<compile_context>
chip_gen: v7x
topology: tpu7x:2x2x1
jax: 0.10.0
libtpu: 0.0.40
codegen_flags: <defaults>
</compile_context>

<pallas_src>
import jax
import jax.numpy as jnp
from jax import lax
from jax.experimental import pallas as pl
from jax.experimental.pallas import tpu as pltpu


def basic_block_kernel(x_ref, w1_ref, w2_ref, b1_ref, b2_ref, out_ref, pad_scr):
    # x_ref   : (Bt, H, W, C)       f32   Bt images (unpadded, NHWC)
    # w1_ref  : (3, 3*C, C)         bf16  conv1 weights (BN1 scale folded), K order (kw, cin)
    # w2_ref  : (3, 3*C, C)         bf16  conv2 weights (BN2 scale folded)
    # b*_ref  : (1, C)              f32   folded BN bias
    # out_ref : (Bt, H, W, C)       f32
    # pad_scr : (Bt, H+2, W+2, C)   bf16  zero-padded activation scratch (reused by both convs)
    Bt, H, W, C = x_ref.shape
    M = Bt * H * W

    # Zero only the 1-px halo (interior writes never dirty it).  Re-zeroed every
    # step because the scratch persists and a megacore shard may never see step 0.
    pad_scr[:, 0:1, :, :] = jnp.zeros((Bt, 1, W + 2, C), pad_scr.dtype)
    pad_scr[:, H + 1:H + 2, :, :] = jnp.zeros((Bt, 1, W + 2, C), pad_scr.dtype)
    pad_scr[:, :, 0:1, :] = jnp.zeros((Bt, H + 2, 1, C), pad_scr.dtype)
    pad_scr[:, :, W + 1:W + 2, :] = jnp.zeros((Bt, H + 2, 1, C), pad_scr.dtype)

    # Interior of conv1's input: the image, cast to bf16 once (matmul input dtype).
    pad_scr[:, 1:H + 1, 1:W + 1, :] = x_ref[...].astype(pad_scr.dtype)

    def conv3x3(w_ref):
        # 3 MXU matmuls of K = 3*C (bf16 inputs), accumulated in f32.
        acc = None
        for kh in range(3):
            cols = [pad_scr[:, kh:kh + H, kw:kw + W, :].reshape(M, C)
                    for kw in range(3)]
            patch = jnp.concatenate(cols, axis=-1)          # (M, 3C) bf16
            part = jnp.dot(patch, w_ref[kh],
                           preferred_element_type=jnp.float32)
            acc = part if acc is None else acc + part
        return acc                                          # (M, C) f32

    # ---- conv1 (BN1 scale folded) -> +bias -> relu ----
    out1 = jnp.maximum(conv3x3(w1_ref) + b1_ref[...], 0.0)

    # ---- re-pad conv1 output into the same scratch (halo still zero) ----
    pad_scr[:, 1:H + 1, 1:W + 1, :] = out1.reshape(Bt, H, W, C).astype(pad_scr.dtype)

    # ---- conv2 (BN2 scale folded) -> +bias -> +identity -> relu ----
    acc2 = conv3x3(w2_ref)
    identity = x_ref[...].reshape(M, C)       # late re-read; input block is resident
    out = jnp.maximum(acc2 + b2_ref[...] + identity, 0.0)
    out_ref[...] = out.reshape(Bt, H, W, C).astype(out_ref.dtype)


def fold_bn(gamma, beta, mean, var, eps=1e-5):
    scale = gamma / jnp.sqrt(var + eps)
    bias = beta - mean * scale
    return scale, bias


def _prep_weight(w_oihw, scale):
    """OIHW -> (kh, 3*cin, cout) with BN scale folded per output channel.

    Fold in f32 first, then cast to bf16 (single rounding).  Row order within
    each kh block is (kw, cin), matching the in-kernel im2col concat order.
    """
    cout, cin, kh, kw = w_oihw.shape
    w = jnp.transpose(w_oihw.astype(jnp.float32), (2, 3, 1, 0))   # (kh, kw, cin, cout)
    w = w * scale.reshape(1, 1, 1, cout)
    return w.reshape(kh, kw * cin, cout).astype(jnp.bfloat16)


def _vmem_limit_bytes():
    # Generation-dependent VMEM budget: ~48 MiB on v7x (64 MiB/TC),
    # ~96 MiB on v6e/v5e (128 MiB).
    cap = 64 * 1024 * 1024
    try:
        info = pltpu.get_tpu_info()
        cap = int(getattr(info, "vmem_capacity_bytes", cap))
    except Exception:
        pass
    return max(32 * 1024 * 1024, (cap * 3) // 4)


def _pick_batch_tile(N, H, W, C, vmem_budget):
    """Smallest divisor Bt of N with Bt*H*W >= 256 (MXU M tile), VMEM permitting."""
    best = 1
    for bt in range(1, N + 1):
        if N % bt:
            continue
        per_step = (4 * bt * H * W * C * 4           # double-buffered f32 in + out blocks
                    + bt * (H + 2) * (W + 2) * C * 2  # bf16 padded scratch
                    + 6 * bt * H * W * C * 4)         # patch + f32 accumulators (rough)
        if per_step > vmem_budget // 2:
            break
        best = bt
        if bt * H * W >= 256:
            break
    return best


def basic_block_forward_nhwc(x_nhwc, params):
    """Fused BasicBlock forward. x_nhwc: (N, H, W, C) float32 -> (N, H, W, C)."""
    w1_oihw, w2_oihw, bn1, bn2 = params
    N, H, W, C = x_nhwc.shape
    Cout = w1_oihw.shape[0]
    # Identity residual path (stride=1, downsample=None) requires matching channels.
    assert C == Cout, "BasicBlock identity path requires inplanes == planes"
    assert w1_oihw.shape == (Cout, C, 3, 3) and w2_oihw.shape == (Cout, Cout, 3, 3)

    s1, b1 = fold_bn(*bn1)
    s2, b2 = fold_bn(*bn2)
    w1 = _prep_weight(w1_oihw, s1)                      # (3, 3*C, C) bf16, scale folded
    w2 = _prep_weight(w2_oihw, s2)
    b1 = b1.reshape(1, Cout).astype(jnp.float32)
    b2 = b2.reshape(1, Cout).astype(jnp.float32)

    vmem_limit = _vmem_limit_bytes()
    Bt = _pick_batch_tile(N, H, W, C, vmem_limit)
    grid = (N // Bt,)

    flops = 2 * 2 * N * H * W * (9 * C) * Cout          # two 3x3 convs
    bytes_accessed = (2 * N * H * W * C * 4             # x in + out
                      + (w1.size + w2.size) * 2         # bf16 weights
                      + 2 * Cout * 4)                   # biases

    out_nhwc = pl.pallas_call(
        basic_block_kernel,
        out_shape=jax.ShapeDtypeStruct((N, H, W, Cout), jnp.float32),
        grid=grid,
        in_specs=[
            pl.BlockSpec((Bt, H, W, C), lambda n: (n, 0, 0, 0)),
            # constant index maps -> weights / biases stay resident in VMEM
            pl.BlockSpec((3, 3 * C, Cout), lambda n: (0, 0, 0)),
            pl.BlockSpec((3, 3 * Cout, Cout), lambda n: (0, 0, 0)),
            pl.BlockSpec((1, Cout), lambda n: (0, 0)),
            pl.BlockSpec((1, Cout), lambda n: (0, 0)),
        ],
        out_specs=pl.BlockSpec((Bt, H, W, Cout), lambda n: (n, 0, 0, 0)),
        scratch_shapes=[pltpu.VMEM((Bt, H + 2, W + 2, C), jnp.bfloat16)],
        compiler_params=pltpu.CompilerParams(
            dimension_semantics=("parallel",),
            vmem_limit_bytes=vmem_limit,
        ),
        cost_estimate=pl.CostEstimate(
            flops=flops, transcendentals=0, bytes_accessed=bytes_accessed),
    )(x_nhwc, w1, w2, b1, b2)
    return out_nhwc


def basic_block_forward(x_nchw, params):
    """PyTorch-layout compatibility wrapper (NCHW in/out).

    Prefer basic_block_forward_nhwc in a real pipeline: these two transposes
    are full-tensor HBM round trips outside the kernel.
    """
    x_nhwc = jnp.transpose(x_nchw, (0, 2, 3, 1)).astype(jnp.float32)
    out_nhwc = basic_block_forward_nhwc(x_nhwc, params)
    return jnp.transpose(out_nhwc, (0, 3, 1, 2))


def reference_forward(x_nchw, params):
    """Pure-JAX (XLA) reference for correctness checking (NCHW, like PyTorch)."""
    w1, w2, bn1, bn2 = params
    dn = lax.conv_dimension_numbers(x_nchw.shape, w1.shape,
                                    ('NCHW', 'OIHW', 'NCHW'))

    def conv(x, w):
        return lax.conv_general_dilated(x, w, (1, 1), ((1, 1), (1, 1)),
                                        dimension_numbers=dn)

    def bn(x, p):
        scale, bias = fold_bn(*p)
        return x * scale[None, :, None, None] + bias[None, :, None, None]

    out = jax.nn.relu(bn(conv(x_nchw, w1), bn1))
    out = bn(conv(out, w2), bn2)
    return jax.nn.relu(out + x_nchw)


if __name__ == "__main__":
    key = jax.random.PRNGKey(0)
    N, C, H, W = 2, 4, 16, 16          # batch, inplanes=planes, spatial
    k_x, k_w1, k_w2, k_g1, k_b1, k_m1, k_v1, k_g2, k_b2, k_m2, k_v2 = \
        jax.random.split(key, 11)

    x_nchw = jax.random.normal(k_x, (N, C, H, W), jnp.float32)

    # conv weights (PyTorch OIHW: (out, in, 3, 3), bias=False)
    w1 = jax.random.normal(k_w1, (C, C, 3, 3), jnp.float32) * 0.2
    w2 = jax.random.normal(k_w2, (C, C, 3, 3), jnp.float32) * 0.2

    # BatchNorm params (inference mode: gamma, beta, running_mean, running_var)
    bn1 = (jax.random.normal(k_g1, (C,)) * 0.1 + 1.0,
           jax.random.normal(k_b1, (C,)) * 0.1,
           jax.random.normal(k_m1, (C,)) * 0.1,
           jax.random.uniform(k_v1, (C,), minval=0.5, maxval=1.5))
    bn2 = (jax.random.normal(k_g2, (C,)) * 0.1 + 1.0,
           jax.random.normal(k_b2, (C,)) * 0.1,
           jax.random.normal(k_m2, (C,)) * 0.1,
           jax.random.uniform(k_v2, (C,), minval=0.5, maxval=1.5))

    params = (w1, w2, bn1, bn2)

    # Production path is NHWC and transpose-free; the transposes below are
    # test plumbing only (to compare against the PyTorch-layout reference).
    x_nhwc = jnp.transpose(x_nchw, (0, 2, 3, 1))
    out_nhwc = jax.block_until_ready(basic_block_forward_nhwc(x_nhwc, params))
    ref_nchw = jax.block_until_ready(reference_forward(x_nchw, params))
    out_nchw = jnp.transpose(out_nhwc, (0, 3, 1, 2))

    assert out_nchw.shape == (N, C, H, W)
    # bf16 matmul inputs (f32 accumulation, BN scale folded in f32) -> loose tolerance.
    err = float(jnp.max(jnp.abs(out_nchw - ref_nchw)))
    assert jnp.allclose(out_nchw, ref_nchw, atol=5e-2, rtol=5e-2), f"max abs err = {err}"

    print("KERNEL_OK")
</pallas_src>

<mosaic_0001>
module attributes {stable_mosaic.version = 11 : i64} {
  func.func @basic_block_kernel(%arg0: i32, %arg1: memref<1x16x16x4xf32, #tpu.memory_space<vmem>>, %arg2: memref<3x12x4xbf16, #tpu.memory_space<vmem>>, %arg3: memref<3x12x4xbf16, #tpu.memory_space<vmem>>, %arg4: memref<1x4xf32, #tpu.memory_space<vmem>>, %arg5: memref<1x4xf32, #tpu.memory_space<vmem>>, %arg6: memref<1x16x16x4xf32, #tpu.memory_space<vmem>>, %arg7: memref<1x18x18x4xbf16, #tpu.memory_space<vmem>>) attributes {dimension_semantics = [#tpu.dimension_semantics<parallel>], iteration_bounds = array<i64: 2>, scalar_prefetch = 0 : i64, scratch_operands = 1 : i64, tpu.core_type = #tpu.core_type<tc>, window_params = [{transform_indices = @transform_0, window_bounds = array<i64: 1, 16, 16, 4>}, {pipeline_mode = #tpu.pipeline_mode<synchronous>, transform_indices = @transform_1, window_bounds = array<i64: 3, 12, 4>}, {pipeline_mode = #tpu.pipeline_mode<synchronous>, transform_indices = @transform_2, window_bounds = array<i64: 3, 12, 4>}, {pipeline_mode = #tpu.pipeline_mode<synchronous>, transform_indices = @transform_3, window_bounds = array<i64: 1, 4>}, {pipeline_mode = #tpu.pipeline_mode<synchronous>, transform_indices = @transform_4, window_bounds = array<i64: 1, 4>}, {transform_indices = @transform_5, window_bounds = array<i64: 1, 16, 16, 4>}]} {
    %cst = arith.constant 0.000000e+00 : bf16
    %0 = vector.broadcast %cst : bf16 to vector<1x1x18x4xbf16>
    %c0 = arith.constant 0 : index
    %c0_0 = arith.constant 0 : index
    %c0_1 = arith.constant 0 : index
    %c0_2 = arith.constant 0 : index
    %1 = vector.load %arg7[%c0, %c0_0, %c0_1, %c0_2] : memref<1x18x18x4xbf16, #tpu.memory_space<vmem>>, vector<1x1x18x4xbf16>
    tpu.vector_store %arg7[%c0, %c0_0, %c0_1, %c0_2], %0 {strides = array<i32>} : memref<1x18x18x4xbf16, #tpu.memory_space<vmem>>, vector<1x1x18x4xbf16>,
    %cst_3 = arith.constant 0.000000e+00 : bf16
    %2 = vector.broadcast %cst_3 : bf16 to vector<1x1x18x4xbf16>
    %c0_4 = arith.constant 0 : index
    %c17 = arith.constant 17 : index
    %c0_5 = arith.constant 0 : index
    %c0_6 = arith.constant 0 : index
    %3 = vector.load %arg7[%c0_4, %c17, %c0_5, %c0_6] : memref<1x18x18x4xbf16, #tpu.memory_space<vmem>>, vector<1x1x18x4xbf16>
    tpu.vector_store %arg7[%c0_4, %c17, %c0_5, %c0_6], %2 {strides = array<i32>} : memref<1x18x18x4xbf16, #tpu.memory_space<vmem>>, vector<1x1x18x4xbf16>,
    %cst_7 = arith.constant 0.000000e+00 : bf16
    %4 = vector.broadcast %cst_7 : bf16 to vector<1x18x1x4xbf16>
    %c0_8 = arith.constant 0 : index
    %c0_9 = arith.constant 0 : index
    %c0_10 = arith.constant 0 : index
    %c0_11 = arith.constant 0 : index
    %5 = vector.load %arg7[%c0_8, %c0_9, %c0_10, %c0_11] : memref<1x18x18x4xbf16, #tpu.memory_space<vmem>>, vector<1x18x1x4xbf16>
    tpu.vector_store %arg7[%c0_8, %c0_9, %c0_10, %c0_11], %4 {strides = array<i32>} : memref<1x18x18x4xbf16, #tpu.memory_space<vmem>>, vector<1x18x1x4xbf16>,
    %cst_12 = arith.constant 0.000000e+00 : bf16
    %6 = vector.broadcast %cst_12 : bf16 to vector<1x18x1x4xbf16>
    %c0_13 = arith.constant 0 : index
    %c0_14 = arith.constant 0 : index
    %c17_15 = arith.constant 17 : index
    %c0_16 = arith.constant 0 : index
    %7 = vector.load %arg7[%c0_13, %c0_14, %c17_15, %c0_16] : memref<1x18x18x4xbf16, #tpu.memory_space<vmem>>, vector<1x18x1x4xbf16>
    tpu.vector_store %arg7[%c0_13, %c0_14, %c17_15, %c0_16], %6 {strides = array<i32>} : memref<1x18x18x4xbf16, #tpu.memory_space<vmem>>, vector<1x18x1x4xbf16>,
    %c0_17 = arith.constant 0 : index
    %c0_18 = arith.constant 0 : index
    %c0_19 = arith.constant 0 : index
    %c0_20 = arith.constant 0 : index
    %8 = vector.load %arg1[%c0_17, %c0_18, %c0_19, %c0_20] : memref<1x16x16x4xf32, #tpu.memory_space<vmem>>, vector<1x16x16x4xf32>
    %9 = arith.truncf %8 : vector<1x16x16x4xf32> to vector<1x16x16x4xbf16>
    %c0_21 = arith.constant 0 : index
    %c1 = arith.constant 1 : index
    %c1_22 = arith.constant 1 : index
    %c0_23 = arith.constant 0 : index
    %10 = vector.load %arg7[%c0_21, %c1, %c1_22, %c0_23] : memref<1x18x18x4xbf16, #tpu.memory_space<vmem>>, vector<1x16x16x4xbf16>
    tpu.vector_store %arg7[%c0_21, %c1, %c1_22, %c0_23], %9 {strides = array<i32>} : memref<1x18x18x4xbf16, #tpu.memory_space<vmem>>, vector<1x16x16x4xbf16>,
    %c0_24 = arith.constant 0 : index
    %c0_25 = arith.constant 0 : index
    %c0_26 = arith.constant 0 : index
    %c0_27 = arith.constant 0 : index
    %11 = vector.load %arg7[%c0_24, %c0_25, %c0_26, %c0_27] : memref<1x18x18x4xbf16, #tpu.memory_space<vmem>>, vector<1x16x16x4xbf16>
    %12 = vector.shape_cast %11 : vector<1x16x16x4xbf16> to vector<256x4xbf16>
    %c0_28 = arith.constant 0 : index
    %c0_29 = arith.constant 0 : index
    %c1_30 = arith.constant 1 : index
    %c0_31 = arith.constant 0 : index
    %13 = vector.load %arg7[%c0_28, %c0_29, %c1_30, %c0_31] : memref<1x18x18x4xbf16, #tpu.memory_space<vmem>>, vector<1x16x16x4xbf16>
    %14 = vector.shape_cast %13 : vector<1x16x16x4xbf16> to vector<256x4xbf16>
    %c0_32 = arith.constant 0 : index
    %c0_33 = arith.constant 0 : index
    %c2 = arith.constant 2 : index
    %c0_34 = arith.constant 0 : index
    %15 = vector.load %arg7[%c0_32, %c0_33, %c2, %c0_34] : memref<1x18x18x4xbf16, #tpu.memory_space<vmem>>, vector<1x16x16x4xbf16>
    %16 = vector.shape_cast %15 : vector<1x16x16x4xbf16> to vector<256x4xbf16>
    %17 = tpu.concatenate %12, %14, %16 in 1 : vector<256x4xbf16>, vector<256x4xbf16>, vector<256x4xbf16> -> vector<256x12xbf16>
    %c0_35 = arith.constant 0 : index
    %c0_36 = arith.constant 0 : index
    %c0_37 = arith.constant 0 : index
    %18 = vector.load %arg2[%c0_35, %c0_36, %c0_37] : memref<3x12x4xbf16, #tpu.memory_space<vmem>>, vector<1x12x4xbf16>
    %19 = vector.shape_cast %18 : vector<1x12x4xbf16> to vector<12x4xbf16>
    %cst_38 = arith.constant dense<0.000000e+00> : vector<256x4xf32>
    %20 = tpu.matmul %17, %19, %cst_38 {dimension_numbers = #tpu.dot_dimension_numbers<[1], [0], [0], [1], [0, 0, 1, 1], [], []>} : vector<256x12xbf16>, vector<12x4xbf16>, vector<256x4xf32> -> vector<256x4xf32>
    %c0_39 = arith.constant 0 : index
    %c1_40 = arith.constant 1 : index
    %c0_41 = arith.constant 0 : index
    %c0_42 = arith.constant 0 : index
    %21 = vector.load %arg7[%c0_39, %c1_40, %c0_41, %c0_42] : memref<1x18x18x4xbf16, #tpu.memory_space<vmem>>, vector<1x16x16x4xbf16>
    %22 = vector.shape_cast %21 : vector<1x16x16x4xbf16> to vector<256x4xbf16>
    %c0_43 = arith.constant 0 : index
    %c1_44 = arith.constant 1 : index
    %c1_45 = arith.constant 1 : index
    %c0_46 = arith.constant 0 : index
    %23 = vector.load %arg7[%c0_43, %c1_44, %c1_45, %c0_46] : memref<1x18x18x4xbf16, #tpu.memory_space<vmem>>, vector<1x16x16x4xbf16>
    %24 = vector.shape_cast %23 : vector<1x16x16x4xbf16> to vector<256x4xbf16>
    %c0_47 = arith.constant 0 : index
    %c1_48 = arith.constant 1 : index
    %c2_49 = arith.constant 2 : index
    %c0_50 = arith.constant 0 : index
    %25 = vector.load %arg7[%c0_47, %c1_48, %c2_49, %c0_50] : memref<1x18x18x4xbf16, #tpu.memory_space<vmem>>, vector<1x16x16x4xbf16>
    %26 = vector.shape_cast %25 : vector<1x16x16x4xbf16> to vector<256x4xbf16>
    %27 = tpu.concatenate %22, %24, %26 in 1 : vector<256x4xbf16>, vector<256x4xbf16>, vector<256x4xbf16> -> vector<256x12xbf16>
    %c1_51 = arith.constant 1 : index
    %c0_52 = arith.constant 0 : index
    %c0_53 = arith.constant 0 : index
    %28 = vector.load %arg2[%c1_51, %c0_52, %c0_53] : memref<3x12x4xbf16, #tpu.memory_space<vmem>>, vector<1x12x4xbf16>
    %29 = vector.shape_cast %28 : vector<1x12x4xbf16> to vector<12x4xbf16>
    %cst_54 = arith.constant dense<0.000000e+00> : vector<256x4xf32>
    %30 = tpu.matmul %27, %29, %cst_54 {dimension_numbers = #tpu.dot_dimension_numbers<[1], [0], [0], [1], [0, 0, 1, 1], [], []>} : vector<256x12xbf16>, vector<12x4xbf16>, vector<256x4xf32> -> vector<256x4xf32>
    %31 = arith.addf %20, %30 : vector<256x4xf32>
    %c0_55 = arith.constant 0 : index
    %c2_56 = arith.constant 2 : index
    %c0_57 = arith.constant 0 : index
    %c0_58 = arith.constant 0 : index
    %32 = vector.load %arg7[%c0_55, %c2_56, %c0_57, %c0_58] : memref<1x18x18x4xbf16, #tpu.memory_space<vmem>>, vector<1x16x16x4xbf16>
    %33 = vector.shape_cast %32 : vector<1x16x16x4xbf16> to vector<256x4xbf16>
    %c0_59 = arith.constant 0 : index
    %c2_60 = arith.constant 2 : index
    %c1_61 = arith.constant 1 : index
    %c0_62 = arith.constant 0 : index
    %34 = vector.load %arg7[%c0_59, %c2_60, %c1_61, %c0_62] : memref<1x18x18x4xbf16, #tpu.memory_space<vmem>>, vector<1x16x16x4xbf16>
    %35 = vector.shape_cast %34 : vector<1x16x16x4xbf16> to vector<256x4xbf16>
    %c0_63 = arith.constant 0 : index
    %c2_64 = arith.constant 2 : index
    %c2_65 = arith.constant 2 : index
    %c0_66 = arith.constant 0 : index
    %36 = vector.load %arg7[%c0_63, %c2_64, %c2_65, %c0_66] : memref<1x18x18x4xbf16, #tpu.memory_space<vmem>>, vector<1x16x16x4xbf16>
    %37 = vector.shape_cast %36 : vector<1x16x16x4xbf16> to vector<256x4xbf16>
    %38 = tpu.concatenate %33, %35, %37 in 1 : vector<256x4xbf16>, vector<256x4xbf16>, vector<256x4xbf16> -> vector<256x12xbf16>
    %c2_67 = arith.constant 2 : index
    %c0_68 = arith.constant 0 : index
    %c0_69 = arith.constant 0 : index
    %39 = vector.load %arg2[%c2_67, %c0_68, %c0_69] : memref<3x12x4xbf16, #tpu.memory_space<vmem>>, vector<1x12x4xbf16>
    %40 = vector.shape_cast %39 : vector<1x12x4xbf16> to vector<12x4xbf16>
    %cst_70 = arith.constant dense<0.000000e+00> : vector<256x4xf32>
    %41 = tpu.matmul %38, %40, %cst_70 {dimension_numbers = #tpu.dot_dimension_numbers<[1], [0], [0], [1], [0, 0, 1, 1], [], []>} : vector<256x12xbf16>, vector<12x4xbf16>, vector<256x4xf32> -> vector<256x4xf32>
    %42 = arith.addf %31, %41 : vector<256x4xf32>
    %c0_71 = arith.constant 0 : index
    %c0_72 = arith.constant 0 : index
    %43 = vector.load %arg4[%c0_71, %c0_72] : memref<1x4xf32, #tpu.memory_space<vmem>>, vector<1x4xf32>
    %44 = vector.broadcast %43 : vector<1x4xf32> to vector<256x4xf32>
    %45 = arith.addf %42, %44 : vector<256x4xf32>
    %cst_73 = arith.constant 0.000000e+00 : f32
    %46 = vector.broadcast %cst_73 : f32 to vector<256x4xf32>
    %47 = arith.maximumf %45, %46 : vector<256x4xf32>
    %48 = vector.shape_cast %47 : vector<256x4xf32> to vector<1x16x16x4xf32>
    %49 = arith.truncf %48 : vector<1x16x16x4xf32> to vector<1x16x16x4xbf16>
    %c0_74 = arith.constant 0 : index
    %c1_75 = arith.constant 1 : index
    %c1_76 = arith.constant 1 : index
    %c0_77 = arith.constant 0 : index
    %50 = vector.load %arg7[%c0_74, %c1_75, %c1_76, %c0_77] : memref<1x18x18x4xbf16, #tpu.memory_space<vmem>>, vector<1x16x16x4xbf16>
    tpu.vector_store %arg7[%c0_74, %c1_75, %c1_76, %c0_77], %49 {strides = array<i32>} : memref<1x18x18x4xbf16, #tpu.memory_space<vmem>>, vector<1x16x16x4xbf16>,
    %c0_78 = arith.constant 0 : index
    %c0_79 = arith.constant 0 : index
    %c0_80 = arith.constant 0 : index
    %c0_81 = arith.constant 0 : index
    %51 = vector.load %arg7[%c0_78, %c0_79, %c0_80, %c0_81] : memref<1x18x18x4xbf16, #tpu.memory_space<vmem>>, vector<1x16x16x4xbf16>
    %52 = vector.shape_cast %51 : vector<1x16x16x4xbf16> to vector<256x4xbf16>
    %c0_82 = arith.constant 0 : index
    %c0_83 = arith.constant 0 : index
    %c1_84 = arith.constant 1 : index
    %c0_85 = arith.constant 0 : index
    %53 = vector.load %arg7[%c0_82, %c0_83, %c1_84, %c0_85] : memref<1x18x18x4xbf16, #tpu.memory_space<vmem>>, vector<1x16x16x4xbf16>
    %54 = vector.shape_cast %53 : vector<1x16x16x4xbf16> to vector<256x4xbf16>
    %c0_86 = arith.constant 0 : index
    %c0_87 = arith.constant 0 : index
    %c2_88 = arith.constant 2 : index
    %c0_89 = arith.constant 0 : index
    %55 = vector.load %arg7[%c0_86, %c0_87, %c2_88, %c0_89] : memref<1x18x18x4xbf16, #tpu.memory_space<vmem>>, vector<1x16x16x4xbf16>
    %56 = vector.shape_cast %55 : vector<1x16x16x4xbf16> to vector<256x4xbf16>
    %57 = tpu.concatenate %52, %54, %56 in 1 : vector<256x4xbf16>, vector<256x4xbf16>, vector<256x4xbf16> -> vector<256x12xbf16>
    %c0_90 = arith.constant 0 : index
    %c0_91 = arith.constant 0 : index
    %c0_92 = arith.constant 0 : index
    %58 = vector.load %arg3[%c0_90, %c0_91, %c0_92] : memref<3x12x4xbf16, #tpu.memory_space<vmem>>, vector<1x12x4xbf16>
    %59 = vector.shape_cast %58 : vector<1x12x4xbf16> to vector<12x4xbf16>
    %cst_93 = arith.constant dense<0.000000e+00> : vector<256x4xf32>
    %60 = tpu.matmul %57, %59, %cst_93 {dimension_numbers = #tpu.dot_dimension_numbers<[1], [0], [0], [1], [0, 0, 1, 1], [], []>} : vector<256x12xbf16>, vector<12x4xbf16>, vector<256x4xf32> -> vector<256x4xf32>
    %c0_94 = arith.constant 0 : index
    %c1_95 = arith.constant 1 : index
    %c0_96 = arith.constant 0 : index
    %c0_97 = arith.constant 0 : index
    %61 = vector.load %arg7[%c0_94, %c1_95, %c0_96, %c0_97] : memref<1x18x18x4xbf16, #tpu.memory_space<vmem>>, vector<1x16x16x4xbf16>
    %62 = vector.shape_cast %61 : vector<1x16x16x4xbf16> to vector<256x4xbf16>
    %c0_98 = arith.constant 0 : index
    %c1_99 = arith.constant 1 : index
    %c1_100 = arith.constant 1 : index
    %c0_101 = arith.constant 0 : index
    %63 = vector.load %arg7[%c0_98, %c1_99, %c1_100, %c0_101] : memref<1x18x18x4xbf16, #tpu.memory_space<vmem>>, vector<1x16x16x4xbf16>
    %64 = vector.shape_cast %63 : vector<1x16x16x4xbf16> to vector<256x4xbf16>
    %c0_102 = arith.constant 0 : index
    %c1_103 = arith.constant 1 : index
    %c2_104 = arith.constant 2 : index
    %c0_105 = arith.constant 0 : index
    %65 = vector.load %arg7[%c0_102, %c1_103, %c2_104, %c0_105] : memref<1x18x18x4xbf16, #tpu.memory_space<vmem>>, vector<1x16x16x4xbf16>
    %66 = vector.shape_cast %65 : vector<1x16x16x4xbf16> to vector<256x4xbf16>
    %67 = tpu.concatenate %62, %64, %66 in 1 : vector<256x4xbf16>, vector<256x4xbf16>, vector<256x4xbf16> -> vector<256x12xbf16>
    %c1_106 = arith.constant 1 : index
    %c0_107 = arith.constant 0 : index
    %c0_108 = arith.constant 0 : index
    %68 = vector.load %arg3[%c1_106, %c0_107, %c0_108] : memref<3x12x4xbf16, #tpu.memory_space<vmem>>, vector<1x12x4xbf16>
    %69 = vector.shape_cast %68 : vector<1x12x4xbf16> to vector<12x4xbf16>
    %cst_109 = arith.constant dense<0.000000e+00> : vector<256x4xf32>
    %70 = tpu.matmul %67, %69, %cst_109 {dimension_numbers = #tpu.dot_dimension_numbers<[1], [0], [0], [1], [0, 0, 1, 1], [], []>} : vector<256x12xbf16>, vector<12x4xbf16>, vector<256x4xf32> -> vector<256x4xf32>
    %71 = arith.addf %60, %70 : vector<256x4xf32>
    %c0_110 = arith.constant 0 : index
    %c2_111 = arith.constant 2 : index
    %c0_112 = arith.constant 0 : index
    %c0_113 = arith.constant 0 : index
    %72 = vector.load %arg7[%c0_110, %c2_111, %c0_112, %c0_113] : memref<1x18x18x4xbf16, #tpu.memory_space<vmem>>, vector<1x16x16x4xbf16>
    %73 = vector.shape_cast %72 : vector<1x16x16x4xbf16> to vector<256x4xbf16>
    %c0_114 = arith.constant 0 : index
    %c2_115 = arith.constant 2 : index
    %c1_116 = arith.constant 1 : index
    %c0_117 = arith.constant 0 : index
    %74 = vector.load %arg7[%c0_114, %c2_115, %c1_116, %c0_117] : memref<1x18x18x4xbf16, #tpu.memory_space<vmem>>, vector<1x16x16x4xbf16>
    %75 = vector.shape_cast %74 : vector<1x16x16x4xbf16> to vector<256x4xbf16>
    %c0_118 = arith.constant 0 : index
    %c2_119 = arith.constant 2 : index
    %c2_120 = arith.constant 2 : index
    %c0_121 = arith.constant 0 : index
    %76 = vector.load %arg7[%c0_118, %c2_119, %c2_120, %c0_121] : memref<1x18x18x4xbf16, #tpu.memory_space<vmem>>, vector<1x16x16x4xbf16>
    %77 = vector.shape_cast %76 : vector<1x16x16x4xbf16> to vector<256x4xbf16>
    %78 = tpu.concatenate %73, %75, %77 in 1 : vector<256x4xbf16>, vector<256x4xbf16>, vector<256x4xbf16> -> vector<256x12xbf16>
    %c2_122 = arith.constant 2 : index
    %c0_123 = arith.constant 0 : index
    %c0_124 = arith.constant 0 : index
    %79 = vector.load %arg3[%c2_122, %c0_123, %c0_124] : memref<3x12x4xbf16, #tpu.memory_space<vmem>>, vector<1x12x4xbf16>
    %80 = vector.shape_cast %79 : vector<1x12x4xbf16> to vector<12x4xbf16>
    %cst_125 = arith.constant dense<0.000000e+00> : vector<256x4xf32>
    %81 = tpu.matmul %78, %80, %cst_125 {dimension_numbers = #tpu.dot_dimension_numbers<[1], [0], [0], [1], [0, 0, 1, 1], [], []>} : vector<256x12xbf16>, vector<12x4xbf16>, vector<256x4xf32> -> vector<256x4xf32>
    %82 = arith.addf %71, %81 : vector<256x4xf32>
    %c0_126 = arith.constant 0 : index
    %c0_127 = arith.constant 0 : index
    %c0_128 = arith.constant 0 : index
    %c0_129 = arith.constant 0 : index
    %83 = vector.load %arg1[%c0_126, %c0_127, %c0_128, %c0_129] : memref<1x16x16x4xf32, #tpu.memory_space<vmem>>, vector<1x16x16x4xf32>
    %84 = vector.shape_cast %83 : vector<1x16x16x4xf32> to vector<256x4xf32>
    %c0_130 = arith.constant 0 : index
    %c0_131 = arith.constant 0 : index
    %85 = vector.load %arg5[%c0_130, %c0_131] : memref<1x4xf32, #tpu.memory_space<vmem>>, vector<1x4xf32>
    %86 = vector.broadcast %85 : vector<1x4xf32> to vector<256x4xf32>
    %87 = arith.addf %82, %86 : vector<256x4xf32>
    %88 = arith.addf %87, %84 : vector<256x4xf32>
    %cst_132 = arith.constant 0.000000e+00 : f32
    %89 = vector.broadcast %cst_132 : f32 to vector<256x4xf32>
    %90 = arith.maximumf %88, %89 : vector<256x4xf32>
    %91 = vector.shape_cast %90 : vector<256x4xf32> to vector<1x16x16x4xf32>
    %c0_133 = arith.constant 0 : index
    %c0_134 = arith.constant 0 : index
    %c0_135 = arith.constant 0 : index
    %c0_136 = arith.constant 0 : index
    %92 = vector.load %arg6[%c0_133, %c0_134, %c0_135, %c0_136] : memref<1x16x16x4xf32, #tpu.memory_space<vmem>>, vector<1x16x16x4xf32>
    tpu.vector_store %arg6[%c0_133, %c0_134, %c0_135, %c0_136], %91 {strides = array<i32>} : memref<1x16x16x4xf32, #tpu.memory_space<vmem>>, vector<1x16x16x4xf32>,
    return
  }
  func.func @transform_0(%arg0: i32) -> (i32, i32, i32, i32) {
    %c0_i32 = arith.constant 0 : i32
    %c0_i32_0 = arith.constant 0 : i32
    %c0_i32_1 = arith.constant 0 : i32
    %c0_i32_2 = arith.constant 0 : i32
    return %arg0, %c0_i32, %c0_i32_0, %c0_i32_1 : i32, i32, i32, i32
  }
  func.func @transform_1(%arg0: i32) -> (i32, i32, i32) {
    %c0_i32 = arith.constant 0 : i32
    %c0_i32_0 = arith.constant 0 : i32
    %c0_i32_1 = arith.constant 0 : i32
    %c0_i32_2 = arith.constant 0 : i32
    return %c0_i32, %c0_i32_0, %c0_i32_1 : i32, i32, i32
  }
  func.func @transform_2(%arg0: i32) -> (i32, i32, i32) {
    %c0_i32 = arith.constant 0 : i32
    %c0_i32_0 = arith.constant 0 : i32
    %c0_i32_1 = arith.constant 0 : i32
    %c0_i32_2 = arith.constant 0 : i32
    return %c0_i32, %c0_i32_0, %c0_i32_1 : i32, i32, i32
  }
  func.func @transform_3(%arg0: i32) -> (i32, i32) {
    %c0_i32 = arith.constant 0 : i32
    %c0_i32_0 = arith.constant 0 : i32
    %c0_i32_1 = arith.constant 0 : i32
    return %c0_i32, %c0_i32_0 : i32, i32
  }
  func.func @transform_4(%arg0: i32) -> (i32, i32) {
    %c0_i32 = arith.constant 0 : i32
    %c0_i32_0 = arith.constant 0 : i32
    %c0_i32_1 = arith.constant 0 : i32
    return %c0_i32, %c0_i32_0 : i32, i32
  }
  func.func @transform_5(%arg0: i32) -> (i32, i32, i32, i32) {
    %c0_i32 = arith.constant 0 : i32
    %c0_i32_0 = arith.constant 0 : i32
    %c0_i32_1 = arith.constant 0 : i32
    %c0_i32_2 = arith.constant 0 : i32
    return %arg0, %c0_i32, %c0_i32_0, %c0_i32_1 : i32, i32, i32, i32
  }
}

</mosaic_0001>

<bundles_post_ra>
// kernel: tpu_custom_call.1
= control target key start
LH: loop header
LB: loop body
LE: loop exit
PB: predicated region body
PF: predicated region fallthrough
CT: control target
= control target key end

     0   :  { %s9865_s18 = smov 0   ;;  %s12956_s0 = inlined_call_operand.vmem [shape: f32[2,16,16,4], index: 0, kind: input, shape index: {}]   ;;  %s12957_s1 = inlined_call_operand.vmem [shape: bf16[3,12,4], index: 1, kind: input, shape index: {}]   ;;  %s12958_s2 = inlined_call_operand.vmem [shape: bf16[3,12,4], index: 2, kind: input, shape index: {}]   ;;  %s12959_s3 = inlined_call_operand.vmem [shape: f32[1,4], index: 3, kind: input, shape index: {}]   ;;  %s12960_s4 = inlined_call_operand.vmem [shape: f32[1,4], index: 4, kind: input, shape index: {}]   ;;  %s12961_s5 = inlined_call_operand.vmem [shape: f32[2,16,16,4], index: 5, kind: output, shape index: {}]  }
   0x1 LB: > { %s8502_s19 = sadd.s32 4294967295, %s9830_s18   ;;  %p8506_p0 = scmp.ge.s32.totalorder %s9830_s18, 1  ;;  %s9830_s18 = sphi %s9865_s18, %s15_s18  }
   0x2   : > { %p187_p1 = scmp.lt.s32.totalorder %s9830_s18, 3 }
   0x4   : > { %p188_p2 = pnand %p8506_p0, %p187_p1 }
   0x6   : > { %191 = sbr.rel (%p188_p2) target bundleno = 1397 (0x575), region = 40 }
   0xd   : > { %p215_p3 = scmp.lt.s32.totalorder %s8502_s19, 1  ;;  %vm229_vm0 = vcmask 24576   ;;  %vm236_vm1 = vsmask.f32 256  ;;  %v12976_v0 = vmov 0  ;;  %vm226_vm5 = vcmask 27648  }
   0xe   : > { %vm9875_vm2 = vmand %vm229_vm0, %vm236_vm1  ;;  %v241_v1 = vld [vmem:[#allocation2 + $0xc] sm:$0x1]  ;;  %vm292_vm3 = vsmask.f32 7938  ;;  %v297_v2 = vld [vmem:[#allocation2 + $0x14] sm:$0x1] }
   0xf   : > { %v12977_v0 = vsel %vm9875_vm2, 4294967295, %v12976_v0  ;;  %s13011_s19 = smov (!%p215_p3, %s8502_s19), 1  ;;  %v242_v3 = vsel %vm9875_vm2, 0, %v241_v1  ;;  %vm9885_vm4 = vmand %vm229_vm0, %vm292_vm3  ;;  %v244_v6 = vld [vmem:[#allocation2 + $0x18] sm:$0x1]  ;;  %v12981_v34 = vmov 0 }
  0x10   : > { %12978 = vst [vmem:[#allocation3_spill] sm:$0xff] %v12977_v0  ;;  %243 = vst [vmem:[#allocation2 + $0xc] sm:$0x1] %v242_v3  ;;  %v298_v5 = vsel %vm9885_vm4, 0, %v297_v2  ;;  %s9073_s20 = sshll.u32 %s13011_s19, 8  ;;  %v245_v8 = vsel %vm9875_vm2, 0, %v244_v6 }
  0x11   : > { %299 = vst [vmem:[#allocation2 + $0x14] sm:$0x1] %v298_v5  ;;  %v300_v7 = vld [vmem:[#allocation2 + $0x20] sm:$0x1]  ;;  %s9897_s23 = scalar_lea.vmem %s12956_s0, %s9073_s20  ;;  %v250_v10 = vld [vmem:[#allocation2 + $0x30] sm:$0x1]  ;;  %vm9920_vm10 = vmand %vm226_vm5, %vm292_vm3  ;;  %s12830_s6 = scalar_lea.vmem %s12961_s5, %s9073_s20 }
  0x12   : > { %v301_v9 = vsel %vm9885_vm4, 0, %v300_v7  ;;  %v306_v11 = vld [vmem:[#allocation2 + $0x38] sm:$0x1]  ;;  %v348_v12 = vld [vmem:[%s9897_s23] sm:$0xff]  ;;  %v349_v13 = vld [vmem:[%s9897_s23 + $0x8] sm:$0xff]  ;;  %v251_v14 = vsel %vm9875_vm2, 0, %v250_v10 }
  0x13   : > { %246 = vst [vmem:[#allocation2 + $0x18] sm:$0x1] %v245_v8  ;;  %302 = vst [vmem:[#allocation2 + $0x20] sm:$0x1] %v301_v9  ;;  %v307_v15 = vsel %vm9885_vm4, 0, %v306_v11  ;;  %v9075_v16 = vpack.c.bf16 %v348_v12, %v348_v12  ;;  %v9076_v17 = vpack.c.bf16 %v349_v13, %v349_v13  ;;  %v350_v18 = vld [vmem:[%s9897_s23 + $0x10] sm:$0xff] }
  0x14   : > { %v351_v19 = vld [vmem:[%s9897_s23 + $0x18] sm:$0xff]  ;;  %252 = vst [vmem:[#allocation2 + $0x30] sm:$0x1] %v251_v14  ;;  %308 = vst [vmem:[#allocation2 + $0x38] sm:$0x1] %v307_v15  ;;  %v354_v20 = vld [vmem:[%s9897_s23 + $0x30] sm:$0xff]  ;;  %v9077_v21 = vpack.c.bf16 %v350_v18, %v350_v18 }
  0x15   : > { %vm476_vm6 = vsmask.f32 4368  ;;  %v9078_v22 = vpack.c.bf16 %v351_v19, %v351_v19  ;;  %v355_v23 = vld [vmem:[%s9897_s23 + $0x38] sm:$0xff]  ;;  %v9081_v24 = vpack.c.bf16 %v354_v20, %v354_v20  ;;  %v479_v25 = vshrl.u32 %v9075_v16, 16  ;;  %v247_v29 = vld [vmem:[#allocation2 + $0x24] sm:$0x1] }
  0x16   : > { %v482_v26 = vshll.u32 %v9075_v16, 16  ;;  %v487_v27 = vshrl.u32 %v9076_v17, 16  ;;  %v490_v28 = vshll.u32 %v9076_v17, 16  ;;  %v496_v30 = vshrl.u32 %v9077_v21, 16  ;;  %vm9914_vm7 = vmor %vm236_vm1, %vm476_vm6  ;;  %v303_v56 = vld [vmem:[#allocation2 + $0x2c] sm:$0x1] }
  0x17   : > { %v499_v31 = vshll.u32 %v9077_v21, 16  ;;  %v504_v32 = vshrl.u32 %v9078_v22, 16  ;;  %v507_v33 = vshll.u32 %v9078_v22, 16  ;;  %v12982_v34 = vsel %vm9914_vm7, 4294967295, %v12981_v34  ;;  %v801_v37 = vld [vmem:[#allocation2 + $0xc] sm:$0xf] }
  0x18   : > { %12983 = vst [vmem:[#allocation4_spill] sm:$0xff] %v12982_v34  ;;  %v481_v35 = vrot.slane %v479_v25, 7  ;;  %v489_v36 = vrot.slane %v487_v27, 7  ;;  %vm1412_vm8 = vcmask 1042432   ;;  %vm1413_vm9 = vcmask 1046532   ;;  %v352_v57 = vld [vmem:[%s9897_s23 + $0x20] sm:$0xff] }
  0x19   : > { %v9082_v38 = vpack.c.bf16 %v355_v23, %v355_v23  ;;  %v530_v39 = vshrl.u32 %v9081_v24, 16  ;;  %v12984_v40 = vmov 0  ;;  %v805_v41 = vld [vmem:[#allocation2 + $0x14] sm:$0x1]  ;;  %v498_v42 = vrot.slane %v496_v30, 7  ;;  %v353_v62 = vld [vmem:[%s9897_s23 + $0x28] sm:$0xff]  ;;  %vm9968_vm13 = vmor %vm1412_vm8, %vm1413_vm9 }
  0x1a   : > { %v12985_v40 = vsel %vm9920_vm10, 4294967295, %v12984_v40  ;;  %v506_v43 = vrot.slane %v504_v32, 7  ;;  %v533_v44 = vshll.u32 %v9081_v24, 16  ;;  %v248_v45 = vsel %vm9875_vm2, 0, %v247_v29  ;;  %v808_v50 = vld [vmem:[#allocation2 + $0x18] sm:$0xf] }
  0x1b   : > { %12986 = vst [vmem:[#allocation5_spill] sm:$0xff] %v12985_v40  ;;  %v484_v46 = vor.u32 %v482_v26, %v481_v35  ;;  %v485_v47 = vrot.slane %v481_v35, 4  ;;  %v492_v48 = vor.u32 %v490_v28, %v489_v36  ;;  %v494_v49 = vrot.slane %v489_v36, 4  ;;  %v812_v51 = vld [vmem:[#allocation2 + $0x20] sm:$0x1]  ;;  %v358_v1 = vld [vmem:[%s9897_s23 + $0x50] sm:$0xff] }
  0x1c   : > { %249 = vst [vmem:[#allocation2 + $0x24] sm:$0x1] %v248_v45  ;;  %v501_v52 = vor.u32 %v499_v31, %v498_v42  ;;  %v502_v53 = vrot.slane %v498_v42, 4  ;;  %v509_v54 = vor.u32 %v507_v33, %v506_v43  ;;  %v511_v55 = vrot.slane %v506_v43, 4  ;;  %v256_v63 = vld [vmem:[#allocation2 + $0x48] sm:$0x1] }
  0x1d   : > { %v493_v58 = vsel %vm9914_vm7, %v485_v47, %v492_v48  ;;  %v802_v59 = vsel %vm9920_vm10, %v484_v46, %v801_v37  ;;  %v806_v60 = vsel %vm9875_vm2, %v494_v49, %v805_v41  ;;  %v532_v61 = vrot.slane %v530_v39, 7  ;;  %v822_v7 = vld [vmem:[#allocation2 + $0x30] sm:$0xf]  ;;  %v359_v9 = vld [vmem:[%s9897_s23 + $0x58] sm:$0xff]  ;;  %v356_v23 = vld [vmem:[%s9897_s23 + $0x40] sm:$0xff]  ;;  %s9832_s24 = smov 8  }
  0x1e   : > { %803 = vst [vmem:[#allocation2 + $0xc] sm:$0xf] %v802_v59  ;;  %804 = vst.msk [vmem:[#allocation2 + $0x10] sm:$0xf] %vm226_vm5, %v493_v58  ;;  %v510_v2 = vsel %vm9914_vm7, %v502_v53, %v509_v54  ;;  %v809_v3 = vsel %vm9920_vm10, %v501_v52, %v808_v50  ;;  %v813_v5 = vsel %vm9875_vm2, %v511_v55, %v812_v51  ;;  %v538_v6 = vshrl.u32 %v9082_v38, 16  ;;  %v357_v28 = vld [vmem:[%s9897_s23 + $0x48] sm:$0xff] }
  0x1f   : > { %807 = vst [vmem:[#allocation2 + $0x14] sm:$0x1] %v806_v60  ;;  %v312_v8 = vld [vmem:[#allocation2 + $0x50] sm:$0x1]  ;;  %810 = vst [vmem:[#allocation2 + $0x18] sm:$0xf] %v809_v3  ;;  %v535_v10 = vor.u32 %v533_v44, %v532_v61  ;;  %v9079_v15 = vpack.c.bf16 %v352_v57, %v352_v57  ;;  %v9946_v16 = vpack.c.bf16 %v353_v62, %v353_v62 }
  0x20   : > { %811 = vst.msk [vmem:[#allocation2 + $0x1c] sm:$0xf] %vm226_vm5, %v510_v2  ;;  %814 = vst [vmem:[#allocation2 + $0x20] sm:$0x1] %v813_v5  ;;  %v536_v11 = vrot.slane %v532_v61, 4  ;;  %v541_v12 = vshll.u32 %v9082_v38, 16  ;;  %v9954_v21 = vpack.c.bf16 %v358_v1, %v358_v1  ;;  %v9956_v22 = vpack.c.bf16 %v359_v9, %v359_v9 }
  0x21   : > { %v304_v13 = vsel %vm9885_vm4, 0, %v303_v56  ;;  %v540_v14 = vrot.slane %v538_v6, 7  ;;  %v257_v17 = vsel %vm9875_vm2, 0, %v256_v63  ;;  %vm961_vm11 = vsmask.f32 3328  ;;  %v362_v29 = vld [vmem:[%s9897_s23 + $0x70] sm:$0xff] }
  0x22   : > { %305 = vst [vmem:[#allocation2 + $0x2c] sm:$0x1] %v304_v13  ;;  %vm962_vm12 = vsmask.f32 7440  ;;  %v823_v18 = vsel %vm9920_vm10, %v535_v10, %v822_v7  ;;  %v826_v19 = vld [vmem:[#allocation2 + $0x38] sm:$0x1]  ;;  %v9980_v45 = vpack.c.bf16 %v356_v23, %v356_v23  ;;  %v9982_v46 = vpack.c.bf16 %v357_v28, %v357_v28 }
  0x23   : > { %258 = vst [vmem:[#allocation2 + $0x48] sm:$0x1] %v257_v17  ;;  %v313_v20 = vsel %vm9885_vm4, 0, %v312_v8  ;;  %v543_v24 = vor.u32 %v541_v12, %v540_v14  ;;  %v545_v25 = vrot.slane %v540_v14, 4  ;;  %824 = vst [vmem:[#allocation2 + $0x30] sm:$0xf] %v823_v18  ;;  %v9984_v47 = vpack.c.bf16 %v362_v29, %v362_v29 }
  0x24   : > { %v513_v26 = vshrl.u32 %v9079_v15, 16  ;;  %v516_v27 = vshll.u32 %v9079_v15, 16  ;;  %314 = vst [vmem:[#allocation2 + $0x50] sm:$0x1] %v313_v20  ;;  %v363_v30 = vld [vmem:[%s9897_s23 + $0x78] sm:$0xff]  ;;  %v521_v31 = vshrl.u32 %v9946_v16, 16  ;;  %vm9997_vm14 = vmor %vm961_vm11, %vm962_vm12 }
  0x25   : > { %v524_v32 = vshll.u32 %v9946_v16, 16  ;;  %v564_v33 = vshrl.u32 %v9954_v21, 16  ;;  %v567_v35 = vshll.u32 %v9954_v21, 16  ;;  %v544_v37 = vsel %vm9914_vm7, %v536_v11, %v543_v24  ;;  %v1836_v42 = vld [vmem:[#allocation2 + $0x10] sm:$0xf]  ;;  %s9833_s25 = smov 4  }
  0x26   : > { %v827_v38 = vsel %vm9875_vm2, %v545_v25, %v826_v19  ;;  %v9976_v39 = vrot.slane %v513_v26, 7  ;;  %v572_v41 = vshrl.u32 %v9956_v22, 16  ;;  %v1867_v43 = vld [vmem:[#allocation2 + $0x14] sm:$0x1]  ;;  %v2267_v44 = vld [vmem:[#allocation2 + $0xc] sm:$0xe]  ;;  %v9986_v48 = vpack.c.bf16 %v363_v30, %v363_v30 }
  0x27   : > { %825 = vst.msk [vmem:[#allocation2 + $0x34] sm:$0xf] %vm226_vm5, %v544_v37  ;;  %828 = vst [vmem:[#allocation2 + $0x38] sm:$0x1] %v827_v38  ;;  %v8607_v49 = vrot.slane %v2267_v44, 9  ;;  %v2333_v50 = vrot.slane %v1836_v42, 5 }
  0x28   : > { %v2336_v51 = vrot.slane %v1867_v43, 5  ;;  %v1835_v52 = vld [vmem:[#allocation2 + $0xc] sm:$0xf]  ;;  %v1893_v53 = vshll.u32 %v1836_v42, 16  ;;  %v1897_v56 = vshrl.u32 %v1836_v42, 16  ;;  %v1903_v57 = vshll.u32 %v1867_v43, 16 }
  0x29   : > { %v1884_v54 = vshrl.u32 %v1835_v52, 16  ;;  %v1887_v55 = vshll.u32 %v1835_v52, 16  ;;  %v1838_v58 = vld [vmem:[#allocation2 + $0x1c] sm:$0xf]  ;;  %v2334_v59 = vsel %vm9968_vm13, %v8607_v49, %v2333_v50  ;;  %v2335_v60 = vrot.slane %v2333_v50, 4 }
  0x2a   : > { %v1895_v61 = vrot.slane %v1893_v53, 5  ;;  %v1868_v62 = vld [vmem:[#allocation2 + $0x20] sm:$0x1]  ;;  %v2268_v63 = vld [vmem:[#allocation2 + $0x18] sm:$0xe]  ;;  %v9991_v1 = vor.u32 %v516_v27, %v9976_v39  ;;  %v1899_v5 = vrot.slane %v1897_v56, 4 }
  0x2b   : > { %v1886_v2 = vrot.slane %v1884_v54, 4  ;;  %v1889_v3 = vrot.slane %v1887_v55, 5  ;;  %v1905_v6 = vrot.slane %v1903_v57, 5  ;;  %v1837_v7 = vld [vmem:[#allocation2 + $0x18] sm:$0xf]  ;;  %v2337_v8 = vsel %vm9968_vm13, %v2335_v60, %v2336_v51 }
  0x2c   : > { %v8608_v9 = vrot.slane %v2268_v63, 9  ;;  %v2340_v10 = vrot.slane %v1838_v58, 5  ;;  %v2343_v11 = vrot.slane %v1868_v62, 5  ;;  %v8655_v12 = vcombine.low %v2334_v59, %v2337_v8  ;;  %v1841_v28 = vld [vmem:[#allocation2 + $0x30] sm:$0xf] }
  0x2d   : > { %v1890_v13 = vor.u32 %v1889_v3, %v1886_v2  ;;  %v1900_v14 = vor.u32 %v1899_v5, %v1895_v61  ;;  %v1908_v15 = vshrl.u32 %v1837_v7, 16  ;;  %v1911_v20 = vshll.u32 %v1837_v7, 16  ;;  %v815_v60 = vld [vmem:[#allocation2 + $0x24] sm:$0xf]  ;;  %v2270_v3 = vld [vmem:[#allocation2 + $0x30] sm:$0xe] }
  0x2e   : > { %v2341_v18 = vsel %vm9968_vm13, %v8608_v9, %v2340_v10  ;;  %v2342_v19 = vrot.slane %v2340_v10, 4  ;;  %v1917_v23 = vshll.u32 %v1838_v58, 16  ;;  %2635 = vrot.lane.b32.xlu1 %v8655_v12, %s9832_s24  ;;  %v1921_v27 = vshrl.u32 %v1838_v58, 16  ;;  %v1842_v42 = vld [vmem:[#allocation2 + $0x34] sm:$0xf] }
  0x2f   : > { %v1891_v24 = vrot.slane %v1890_v13, 4  ;;  %v1901_v25 = vrot.slane %v1900_v14, 4  ;;  %v1910_v26 = vrot.slane %v1908_v15, 4  ;;  %v1913_v30 = vrot.slane %v1911_v20, 5  ;;  %v1870_v51 = vld [vmem:[#allocation2 + $0x38] sm:$0x1] }
  0x30   : > { %v2344_v29 = vsel %vm9968_vm13, %v2342_v19, %v2343_v11  ;;  %v1919_v37 = vrot.slane %v1917_v23, 5  ;;  %v1927_v38 = vshll.u32 %v1868_v62, 16  ;;  %v1923_v50 = vrot.slane %v1921_v27, 4  ;;  %v819_v15 = vld [vmem:[#allocation2 + $0x2c] sm:$0x1] }
  0x31   : > { %v1896_v43 = vsel %vm9997_vm14, %v1891_v24, %v1895_v61  ;;  %v1906_v44 = vsel %vm9997_vm14, %v1901_v25, %v1905_v6  ;;  %v8656_v49 = vcombine.low %v2341_v18, %v2344_v29  ;;  %v1914_v53 = vor.u32 %v1913_v30, %v1910_v26  ;;  %v253_v27 = vld [vmem:[#allocation2 + $0x3c] sm:$0x1]  ;;  %v836_v30 = vld [vmem:[#allocation2 + $0x48] sm:$0xf] }
  0x32   : > { %v8639_v52 = vcombine.low %v1896_v43, %v1906_v44  ;;  %v1929_v54 = vrot.slane %v1927_v38, 5  ;;  %v1956_v55 = vshrl.u32 %v1841_v28, 16  ;;  %v1924_v56 = vor.u32 %v1923_v50, %v1919_v37  ;;  %v840_v44 = vld [vmem:[#allocation2 + $0x50] sm:$0x1] }
  0x33   : > { %2637 = vrot.lane.b32.xlu1 %v8656_v49, %s9832_s24  ;;  %v1959_v57 = vshll.u32 %v1841_v28, 16  ;;  %v1965_v58 = vshll.u32 %v1842_v42, 16  ;;  %v1969_v59 = vshrl.u32 %v1842_v42, 16  ;;  %v1915_v61 = vrot.slane %v1914_v53, 4  ;;  %v360_v49 = vld [vmem:[%s9897_s23 + $0x60] sm:$0xff] }
  0x34   : > { %2555 = vrot.lane.b32.xlu0 %v8639_v52, %s9833_s25  ;;  %v1958_v62 = vrot.slane %v1956_v55, 4  ;;  %v1975_v63 = vshll.u32 %v1870_v51, 16  ;;  %v519_v2 = vrot.slane %v9976_v39, 4  ;;  %v1925_v5 = vrot.slane %v1924_v56, 4 }
  0x35   : > { %v1961_v6 = vrot.slane %v1959_v57, 5  ;;  %v1967_v7 = vrot.slane %v1965_v58, 5  ;;  %v1971_v8 = vrot.slane %v1969_v59, 4  ;;  %v1920_v9 = vsel %vm9997_vm14, %v1915_v61, %v1919_v37  ;;  %v309_v37 = vld [vmem:[#allocation2 + $0x44] sm:$0x1]  ;;  %v361_v57 = vld [vmem:[%s9897_s23 + $0x68] sm:$0xff] }
  0x36   : > { %v1977_v10 = vrot.slane %v1975_v63, 5  ;;  %v523_v11 = vrot.slane %v521_v31, 7  ;;  %v816_v12 = vsel %vm9920_vm10, %v9991_v1, %v815_v60  ;;  %v1930_v13 = vsel %vm9997_vm14, %v1925_v5, %v1929_v54  ;;  %v262_v54 = vld [vmem:[#allocation2 + $0x60] sm:$0x1] }
  0x37   : > { %v1962_v39 = vor.u32 %v1961_v6, %v1958_v62  ;;  %v1972_v14 = vor.u32 %v1971_v8, %v1967_v7  ;;  %817 = vst [vmem:[#allocation2 + $0x24] sm:$0xf] %v816_v12  ;;  %v8610_v18 = vrot.slane %v2270_v3, 9  ;;  %v8640_v19 = vcombine.low %v1920_v9, %v1930_v13 }
  0x38   : > { %v526_v20 = vor.u32 %v524_v32, %v523_v11  ;;  %v528_v23 = vrot.slane %v523_v11, 4  ;;  %v2354_v24 = vrot.slane %v1842_v42, 5  ;;  %v2357_v26 = vrot.slane %v1870_v51, 5 }
  0x39   : > { %v1963_v25 = vrot.slane %v1962_v39, 4  ;;  %v1973_v31 = vrot.slane %v1972_v14, 4  ;;  %v566_v1 = vrot.slane %v564_v33, 7  ;;  %2557 = vrot.lane.b32.xlu0 %v8640_v19, %s9833_s25  ;;  %v574_v52 = vrot.slane %v572_v41, 7 }
  0x3a   : > { %v527_v28 = vsel %vm9914_vm7, %v519_v2, %v526_v20  ;;  %v820_v29 = vsel %vm9875_vm2, %v528_v23, %v819_v15  ;;  %v2355_v16 = vsel %vm9968_vm13, %v8610_v18, %v2354_v24  ;;  %v2356_v32 = vrot.slane %v2354_v24, 4 }
  0x3b   : > { %v1968_v38 = vsel %vm9997_vm14, %v1963_v25, %v1967_v7  ;;  %v1978_v33 = vsel %vm9997_vm14, %v1973_v31, %v1977_v10  ;;  %818 = vst.msk [vmem:[#allocation2 + $0x28] sm:$0xf] %vm226_vm5, %v527_v28  ;;  %821 = vst [vmem:[#allocation2 + $0x2c] sm:$0x1] %v820_v29  ;;  %v569_v42 = vor.u32 %v567_v35, %v566_v1  ;;  %v570_v43 = vrot.slane %v566_v1, 4 }
  0x3c   : > { %v8642_v50 = vcombine.low %v1968_v38, %v1978_v33  ;;  %v2358_v51 = vsel %vm9968_vm13, %v2356_v32, %v2357_v26  ;;  %v575_v53 = vshll.u32 %v9956_v22, 16  ;;  %v254_v21 = vsel %vm9875_vm2, 0, %v253_v27 }
  0x3d   : > { %v8658_v55 = vcombine.low %v2355_v16, %v2358_v51  ;;  %v837_v56 = vsel %vm9920_vm10, %v569_v42, %v836_v30  ;;  %v310_v35 = vsel %vm9885_vm4, 0, %v309_v37  ;;  %v579_v41 = vrot.slane %v574_v52, 4  ;;  %255 = vst [vmem:[#allocation2 + $0x3c] sm:$0x1] %v254_v21 }
  0x3e   : > { %2561 = vrot.lane.b32.xlu1 %v8642_v50, %s9833_s25  ;;  %v1839_v58 = vld [vmem:[#allocation2 + $0x24] sm:$0xf]  ;;  %v577_v60 = vor.u32 %v575_v53, %v574_v52  ;;  %838 = vst [vmem:[#allocation2 + $0x48] sm:$0xf] %v837_v56  ;;  %311 = vst [vmem:[#allocation2 + $0x44] sm:$0x1] %v310_v35  ;;  %v10055_v61 = vpack.c.bf16 %v360_v49, %v360_v49  ;;  %v10068_v18 = vpack.c.bf16 %v361_v57, %v361_v57 }
  0x3f   : > { %v2269_v59 = vld [vmem:[#allocation2 + $0x24] sm:$0xe]  ;;  %v547_v22 = vshrl.u32 %v9980_v45, 16  ;;  %v1932_v62 = vshrl.u32 %v1839_v58, 16  ;;  %v1935_v63 = vshll.u32 %v1839_v58, 16  ;;  %v550_v3 = vshll.u32 %v9980_v45, 16 }
  0x40   : > { %v8609_v2 = vrot.slane %v2269_v59, 9  ;;  %v578_v5 = vsel %vm9914_vm7, %v570_v43, %v577_v60  ;;  %v841_v6 = vsel %vm9875_vm2, %v579_v41, %v840_v44  ;;  %v555_v8 = vshrl.u32 %v9982_v46, 16  ;;  %v318_v60 = vld [vmem:[#allocation2 + $0x68] sm:$0x1] }
  0x41   : > { %v549_v7 = vrot.slane %v547_v22, 7  ;;  %v1934_v9 = vrot.slane %v1932_v62, 4  ;;  %v1937_v10 = vrot.slane %v1935_v63, 5  ;;  %839 = vst.msk [vmem:[#allocation2 + $0x4c] sm:$0xf] %vm226_vm5, %v578_v5  ;;  %v558_v11 = vshll.u32 %v9982_v46, 16 }
  0x42   : > { %842 = vst [vmem:[#allocation2 + $0x50] sm:$0x1] %v841_v6  ;;  %v263_v12 = vsel %vm9875_vm2, 0, %v262_v54  ;;  %v1840_v45 = vld [vmem:[#allocation2 + $0x28] sm:$0xf]  ;;  %2641 = vrot.lane.b32.xlu1 %v8658_v55, %s9832_s24  ;;  %v557_v15 = vrot.slane %v555_v8, 7 }
  0x43   : > { %v1869_v13 = vld [vmem:[#allocation2 + $0x2c] sm:$0x1]  ;;  %v552_v39 = vor.u32 %v550_v3, %v549_v7  ;;  %v553_v14 = vrot.slane %v549_v7, 4  ;;  %264 = vst [vmem:[#allocation2 + $0x60] sm:$0x1] %v263_v12  ;;  %v1938_v19 = vor.u32 %v1937_v10, %v1934_v9  ;;  %v1941_v20 = vshll.u32 %v1840_v45, 16 }
  0x44   : > { %v1945_v23 = vshrl.u32 %v1840_v45, 16  ;;  %v1951_v24 = vshll.u32 %v1869_v13, 16  ;;  %v2347_v25 = vrot.slane %v1840_v45, 5  ;;  %v2350_v31 = vrot.slane %v1869_v13, 5  ;;  %v829_v33 = vld [vmem:[#allocation2 + $0x3c] sm:$0xf] }
  0x45   : > { %v560_v46 = vor.u32 %v558_v11, %v557_v15  ;;  %v562_v26 = vrot.slane %v557_v15, 4  ;;  %v1939_v1 = vrot.slane %v1938_v19, 4  ;;  %v1943_v27 = vrot.slane %v1941_v20, 5  ;;  %v1845_v16 = vld [vmem:[#allocation2 + $0x48] sm:$0xf]  ;;  %v366_v7 = vld [vmem:[%s9897_s23 + $0x90] sm:$0xff] }
  0x46   : > { %v1947_v28 = vrot.slane %v1945_v23, 4  ;;  %v1953_v29 = vrot.slane %v1951_v24, 5  ;;  %v10072_v32 = vsel %vm9968_vm13, %v8609_v2, %v2347_v25  ;;  %v2349_v30 = vrot.slane %v2347_v25, 4  ;;  %v833_v50 = vld [vmem:[#allocation2 + $0x44] sm:$0x1] }
  0x47   : > { %v2004_v37 = vshrl.u32 %v1845_v16, 16  ;;  %v2007_v38 = vshll.u32 %v1845_v16, 16  ;;  %v1944_v42 = vsel %vm9997_vm14, %v1939_v1, %v1943_v27  ;;  %v561_v44 = vsel %vm9914_vm7, %v553_v14, %v560_v46  ;;  %v2272_v51 = vld [vmem:[#allocation2 + $0x48] sm:$0xe] }
  0x48   : > { %v1948_v43 = vor.u32 %v1947_v28, %v1943_v27  ;;  %v830_v49 = vsel %vm9920_vm10, %v552_v39, %v829_v33  ;;  %v2351_v52 = vsel %vm9968_vm13, %v2349_v30, %v2350_v31  ;;  %v1846_v53 = vld [vmem:[#allocation2 + $0x4c] sm:$0xf]  ;;  %832 = vst.msk [vmem:[#allocation2 + $0x40] sm:$0xf] %vm226_vm5, %v561_v44  ;;  %v834_v21 = vsel %vm9875_vm2, %v562_v26, %v833_v50 }
  0x49   : > { %v1872_v54 = vld [vmem:[#allocation2 + $0x50] sm:$0x1]  ;;  %v2006_v55 = vrot.slane %v2004_v37, 4  ;;  %v2009_v56 = vrot.slane %v2007_v38, 5  ;;  %831 = vst [vmem:[#allocation2 + $0x3c] sm:$0xf] %v830_v49  ;;  %v8657_v57 = vcombine.low %v10072_v32, %v2351_v52  ;;  %v10104_v26 = vpack.c.bf16 %v366_v7, %v366_v7 }
  0x4a   : > { %v1949_v35 = vrot.slane %v1948_v43, 4  ;;  %v2013_v58 = vshll.u32 %v1846_v53, 16  ;;  %v2017_v59 = vshrl.u32 %v1846_v53, 16  ;;  %835 = vst [vmem:[#allocation2 + $0x44] sm:$0x1] %v834_v21  ;;  %v2023_v22 = vshll.u32 %v1872_v54, 16 }
  0x4b   : > { %v2010_v41 = vor.u32 %v2009_v56, %v2006_v55  ;;  %v8612_v62 = vrot.slane %v2272_v51, 9  ;;  %v2368_v63 = vrot.slane %v1846_v53, 5  ;;  %v2371_v6 = vrot.slane %v1872_v54, 5  ;;  %v259_v38 = vld [vmem:[#allocation2 + $0x54] sm:$0x1] }
  0x4c   : > { %v1954_v2 = vsel %vm9997_vm14, %v1949_v35, %v1953_v29  ;;  %v2015_v3 = vrot.slane %v2013_v58, 5  ;;  %v2019_v5 = vrot.slane %v2017_v59, 4  ;;  %v2025_v10 = vrot.slane %v2023_v22, 5  ;;  %v315_v49 = vld [vmem:[#allocation2 + $0x5c] sm:$0x1] }
  0x4d   : > { %v8641_v8 = vcombine.low %v1944_v42, %v1954_v2  ;;  %v2011_v9 = vrot.slane %v2010_v41, 4  ;;  %v10091_v11 = vsel %vm9968_vm13, %v8612_v62, %v2368_v63  ;;  %v2370_v45 = vrot.slane %v2368_v63, 4  ;;  %v850_v54 = vld [vmem:[#allocation2 + $0x60] sm:$0xf] }
  0x4e   : > { %v2020_v12 = vor.u32 %v2019_v5, %v2015_v3  ;;  %v319_v13 = vsel %vm9885_vm4, 0, %v318_v60  ;;  %v598_v39 = vshrl.u32 %v9984_v47, 16  ;;  %v601_v15 = vshll.u32 %v9984_v47, 16 }
  0x4f   : > { %2559 = vrot.lane.b32.xlu0 %v8641_v8, %s9833_s25  ;;  %v2016_v14 = vsel %vm9997_vm14, %v2011_v9, %v2015_v3  ;;  %320 = vst [vmem:[#allocation2 + $0x68] sm:$0x1] %v319_v13  ;;  %v606_v19 = vshrl.u32 %v9986_v48, 16  ;;  %v609_v20 = vshll.u32 %v9986_v48, 16  ;;  %v1844_v25 = vld [vmem:[#allocation2 + $0x40] sm:$0xf]  ;;  %v2372_v31 = vsel %vm9968_vm13, %v2370_v45, %v2371_v6 }
  0x50   : > { %v2021_v23 = vrot.slane %v2020_v12, 4  ;;  %v1843_v24 = vld [vmem:[#allocation2 + $0x3c] sm:$0xf]  ;;  %v600_v46 = vrot.slane %v598_v39, 7  ;;  %v1989_v29 = vshll.u32 %v1844_v25, 16  ;;  %v1993_v16 = vshrl.u32 %v1844_v25, 16 }
  0x51   : > { %v1871_v1 = vld [vmem:[#allocation2 + $0x44] sm:$0x1]  ;;  %v1980_v27 = vshrl.u32 %v1843_v24, 16  ;;  %v1983_v28 = vshll.u32 %v1843_v24, 16  ;;  %v8660_v48 = vcombine.low %v10091_v11, %v2372_v31  ;;  %v2271_v30 = vld [vmem:[#allocation2 + $0x3c] sm:$0xe] }
  0x52   : > { %v2026_v47 = vsel %vm9997_vm14, %v2021_v23, %v2025_v10  ;;  %v1999_v32 = vshll.u32 %v1871_v1, 16  ;;  %v2361_v37 = vrot.slane %v1844_v25, 5  ;;  %v1991_v44 = vrot.slane %v1989_v29, 5  ;;  %v268_v8 = vld [vmem:[#allocation2 + $0x78] sm:$0x1] }
  0x53   : > { %2639 = vrot.lane.b32.xlu0 %v8657_v57, %s9832_s24  ;;  %v8644_v33 = vcombine.low %v2016_v14, %v2026_v47  ;;  %v1982_v42 = vrot.slane %v1980_v27, 4  ;;  %v1985_v43 = vrot.slane %v1983_v28, 5  ;;  %v1995_v50 = vrot.slane %v1993_v16, 4  ;;  %v324_v45 = vld [vmem:[#allocation2 + $0x80] sm:$0x1]  ;;  %v367_v13 = vld [vmem:[%s9897_s23 + $0x98] sm:$0xff] }
  0x54   : > { %v2001_v51 = vrot.slane %v1999_v32, 5  ;;  %v8611_v52 = vrot.slane %v2271_v30, 9  ;;  %v2363_v53 = vrot.slane %v2361_v37, 4  ;;  %v2364_v56 = vrot.slane %v1871_v1, 5  ;;  %v265_v25 = vld [vmem:[#allocation2 + $0x6c] sm:$0x1] }
  0x55   : > { %2565 = vrot.lane.b32.xlu1 %v8644_v33, %s9833_s25  ;;  %v1986_v55 = vor.u32 %v1985_v43, %v1982_v42  ;;  %v603_v21 = vor.u32 %v601_v15, %v600_v46  ;;  %v604_v35 = vrot.slane %v600_v46, 4  ;;  %v1996_v58 = vor.u32 %v1995_v50, %v1991_v44  ;;  %v364_v27 = vld [vmem:[%s9897_s23 + $0x80] sm:$0xff]  ;;  %v365_v28 = vld [vmem:[%s9897_s23 + $0x88] sm:$0xff]  ;;  %v370_v30 = vld [vmem:[%s9897_s23 + $0xb0] sm:$0xff] }
  0x56   : > { %v10113_v57 = vsel %vm9968_vm13, %v8611_v52, %v2361_v37  ;;  %v608_v59 = vrot.slane %v606_v19, 7  ;;  %v260_v60 = vsel %vm9875_vm2, 0, %v259_v38  ;;  %v10119_v22 = vsel %vm9968_vm13, %v2363_v53, %v2364_v56  ;;  %v854_v63 = vld [vmem:[#allocation2 + $0x68] sm:$0x1]  ;;  %v371_v37 = vld [vmem:[%s9897_s23 + $0xb8] sm:$0xff] }
  0x57   : > { %v1987_v41 = vrot.slane %v1986_v55, 4  ;;  %v851_v62 = vsel %vm9920_vm10, %v603_v21, %v850_v54  ;;  %261 = vst [vmem:[#allocation2 + $0x54] sm:$0x1] %v260_v60  ;;  %v316_v2 = vsel %vm9885_vm4, 0, %v315_v49  ;;  %v1997_v3 = vrot.slane %v1996_v58, 4 }
  0x58   : > { %v8659_v5 = vcombine.low %v10113_v57, %v10119_v22  ;;  %v611_v6 = vor.u32 %v609_v20, %v608_v59  ;;  %v613_v7 = vrot.slane %v608_v59, 4  ;;  %852 = vst [vmem:[#allocation2 + $0x60] sm:$0xf] %v851_v62  ;;  %317 = vst [vmem:[#allocation2 + $0x5c] sm:$0x1] %v316_v2  ;;  %v581_v10 = vshrl.u32 %v10055_v61, 16 }
  0x59   : > { %v1992_v9 = vsel %vm9997_vm14, %v1987_v41, %v1991_v44  ;;  %2645 = vrot.lane.b32.xlu1 %v8660_v48, %s9832_s24  ;;  %v584_v11 = vshll.u32 %v10055_v61, 16  ;;  %v589_v12 = vshrl.u32 %v10068_v18, 16  ;;  %v2002_v39 = vsel %vm9997_vm14, %v1997_v3, %v2001_v51  ;;  %v321_v48 = vld [vmem:[#allocation2 + $0x74] sm:$0x1] }
  0x5a   : > { %v612_v14 = vsel %vm9914_vm7, %v604_v35, %v611_v6  ;;  %v855_v15 = vsel %vm9875_vm2, %v613_v7, %v854_v63  ;;  %v592_v19 = vshll.u32 %v10068_v18, 16  ;;  %v8643_v20 = vcombine.low %v1992_v9, %v2002_v39  ;;  %v368_v39 = vld [vmem:[%s9897_s23 + $0xa0] sm:$0xff] }
  0x5b   : > { %853 = vst.msk [vmem:[#allocation2 + $0x64] sm:$0xf] %vm226_vm5, %v612_v14  ;;  %856 = vst [vmem:[#allocation2 + $0x68] sm:$0x1] %v855_v15  ;;  %v583_v61 = vrot.slane %v581_v10, 7  ;;  %v591_v23 = vrot.slane %v589_v12, 7  ;;  %v9094_v46 = vpack.c.bf16 %v367_v13, %v367_v13  ;;  %v10159_v53 = vpack.c.bf16 %v364_v27, %v364_v27 }
  0x5c   : > { %v269_v24 = vsel %vm9875_vm2, 0, %v268_v8  ;;  %v325_v31 = vsel %vm9885_vm4, 0, %v324_v45  ;;  %v632_v1 = vshrl.u32 %v10104_v26, 16  ;;  %v635_v18 = vshll.u32 %v10104_v26, 16  ;;  %2563 = vrot.lane.b32.xlu0 %v8643_v20, %s9833_s25  ;;  %v369_v14 = vld [vmem:[%s9897_s23 + $0xa8] sm:$0xff] }
  0x5d   : > { %270 = vst [vmem:[#allocation2 + $0x78] sm:$0x1] %v269_v24  ;;  %v586_v29 = vor.u32 %v584_v11, %v583_v61  ;;  %v587_v16 = vrot.slane %v583_v61, 4  ;;  %v594_v47 = vor.u32 %v592_v19, %v591_v23  ;;  %v596_v32 = vrot.slane %v591_v23, 4  ;;  %326 = vst [vmem:[#allocation2 + $0x80] sm:$0x1] %v325_v31 }
  0x5e   : > { %v843_v38 = vld [vmem:[#allocation2 + $0x54] sm:$0xf]  ;;  %v634_v33 = vrot.slane %v632_v1, 7  ;;  %v640_v42 = vshrl.u32 %v9094_v46, 16  ;;  %v643_v43 = vshll.u32 %v9094_v46, 16  ;;  %v266_v44 = vsel %vm9875_vm2, 0, %v265_v25 }
  0x5f   : > { %v1849_v26 = vld [vmem:[#allocation2 + $0x60] sm:$0xf]  ;;  %v595_v49 = vsel %vm9914_vm7, %v587_v16, %v594_v47  ;;  %v844_v50 = vsel %vm9920_vm10, %v586_v29, %v843_v38  ;;  %v847_v51 = vld [vmem:[#allocation2 + $0x5c] sm:$0x1]  ;;  %267 = vst [vmem:[#allocation2 + $0x6c] sm:$0x1] %v266_v44  ;;  %v10161_v54 = vpack.c.bf16 %v365_v28, %v365_v28  ;;  %v10169_v2 = vpack.c.bf16 %v370_v30, %v370_v30 }
  0x60   : > { %v2274_v52 = vld [vmem:[#allocation2 + $0x60] sm:$0xe]  ;;  %v2052_v55 = vshrl.u32 %v1849_v26, 16  ;;  %v2055_v56 = vshll.u32 %v1849_v26, 16  ;;  %845 = vst [vmem:[#allocation2 + $0x54] sm:$0xf] %v844_v50  ;;  %v848_v21 = vsel %vm9875_vm2, %v596_v32, %v847_v51  ;;  %2643 = vrot.lane.b32.xlu0 %v8659_v5, %s9832_s24  ;;  %v637_v58 = vor.u32 %v635_v18, %v634_v33 }
  0x61   : > { %846 = vst.msk [vmem:[#allocation2 + $0x58] sm:$0xf] %vm226_vm5, %v595_v49  ;;  %v8614_v35 = vrot.slane %v2274_v52, 9  ;;  %849 = vst [vmem:[#allocation2 + $0x5c] sm:$0x1] %v848_v21  ;;  %v638_v57 = vrot.slane %v634_v33, 4  ;;  %v10171_v3 = vpack.c.bf16 %v371_v37, %v371_v37  ;;  %v10186_v29 = vpack.c.bf16 %v368_v39, %v368_v39 }
  0x62   : > { %v642_v59 = vrot.slane %v640_v42, 7  ;;  %v322_v60 = vsel %vm9885_vm4, 0, %v321_v48  ;;  %v1850_v41 = vld [vmem:[#allocation2 + $0x64] sm:$0xf]  ;;  %v1874_v22 = vld [vmem:[#allocation2 + $0x68] sm:$0x1]  ;;  %v10188_v16 = vpack.c.bf16 %v369_v14, %v369_v14 }
  0x63   : > { %v2054_v62 = vrot.slane %v2052_v55, 4  ;;  %v2057_v63 = vrot.slane %v2055_v56, 5  ;;  %323 = vst [vmem:[#allocation2 + $0x74] sm:$0x1] %v322_v60  ;;  %v2061_v6 = vshll.u32 %v1850_v41, 16  ;;  %v2065_v5 = vshrl.u32 %v1850_v41, 16 }
  0x64   : > { %v2071_v7 = vshll.u32 %v1874_v22, 16  ;;  %v2382_v8 = vrot.slane %v1850_v41, 5  ;;  %v864_v9 = vld [vmem:[#allocation2 + $0x78] sm:$0xf]  ;;  %v2385_v11 = vrot.slane %v1874_v22, 5  ;;  %v645_v12 = vor.u32 %v643_v43, %v642_v59  ;;  %v374_v21 = vld [vmem:[%s9897_s23 + $0xd0] sm:$0xff] }
  0x65   : > { %v2058_v10 = vor.u32 %v2057_v63, %v2054_v62  ;;  %v647_v45 = vrot.slane %v642_v59, 4  ;;  %v868_v13 = vld [vmem:[#allocation2 + $0x80] sm:$0x1]  ;;  %v2063_v15 = vrot.slane %v2061_v6, 5  ;;  %v2067_v19 = vrot.slane %v2065_v5, 4 }
  0x66   : > { %v2073_v20 = vrot.slane %v2071_v7, 5  ;;  %v10177_v61 = vsel %vm9968_vm13, %v8614_v35, %v2382_v8  ;;  %v2384_v24 = vrot.slane %v2382_v8, 4  ;;  %v646_v25 = vsel %vm9914_vm7, %v638_v57, %v645_v12 }
  0x67   : > { %v2059_v23 = vrot.slane %v2058_v10, 4  ;;  %v865_v31 = vsel %vm9920_vm10, %v637_v58, %v864_v9  ;;  %v2068_v46 = vor.u32 %v2067_v19, %v2063_v15  ;;  %v1847_v1 = vld [vmem:[#allocation2 + $0x54] sm:$0xf]  ;;  %867 = vst.msk [vmem:[#allocation2 + $0x7c] sm:$0xf] %vm226_vm5, %v646_v25  ;;  %v869_v28 = vsel %vm9875_vm2, %v647_v45, %v868_v13 }
  0x68   : > { %v1848_v18 = vld [vmem:[#allocation2 + $0x58] sm:$0xf]  ;;  %v2273_v27 = vld [vmem:[#allocation2 + $0x54] sm:$0xe]  ;;  %866 = vst [vmem:[#allocation2 + $0x78] sm:$0xf] %v865_v31  ;;  %v2386_v43 = vsel %vm9968_vm13, %v2384_v24, %v2385_v11  ;;  %v10204_v9 = vpack.c.bf16 %v374_v21, %v374_v21 }
  0x69   : > { %v2064_v47 = vsel %vm9997_vm14, %v2059_v23, %v2063_v15  ;;  %v1873_v32 = vld [vmem:[#allocation2 + $0x5c] sm:$0x1]  ;;  %v2028_v48 = vshrl.u32 %v1847_v1, 16  ;;  %v2031_v30 = vshll.u32 %v1847_v1, 16  ;;  %v2037_v37 = vshll.u32 %v1848_v18, 16 }
  0x6a   : > { %870 = vst [vmem:[#allocation2 + $0x80] sm:$0x1] %v869_v28  ;;  %v2069_v38 = vrot.slane %v2068_v46, 4  ;;  %v2041_v33 = vshrl.u32 %v1848_v18, 16  ;;  %v2047_v42 = vshll.u32 %v1873_v32, 16  ;;  %v8662_v50 = vcombine.low %v10177_v61, %v2386_v43 }
  0x6b   : > { %v2030_v44 = vrot.slane %v2028_v48, 4  ;;  %v2033_v26 = vrot.slane %v2031_v30, 5  ;;  %v2039_v49 = vrot.slane %v2037_v37, 5  ;;  %v8613_v56 = vrot.slane %v2273_v27, 9  ;;  %v857_v30 = vld [vmem:[#allocation2 + $0x6c] sm:$0xf] }
  0x6c   : > { %v2074_v51 = vsel %vm9997_vm14, %v2069_v38, %v2073_v20  ;;  %v2043_v52 = vrot.slane %v2041_v33, 4  ;;  %v2049_v55 = vrot.slane %v2047_v42, 5  ;;  %v2375_v57 = vrot.slane %v1848_v18, 5 }
  0x6d   : > { %v8646_v35 = vcombine.low %v2064_v47, %v2074_v51  ;;  %v2034_v58 = vor.u32 %v2033_v26, %v2030_v44  ;;  %v2378_v59 = vrot.slane %v1873_v32, 5  ;;  %v615_v41 = vshrl.u32 %v10159_v53, 16  ;;  %v274_v32 = vld [vmem:[#allocation2 + $0x90] sm:$0x1] }
  0x6e   : > { %v2044_v60 = vor.u32 %v2043_v52, %v2039_v49  ;;  %v618_v22 = vshll.u32 %v10159_v53, 16  ;;  %v623_v62 = vshrl.u32 %v10161_v54, 16  ;;  %v2376_v6 = vsel %vm9968_vm13, %v8613_v56, %v2375_v57  ;;  %v1854_v8 = vld [vmem:[#allocation2 + $0x7c] sm:$0xf] }
  0x6f   : > { %2569 = vrot.lane.b32.xlu1 %v8646_v35, %s9833_s25  ;;  %v2035_v63 = vrot.slane %v2034_v58, 4  ;;  %v2377_v5 = vrot.slane %v2375_v57, 4  ;;  %v1853_v7 = vld [vmem:[#allocation2 + $0x78] sm:$0xf]  ;;  %v2109_v13 = vshll.u32 %v1854_v8, 16  ;;  %v2113_v14 = vshrl.u32 %v1854_v8, 16 }
  0x70   : > { %v2045_v10 = vrot.slane %v2044_v60, 4  ;;  %v2100_v12 = vshrl.u32 %v1853_v7, 16  ;;  %v2103_v45 = vshll.u32 %v1853_v7, 16  ;;  %v2276_v24 = vld [vmem:[#allocation2 + $0x78] sm:$0xe]  ;;  %v617_v27 = vrot.slane %v615_v41, 7 }
  0x71   : > { %v1876_v11 = vld [vmem:[#allocation2 + $0x80] sm:$0x1]  ;;  %v2040_v53 = vsel %vm9997_vm14, %v2035_v63, %v2039_v49  ;;  %v2379_v39 = vsel %vm9968_vm13, %v2377_v5, %v2378_v59  ;;  %v2111_v31 = vrot.slane %v2109_v13, 5  ;;  %v2115_v46 = vrot.slane %v2113_v14, 4  ;;  %v861_v49 = vld [vmem:[#allocation2 + $0x74] sm:$0x1] }
  0x72   : > { %v2119_v15 = vshll.u32 %v1876_v11, 16  ;;  %v2050_v19 = vsel %vm9997_vm14, %v2045_v10, %v2049_v55  ;;  %v8661_v20 = vcombine.low %v2376_v6, %v2379_v39  ;;  %v2102_v61 = vrot.slane %v2100_v12, 4  ;;  %v271_v57 = vld [vmem:[#allocation2 + $0x84] sm:$0x1]  ;;  %v327_v59 = vld [vmem:[#allocation2 + $0x8c] sm:$0x1] }
  0x73   : > { %v2105_v23 = vrot.slane %v2103_v45, 5  ;;  %v8645_v25 = vcombine.low %v2040_v53, %v2050_v19  ;;  %2649 = vrot.lane.b32.xlu1 %v8662_v50, %s9832_s24  ;;  %v625_v28 = vrot.slane %v623_v62, 7  ;;  %v626_v47 = vshll.u32 %v10161_v54, 16  ;;  %v330_v50 = vld [vmem:[#allocation2 + $0x98] sm:$0x1] }
  0x74   : > { %v2121_v1 = vrot.slane %v2119_v15, 5  ;;  %v2116_v48 = vor.u32 %v2115_v46, %v2111_v31  ;;  %v8616_v37 = vrot.slane %v2276_v24, 9  ;;  %v2396_v38 = vrot.slane %v1854_v8, 5  ;;  %v280_v8 = vld [vmem:[#allocation2 + $0xa8] sm:$0x1]  ;;  %v375_v15 = vld [vmem:[%s9897_s23 + $0xd8] sm:$0xff] }
  0x75   : > { %v2106_v18 = vor.u32 %v2105_v23, %v2102_v61  ;;  %2567 = vrot.lane.b32.xlu0 %v8645_v25, %s9833_s25  ;;  %v2399_v33 = vrot.slane %v1876_v11, 5  ;;  %v620_v43 = vor.u32 %v618_v22, %v617_v27  ;;  %v621_v44 = vrot.slane %v617_v27, 4  ;;  %v336_v10 = vld [vmem:[#allocation2 + $0xb0] sm:$0x1]  ;;  %v372_v23 = vld [vmem:[%s9897_s23 + $0xc0] sm:$0xff]  ;;  %v373_v24 = vld [vmem:[%s9897_s23 + $0xc8] sm:$0xff] }
  0x76   : > { %v628_v26 = vor.u32 %v626_v47, %v625_v28  ;;  %v2117_v51 = vrot.slane %v2116_v48, 4  ;;  %v630_v52 = vrot.slane %v625_v28, 4  ;;  %v2397_v55 = vsel %vm9968_vm13, %v8616_v37, %v2396_v38 }
  0x77   : > { %v2107_v42 = vrot.slane %v2106_v18, 4  ;;  %v2398_v54 = vrot.slane %v2396_v38, 4  ;;  %v858_v35 = vsel %vm9920_vm10, %v620_v43, %v857_v30  ;;  %v275_v58 = vsel %vm9875_vm2, 0, %v274_v32 }
  0x78   : > { %v629_v21 = vsel %vm9914_vm7, %v621_v44, %v628_v26  ;;  %v2122_v60 = vsel %vm9997_vm14, %v2117_v51, %v2121_v1  ;;  %859 = vst [vmem:[#allocation2 + $0x6c] sm:$0xf] %v858_v35  ;;  %v862_v41 = vsel %vm9875_vm2, %v630_v52, %v861_v49  ;;  %276 = vst [vmem:[#allocation2 + $0x90] sm:$0x1] %v275_v58  ;;  %v331_v62 = vsel %vm9885_vm4, 0, %v330_v50 }
  0x79   : > { %v2112_v56 = vsel %vm9997_vm14, %v2107_v42, %v2111_v31  ;;  %2647 = vrot.lane.b32.xlu0 %v8661_v20, %s9832_s24  ;;  %860 = vst.msk [vmem:[#allocation2 + $0x70] sm:$0xf] %vm226_vm5, %v629_v21  ;;  %v2400_v22 = vsel %vm9968_vm13, %v2398_v54, %v2399_v33  ;;  %863 = vst [vmem:[#allocation2 + $0x74] sm:$0x1] %v862_v41  ;;  %v666_v5 = vshrl.u32 %v10169_v2, 16  ;;  %v669_v7 = vshll.u32 %v10169_v2, 16 }
  0x7a   : > { %v8648_v63 = vcombine.low %v2112_v56, %v2122_v60  ;;  %v8664_v6 = vcombine.low %v2397_v55, %v2400_v22  ;;  %332 = vst [vmem:[#allocation2 + $0x98] sm:$0x1] %v331_v62  ;;  %v674_v11 = vshrl.u32 %v10171_v3, 16  ;;  %v677_v12 = vshll.u32 %v10171_v3, 16 }
  0x7b   : > { %v272_v45 = vsel %vm9875_vm2, 0, %v271_v57  ;;  %v328_v13 = vsel %vm9885_vm4, 0, %v327_v59  ;;  %v668_v53 = vrot.slane %v666_v5, 7  ;;  %v649_v2 = vshrl.u32 %v10186_v29, 16 }
  0x7c   : > { %2573 = vrot.lane.b32.xlu1 %v8648_v63, %s9833_s25  ;;  %273 = vst [vmem:[#allocation2 + $0x84] sm:$0x1] %v272_v45  ;;  %329 = vst [vmem:[#allocation2 + $0x8c] sm:$0x1] %v328_v13  ;;  %v652_v39 = vshll.u32 %v10186_v29, 16  ;;  %v657_v14 = vshrl.u32 %v10188_v16, 16  ;;  %v10255_v27 = vpack.c.bf16 %v375_v15, %v375_v15  ;;  %v10259_v37 = vpack.c.bf16 %v372_v23, %v372_v23 }
  0x7d   : > { %v676_v3 = vrot.slane %v674_v11, 7  ;;  %v660_v19 = vshll.u32 %v10188_v16, 16  ;;  %v281_v20 = vsel %vm9875_vm2, 0, %v280_v8  ;;  %v337_v61 = vsel %vm9885_vm4, 0, %v336_v10 }
  0x7e   : > { %v671_v25 = vor.u32 %v669_v7, %v668_v53  ;;  %v672_v31 = vrot.slane %v668_v53, 4  ;;  %v651_v46 = vrot.slane %v649_v2, 7  ;;  %v659_v1 = vrot.slane %v657_v14, 7  ;;  %282 = vst [vmem:[#allocation2 + $0xa8] sm:$0x1] %v281_v20 }
  0x7f   : > { %338 = vst [vmem:[#allocation2 + $0xb0] sm:$0x1] %v337_v61  ;;  %v679_v29 = vor.u32 %v677_v12, %v676_v3  ;;  %v681_v18 = vrot.slane %v676_v3, 4  ;;  %v700_v16 = vshrl.u32 %v10204_v9, 16  ;;  %v1851_v28 = vld [vmem:[#allocation2 + $0x6c] sm:$0xf]  ;;  %v10261_v38 = vpack.c.bf16 %v373_v24, %v373_v24 }
  0x80   : > { %v1852_v47 = vld [vmem:[#allocation2 + $0x70] sm:$0xf]  ;;  %2653 = vrot.lane.b32.xlu1 %v8664_v6, %s9832_s24  ;;  %v2275_v32 = vld [vmem:[#allocation2 + $0x6c] sm:$0xe]  ;;  %v654_v48 = vor.u32 %v652_v39, %v651_v46  ;;  %v662_v30 = vor.u32 %v660_v19, %v659_v1  ;;  %v1875_v33 = vld [vmem:[#allocation2 + $0x74] sm:$0x1] }
  0x81   : > { %v2076_v42 = vshrl.u32 %v1851_v28, 16  ;;  %v2079_v43 = vshll.u32 %v1851_v28, 16  ;;  %v2085_v44 = vshll.u32 %v1852_v47, 16  ;;  %v2089_v26 = vshrl.u32 %v1852_v47, 16  ;;  %v878_v55 = vld [vmem:[#allocation2 + $0x90] sm:$0xf] }
  0x82   : > { %v2095_v49 = vshll.u32 %v1875_v33, 16  ;;  %v8615_v50 = vrot.slane %v2275_v32, 9  ;;  %v2389_v51 = vrot.slane %v1852_v47, 5  ;;  %v2392_v52 = vrot.slane %v1875_v33, 5  ;;  %v882_v58 = vld [vmem:[#allocation2 + $0x98] sm:$0x1] }
  0x83   : > { %v2078_v54 = vrot.slane %v2076_v42, 4  ;;  %v2081_v56 = vrot.slane %v2079_v43, 5  ;;  %v2087_v21 = vrot.slane %v2085_v44, 5  ;;  %v2091_v35 = vrot.slane %v2089_v26, 4  ;;  %v871_v22 = vld [vmem:[#allocation2 + $0x84] sm:$0xf] }
  0x84   : > { %v2097_v57 = vrot.slane %v2095_v49, 5  ;;  %v10265_v59 = vsel %vm9968_vm13, %v8615_v50, %v2389_v51  ;;  %v2391_v60 = vrot.slane %v2389_v51, 4  ;;  %v680_v41 = vsel %vm9914_vm7, %v672_v31, %v679_v29  ;;  %v875_v7 = vld [vmem:[#allocation2 + $0x8c] sm:$0x1]  ;;  %v277_v39 = vld [vmem:[#allocation2 + $0x9c] sm:$0x1] }
  0x85   : > { %v2082_v62 = vor.u32 %v2081_v56, %v2078_v54  ;;  %v2092_v63 = vor.u32 %v2091_v35, %v2087_v21  ;;  %v879_v6 = vsel %vm9920_vm10, %v671_v25, %v878_v55  ;;  %881 = vst.msk [vmem:[#allocation2 + $0x94] sm:$0xf] %vm226_vm5, %v680_v41  ;;  %v883_v5 = vsel %vm9875_vm2, %v681_v18, %v882_v58  ;;  %v333_v20 = vld [vmem:[#allocation2 + $0xa4] sm:$0x1]  ;;  %v892_v31 = vld [vmem:[#allocation2 + $0xa8] sm:$0xf] }
  0x86   : > { %v2393_v8 = vsel %vm9968_vm13, %v2391_v60, %v2392_v52  ;;  %880 = vst [vmem:[#allocation2 + $0x90] sm:$0xf] %v879_v6  ;;  %884 = vst [vmem:[#allocation2 + $0x98] sm:$0x1] %v883_v5  ;;  %v655_v10 = vrot.slane %v651_v46, 4  ;;  %v664_v11 = vrot.slane %v659_v1, 4  ;;  %v872_v12 = vsel %vm9920_vm10, %v654_v48, %v871_v22 }
  0x87   : > { %v2083_v45 = vrot.slane %v2082_v62, 4  ;;  %v2093_v13 = vrot.slane %v2092_v63, 4  ;;  %v8663_v53 = vcombine.low %v10265_v59, %v2393_v8  ;;  %873 = vst [vmem:[#allocation2 + $0x84] sm:$0xf] %v872_v12  ;;  %v10279_v2 = vrot.slane %v700_v16, 7  ;;  %v378_v18 = vld [vmem:[%s9897_s23 + $0xf0] sm:$0xff] }
  0x88   : > { %v663_v14 = vsel %vm9914_vm7, %v655_v10, %v662_v30  ;;  %v876_v15 = vsel %vm9875_vm2, %v664_v11, %v875_v7  ;;  %v703_v3 = vshll.u32 %v10204_v9, 16  ;;  %v708_v19 = vshrl.u32 %v10255_v27, 16  ;;  %v379_v16 = vld [vmem:[%s9897_s23 + $0xf8] sm:$0xff] }
  0x89   : > { %v2088_v61 = vsel %vm9997_vm14, %v2083_v45, %v2087_v21  ;;  %v2098_v23 = vsel %vm9997_vm14, %v2093_v13, %v2097_v57  ;;  %874 = vst.msk [vmem:[#allocation2 + $0x88] sm:$0xf] %vm226_vm5, %v663_v14  ;;  %877 = vst [vmem:[#allocation2 + $0x8c] sm:$0x1] %v876_v15  ;;  %v706_v24 = vrot.slane %v10279_v2, 4  ;;  %v711_v25 = vshll.u32 %v10255_v27, 16 }
  0x8a   : > { %v8647_v46 = vcombine.low %v2088_v61, %v2098_v23  ;;  %v705_v9 = vor.u32 %v703_v3, %v10279_v2  ;;  %v10295_v1 = vrot.slane %v708_v19, 7  ;;  %v278_v29 = vsel %vm9875_vm2, 0, %v277_v39 }
  0x8b   : > { %279 = vst [vmem:[#allocation2 + $0x9c] sm:$0x1] %v278_v29  ;;  %v334_v28 = vsel %vm9885_vm4, 0, %v333_v20  ;;  %v683_v47 = vshrl.u32 %v10259_v37, 16  ;;  %v686_v32 = vshll.u32 %v10259_v37, 16  ;;  %v691_v27 = vshrl.u32 %v10261_v38, 16 }
  0x8c   : > { %2571 = vrot.lane.b32.xlu0 %v8647_v46, %s9833_s25  ;;  %v1858_v48 = vld [vmem:[#allocation2 + $0x94] sm:$0xf]  ;;  %v10308_v30 = vor.u32 %v711_v25, %v10295_v1  ;;  %v715_v33 = vrot.slane %v10295_v1, 4  ;;  %v893_v42 = vsel %vm9920_vm10, %v705_v9, %v892_v31  ;;  %335 = vst [vmem:[#allocation2 + $0xa4] sm:$0x1] %v334_v28  ;;  %v694_v43 = vshll.u32 %v10261_v38, 16 }
  0x8d   : > { %v1857_v44 = vld [vmem:[#allocation2 + $0x90] sm:$0xf]  ;;  %v1878_v26 = vld [vmem:[#allocation2 + $0x98] sm:$0x1]  ;;  %v2157_v49 = vshll.u32 %v1858_v48, 16  ;;  %v2161_v50 = vshrl.u32 %v1858_v48, 16  ;;  %v10314_v51 = vpack.c.bf16 %v378_v18, %v378_v18  ;;  %v10316_v52 = vpack.c.bf16 %v379_v16, %v379_v16 }
  0x8e   : > { %894 = vst [vmem:[#allocation2 + $0xa8] sm:$0xf] %v893_v42  ;;  %v2148_v55 = vshrl.u32 %v1857_v44, 16  ;;  %v2151_v54 = vshll.u32 %v1857_v44, 16  ;;  %v2167_v56 = vshll.u32 %v1878_v26, 16  ;;  %v2410_v35 = vrot.slane %v1858_v48, 5 }
  0x8f   : > { %v1855_v21 = vld [vmem:[#allocation2 + $0x84] sm:$0xf]  ;;  %v2159_v58 = vrot.slane %v2157_v49, 5  ;;  %v2163_v57 = vrot.slane %v2161_v50, 4  ;;  %v2278_v41 = vld [vmem:[#allocation2 + $0x90] sm:$0xe] }
  0x90   : > { %v2124_v59 = vshrl.u32 %v1855_v21, 16  ;;  %v2127_v60 = vshll.u32 %v1855_v21, 16  ;;  %2651 = vrot.lane.b32.xlu0 %v8663_v53, %s9832_s24  ;;  %v2150_v22 = vrot.slane %v2148_v55, 4  ;;  %v2153_v62 = vrot.slane %v2151_v54, 5  ;;  %v1856_v6 = vld [vmem:[#allocation2 + $0x88] sm:$0xf] }
  0x91   : > { %v2169_v63 = vrot.slane %v2167_v56, 5  ;;  %v8618_v5 = vrot.slane %v2278_v41, 9  ;;  %v2164_v7 = vor.u32 %v2163_v57, %v2159_v58  ;;  %v1877_v8 = vld [vmem:[#allocation2 + $0x8c] sm:$0x1]  ;;  %v2133_v12 = vshll.u32 %v1856_v6, 16 }
  0x92   : > { %v2126_v10 = vrot.slane %v2124_v59, 4  ;;  %v2129_v11 = vrot.slane %v2127_v60, 5  ;;  %v2154_v45 = vor.u32 %v2153_v62, %v2150_v22  ;;  %v2137_v13 = vshrl.u32 %v1856_v6, 16  ;;  %v2277_v15 = vld [vmem:[#allocation2 + $0x84] sm:$0xe] }
  0x93   : > { %v2143_v39 = vshll.u32 %v1877_v8, 16  ;;  %v2411_v14 = vsel %vm9968_vm13, %v8618_v5, %v2410_v35  ;;  %v2165_v3 = vrot.slane %v2164_v7, 4  ;;  %v2135_v53 = vrot.slane %v2133_v12, 5  ;;  %v896_v16 = vld [vmem:[#allocation2 + $0xb0] sm:$0x1] }
  0x94   : > { %v2130_v19 = vor.u32 %v2129_v11, %v2126_v10  ;;  %v2412_v20 = vrot.slane %v2410_v35, 4  ;;  %v2155_v61 = vrot.slane %v2154_v45, 4  ;;  %v2139_v23 = vrot.slane %v2137_v13, 4  ;;  %v286_v21 = vld [vmem:[#allocation2 + $0xc0] sm:$0x1] }
  0x95   : > { %v2145_v25 = vrot.slane %v2143_v39, 5  ;;  %v2413_v31 = vrot.slane %v1878_v26, 5  ;;  %v2170_v46 = vsel %vm9997_vm14, %v2165_v3, %v2169_v63  ;;  %v8617_v29 = vrot.slane %v2277_v15, 9  ;;  %v1861_v49 = vld [vmem:[#allocation2 + $0xa8] sm:$0xf] }
  0x96   : > { %v2131_v9 = vrot.slane %v2130_v19, 4  ;;  %v2403_v18 = vrot.slane %v1856_v6, 5  ;;  %v2160_v28 = vsel %vm9997_vm14, %v2155_v61, %v2159_v58  ;;  %v2140_v48 = vor.u32 %v2139_v23, %v2135_v53  ;;  %v10331_v56 = vld [vmem:[#allocation2 + $0xa8] sm:$0xe]  ;;  %v342_v62 = vld [vmem:[#allocation2 + $0xc8] sm:$0x1] }
  0x97   : > { %v2414_v42 = vsel %vm9968_vm13, %v2412_v20, %v2413_v31  ;;  %v2406_v44 = vrot.slane %v1877_v8, 5  ;;  %v8650_v50 = vcombine.low %v2160_v28, %v2170_v46  ;;  %v714_v58 = vsel %vm9914_vm7, %v706_v24, %v10308_v30  ;;  %v283_v45 = vld [vmem:[#allocation2 + $0xb4] sm:$0x1]  ;;  %v339_v13 = vld [vmem:[#allocation2 + $0xbc] sm:$0x1]  ;;  %v377_v3 = vld [vmem:[%s9897_s23 + $0xe8] sm:$0xff] }
  0x98   : > { %v2136_v26 = vsel %vm9997_vm14, %v2131_v9, %v2135_v53  ;;  %v8666_v55 = vcombine.low %v2411_v14, %v2414_v42  ;;  %v2404_v54 = vsel %vm9968_vm13, %v8617_v29, %v2403_v18  ;;  %v2141_v35 = vrot.slane %v2140_v48, 4  ;;  %895 = vst.msk [vmem:[#allocation2 + $0xac] sm:$0xf] %vm226_vm5, %v714_v58 }
  0x99   : > { %v2405_v57 = vrot.slane %v2403_v18, 4  ;;  %v897_v59 = vsel %vm9875_vm2, %v715_v33, %v896_v16  ;;  %2577 = vrot.lane.b32.xlu1 %v8650_v50, %s9833_s25  ;;  %v2196_v60 = vshrl.u32 %v1861_v49, 16  ;;  %v2199_v41 = vshll.u32 %v1861_v49, 16 }
  0x9a   : > { %898 = vst [vmem:[#allocation2 + $0xb0] sm:$0x1] %v897_v59  ;;  %v685_v22 = vrot.slane %v683_v47, 7  ;;  %v693_v2 = vrot.slane %v691_v27, 7  ;;  %v2146_v24 = vsel %vm9997_vm14, %v2141_v35, %v2145_v25  ;;  %v8620_v30 = vrot.slane %v10331_v56, 9 }
  0x9b   : > { %v2407_v1 = vsel %vm9968_vm13, %v2405_v57, %v2406_v44  ;;  %v287_v33 = vsel %vm9875_vm2, 0, %v286_v21  ;;  %v8649_v63 = vcombine.low %v2136_v26, %v2146_v24  ;;  %v2198_v5 = vrot.slane %v2196_v60, 4  ;;  %v885_v47 = vld [vmem:[#allocation2 + $0x9c] sm:$0xf]  ;;  %v889_v27 = vld [vmem:[#allocation2 + $0xa4] sm:$0x1] }
  0x9c   : > { %v8665_v6 = vcombine.low %v2404_v54, %v2407_v1  ;;  %v2201_v7 = vrot.slane %v2199_v41, 5  ;;  %288 = vst [vmem:[#allocation2 + $0xc0] sm:$0x1] %v287_v33  ;;  %v688_v8 = vor.u32 %v686_v32, %v685_v22  ;;  %v689_v10 = vrot.slane %v685_v22, 4  ;;  %v376_v32 = vld [vmem:[%s9897_s23 + $0xe0] sm:$0xff] }
  0x9d   : > { %v696_v11 = vor.u32 %v694_v43, %v693_v2  ;;  %v698_v12 = vrot.slane %v693_v2, 4  ;;  %2575 = vrot.lane.b32.xlu0 %v8649_v63, %s9833_s25  ;;  %2657 = vrot.lane.b32.xlu1 %v8666_v55, %s9832_s24  ;;  %v343_v14 = vsel %vm9885_vm4, 0, %v342_v62  ;;  %v734_v15 = vshrl.u32 %v10314_v51, 16 }
  0x9e   : > { %v2202_v39 = vor.u32 %v2201_v7, %v2198_v5  ;;  %v737_v37 = vshll.u32 %v10314_v51, 16  ;;  %v886_v43 = vsel %vm9920_vm10, %v688_v8, %v885_v47  ;;  %344 = vst [vmem:[#allocation2 + $0xc8] sm:$0x1] %v343_v14  ;;  %v742_v53 = vshrl.u32 %v10316_v52, 16  ;;  %v10407_v5 = vld [vmem:[#allocation2 + $0xc] sm:$0xf] }
  0x9f   : > { %v697_v38 = vsel %vm9914_vm7, %v689_v10, %v696_v11  ;;  %v890_v19 = vsel %vm9875_vm2, %v698_v12, %v889_v27  ;;  %887 = vst [vmem:[#allocation2 + $0x9c] sm:$0xf] %v886_v43  ;;  %v736_v51 = vrot.slane %v734_v15, 7  ;;  %v745_v61 = vshll.u32 %v10316_v52, 16  ;;  %v1862_v25 = vld [vmem:[#allocation2 + $0xac] sm:$0xf] }
  0xa0   : > { %v10374_v20 = vrot.slane %v2202_v39, 4  ;;  %888 = vst.msk [vmem:[#allocation2 + $0xa0] sm:$0xf] %vm226_vm5, %v697_v38  ;;  %891 = vst [vmem:[#allocation2 + $0xa4] sm:$0x1] %v890_v19  ;;  %v284_v23 = vsel %vm9875_vm2, 0, %v283_v45  ;;  %v10382_v29 = vpack.c.bf16 %v376_v32, %v376_v32  ;;  %v10384_v18 = vpack.c.bf16 %v377_v3, %v377_v3 }
  0xa1   : > { %v1880_v31 = vld [vmem:[#allocation2 + $0xb0] sm:$0x1]  ;;  %v744_v46 = vrot.slane %v742_v53, 7  ;;  %285 = vst [vmem:[#allocation2 + $0xb4] sm:$0x1] %v284_v23  ;;  %v340_v9 = vsel %vm9885_vm4, 0, %v339_v13  ;;  %2655 = vrot.lane.b32.xlu0 %v8665_v6, %s9832_s24  ;;  %v739_v44 = vor.u32 %v737_v37, %v736_v51 }
  0xa2   : > { %v2205_v16 = vshll.u32 %v1862_v25, 16  ;;  %v2209_v28 = vshrl.u32 %v1862_v25, 16  ;;  %v2215_v48 = vshll.u32 %v1880_v31, 16  ;;  %v2424_v52 = vrot.slane %v1862_v25, 5  ;;  %341 = vst [vmem:[#allocation2 + $0xbc] sm:$0x1] %v340_v9 }
  0xa3   : > { %v2427_v42 = vrot.slane %v1880_v31, 5  ;;  %v740_v49 = vrot.slane %v736_v51, 4  ;;  %v747_v50 = vor.u32 %v745_v61, %v744_v46  ;;  %v906_v26 = vld [vmem:[#allocation2 + $0xc0] sm:$0xf]  ;;  %v749_v58 = vrot.slane %v744_v46, 4 }
  0xa4   : > { %v2207_v55 = vrot.slane %v2205_v16, 5  ;;  %v2211_v54 = vrot.slane %v2209_v28, 4  ;;  %v2217_v56 = vrot.slane %v2215_v48, 5  ;;  %v10389_v21 = vsel %vm9968_vm13, %v8620_v30, %v2424_v52  ;;  %v10405_v6 = vld [vmem:[#allocation2 + $0x10] sm:$0xf] }
  0xa5   : > { %v2426_v35 = vrot.slane %v2424_v52, 4  ;;  %v748_v57 = vsel %vm9914_vm7, %v740_v49, %v747_v50  ;;  %v907_v59 = vsel %vm9920_vm10, %v739_v44, %v906_v26  ;;  %v910_v22 = vld [vmem:[#allocation2 + $0xc8] sm:$0x1]  ;;  %v717_v2 = vshrl.u32 %v10382_v29, 16  ;;  %v10411_v47 = vld [vmem:[#allocation2 + $0x1c] sm:$0xf] }
  0xa6   : > { %v2208_v60 = vsel %vm9997_vm14, %v10374_v20, %v2207_v55  ;;  %v2212_v41 = vor.u32 %v2211_v54, %v2207_v55  ;;  %908 = vst [vmem:[#allocation2 + $0xc0] sm:$0xf] %v907_v59  ;;  %909 = vst.msk [vmem:[#allocation2 + $0xc4] sm:$0xf] %vm226_vm5, %v748_v57  ;;  %v720_v24 = vshll.u32 %v10382_v29, 16  ;;  %v911_v63 = vsel %vm9875_vm2, %v749_v58, %v910_v22 }
  0xa7   : > { %v1859_v1 = vld [vmem:[#allocation2 + $0x9c] sm:$0xf]  ;;  %v1860_v30 = vld [vmem:[#allocation2 + $0xa0] sm:$0xf]  ;;  %v1879_v33 = vld [vmem:[#allocation2 + $0xa4] sm:$0x1]  ;;  %v2428_v62 = vsel %vm9968_vm13, %v2426_v35, %v2427_v42  ;;  %v8623_v7 = vcombine.low %v10407_v5, %v10405_v6 }
  0xa8   : > { %v10413_v27 = vld [vmem:[#allocation2 + $0x18] sm:$0xf]  ;;  %v2213_v10 = vrot.slane %v2212_v41, 4  ;;  %v2172_v11 = vshrl.u32 %v1859_v1, 16  ;;  %v2175_v12 = vshll.u32 %v1859_v1, 16  ;;  %v2181_v45 = vshll.u32 %v1860_v30, 16 }
  0xa9   : > { %v8624_v8 = vcombine.low %v10413_v27, %v10411_v47  ;;  %v2279_v13 = vld [vmem:[#allocation2 + $0x9c] sm:$0xe]  ;;  %912 = vst [vmem:[#allocation2 + $0xc8] sm:$0x1] %v911_v63  ;;  %v2185_v39 = vshrl.u32 %v1860_v30, 16  ;;  %v2191_v14 = vshll.u32 %v1879_v33, 16  ;;  %v8668_v15 = vcombine.low %v10389_v21, %v2428_v62 }
  0xaa   : > { %v8619_v37 = vrot.slane %v2279_v13, 9  ;;  %v2218_v32 = vsel %vm9997_vm14, %v2213_v10, %v2217_v56  ;;  %v2174_v3 = vrot.slane %v2172_v11, 4  ;;  %v2177_v38 = vrot.slane %v2175_v12, 5  ;;  %v899_v59 = vld [vmem:[#allocation2 + $0xb4] sm:$0xf] }
  0xab   : > { %v2183_v43 = vrot.slane %v2181_v45, 5  ;;  %v8652_v19 = vcombine.low %v2208_v60, %v2218_v32  ;;  %v2187_v53 = vrot.slane %v2185_v39, 4  ;;  %v2193_v20 = vrot.slane %v2191_v14, 5  ;;  %v915_v62 = vld [vmem:[#allocation2 + $0xc] sm:$0xf] }
  0xac   : > { %v2417_v51 = vrot.slane %v1860_v30, 5  ;;  %v2178_v61 = vor.u32 %v2177_v38, %v2174_v3  ;;  %v2420_v23 = vrot.slane %v1879_v33, 5  ;;  %v719_v25 = vrot.slane %v717_v2, 7  ;;  %v903_v12 = vld [vmem:[#allocation2 + $0xbc] sm:$0x1] }
  0xad   : > { %v725_v31 = vshrl.u32 %v10384_v18, 16  ;;  %2581 = vrot.lane.b32.xlu1 %v8652_v19, %s9833_s25  ;;  %v2188_v46 = vor.u32 %v2187_v53, %v2183_v43  ;;  %v1865_v16 = vld [vmem:[#allocation2 + $0xc0] sm:$0xf]  ;;  %v1866_v28 = vld [vmem:[#allocation2 + $0xc4] sm:$0xf]  ;;  %v728_v48 = vshll.u32 %v10384_v18, 16 }
  0xae   : > { %v2418_v9 = vsel %vm9968_vm13, %v8619_v37, %v2417_v51  ;;  %v2419_v29 = vrot.slane %v2417_v51, 4  ;;  %v2179_v52 = vrot.slane %v2178_v61, 4  ;;  %v2244_v42 = vshrl.u32 %v1865_v16, 16  ;;  %v2282_v60 = vld [vmem:[#allocation2 + $0xc0] sm:$0xe] }
  0xaf   : > { %v2247_v44 = vshll.u32 %v1865_v16, 16  ;;  %v2253_v49 = vshll.u32 %v1866_v28, 16  ;;  %v2189_v50 = vrot.slane %v2188_v46, 4  ;;  %v2257_v54 = vshrl.u32 %v1866_v28, 16  ;;  %v916_v37 = vld [vmem:[#allocation2 + $0x10] sm:$0xf] }
  0xb0   : > { %v2421_v26 = vsel %vm9968_vm13, %v2419_v29, %v2420_v23  ;;  %v1882_v55 = vld [vmem:[#allocation2 + $0xc8] sm:$0x1]  ;;  %v722_v56 = vor.u32 %v720_v24, %v719_v25  ;;  %v2184_v21 = vsel %vm9997_vm14, %v2179_v52, %v2183_v43  ;;  %v2246_v57 = vrot.slane %v2244_v42, 4  ;;  %v10435_v38 = vld [vmem:[#allocation2 + $0x14] sm:$0x1] }
  0xb1   : > { %v8667_v35 = vcombine.low %v2418_v9, %v2421_v26  ;;  %v2249_v58 = vrot.slane %v2247_v44, 5  ;;  %v2194_v18 = vsel %vm9997_vm14, %v2189_v50, %v2193_v20  ;;  %2661 = vrot.lane.b32.xlu1 %v8668_v15, %s9832_s24  ;;  %v2255_v41 = vrot.slane %v2253_v49, 5  ;;  %v1349_v23 = vld [vmem:[#allocation2 + $0xc] sm:$0xe] }
  0xb2   : > { %v2259_v22 = vrot.slane %v2257_v54, 4  ;;  %v2263_v2 = vshll.u32 %v1882_v55, 16  ;;  %v8651_v1 = vcombine.low %v2184_v21, %v2194_v18  ;;  %v723_v33 = vrot.slane %v719_v25, 4  ;;  %v10465_v18 = vld [vmem:[#allocation2 + $0x24] sm:$0xf] }
  0xb3   : > { %v2250_v30 = vor.u32 %v2249_v58, %v2246_v57  ;;  %v727_v24 = vrot.slane %v725_v31, 7  ;;  %v900_v11 = vsel %vm9920_vm10, %v722_v56, %v899_v59  ;;  %v8622_v45 = vrot.slane %v2282_v60, 9  ;;  %v10459_v58 = vld [vmem:[#allocation2 + $0x30] sm:$0xf]  ;;  %v10461_v59 = vld [vmem:[#allocation2 + $0x34] sm:$0xf] }
  0xb4   : > { %v2260_v63 = vor.u32 %v2259_v22, %v2255_v41  ;;  %v2265_v10 = vrot.slane %v2263_v2, 5  ;;  %2579 = vrot.lane.b32.xlu0 %v8651_v1, %s9833_s25  ;;  %901 = vst [vmem:[#allocation2 + $0xb4] sm:$0xf] %v900_v11  ;;  %v2438_v15 = vrot.slane %v1866_v28, 5  ;;  %v2441_v3 = vrot.slane %v1882_v55, 5 }
  0xb5   : > { %v2251_v13 = vrot.slane %v2250_v30, 4  ;;  %v730_v39 = vor.u32 %v728_v48, %v727_v24  ;;  %v732_v14 = vrot.slane %v727_v24, 4  ;;  %v989_v43 = vshrl.u32 %v915_v62, 16 }
  0xb6   : > { %v2261_v32 = vrot.slane %v2260_v63, 4  ;;  %v992_v19 = vshll.u32 %v915_v62, 16  ;;  %v2439_v61 = vsel %vm9968_vm13, %v8622_v45, %v2438_v15  ;;  %v2440_v31 = vrot.slane %v2438_v15, 4 }
  0xb7   : > { %v2256_v53 = vsel %vm9997_vm14, %v2251_v13, %v2255_v41  ;;  %v731_v20 = vsel %vm9914_vm7, %v723_v33, %v730_v39  ;;  %v904_v51 = vsel %vm9875_vm2, %v732_v14, %v903_v12  ;;  %v991_v46 = vrot.slane %v989_v43, 4  ;;  %v10467_v41 = vld [vmem:[#allocation2 + $0x28] sm:$0xf]  ;;  %v10481_v14 = vld [vmem:[#allocation2 + $0x4c] sm:$0xf] }
  0xb8   : > { %v2266_v25 = vsel %vm9997_vm14, %v2261_v32, %v2265_v10  ;;  %902 = vst.msk [vmem:[#allocation2 + $0xb8] sm:$0xf] %vm226_vm5, %v731_v20  ;;  %905 = vst [vmem:[#allocation2 + $0xbc] sm:$0x1] %v904_v51  ;;  %v994_v9 = vrot.slane %v992_v19, 5  ;;  %2659 = vrot.lane.b32.xlu0 %v8667_v35, %s9832_s24  ;;  %v998_v16 = vshll.u32 %v916_v37, 16  ;;  %v2442_v52 = vsel %vm9968_vm13, %v2440_v31, %v2441_v3 }
  0xb9   : > { %v8654_v29 = vcombine.low %v2256_v53, %v2266_v25  ;;  %v1002_v28 = vshrl.u32 %v916_v37, 16  ;;  %v1008_v48 = vshll.u32 %v10435_v38, 16  ;;  %v8544_v44 = vrot.slane %v1349_v23, 9  ;;  %v10479_v39 = vld [vmem:[#allocation2 + $0x48] sm:$0xf] }
  0xba   : > { %v995_v42 = vor.u32 %v994_v9, %v991_v46  ;;  %v8670_v49 = vcombine.low %v2439_v61, %v2442_v52  ;;  %v1000_v50 = vrot.slane %v998_v16, 5  ;;  %v9834_v54 = vmov 0   ;;  %v10487_v32 = vld [vmem:[#allocation2 + $0x40] sm:$0xf]  ;;  %v919_v16 = vld [vmem:[#allocation2 + $0x24] sm:$0xf] }
  0xbb   : > { %2585 = vrot.lane.b32.xlu1 %v8654_v29, %s9833_s25  ;;  %v1004_v26 = vrot.slane %v1002_v28, 4  ;;  %v1010_v55 = vrot.slane %v1008_v48, 5  ;;  %227 = vst.msk [vmem:[#allocation2] sm:$0xf] %vm226_vm5, %v9834_v54  ;;  %228 = vst.msk [vmem:[#allocation2 + $0x4] sm:$0xf] %vm226_vm5, %v9834_v54  ;;  %v8626_v60 = vcombine.low %v10459_v58, %v10461_v59  ;;  %v8625_v22 = vcombine.low %v10465_v18, %v10467_v41 }
  0xbc   : > { %230 = vst.msk [vmem:[#allocation2 + $0x8] sm:$0x1] %vm229_vm0, %v9834_v54  ;;  %234 = vst.msk [vmem:[#allocation2 + $0xd4] sm:$0x1] %vm229_vm0, %v9834_v54  ;;  %v1863_v56 = vld [vmem:[#allocation2 + $0xb4] sm:$0xf]  ;;  %v8628_v15 = vcombine.low %v10479_v39, %v10481_v14 }
  0xbd   : > { %232 = vst.msk [vmem:[#allocation2 + $0xcc] sm:$0xf] %vm226_vm5, %v9834_v54  ;;  %233 = vst.msk [vmem:[#allocation2 + $0xd0] sm:$0xf] %vm226_vm5, %v9834_v54  ;;  %v2281_v21 = vld [vmem:[#allocation2 + $0xb4] sm:$0xe]  ;;  %v1005_v33 = vor.u32 %v1004_v26, %v1000_v50 }
  0xbe   : > { %v996_v35 = vrot.slane %v995_v42, 4  ;;  %v1424_v57 = vrot.slane %v916_v37, 5  ;;  %v2220_v2 = vshrl.u32 %v1863_v56, 16  ;;  %v2223_v1 = vshll.u32 %v1863_v56, 16  ;;  %v10485_v37 = vld [vmem:[#allocation2 + $0x3c] sm:$0xf] }
  0xbf   : > { %v8621_v30 = vrot.slane %v2281_v21, 9  ;;  %v1427_v10 = vrot.slane %v10435_v38, 5  ;;  %v1864_v11 = vld [vmem:[#allocation2 + $0xb8] sm:$0xf]  ;;  %v1881_v12 = vld [vmem:[#allocation2 + $0xbc] sm:$0x1]  ;;  %2665 = vrot.lane.b32.xlu1 %v8670_v49, %s9832_s24  ;;  %v8627_v3 = vcombine.low %v10485_v37, %v10487_v32 }
  0xc0   : > { %v1001_v24 = vsel %vm9997_vm14, %v996_v35, %v1000_v50  ;;  %v10475_v62 = vsel %vm9968_vm13, %v8544_v44, %v1424_v57  ;;  %v1426_v63 = vrot.slane %v1424_v57, 4  ;;  %v2222_v45 = vrot.slane %v2220_v2, 4 }
  0xc1   : > { %v2225_v13 = vrot.slane %v2223_v1, 5  ;;  %v2229_v38 = vshll.u32 %v1864_v11, 16  ;;  %v2233_v43 = vshrl.u32 %v1864_v11, 16  ;;  %v2239_v19 = vshll.u32 %v1881_v12, 16  ;;  %v10508_v1 = vld [vmem:[#allocation2 + $0x28] sm:$0xf] }
  0xc2   : > { %v2431_v53 = vrot.slane %v1864_v11, 5  ;;  %v2434_v51 = vrot.slane %v1881_v12, 5  ;;  %v1006_v61 = vrot.slane %v1005_v33, 4  ;;  %v1428_v23 = vsel %vm9968_vm13, %v1426_v63, %v1427_v10  ;;  %v238_v29 = vld [vmem:[#allocation2] sm:$0x1] }
  0xc3   : > { %v2226_v20 = vor.u32 %v2225_v13, %v2222_v45  ;;  %v2231_v25 = vrot.slane %v2229_v38, 5  ;;  %v2235_v31 = vrot.slane %v2233_v43, 4  ;;  %v2241_v46 = vrot.slane %v2239_v19, 5  ;;  %v294_v44 = vld [vmem:[#allocation2 + $0x8] sm:$0x1] }
  0xc4   : > { %v10495_v9 = vsel %vm9968_vm13, %v8621_v30, %v2431_v53  ;;  %v2433_v48 = vrot.slane %v2431_v53, 4  ;;  %v1011_v52 = vsel %vm9997_vm14, %v1006_v61, %v1010_v55  ;;  %v239_v42 = vsel %vm9875_vm2, 0, %v238_v29  ;;  %v914_v54 = vld [vmem:[#allocation2 + $0x4] sm:$0xf]  ;;  %v1348_v21 = vld [vmem:[#allocation2] sm:$0xe] }
  0xc5   : > { %v2227_v28 = vrot.slane %v2226_v20, 4  ;;  %v2236_v49 = vor.u32 %v2235_v31, %v2231_v25  ;;  %v8576_v50 = vcombine.low %v1001_v24, %v1011_v52  ;;  %240 = vst [vmem:[#allocation2] sm:$0x1] %v239_v42  ;;  %v295_v26 = vsel %vm9885_vm4, 0, %v294_v44  ;;  %v917_v13 = vld [vmem:[#allocation2 + $0x18] sm:$0xf] }
  0xc6   : > { %v8592_v56 = vcombine.low %v10475_v62, %v1428_v23  ;;  %v2435_v55 = vsel %vm9968_vm13, %v2433_v48, %v2434_v51  ;;  %296 = vst [vmem:[#allocation2 + $0x8] sm:$0x1] %v295_v26  ;;  %v974_v57 = vshll.u32 %v914_v54, 16  ;;  %v978_v2 = vshrl.u32 %v914_v54, 16  ;;  %v10512_v62 = vld [vmem:[#allocation2 + $0x2c] sm:$0x1] }
  0xc7   : > { %v2232_v35 = vsel %vm9997_vm14, %v2227_v28, %v2231_v25  ;;  %v2237_v30 = vrot.slane %v2236_v49, 4  ;;  %v8669_v33 = vcombine.low %v10495_v9, %v2435_v55  ;;  %1641 = vrot.lane.b32.xlu1 %v8576_v50, %s9833_s25  ;;  %v8543_v24 = vrot.slane %v1348_v21, 9  ;;  %v10523_v20 = vld [vmem:[#allocation2 + $0x1c] sm:$0xf]  ;;  %v947_v55 = vld [vmem:[#allocation2 + $0x20] sm:$0x1] }
  0xc8   : > { %v1417_v63 = vrot.slane %v914_v54, 5  ;;  %v10514_v10 = vrot.slane %v974_v57, 5  ;;  %v980_v11 = vrot.slane %v978_v2, 4  ;;  %v1037_v12 = vshrl.u32 %v919_v16, 16 }
  0xc9   : > { %v1040_v45 = vshll.u32 %v919_v16, 16  ;;  %v2242_v38 = vsel %vm9997_vm14, %v2237_v30, %v2241_v46  ;;  %v1046_v53 = vshll.u32 %v10508_v1, 16  ;;  %v1050_v9 = vshrl.u32 %v10508_v1, 16 }
  0xca   : > { %v10520_v43 = vsel %vm9968_vm13, %v8543_v24, %v1417_v63  ;;  %v1419_v19 = vrot.slane %v1417_v63, 4  ;;  %v8653_v51 = vcombine.low %v2232_v35, %v2242_v38  ;;  %v981_v61 = vor.u32 %v980_v11, %v10514_v10  ;;  %v1351_v11 = vld [vmem:[#allocation2 + $0x24] sm:$0xe] }
  0xcb   : > { %v1039_v23 = vrot.slane %v1037_v12, 4  ;;  %v1042_v25 = vrot.slane %v1040_v45, 5  ;;  %1721 = vrot.lane.b32.xlu1 %v8592_v56, %s9832_s24  ;;  %v1048_v31 = vrot.slane %v1046_v53, 5  ;;  %v1056_v46 = vshll.u32 %v10512_v62, 16 }
  0xcc   : > { %v1013_v29 = vshrl.u32 %v917_v13, 16  ;;  %2583 = vrot.lane.b32.xlu0 %v8653_v51, %s9833_s25  ;;  %v913_v16 = vld [vmem:[#allocation2] sm:$0xf]  ;;  %v982_v28 = vrot.slane %v981_v61, 4  ;;  %v1016_v52 = vshll.u32 %v917_v13, 16  ;;  %v1022_v42 = vshll.u32 %v10523_v20, 16 }
  0xcd   : > { %v1043_v48 = vor.u32 %v1042_v25, %v1039_v23  ;;  %v945_v44 = vld [vmem:[#allocation2 + $0x8] sm:$0x1]  ;;  %v965_v49 = vshrl.u32 %v913_v16, 16  ;;  %v968_v50 = vshll.u32 %v913_v16, 16  ;;  %v1052_v26 = vrot.slane %v1050_v9, 4 }
  0xce   : > { %v1058_v54 = vrot.slane %v1056_v46, 5  ;;  %v984_v56 = vshll.u32 %v945_v44, 16  ;;  %v1420_v21 = vrot.slane %v945_v44, 5  ;;  %v1015_v57 = vrot.slane %v1013_v29, 4 }
  0xcf   : > { %v1044_v35 = vrot.slane %v1043_v48, 4  ;;  %v967_v2 = vrot.slane %v965_v49, 4  ;;  %v970_v30 = vrot.slane %v968_v50, 5  ;;  %v1053_v24 = vor.u32 %v1052_v26, %v1048_v31  ;;  %v1350_v48 = vld [vmem:[#allocation2 + $0x18] sm:$0xe] }
  0xd0   : > { %v1018_v63 = vrot.slane %v1016_v52, 5  ;;  %2663 = vrot.lane.b32.xlu0 %v8669_v33, %s9832_s24  ;;  %v986_v12 = vrot.slane %v984_v56, 5  ;;  %v1421_v45 = vsel %vm9968_vm13, %v1419_v19, %v1420_v21  ;;  %v1024_v38 = vrot.slane %v1022_v42, 5  ;;  %v923_v49 = vld [vmem:[#allocation2 + $0x3c] sm:$0xf] }
  0xd1   : > { %v1049_v13 = vsel %vm9997_vm14, %v1044_v35, %v1048_v31  ;;  %v971_v53 = vor.u32 %v970_v30, %v967_v2  ;;  %v8591_v51 = vcombine.low %v10520_v43, %v1421_v45  ;;  %v1054_v61 = vrot.slane %v1053_v24, 4  ;;  %v950_v30 = vld [vmem:[#allocation2 + $0x44] sm:$0x1] }
  0xd2   : > { %v1019_v23 = vor.u32 %v1018_v63, %v1015_v57  ;;  %v987_v25 = vsel %vm9997_vm14, %v982_v28, %v986_v12  ;;  %v1026_v9 = vshrl.u32 %v10523_v20, 16  ;;  %v1032_v46 = vshll.u32 %v947_v55, 16  ;;  %v921_v57 = vld [vmem:[#allocation2 + $0x30] sm:$0xf] }
  0xd3   : > { %v8546_v33 = vrot.slane %v1351_v11, 9  ;;  %v972_v29 = vrot.slane %v971_v53, 4  ;;  %v1059_v19 = vsel %vm9997_vm14, %v1054_v61, %v1058_v54  ;;  %v1438_v31 = vrot.slane %v10508_v1, 5 }
  0xd4   : > { %v1020_v16 = vrot.slane %v1019_v23, 4  ;;  %v8578_v52 = vcombine.low %v1049_v13, %v1059_v19  ;;  %v1028_v42 = vrot.slane %v1026_v9, 4  ;;  %v1034_v43 = vrot.slane %v1032_v46, 5  ;;  %v922_v9 = vld [vmem:[#allocation2 + $0x34] sm:$0xf] }
  0xd5   : > { %v1441_v44 = vrot.slane %v10512_v62, 5  ;;  %v977_v28 = vsel %vm9997_vm14, %v972_v29, %v10514_v10  ;;  %v1439_v26 = vsel %vm9968_vm13, %v8546_v33, %v1438_v31  ;;  %v1440_v54 = vrot.slane %v1438_v31, 4  ;;  %v924_v62 = vld [vmem:[#allocation2 + $0x40] sm:$0xf]  ;;  %v949_v46 = vld [vmem:[#allocation2 + $0x38] sm:$0x1] }
  0xd6   : > { %v1025_v50 = vsel %vm9997_vm14, %v1020_v16, %v1024_v38  ;;  %v8575_v56 = vcombine.low %v977_v28, %v987_v25  ;;  %1645 = vrot.lane.b32.xlu1 %v8578_v52, %s9833_s25  ;;  %v1029_v1 = vor.u32 %v1028_v42, %v1024_v38  ;;  %v8545_v21 = vrot.slane %v1350_v48, 9  ;;  %v1353_v48 = vld [vmem:[#allocation2 + $0x3c] sm:$0xe] }
  0xd7   : > { %v1431_v35 = vrot.slane %v10523_v20, 5  ;;  %v1442_v2 = vsel %vm9968_vm13, %v1440_v54, %v1441_v44  ;;  %v1434_v10 = vrot.slane %v947_v55, 5  ;;  %v1085_v24 = vshrl.u32 %v923_v49, 16 }
  0xd8   : > { %v1088_v63 = vshll.u32 %v923_v49, 16  ;;  %1639 = vrot.lane.b32.xlu0 %v8575_v56, %s9833_s25  ;;  %v1030_v11 = vrot.slane %v1029_v1, 4  ;;  %v8594_v12 = vcombine.low %v1439_v26, %v1442_v2  ;;  %v1094_v20 = vshll.u32 %v924_v62, 16  ;;  %v1352_v2 = vld [vmem:[#allocation2 + $0x30] sm:$0xe] }
  0xd9   : > { %v1432_v45 = vsel %vm9968_vm13, %v8545_v21, %v1431_v35  ;;  %v1433_v13 = vrot.slane %v1431_v35, 4  ;;  %v1087_v38 = vrot.slane %v1085_v24, 4  ;;  %v1098_v61 = vshrl.u32 %v924_v62, 16 }
  0xda   : > { %v1090_v53 = vrot.slane %v1088_v63, 5  ;;  %v1035_v23 = vsel %vm9997_vm14, %v1030_v11, %v1034_v43  ;;  %1725 = vrot.lane.b32.xlu1 %v8594_v12, %s9832_s24  ;;  %v1104_v25 = vshll.u32 %v950_v30, 16  ;;  %v1061_v33 = vshrl.u32 %v921_v57, 16 }
  0xdb   : > { %v1435_v55 = vsel %vm9968_vm13, %v1433_v13, %v1434_v10  ;;  %v8577_v29 = vcombine.low %v1025_v50, %v1035_v23  ;;  %v1096_v31 = vrot.slane %v1094_v20, 5  ;;  %v1100_v52 = vrot.slane %v1098_v61, 4 }
  0xdc   : > { %v8593_v19 = vcombine.low %v1432_v45, %v1435_v55  ;;  %v1091_v16 = vor.u32 %v1090_v53, %v1087_v38  ;;  %1719 = vrot.lane.b32.xlu0 %v8591_v51, %s9832_s24  ;;  %v1106_v42 = vrot.slane %v1104_v25, 5  ;;  %v1063_v44 = vrot.slane %v1061_v33, 4  ;;  %v927_v51 = vld [vmem:[#allocation2 + $0x54] sm:$0xf]  ;;  %v928_v55 = vld [vmem:[#allocation2 + $0x58] sm:$0xf] }
  0xdd   : > { %v1064_v43 = vshll.u32 %v921_v57, 16  ;;  %v1070_v28 = vshll.u32 %v922_v9, 16  ;;  %v1074_v26 = vshrl.u32 %v922_v9, 16  ;;  %v1080_v54 = vshll.u32 %v949_v46, 16 }
  0xde   : > { %v1092_v49 = vrot.slane %v1091_v16, 4  ;;  %v1101_v56 = vor.u32 %v1100_v52, %v1096_v31  ;;  %v8548_v21 = vrot.slane %v1353_v48, 9  ;;  %v1452_v35 = vrot.slane %v924_v62, 5  ;;  %v952_v48 = vld [vmem:[#allocation2 + $0x5c] sm:$0x1] }
  0xdf   : > { %v1066_v1 = vrot.slane %v1064_v43, 5  ;;  %v1072_v10 = vrot.slane %v1070_v28, 5  ;;  %v1076_v24 = vrot.slane %v1074_v26, 4  ;;  %v1082_v63 = vrot.slane %v1080_v54, 5  ;;  %v925_v52 = vld [vmem:[#allocation2 + $0x48] sm:$0xf] }
  0xe0   : > { %v1097_v50 = vsel %vm9997_vm14, %v1092_v49, %v1096_v31  ;;  %1643 = vrot.lane.b32.xlu0 %v8577_v29, %s9833_s25  ;;  %v1102_v11 = vrot.slane %v1101_v56, 4  ;;  %v1453_v12 = vsel %vm9968_vm13, %v8548_v21, %v1452_v35  ;;  %v1454_v45 = vrot.slane %v1452_v35, 4  ;;  %v926_v26 = vld [vmem:[#allocation2 + $0x4c] sm:$0xf] }
  0xe1   : > { %v1067_v57 = vor.u32 %v1066_v1, %v1063_v44  ;;  %v1077_v13 = vor.u32 %v1076_v24, %v1072_v10  ;;  %v1455_v38 = vrot.slane %v950_v30, 5  ;;  %v8547_v53 = vrot.slane %v1352_v2, 9  ;;  %v10583_v1 = vld [vmem:[#allocation2 + $0x50] sm:$0x1]  ;;  %v1355_v24 = vld [vmem:[#allocation2 + $0x54] sm:$0xe] }
  0xe2   : > { %v1445_v62 = vrot.slane %v922_v9, 5  ;;  %v1107_v20 = vsel %vm9997_vm14, %v1102_v11, %v1106_v42  ;;  %v1448_v23 = vrot.slane %v949_v46, 5  ;;  %v1133_v25 = vshrl.u32 %v927_v51, 16 }
  0xe3   : > { %v1068_v61 = vrot.slane %v1067_v57, 4  ;;  %v8580_v33 = vcombine.low %v1097_v50, %v1107_v20  ;;  %v1078_v16 = vrot.slane %v1077_v13, 4  ;;  %v1456_v29 = vsel %vm9968_vm13, %v1454_v45, %v1455_v38 }
  0xe4   : > { %v1446_v31 = vsel %vm9968_vm13, %v8547_v53, %v1445_v62  ;;  %1723 = vrot.lane.b32.xlu0 %v8593_v19, %s9832_s24  ;;  %v8596_v9 = vcombine.low %v1453_v12, %v1456_v29  ;;  %v1447_v42 = vrot.slane %v1445_v62, 4  ;;  %v1135_v46 = vrot.slane %v1133_v25, 4  ;;  %v10588_v25 = vpop.permute.xlu0 %2555 }
  0xe5   : > { %v1073_v30 = vsel %vm9997_vm14, %v1068_v61, %v1072_v10  ;;  %1649 = vrot.lane.b32.xlu1 %v8580_v33, %s9833_s25  ;;  %v1083_v44 = vsel %vm9997_vm14, %v1078_v16, %v1082_v63  ;;  %v1136_v43 = vshll.u32 %v927_v51, 16  ;;  %v1142_v49 = vshll.u32 %v928_v55, 16 }
  0xe6   : > { %v1146_v28 = vshrl.u32 %v928_v55, 16  ;;  %v8579_v54 = vcombine.low %v1073_v30, %v1083_v44  ;;  %v1449_v56 = vsel %vm9968_vm13, %v1447_v42, %v1448_v23  ;;  %v1152_v19 = vshll.u32 %v952_v48, 16  ;;  %v1354_v23 = vld [vmem:[#allocation2 + $0x48] sm:$0xe]  ;;  %v931_v44 = vld [vmem:[#allocation2 + $0x6c] sm:$0xf] }
  0xe7   : > { %v1109_v21 = vshrl.u32 %v925_v52, 16  ;;  %v8595_v35 = vcombine.low %v1446_v31, %v1449_v56  ;;  %v1138_v2 = vrot.slane %v1136_v43, 5  ;;  %v1144_v50 = vrot.slane %v1142_v49, 5 }
  0xe8   : > { %v1148_v10 = vrot.slane %v1146_v28, 4  ;;  %1647 = vrot.lane.b32.xlu0 %v8579_v54, %s9833_s25  ;;  %v1154_v63 = vrot.slane %v1152_v19, 5  ;;  %v1112_v11 = vshll.u32 %v925_v52, 16  ;;  %v1118_v57 = vshll.u32 %v926_v26, 16  ;;  %v10590_v52 = vpop.permute.xlu1 %2635 }
  0xe9   : > { %v1111_v51 = vrot.slane %v1109_v21, 4  ;;  %1729 = vrot.lane.b32.xlu1 %v8596_v9, %s9832_s24  ;;  %v1139_v12 = vor.u32 %v1138_v2, %v1135_v46  ;;  %v1122_v13 = vshrl.u32 %v926_v26, 16  ;;  %v1128_v38 = vshll.u32 %v10583_v1, 16 }
  0xea   : > { %v1149_v45 = vor.u32 %v1148_v10, %v1144_v50  ;;  %v1114_v53 = vrot.slane %v1112_v11, 5  ;;  %v1120_v62 = vrot.slane %v1118_v57, 5  ;;  %v8550_v20 = vrot.slane %v1355_v24, 9  ;;  %v10602_v24 = vld [vmem:[#allocation2 + $0x74] sm:$0x1] }
  0xeb   : > { %v1466_v61 = vrot.slane %v928_v55, 5  ;;  %v1140_v33 = vrot.slane %v1139_v12, 4  ;;  %v1124_v29 = vrot.slane %v1122_v13, 4  ;;  %v1130_v31 = vrot.slane %v1128_v38, 5  ;;  %v929_v12 = vld [vmem:[#allocation2 + $0x60] sm:$0xf] }
  0xec   : > { %v1150_v16 = vrot.slane %v1149_v45, 4  ;;  %1727 = vrot.lane.b32.xlu0 %v8595_v35, %s9832_s24  ;;  %v1115_v30 = vor.u32 %v1114_v53, %v1111_v51  ;;  %v1469_v46 = vrot.slane %v952_v48, 5  ;;  %v8549_v28 = vrot.slane %v1354_v23, 9  ;;  %v932_v35 = vld [vmem:[#allocation2 + $0x70] sm:$0xf] }
  0xed   : > { %v1467_v9 = vsel %vm9968_vm13, %v8550_v20, %v1466_v61  ;;  %v1468_v42 = vrot.slane %v1466_v61, 4  ;;  %v1145_v55 = vsel %vm9997_vm14, %v1140_v33, %v1144_v50  ;;  %v1125_v49 = vor.u32 %v1124_v29, %v1120_v62  ;;  %v930_v53 = vld [vmem:[#allocation2 + $0x64] sm:$0xf]  ;;  %v10613_v20 = vpop.permute.xlu1 %2637 }
  0xee   : > { %v1155_v43 = vsel %vm9997_vm14, %v1150_v16, %v1154_v63  ;;  %v1116_v56 = vrot.slane %v1115_v30, 4  ;;  %v1459_v21 = vrot.slane %v926_v26, 5  ;;  %v1462_v48 = vrot.slane %v10583_v1, 5  ;;  %v10609_v26 = vpop.permute.xlu0 %2557  ;;  %v10618_v16 = vld [vmem:[#allocation2 + $0x68] sm:$0x1] }
  0xef   : > { %v8582_v54 = vcombine.low %v1145_v55, %v1155_v43  ;;  %v1470_v19 = vsel %vm9968_vm13, %v1468_v42, %v1469_v46  ;;  %v1126_v2 = vrot.slane %v1125_v49, 4  ;;  %v1181_v51 = vshrl.u32 %v931_v44, 16 }
  0xf0   : > { %v8598_v10 = vcombine.low %v1467_v9, %v1470_v19  ;;  %v1121_v50 = vsel %vm9997_vm14, %v1116_v56, %v1120_v62  ;;  %v1460_v63 = vsel %vm9968_vm13, %v8549_v28, %v1459_v21  ;;  %v1461_v11 = vrot.slane %v1459_v21, 4  ;;  %v1356_v19 = vld [vmem:[#allocation2 + $0x60] sm:$0xe] }
  0xf1   : > { %1653 = vrot.lane.b32.xlu1 %v8582_v54, %s9833_s25  ;;  %v1184_v57 = vshll.u32 %v931_v44, 16  ;;  %v1131_v45 = vsel %vm9997_vm14, %v1126_v2, %v1130_v31  ;;  %v1183_v1 = vrot.slane %v1181_v51, 4  ;;  %v1190_v13 = vshll.u32 %v932_v35, 16  ;;  %v1357_v31 = vld [vmem:[#allocation2 + $0x6c] sm:$0xe] }
  0xf2   : > { %v1194_v38 = vshrl.u32 %v932_v35, 16  ;;  %v8581_v61 = vcombine.low %v1121_v50, %v1131_v45  ;;  %v1463_v62 = vsel %vm9968_vm13, %v1461_v11, %v1462_v48  ;;  %v1200_v33 = vshll.u32 %v10602_v24, 16  ;;  %v10623_v50 = vpop.permute.xlu0 %2559  ;;  %v10625_v45 = vpop.permute.xlu1 %2561 }
  0xf3   : > { %v1186_v23 = vrot.slane %v1184_v57, 5  ;;  %v8597_v29 = vcombine.low %v1460_v63, %v1463_v62  ;;  %v1192_v30 = vrot.slane %v1190_v13, 5  ;;  %v1157_v42 = vshrl.u32 %v929_v12, 16 }
  0xf4   : > { %v1196_v9 = vrot.slane %v1194_v38, 4  ;;  %1651 = vrot.lane.b32.xlu0 %v8581_v61, %s9833_s25  ;;  %v1202_v44 = vrot.slane %v1200_v33, 5  ;;  %v1160_v55 = vshll.u32 %v929_v12, 16  ;;  %v1166_v43 = vshll.u32 %v930_v53, 16  ;;  %v935_v61 = vld [vmem:[#allocation2 + $0x84] sm:$0xf] }
  0xf5   : > { %1733 = vrot.lane.b32.xlu1 %v8598_v10, %s9832_s24  ;;  %v1187_v46 = vor.u32 %v1186_v23, %v1183_v1  ;;  %v1159_v28 = vrot.slane %v1157_v42, 4  ;;  %v1170_v54 = vshrl.u32 %v930_v53, 16  ;;  %v1176_v56 = vshll.u32 %v10618_v16, 16 }
  0xf6   : > { %v1197_v49 = vor.u32 %v1196_v9, %v1192_v30  ;;  %v1162_v2 = vrot.slane %v1160_v55, 5  ;;  %v1168_v48 = vrot.slane %v1166_v43, 5  ;;  %v8552_v51 = vrot.slane %v1357_v31, 9  ;;  %v10638_v55 = vld [vmem:[#allocation2 + $0x8c] sm:$0x1] }
  0xf7   : > { %v1188_v21 = vrot.slane %v1187_v46, 4  ;;  %v1172_v11 = vrot.slane %v1170_v54, 4  ;;  %v1178_v57 = vrot.slane %v1176_v56, 5  ;;  %v1480_v10 = vrot.slane %v932_v35, 5  ;;  %v936_v46 = vld [vmem:[#allocation2 + $0x88] sm:$0xf]  ;;  %v10645_v56 = vpop.permute.xlu0 %2639 }
  0xf8   : > { %v1198_v63 = vrot.slane %v1197_v49, 4  ;;  %1731 = vrot.lane.b32.xlu0 %v8597_v29, %s9832_s24  ;;  %v1163_v1 = vor.u32 %v1162_v2, %v1159_v28  ;;  %v1483_v13 = vrot.slane %v10602_v24, 5  ;;  %v8551_v38 = vrot.slane %v1356_v19, 9 }
  0xf9   : > { %v1193_v12 = vsel %vm9997_vm14, %v1188_v21, %v1192_v30  ;;  %v1173_v23 = vor.u32 %v1172_v11, %v1168_v48  ;;  %v1481_v33 = vsel %vm9968_vm13, %v8552_v51, %v1480_v10  ;;  %v1482_v35 = vrot.slane %v1480_v10, 4  ;;  %v10649_v11 = vpop.permute.xlu1 %2641 }
  0xfa   : > { %v1203_v62 = vsel %vm9997_vm14, %v1198_v63, %v1202_v44  ;;  %v1164_v42 = vrot.slane %v1163_v1, 4  ;;  %v1473_v31 = vrot.slane %v930_v53, 5  ;;  %v1476_v29 = vrot.slane %v10618_v16, 5  ;;  %v933_v16 = vld [vmem:[#allocation2 + $0x78] sm:$0xf] }
  0xfb   : > { %v8584_v9 = vcombine.low %v1193_v12, %v1203_v62  ;;  %v1174_v30 = vrot.slane %v1173_v23, 4  ;;  %v1484_v24 = vsel %vm9968_vm13, %v1482_v35, %v1483_v13  ;;  %v1229_v43 = vshrl.u32 %v935_v61, 16  ;;  %v934_v63 = vld [vmem:[#allocation2 + $0x7c] sm:$0xf]  ;;  %v10654_v13 = vld [vmem:[#allocation2 + $0x80] sm:$0x1] }
  0xfc   : > { %v1232_v49 = vshll.u32 %v935_v61, 16  ;;  %v1169_v44 = vsel %vm9997_vm14, %v1164_v42, %v1168_v48  ;;  %v8600_v28 = vcombine.low %v1481_v33, %v1484_v24  ;;  %v1474_v53 = vsel %vm9968_vm13, %v8551_v38, %v1473_v31 }
  0xfd   : > { %1657 = vrot.lane.b32.xlu1 %v8584_v9, %s9833_s25  ;;  %v1475_v54 = vrot.slane %v1473_v31, 4  ;;  %v1179_v19 = vsel %vm9997_vm14, %v1174_v30, %v1178_v57  ;;  %v1231_v21 = vrot.slane %v1229_v43, 4  ;;  %v1238_v51 = vshll.u32 %v936_v46, 16  ;;  %v1359_v57 = vld [vmem:[#allocation2 + $0x84] sm:$0xe] }
  0xfe   : > { %v1234_v2 = vrot.slane %v1232_v49, 5  ;;  %v8583_v10 = vcombine.low %v1169_v44, %v1179_v19  ;;  %v1242_v12 = vshrl.u32 %v936_v46, 16  ;;  %v1248_v1 = vshll.u32 %v10638_v55, 16  ;;  %v1358_v43 = vld [vmem:[#allocation2 + $0x78] sm:$0xe]  ;;  %v10659_v19 = vpop.permute.xlu0 %2563 }
  0xff   : > { %v1477_v48 = vsel %vm9968_vm13, %v1475_v54, %v1476_v29  ;;  %v1240_v62 = vrot.slane %v1238_v51, 5  ;;  %v1205_v23 = vshrl.u32 %v933_v16, 16  ;;  %v1208_v9 = vshll.u32 %v933_v16, 16  ;;  %v939_v16 = vld [vmem:[#allocation2 + $0x9c] sm:$0xf] }
 0x100   : > { %v8599_v38 = vcombine.low %v1474_v53, %v1477_v48  ;;  %v1235_v61 = vor.u32 %v1234_v2, %v1231_v21  ;;  %1655 = vrot.lane.b32.xlu0 %v8583_v10, %s9833_s25  ;;  %v1244_v33 = vrot.slane %v1242_v12, 4  ;;  %v1250_v35 = vrot.slane %v1248_v1, 5  ;;  %v10663_v10 = vpop.permute.xlu1 %2565 }
 0x101   : > { %1737 = vrot.lane.b32.xlu1 %v8600_v28, %s9832_s24  ;;  %v1214_v42 = vshll.u32 %v934_v63, 16  ;;  %v1207_v29 = vrot.slane %v1205_v23, 4  ;;  %v1218_v30 = vshrl.u32 %v934_v63, 16  ;;  %v1224_v24 = vshll.u32 %v10654_v13, 16 }
 0x102   : > { %v1236_v31 = vrot.slane %v1235_v61, 4  ;;  %v1245_v49 = vor.u32 %v1244_v33, %v1240_v62  ;;  %v1210_v44 = vrot.slane %v1208_v9, 5  ;;  %v8554_v54 = vrot.slane %v1359_v57, 9 }
 0x103   : > { %v1216_v53 = vrot.slane %v1214_v42, 5  ;;  %v1220_v28 = vrot.slane %v1218_v30, 4  ;;  %v1226_v2 = vrot.slane %v1224_v24, 5  ;;  %v1494_v51 = vrot.slane %v936_v46, 5 }
 0x104   : > { %v1241_v21 = vsel %vm9997_vm14, %v1236_v31, %v1240_v62  ;;  %1735 = vrot.lane.b32.xlu0 %v8599_v38, %s9832_s24  ;;  %v1246_v48 = vrot.slane %v1245_v49, 4  ;;  %v1211_v12 = vor.u32 %v1210_v44, %v1207_v29  ;;  %v1497_v1 = vrot.slane %v10638_v55, 5  ;;  %v10672_v31 = vld [vmem:[#allocation2 + $0xa0] sm:$0xf] }
 0x105   : > { %v8553_v61 = vrot.slane %v1358_v43, 9  ;;  %v1221_v23 = vor.u32 %v1220_v28, %v1216_v53  ;;  %v1495_v57 = vsel %vm9968_vm13, %v8554_v54, %v1494_v51  ;;  %v1496_v33 = vrot.slane %v1494_v51, 4  ;;  %v10678_v43 = vld [vmem:[#allocation2 + $0xa4] sm:$0x1]  ;;  %v10682_v54 = vpop.permute.xlu0 %2643 }
 0x106   : > { %v1487_v9 = vrot.slane %v934_v63, 5  ;;  %v1251_v62 = vsel %vm9997_vm14, %v1246_v48, %v1250_v35  ;;  %v1212_v46 = vrot.slane %v1211_v12, 4  ;;  %v1490_v42 = vrot.slane %v10654_v13, 5  ;;  %v937_v63 = vld [vmem:[#allocation2 + $0x90] sm:$0xf] }
 0x107   : > { %v1277_v38 = vshrl.u32 %v939_v16, 16  ;;  %v8586_v30 = vcombine.low %v1241_v21, %v1251_v62  ;;  %v1222_v29 = vrot.slane %v1221_v23, 4  ;;  %v1498_v55 = vsel %vm9968_vm13, %v1496_v33, %v1497_v1  ;;  %v10689_v12 = vld [vmem:[#allocation2 + $0x94] sm:$0xf]  ;;  %v10691_v1 = vpop.permute.xlu1 %2645 }
 0x108   : > { %v1488_v24 = vsel %vm9968_vm13, %v8553_v61, %v1487_v9  ;;  %v1217_v35 = vsel %vm9997_vm14, %v1212_v46, %v1216_v53  ;;  %v8602_v49 = vcombine.low %v1495_v57, %v1498_v55  ;;  %v1489_v44 = vrot.slane %v1487_v9, 4  ;;  %v10696_v57 = vld [vmem:[#allocation2 + $0x98] sm:$0x1]  ;;  %v1361_v46 = vld [vmem:[#allocation2 + $0x9c] sm:$0xe] }
 0x109   : > { %v1279_v13 = vrot.slane %v1277_v38, 4  ;;  %1661 = vrot.lane.b32.xlu1 %v8586_v30, %s9833_s25  ;;  %v1227_v21 = vsel %vm9997_vm14, %v1222_v29, %v1226_v2  ;;  %v1280_v28 = vshll.u32 %v939_v16, 16  ;;  %v1286_v51 = vshll.u32 %v10672_v31, 16 }
 0x10a   : > { %v1290_v48 = vshrl.u32 %v10672_v31, 16  ;;  %v8585_v53 = vcombine.low %v1217_v35, %v1227_v21  ;;  %v1491_v61 = vsel %vm9968_vm13, %v1489_v44, %v1490_v42  ;;  %v1296_v23 = vshll.u32 %v10678_v43, 16 }
 0x10b   : > { %v1253_v33 = vshrl.u32 %v937_v63, 16  ;;  %v8601_v9 = vcombine.low %v1488_v24, %v1491_v61  ;;  %v1282_v2 = vrot.slane %v1280_v28, 5  ;;  %v1288_v16 = vrot.slane %v1286_v51, 5 }
 0x10c   : > { %v1292_v62 = vrot.slane %v1290_v48, 4  ;;  %1659 = vrot.lane.b32.xlu0 %v8585_v53, %s9833_s25  ;;  %v1298_v38 = vrot.slane %v1296_v23, 5  ;;  %v1256_v29 = vshll.u32 %v937_v63, 16  ;;  %v1262_v55 = vshll.u32 %v10689_v12, 16  ;;  %v9590_v48 = vld [vmem:[%s12957_s1 + $0x8] sm:$0x3f]   ;;  %v10706_v53 = vpop.permute.xlu0 %2567 }
 0x10d   : > { %v1255_v30 = vrot.slane %v1253_v33, 4  ;;  %1741 = vrot.lane.b32.xlu1 %v8602_v49, %s9832_s24  ;;  %v1283_v42 = vor.u32 %v1282_v2, %v1279_v13  ;;  %v1266_v44 = vshrl.u32 %v10689_v12, 16  ;;  %v1272_v21 = vshll.u32 %v10696_v57, 16  ;;  %v10708_v13 = vpop.permute.xlu1 %2569 }
 0x10e   : > { %v1293_v35 = vor.u32 %v1292_v62, %v1288_v16  ;;  %v1258_v24 = vrot.slane %v1256_v29, 5  ;;  %v1264_v28 = vrot.slane %v1262_v55, 5  ;;  %vm1751_vm15 = vcmask 31744   ;;  %v1360_v29 = vld [vmem:[#allocation2 + $0x90] sm:$0xe] }
 0x10f   : > { %v8556_v51 = vrot.slane %v1361_v46, 9  ;;  %v1284_v63 = vrot.slane %v1283_v42, 4  ;;  %v1268_v23 = vrot.slane %v1266_v44, 4  ;;  %v1274_v49 = vrot.slane %v1272_v21, 5 }
 0x110   : > { %v1294_v61 = vrot.slane %v1293_v35, 4  ;;  %1739 = vrot.lane.b32.xlu0 %v8601_v9, %s9832_s24  ;;  %v1259_v33 = vor.u32 %v1258_v24, %v1255_v30  ;;  %v2669_v2 = vsel %vm1751_vm15, %v8623_v7, %v10588_v25  ;;  %v1508_v62 = vrot.slane %v10672_v31, 5  ;;  %v10728_v7 = vld [vmem:[%s12957_s1] sm:$0x3f]   ;;  %v943_v24 = vld [vmem:[#allocation2 + $0xb4] sm:$0xf] }
 0x111   : > { %v1511_v46 = vrot.slane %v10678_v43, 5  ;;  %v1289_v55 = vsel %vm9997_vm14, %v1284_v63, %v1288_v16  ;;  %v1269_v35 = vor.u32 %v1268_v23, %v1264_v28  ;;  %vm2788_vm0 = vcmask 1045504   ;;  %v10740_v63 = vpop.permute.xlu0 %2647 }
 0x112   : > { %v1299_v42 = vsel %vm9997_vm14, %v1294_v61, %v1298_v38  ;;  %v1260_v30 = vrot.slane %v1259_v33, 4  ;;  %v1509_v6 = vsel %vm9968_vm13, %v8556_v51, %v1508_v62  ;;  %v1510_v5 = vrot.slane %v1508_v62, 4  ;;  %9573 = vmatprep.subr.msk.bf16.mxu0 %vm2788_vm0, %v9590_v48  ;;  %v10738_v51 = vld [vmem:[#allocation2 + $0xb8] sm:$0xf]  ;;  %v10748_v33 = vpop.permute.xlu1 %2649 }
 0x113   : > { %v8588_v9 = vcombine.low %v1289_v55, %v1299_v42  ;;  %v1270_v25 = vrot.slane %v1269_v35, 4  ;;  %v8555_v31 = vrot.slane %v1360_v29, 9  ;;  %v1501_v43 = vrot.slane %v10689_v12, 5  ;;  %v10774_v35 = vld [vmem:[#allocation2 + $0xb0] sm:$0x1] }
 0x114   : > { %v1504_v16 = vrot.slane %v10696_v57, 5  ;;  %v1265_v38 = vsel %vm9997_vm14, %v1260_v30, %v1264_v28  ;;  %v1512_v44 = vsel %vm9968_vm13, %v1510_v5, %v1511_v46  ;;  %v2790_v21 = vsel %vm2788_vm0, %v9590_v48, 0  ;;  %v10746_v28 = vld [vmem:[#allocation2 + $0xbc] sm:$0x1]  ;;  %v941_v46 = vld [vmem:[#allocation2 + $0xa8] sm:$0xf] }
 0x115   : > { %1665 = vrot.lane.b32.xlu1 %v8588_v9, %s9833_s25  ;;  %vm1800_vm1 = vcmask 64512   ;;  %v1275_v12 = vsel %vm9997_vm14, %v1270_v25, %v1274_v49  ;;  %v8604_v57 = vcombine.low %v1509_v6, %v1512_v44  ;;  %v1502_v61 = vsel %vm9968_vm13, %v8555_v31, %v1501_v43  ;;  %9242 = vmatpush3.bf16.msra.mxu0 %v2790_v21  ;;  %v10777_v44 = vpop.permute.xlu0 %2571 }
 0x116   : > { %v1503_v23 = vrot.slane %v1501_v43, 4  ;;  %v8587_v48 = vcombine.low %v1265_v38, %v1275_v12  ;;  %v2716_v62 = vsel %vm1800_vm1, %v2669_v2, %v10590_v52  ;;  %vm2755_vm3 = vcmask 97280   ;;  %9574 = vmatprep.subr.msk.bf16.mxu0 %vm2788_vm0, %v10728_v7  ;;  %v10763_v2 = vld [vmem:[#allocation2 + $0xac] sm:$0xf]  ;;  %v1363_v38 = vld [vmem:[#allocation2 + $0xb4] sm:$0xe] }
 0x117   : > { %v2672_v49 = vsel %vm1751_vm15, %v8624_v8, %v10609_v26  ;;  %9243 = vmatprep.mubr.msk.bf16.mxu0 %vm2755_vm3, %v2716_v62  ;;  %v1325_v55 = vshrl.u32 %v943_v24, 16  ;;  %v1328_v42 = vshll.u32 %v943_v24, 16  ;;  %v1334_v52 = vshll.u32 %v10738_v51, 16 }
 0x118   : > { %v1505_v29 = vsel %vm9968_vm13, %v1503_v23, %v1504_v16  ;;  %1663 = vrot.lane.b32.xlu0 %v8587_v48, %s9833_s25  ;;  %v1338_v27 = vshrl.u32 %v10738_v51, 16  ;;  %v1344_v8 = vshll.u32 %v10746_v28, 16  ;;  %v2678_v26 = vsel %vm1751_vm15, %v8626_v60, %v10625_v45  ;;  %v10781_v60 = vpop.permute.xlu1 %2573  ;;  %v9592_v45 = vld [vmem:[%s12957_s1 + $0x10] sm:$0x3f]  }
 0x119   : > { %1745 = vrot.lane.b32.xlu1 %v8604_v57, %s9832_s24  ;;  %v8603_v47 = vcombine.low %v1502_v61, %v1505_v29  ;;  %v1327_v9 = vrot.slane %v1325_v55, 4  ;;  %v1330_v30 = vrot.slane %v1328_v42, 5  ;;  %v1336_v6 = vrot.slane %v1334_v52, 5  ;;  %v1362_v55 = vld [vmem:[#allocation2 + $0xa8] sm:$0xe] }
 0x11a   : > { %v1301_v5 = vshrl.u32 %v941_v46, 16  ;;  %v1340_v25 = vrot.slane %v1338_v27, 4  ;;  %v1346_v31 = vrot.slane %v1344_v8, 5  ;;  %v1304_v43 = vshll.u32 %v941_v46, 16 }
 0x11b   : > { %v1310_v16 = vshll.u32 %v10763_v2, 16  ;;  %v1331_v21 = vor.u32 %v1330_v30, %v1327_v9  ;;  %v1314_v58 = vshrl.u32 %v10763_v2, 16  ;;  %v1320_v59 = vshll.u32 %v10774_v35, 16 }
 0x11c   : > { %v1303_v24 = vrot.slane %v1301_v5, 4  ;;  %1743 = vrot.lane.b32.xlu0 %v8603_v47, %s9832_s24  ;;  %v1341_v12 = vor.u32 %v1340_v25, %v1336_v6  ;;  %v1306_v57 = vrot.slane %v1304_v43, 5  ;;  %v2718_v23 = vsel %vm1800_vm1, %v2672_v49, %v10613_v20 }
 0x11d   : > { %v1312_v61 = vrot.slane %v1310_v16, 5  ;;  %v1332_v48 = vrot.slane %v1331_v21, 4  ;;  %v1316_v62 = vrot.slane %v1314_v58, 4  ;;  %v1322_v46 = vrot.slane %v1320_v59, 5  ;;  %9244 = vmatmul.mubr.msk.bf16.vlgmr.msra.gmra.mrb[0].mxu0 %vm2755_vm3, %v2718_v23 }
 0x11e   : > { %v2991_v29 = vsel %vm2788_vm0, %v10728_v7, 0  ;;  %v1342_v42 = vrot.slane %v1341_v12, 4  ;;  %v1307_v52 = vor.u32 %v1306_v57, %v1303_v24  ;;  %v2675_v47 = vsel %vm1751_vm15, %v8625_v22, %v10623_v50  ;;  %v3157_v22 = vld [vmem:[#allocation2 + $0x24] sm:$0xf]  ;;  %v10806_v50 = vpop.permute.xlu0 %2651  ;;  %v10825_v24 = vld [vmem:[#allocation2 + $0x2c] sm:$0x1] }
 0x11f   : > { %9276 = vmatpush3.bf16.msra.mxu0 %v2991_v29  ;;  %v8558_v27 = vrot.slane %v1363_v38, 9  ;;  %v1337_v20 = vsel %vm9997_vm14, %v1332_v48, %v1336_v6  ;;  %v1317_v49 = vor.u32 %v1316_v62, %v1312_v61  ;;  %v1522_v8 = vrot.slane %v10738_v51, 5  ;;  %v3156_v62 = vld [vmem:[#allocation2 + $0x1c] sm:$0xf] }
 0x120   : > { %v1525_v9 = vrot.slane %v10746_v28, 5  ;;  %9575 = vmatprep.subr.msk.bf16.mxu0 %vm2788_vm0, %v9592_v45  ;;  %v1347_v7 = vsel %vm9997_vm14, %v1342_v42, %v1346_v31  ;;  %v1308_v30 = vrot.slane %v1307_v52, 4  ;;  %v2722_v18 = vsel %vm1800_vm1, %v2678_v26, %v10649_v11  ;;  %v10810_v28 = vpop.permute.xlu1 %2653  ;;  %v10818_v26 = vld [vmem:[#allocation2 + $0x28] sm:$0xf]  ;;  %v3187_v42 = vld [vmem:[#allocation2 + $0x20] sm:$0x1] }
 0x121   : > { %v8557_v41 = vrot.slane %v1362_v55, 9  ;;  %v8590_v5 = vcombine.low %v1337_v20, %v1347_v7  ;;  %v1318_v6 = vrot.slane %v1317_v49, 4  ;;  %v1523_v51 = vsel %vm9968_vm13, %v8558_v27, %v1522_v8 }
 0x122   : > { %v1524_v25 = vrot.slane %v1522_v8, 4  ;;  %v1313_v43 = vsel %vm9997_vm14, %v1308_v30, %v1312_v61  ;;  %v1515_v31 = vrot.slane %v10763_v2, 5  ;;  %v1518_v16 = vrot.slane %v10774_v35, 5  ;;  %v3155_v2 = vld [vmem:[#allocation2 + $0x18] sm:$0xf] }
 0x123   : > { %v2720_v11 = vsel %vm1800_vm1, %v2675_v47, %v10645_v56  ;;  %1669 = vrot.lane.b32.xlu1 %v8590_v5, %s9833_s25  ;;  %v1323_v38 = vsel %vm9997_vm14, %v1318_v6, %v1322_v46  ;;  %v3228_v58 = vshrl.u32 %v3157_v22, 16  ;;  %v3231_v59 = vshll.u32 %v3157_v22, 16  ;;  %v10842_v47 = vpop.permute.xlu0 %2575 }
 0x124   : > { %v1526_v21 = vsel %vm9968_vm13, %v1524_v25, %v1525_v9  ;;  %9247 = vmatprep.mubr.msk.bf16.mxu0 %vm2755_vm3, %v2720_v11  ;;  %v8589_v35 = vcombine.low %v1313_v43, %v1323_v38  ;;  %v1516_v56 = vsel %vm9968_vm13, %v8557_v41, %v1515_v31  ;;  %v1517_v12 = vrot.slane %v1515_v31, 4  ;;  %v3588_v9 = vld [vmem:[#allocation2 + $0x24] sm:$0xe]  ;;  %v10845_v7 = vpop.permute.xlu1 %2577  ;;  %v3587_v43 = vld [vmem:[#allocation2 + $0x18] sm:$0xe] }
 0x125   : > { %v8606_v45 = vcombine.low %v1523_v51, %v1526_v21  ;;  %v3230_v57 = vrot.slane %v3228_v58, 4  ;;  %v3233_v61 = vrot.slane %v3231_v59, 5  ;;  %v3237_v23 = vshll.u32 %v10818_v26, 16  ;;  %9248 = vmatmul.mubr.msk.bf16.gmra.mrb[4].mxu0 %vm2755_vm3, %v2722_v18 }
 0x126   : > { %v3241_v48 = vshrl.u32 %v10818_v26, 16  ;;  %1667 = vrot.lane.b32.xlu0 %v8589_v35, %s9833_s25  ;;  %v1519_v46 = vsel %vm9968_vm13, %v1517_v12, %v1518_v16  ;;  %v3247_v29 = vshll.u32 %v10825_v24, 16  ;;  %v2684_v55 = vsel %vm1751_vm15, %v8628_v15, %v10663_v10 }
 0x127   : > { %v3204_v52 = vshrl.u32 %v3155_v2, 16  ;;  %1749 = vrot.lane.b32.xlu1 %v8606_v45, %s9832_s24  ;;  %v8605_v27 = vcombine.low %v1516_v56, %v1519_v46  ;;  %v3234_v20 = vor.u32 %v3233_v61, %v3230_v57  ;;  %v3239_v49 = vrot.slane %v3237_v23, 5  ;;  %v10859_v35 = vpop.permute.xlu0 %2655  ;;  %v3161_v45 = vld [vmem:[#allocation2 + $0x3c] sm:$0xf]  ;;  %v10869_v46 = vld [vmem:[#allocation2 + $0x40] sm:$0xf] }
 0x128   : > { %v3243_v8 = vrot.slane %v3241_v48, 4  ;;  %v3249_v30 = vrot.slane %v3247_v29, 5  ;;  %v3207_v41 = vshll.u32 %v3155_v2, 16  ;;  %v3213_v22 = vshll.u32 %v3156_v62, 16  ;;  %v10863_v56 = vpop.permute.xlu1 %2657 }
 0x129   : > { %v3206_v18 = vrot.slane %v3204_v52, 4  ;;  %v3235_v39 = vrot.slane %v3234_v20, 4  ;;  %v3217_v15 = vshrl.u32 %v3156_v62, 16  ;;  %v3223_v10 = vshll.u32 %v3187_v42, 16  ;;  %v10878_v52 = vld [vmem:[#allocation2 + $0x44] sm:$0x1] }
 0x12a   : > { %v3244_v14 = vor.u32 %v3243_v8, %v3239_v49  ;;  %1747 = vrot.lane.b32.xlu0 %v8605_v27, %s9832_s24  ;;  %v3209_v5 = vrot.slane %v3207_v41, 5  ;;  %v3215_v6 = vrot.slane %v3213_v22, 5  ;;  %v2681_v51 = vsel %vm1751_vm15, %v8627_v3, %v10659_v19 }
 0x12b   : > { %v8708_v25 = vrot.slane %v3588_v9, 9  ;;  %v3240_v31 = vsel %vm9997_vm14, %v3235_v39, %v3239_v49  ;;  %v3219_v11 = vrot.slane %v3217_v15, 4  ;;  %v3225_v38 = vrot.slane %v3223_v10, 5  ;;  %v3159_v9 = vld [vmem:[#allocation2 + $0x30] sm:$0xf]  ;;  %v10889_v39 = vpop.permute.xlu0 %2579 }
 0x12c   : > { %v3245_v16 = vrot.slane %v3244_v14, 4  ;;  %v3210_v21 = vor.u32 %v3209_v5, %v3206_v18  ;;  %v3660_v58 = vrot.slane %v10818_v26, 5  ;;  %v3663_v59 = vrot.slane %v10825_v24, 5  ;;  %v9679_v5 = vld [vmem:[#allocation2 + $0x60] sm:$0xf] }
 0x12d   : > { %v2726_v2 = vsel %vm1800_vm1, %v2684_v55, %v10691_v1  ;;  %v3220_v32 = vor.u32 %v3219_v11, %v3215_v6  ;;  %v8707_v3 = vrot.slane %v3587_v43, 9  ;;  %v3653_v19 = vrot.slane %v3156_v62, 5 }
 0x12e   : > { %v3250_v37 = vsel %vm9997_vm14, %v3245_v16, %v3249_v30  ;;  %v3211_v57 = vrot.slane %v3210_v21, 4  ;;  %v3661_v26 = vsel %vm9968_vm13, %v8708_v25, %v3660_v58  ;;  %v3662_v24 = vrot.slane %v3660_v58, 4  ;;  %v10884_v30 = vld [vmem:[#allocation2 + $0x34] sm:$0xf]  ;;  %v10893_v25 = vpop.permute.xlu1 %2581 }
 0x12f   : > { %v8740_v12 = vcombine.low %v3240_v31, %v3250_v37  ;;  %v3221_v61 = vrot.slane %v3220_v32, 4  ;;  %v3654_v1 = vsel %vm9968_vm13, %v8707_v3, %v3653_v19  ;;  %v3655_v23 = vrot.slane %v3653_v19, 4  ;;  %v10897_v31 = vld [vmem:[#allocation2 + $0x38] sm:$0x1]  ;;  %v3590_v37 = vld [vmem:[#allocation2 + $0x3c] sm:$0xe] }
 0x130   : > { %v3656_v48 = vrot.slane %v3187_v42, 5  ;;  %v3216_v62 = vsel %vm9997_vm14, %v3211_v57, %v3215_v6  ;;  %v3664_v29 = vsel %vm9968_vm13, %v3662_v24, %v3663_v59  ;;  %v2724_v55 = vsel %vm1800_vm1, %v2681_v51, %v10682_v54  ;;  %v9680_v6 = vld [vmem:[#allocation2 + $0x64] sm:$0xf]  ;;  %v9681_v24 = vld [vmem:[#allocation2 + $0x54] sm:$0xf] }
 0x131   : > { %3877 = vrot.lane.b32.xlu1 %v8740_v12, %s9833_s25  ;;  %v3276_v27 = vshrl.u32 %v3161_v45, 16  ;;  %v3226_v20 = vsel %vm9997_vm14, %v3221_v61, %v3225_v38  ;;  %v8756_v42 = vcombine.low %v3661_v26, %v3664_v29  ;;  %v3279_v8 = vshll.u32 %v3161_v45, 16  ;;  %9251 = vmatprep.mubr.msk.bf16.mxu0 %vm2755_vm3, %v2724_v55  ;;  %v9682_v61 = vld [vmem:[#allocation2 + $0x58] sm:$0xf]  ;;  %v3589_v29 = vld [vmem:[#allocation2 + $0x30] sm:$0xe]  ;;  %v10906_v55 = vpop.permute.xlu0 %2659 }
 0x132   : > { %v3657_v49 = vsel %vm9968_vm13, %v3655_v23, %v3656_v48  ;;  %v8739_v18 = vcombine.low %v3216_v62, %v3226_v20  ;;  %v3285_v54 = vshll.u32 %v10869_v46, 16  ;;  %9252 = vmatmul.mubr.msk.bf16.gmra.mrb[8].mxu0 %vm2755_vm3, %v2726_v2  ;;  %v3289_v15 = vshrl.u32 %v10869_v46, 16 }
 0x133   : > { %v8755_v41 = vcombine.low %v3654_v1, %v3657_v49  ;;  %v3278_v22 = vrot.slane %v3276_v27, 4  ;;  %v3281_v14 = vrot.slane %v3279_v8, 5  ;;  %v3295_v10 = vshll.u32 %v10878_v52, 16  ;;  %v10912_v8 = vpop.permute.xlu1 %2661 }
 0x134   : > { %v8630_v51 = vcombine.low %v9679_v5, %v9680_v6  ;;  %3875 = vrot.lane.b32.xlu0 %v8739_v18, %s9833_s25  ;;  %v3287_v43 = vrot.slane %v3285_v54, 5  ;;  %v3252_v16 = vshrl.u32 %v3159_v9, 16  ;;  %v3255_v11 = vshll.u32 %v3159_v9, 16 }
 0x135   : > { %3957 = vrot.lane.b32.xlu1 %v8756_v42, %s9832_s24  ;;  %v3261_v38 = vshll.u32 %v10884_v30, 16  ;;  %v3282_v21 = vor.u32 %v3281_v14, %v3278_v22  ;;  %v3291_v58 = vrot.slane %v3289_v15, 4  ;;  %v3297_v59 = vrot.slane %v3295_v10, 5 }
 0x136   : > { %v2690_v2 = vsel %vm1751_vm15, %v8630_v51, %v10708_v13  ;;  %v3254_v32 = vrot.slane %v3252_v16, 4  ;;  %v3257_v3 = vrot.slane %v3255_v11, 5  ;;  %v3265_v45 = vshrl.u32 %v10884_v30, 16 }
 0x137   : > { %v3263_v19 = vrot.slane %v3261_v38, 5  ;;  %v3283_v12 = vrot.slane %v3282_v21, 4  ;;  %v3292_v57 = vor.u32 %v3291_v58, %v3287_v43  ;;  %v3271_v26 = vshll.u32 %v10897_v31, 16  ;;  %v10931_v38 = vld [vmem:[#allocation2 + $0x5c] sm:$0x1] }
 0x138   : > { %v8629_v1 = vcombine.low %v9681_v24, %v9682_v61  ;;  %3955 = vrot.lane.b32.xlu0 %v8755_v41, %s9832_s24  ;;  %v3258_v23 = vor.u32 %v3257_v3, %v3254_v32  ;;  %v3267_v48 = vrot.slane %v3265_v45, 4  ;;  %v8710_v62 = vrot.slane %v3590_v37, 9  ;;  %v9684_v24 = vld [vmem:[#allocation2 + $0x7c] sm:$0xf] }
 0x139   : > { %v3674_v13 = vrot.slane %v10869_v46, 5  ;;  %v3288_v27 = vsel %vm9997_vm14, %v3283_v12, %v3287_v43  ;;  %v3293_v20 = vrot.slane %v3292_v57, 4  ;;  %v3273_v42 = vrot.slane %v3271_v26, 5  ;;  %v3165_v46 = vld [vmem:[#allocation2 + $0x54] sm:$0xf] }
 0x13a   : > { %v2687_v49 = vsel %vm1751_vm15, %v8629_v1, %v10706_v53  ;;  %v3259_v9 = vrot.slane %v3258_v23, 4  ;;  %v3268_v18 = vor.u32 %v3267_v48, %v3263_v19  ;;  %v3677_v14 = vrot.slane %v10878_v52, 5  ;;  %v10924_v43 = vld [vmem:[#allocation2 + $0x58] sm:$0xf]  ;;  %v10949_v1 = vld [vmem:[#allocation2 + $0x4c] sm:$0xf] }
 0x13b   : > { %v3675_v41 = vsel %vm9968_vm13, %v8710_v62, %v3674_v13  ;;  %v3676_v22 = vrot.slane %v3674_v13, 4  ;;  %v3298_v54 = vsel %vm9997_vm14, %v3293_v20, %v3297_v59  ;;  %v2730_v15 = vsel %vm1800_vm1, %v2690_v2, %v10748_v33  ;;  %v3163_v2 = vld [vmem:[#allocation2 + $0x48] sm:$0xf]  ;;  %v9683_v26 = vld [vmem:[#allocation2 + $0x78] sm:$0xf] }
 0x13c   : > { %v8709_v10 = vrot.slane %v3589_v29, 9  ;;  %v8742_v5 = vcombine.low %v3288_v27, %v3298_v54  ;;  %v3264_v53 = vsel %vm9997_vm14, %v3259_v9, %v3263_v19  ;;  %v3269_v6 = vrot.slane %v3268_v18, 4  ;;  %v10943_v19 = vpop.permute.xlu1 %2585  ;;  %v10952_v13 = vld [vmem:[#allocation2 + $0x50] sm:$0x1]  ;;  %v3592_v9 = vld [vmem:[#allocation2 + $0x54] sm:$0xe] }
 0x13d   : > { %v3667_v51 = vrot.slane %v10884_v30, 5  ;;  %v3678_v16 = vsel %vm9968_vm13, %v3676_v22, %v3677_v14  ;;  %v3670_v11 = vrot.slane %v10897_v31, 5  ;;  %v2728_v52 = vsel %vm1800_vm1, %v2687_v49, %v10740_v63 }
 0x13e   : > { %v3324_v33 = vshrl.u32 %v3165_v46, 16  ;;  %3881 = vrot.lane.b32.xlu1 %v8742_v5, %s9833_s25  ;;  %v3274_v21 = vsel %vm9997_vm14, %v3269_v6, %v3273_v42  ;;  %v8758_v58 = vcombine.low %v3675_v41, %v3678_v16  ;;  %9255 = vmatprep.mubr.msk.bf16.mxu0 %vm2755_vm3, %v2728_v52  ;;  %v10939_v31 = vpop.permute.xlu0 %2583  ;;  %v3327_v32 = vshll.u32 %v3165_v46, 16  ;;  %v9686_v5 = vld [vmem:[#allocation2 + $0x70] sm:$0xf]  ;;  %v3591_v52 = vld [vmem:[#allocation2 + $0x48] sm:$0xe] }
 0x13f   : > { %v3668_v30 = vsel %vm9968_vm13, %v8709_v10, %v3667_v51  ;;  %v3669_v59 = vrot.slane %v3667_v51, 4  ;;  %v8741_v37 = vcombine.low %v3264_v53, %v3274_v21  ;;  %v3333_v3 = vshll.u32 %v10924_v43, 16  ;;  %9256 = vmatmul.mubr.msk.bf16.gmra.mrb[12].mxu0 %vm2755_vm3, %v2730_v15  ;;  %v9685_v10 = vld [vmem:[#allocation2 + $0x6c] sm:$0xf] }
 0x140   : > { %v3326_v63 = vrot.slane %v3324_v33, 4  ;;  %v3337_v12 = vshrl.u32 %v10924_v43, 16  ;;  %v3343_v57 = vshll.u32 %v10931_v38, 16  ;;  %v8632_v61 = vcombine.low %v9683_v26, %v9684_v24  ;;  %v10963_v33 = vpop.permute.xlu1 %2665  ;;  %v10975_v26 = vld [vmem:[#allocation2 + $0x6c] sm:$0xf] }
 0x141   : > { %v3671_v45 = vsel %vm9968_vm13, %v3669_v59, %v3670_v11  ;;  %3879 = vrot.lane.b32.xlu0 %v8741_v37, %s9833_s25  ;;  %v3329_v48 = vrot.slane %v3327_v32, 5  ;;  %v3335_v62 = vrot.slane %v3333_v3, 5  ;;  %v3300_v29 = vshrl.u32 %v3163_v2, 16 }
 0x142   : > { %v8757_v23 = vcombine.low %v3668_v30, %v3671_v45  ;;  %3961 = vrot.lane.b32.xlu1 %v8758_v58, %s9832_s24  ;;  %v3339_v27 = vrot.slane %v3337_v12, 4  ;;  %v3345_v20 = vrot.slane %v3343_v57, 5  ;;  %v2696_v42 = vsel %vm1751_vm15, %v8632_v61, %v10781_v60  ;;  %v10960_v6 = vpop.permute.xlu0 %2663 }
 0x143   : > { %v3303_v49 = vshll.u32 %v3163_v2, 16  ;;  %v3330_v18 = vor.u32 %v3329_v48, %v3326_v63  ;;  %v3302_v41 = vrot.slane %v3300_v29, 4  ;;  %v3309_v22 = vshll.u32 %v10949_v1, 16 }
 0x144   : > { %v3313_v46 = vshrl.u32 %v10949_v1, 16  ;;  %v3340_v54 = vor.u32 %v3339_v27, %v3335_v62  ;;  %v3319_v15 = vshll.u32 %v10952_v13, 16  ;;  %v8631_v53 = vcombine.low %v9685_v10, %v9686_v5 }
 0x145   : > { %v3305_v14 = vrot.slane %v3303_v49, 5  ;;  %3959 = vrot.lane.b32.xlu0 %v8757_v23, %s9832_s24  ;;  %v3331_v60 = vrot.slane %v3330_v18, 4  ;;  %v3311_v51 = vrot.slane %v3309_v22, 5  ;;  %v8712_v11 = vrot.slane %v3592_v9, 9  ;;  %v10998_v49 = vld [vmem:[#allocation2 + $0x60] sm:$0xf] }
 0x146   : > { %v3315_v16 = vrot.slane %v3313_v46, 4  ;;  %v3341_v21 = vrot.slane %v3340_v54, 4  ;;  %v3321_v30 = vrot.slane %v3319_v15, 5  ;;  %v2693_v59 = vsel %vm1751_vm15, %v8631_v53, %v10777_v44  ;;  %v9687_v53 = vld [vmem:[#allocation2 + $0x94] sm:$0xf] }
 0x147   : > { %v3306_v58 = vor.u32 %v3305_v14, %v3302_v41  ;;  %v3336_v2 = vsel %vm9997_vm14, %v3331_v60, %v3335_v62  ;;  %v3688_v63 = vrot.slane %v10924_v43, 5  ;;  %v3691_v32 = vrot.slane %v10931_v38, 5  ;;  %v9688_v60 = vld [vmem:[#allocation2 + $0x90] sm:$0xf] }
 0x148   : > { %v3316_v37 = vor.u32 %v3315_v16, %v3311_v51  ;;  %v3346_v3 = vsel %vm9997_vm14, %v3341_v21, %v3345_v20  ;;  %v2734_v12 = vsel %vm1800_vm1, %v2696_v42, %v10810_v28  ;;  %v8711_v57 = vrot.slane %v3591_v52, 9  ;;  %v10985_v28 = vld [vmem:[#allocation2 + $0x70] sm:$0xf]  ;;  %v10994_v42 = vld [vmem:[#allocation2 + $0x74] sm:$0x1] }
 0x149   : > { %v3307_v45 = vrot.slane %v3306_v58, 4  ;;  %v8744_v24 = vcombine.low %v3336_v2, %v3346_v3  ;;  %v3689_v61 = vsel %vm9968_vm13, %v8712_v11, %v3688_v63  ;;  %v3690_v23 = vrot.slane %v3688_v63, 4  ;;  %v11012_v16 = vld [vmem:[#allocation2 + $0x64] sm:$0xf]  ;;  %v3594_v2 = vld [vmem:[#allocation2 + $0x6c] sm:$0xe] }
 0x14a   : > { %v3317_v44 = vrot.slane %v3316_v37, 4  ;;  %v3681_v38 = vrot.slane %v10949_v1, 5  ;;  %v3684_v48 = vrot.slane %v10952_v13, 5  ;;  %v2732_v62 = vsel %vm1800_vm1, %v2693_v59, %v10806_v50  ;;  %v10987_v29 = vpop.permute.xlu0 %1639  ;;  %v11001_v50 = vpop.permute.xlu1 %1641  ;;  %v11016_v59 = vld [vmem:[#allocation2 + $0x68] sm:$0x1] }
 0x14b   : > { %v3312_v43 = vsel %vm9997_vm14, %v3307_v45, %v3311_v51  ;;  %3885 = vrot.lane.b32.xlu1 %v8744_v24, %s9833_s25  ;;  %v3692_v20 = vsel %vm9968_vm13, %v3690_v23, %v3691_v32  ;;  %v3372_v1 = vshrl.u32 %v10975_v26, 16  ;;  %v3375_v13 = vshll.u32 %v10975_v26, 16  ;;  %9259 = vmatprep.mubr.msk.bf16.mxu0 %vm2755_vm3, %v2732_v62 }
 0x14c   : > { %v3322_v27 = vsel %vm9997_vm14, %v3317_v44, %v3321_v30  ;;  %v8760_v18 = vcombine.low %v3689_v61, %v3692_v20  ;;  %v3682_v41 = vsel %vm9968_vm13, %v8711_v57, %v3681_v38  ;;  %v3683_v22 = vrot.slane %v3681_v38, 4  ;;  %9260 = vmatmul.mubr.msk.bf16.gmra.mrb[16].mxu0 %vm2755_vm3, %v2734_v12  ;;  %v9689_v38 = vld [vmem:[#allocation2 + $0x84] sm:$0xf] }
 0x14d   : > { %v8743_v9 = vcombine.low %v3312_v43, %v3322_v27  ;;  %v3374_v46 = vrot.slane %v3372_v1, 4  ;;  %v3377_v54 = vrot.slane %v3375_v13, 5  ;;  %v3381_v14 = vshll.u32 %v10985_v28, 16 }
 0x14e   : > { %v3385_v15 = vshrl.u32 %v10985_v28, 16  ;;  %v3685_v10 = vsel %vm9968_vm13, %v3683_v22, %v3684_v48  ;;  %v3391_v5 = vshll.u32 %v10994_v42, 16  ;;  %v8634_v51 = vcombine.low %v9688_v60, %v9687_v53  ;;  %v11021_v45 = vpop.permute.xlu0 %1719  ;;  %v11025_v61 = vpop.permute.xlu1 %1721 }
 0x14f   : > { %3883 = vrot.lane.b32.xlu0 %v8743_v9, %s9833_s25  ;;  %v3348_v11 = vshrl.u32 %v10998_v49, 16  ;;  %3965 = vrot.lane.b32.xlu1 %v8760_v18, %s9832_s24  ;;  %v8759_v52 = vcombine.low %v3682_v41, %v3685_v10  ;;  %v3378_v21 = vor.u32 %v3377_v54, %v3374_v46  ;;  %v3383_v58 = vrot.slane %v3381_v14, 5  ;;  %v3593_v46 = vld [vmem:[#allocation2 + $0x60] sm:$0xe] }
 0x150   : > { %v3387_v30 = vrot.slane %v3385_v15, 4  ;;  %v3393_v37 = vrot.slane %v3391_v5, 5  ;;  %v2702_v63 = vsel %vm1751_vm15, %v8634_v51, %v10845_v7  ;;  %v3351_v3 = vshll.u32 %v10998_v49, 16  ;;  %v9690_v7 = vld [vmem:[#allocation2 + $0x88] sm:$0xf] }
 0x151   : > { %v3350_v32 = vrot.slane %v3348_v11, 4  ;;  %v3379_v12 = vrot.slane %v3378_v21, 4  ;;  %v3357_v24 = vshll.u32 %v11012_v16, 16  ;;  %v3361_v44 = vshrl.u32 %v11012_v16, 16  ;;  %v11039_v5 = vld [vmem:[#allocation2 + $0x84] sm:$0xf] }
 0x152   : > { %v3388_v57 = vor.u32 %v3387_v30, %v3383_v58  ;;  %v3353_v23 = vrot.slane %v3351_v3, 5  ;;  %v3367_v43 = vshll.u32 %v11016_v59, 16  ;;  %v8633_v48 = vcombine.low %v9689_v38, %v9690_v7  ;;  %v11043_v11 = vpop.permute.xlu0 %1643 }
 0x153   : > { %3963 = vrot.lane.b32.xlu0 %v8759_v52, %s9832_s24  ;;  %v8714_v62 = vrot.slane %v3594_v2, 9  ;;  %v3384_v27 = vsel %vm9997_vm14, %v3379_v12, %v3383_v58  ;;  %v3359_v1 = vrot.slane %v3357_v24, 5  ;;  %v3363_v13 = vrot.slane %v3361_v44, 4  ;;  %v11049_v2 = vpop.permute.xlu1 %1645  ;;  %v11065_v44 = vld [vmem:[#allocation2 + $0x78] sm:$0xf] }
 0x154   : > { %v3389_v20 = vrot.slane %v3388_v57, 4  ;;  %v3354_v9 = vor.u32 %v3353_v23, %v3350_v32  ;;  %v3369_v18 = vrot.slane %v3367_v43, 5  ;;  %v2699_v41 = vsel %vm1751_vm15, %v8633_v48, %v10842_v47  ;;  %v11058_v32 = vld [vmem:[#allocation2 + $0x8c] sm:$0x1] }
 0x155   : > { %v3702_v22 = vrot.slane %v10985_v28, 5  ;;  %v3364_v14 = vor.u32 %v3363_v13, %v3359_v1  ;;  %v3705_v15 = vrot.slane %v10994_v42, 5  ;;  %v2738_v10 = vsel %vm1800_vm1, %v2702_v63, %v10863_v56  ;;  %v11047_v42 = vld [vmem:[#allocation2 + $0x88] sm:$0xf]  ;;  %v11075_v13 = vld [vmem:[#allocation2 + $0x7c] sm:$0xf] }
 0x156   : > { %v3394_v54 = vsel %vm9997_vm14, %v3389_v20, %v3393_v37  ;;  %v3355_v60 = vrot.slane %v3354_v9, 4  ;;  %v8713_v21 = vrot.slane %v3593_v46, 9  ;;  %v3695_v58 = vrot.slane %v11012_v16, 5  ;;  %v9692_v20 = vld [vmem:[#allocation2 + $0xac] sm:$0xf] }
 0x157   : > { %v8746_v53 = vcombine.low %v3384_v27, %v3394_v54  ;;  %v3703_v51 = vsel %vm9968_vm13, %v8714_v62, %v3702_v22  ;;  %v3704_v47 = vrot.slane %v3702_v22, 4  ;;  %v3365_v52 = vrot.slane %v3364_v14, 4  ;;  %v9691_v27 = vld [vmem:[#allocation2 + $0xa8] sm:$0xf]  ;;  %v11079_v22 = vld [vmem:[#allocation2 + $0x80] sm:$0x1]  ;;  %v11082_v54 = vpop.permute.xlu0 %1723 }
 0x158   : > { %v3698_v30 = vrot.slane %v11016_v59, 5  ;;  %v3360_v56 = vsel %vm9997_vm14, %v3355_v60, %v3359_v1  ;;  %v2736_v63 = vsel %vm1800_vm1, %v2699_v41, %v10859_v35  ;;  %v3420_v3 = vshrl.u32 %v11039_v5, 16  ;;  %v3596_v60 = vld [vmem:[#allocation2 + $0x84] sm:$0xe] }
 0x159   : > { %3889 = vrot.lane.b32.xlu1 %v8746_v53, %s9833_s25  ;;  %v3706_v37 = vsel %vm9968_vm13, %v3704_v47, %v3705_v15  ;;  %v3370_v59 = vsel %vm9997_vm14, %v3365_v52, %v3369_v18  ;;  %v3696_v57 = vsel %vm9968_vm13, %v8713_v21, %v3695_v58  ;;  %v3697_v24 = vrot.slane %v3695_v58, 4  ;;  %9263 = vmatprep.mubr.msk.bf16.mxu0 %vm2755_vm3, %v2736_v63  ;;  %v9693_v63 = vld [vmem:[#allocation2 + $0x9c] sm:$0xf] }
 0x15a   : > { %v8762_v12 = vcombine.low %v3703_v51, %v3706_v37  ;;  %v8745_v23 = vcombine.low %v3360_v56, %v3370_v59  ;;  %v3422_v43 = vrot.slane %v3420_v3, 4  ;;  %v3423_v35 = vshll.u32 %v11039_v5, 16  ;;  %9264 = vmatmul.mubr.msk.bf16.gmra.mrb[20].mxu0 %vm2755_vm3, %v2738_v10  ;;  %v11087_v51 = vpop.permute.xlu1 %1725  ;;  %v9694_v3 = vld [vmem:[#allocation2 + $0xa0] sm:$0xf] }
 0x15b   : > { %v3429_v38 = vshll.u32 %v11047_v42, 16  ;;  %v3699_v7 = vsel %vm9968_vm13, %v3697_v24, %v3698_v30  ;;  %v3433_v48 = vshrl.u32 %v11047_v42, 16  ;;  %v3439_v62 = vshll.u32 %v11058_v32, 16 }
 0x15c   : > { %v8636_v1 = vcombine.low %v9691_v27, %v9692_v20  ;;  %3887 = vrot.lane.b32.xlu0 %v8745_v23, %s9833_s25  ;;  %v8761_v9 = vcombine.low %v3696_v57, %v3699_v7  ;;  %v3425_v18 = vrot.slane %v3423_v35, 5  ;;  %v3396_v46 = vshrl.u32 %v11065_v44, 16  ;;  %v3595_v23 = vld [vmem:[#allocation2 + $0x78] sm:$0xe] }
 0x15d   : > { %3969 = vrot.lane.b32.xlu1 %v8762_v12, %s9832_s24  ;;  %v3431_v41 = vrot.slane %v3429_v38, 5  ;;  %v3435_v14 = vrot.slane %v3433_v48, 4  ;;  %v3441_v15 = vrot.slane %v3439_v62, 5  ;;  %v3399_v53 = vshll.u32 %v11065_v44, 16 }
 0x15e   : > { %v2708_v10 = vsel %vm1751_vm15, %v8636_v1, %v10893_v25  ;;  %v3426_v47 = vor.u32 %v3425_v18, %v3422_v43  ;;  %v3398_v52 = vrot.slane %v3396_v46, 4  ;;  %v3405_v21 = vshll.u32 %v11075_v13, 16  ;;  %v11099_v1 = vpop.permute.xlu0 %1647 }
 0x15f   : > { %v3409_v58 = vshrl.u32 %v11075_v13, 16  ;;  %v3436_v30 = vor.u32 %v3435_v14, %v3431_v41  ;;  %v3401_v56 = vrot.slane %v3399_v53, 5  ;;  %v3415_v37 = vshll.u32 %v11079_v22, 16  ;;  %v11105_v53 = vld [vmem:[#allocation2 + $0x9c] sm:$0xf] }
 0x160   : > { %v8635_v59 = vcombine.low %v9693_v63, %v9694_v3  ;;  %3967 = vrot.lane.b32.xlu0 %v8761_v9, %s9832_s24  ;;  %v3427_v25 = vrot.slane %v3426_v47, 4  ;;  %v3407_v12 = vrot.slane %v3405_v21, 5  ;;  %v8716_v24 = vrot.slane %v3596_v60, 9 }
 0x161   : > { %v3411_v57 = vrot.slane %v3409_v58, 4  ;;  %v3437_v43 = vrot.slane %v3436_v30, 4  ;;  %v3402_v35 = vor.u32 %v3401_v56, %v3398_v52  ;;  %v3417_v38 = vrot.slane %v3415_v37, 5  ;;  %v11124_v56 = vld [vmem:[#allocation2 + $0xa4] sm:$0x1] }
 0x162   : > { %v2705_v7 = vsel %vm1751_vm15, %v8635_v59, %v10889_v39  ;;  %v3432_v48 = vsel %vm9997_vm14, %v3427_v25, %v3431_v41  ;;  %v3716_v27 = vrot.slane %v11047_v42, 5  ;;  %v3719_v20 = vrot.slane %v11058_v32, 5  ;;  %v11107_v39 = vpop.permute.xlu1 %1649 }
 0x163   : > { %v3412_v62 = vor.u32 %v3411_v57, %v3407_v12  ;;  %v3442_v9 = vsel %vm9997_vm14, %v3437_v43, %v3441_v15  ;;  %v3403_v18 = vrot.slane %v3402_v35, 4  ;;  %v2742_v46 = vsel %vm1800_vm1, %v2708_v10, %v10912_v8  ;;  %v11117_v10 = vld [vmem:[#allocation2 + $0xa0] sm:$0xf]  ;;  %v11136_v43 = vpop.permute.xlu0 %1727 }
 0x164   : > { %v8715_v14 = vrot.slane %v3595_v23, 9  ;;  %v8748_v41 = vcombine.low %v3432_v48, %v3442_v9  ;;  %v3717_v47 = vsel %vm9968_vm13, %v8716_v24, %v3716_v27  ;;  %v3718_v32 = vrot.slane %v3716_v27, 4  ;;  %v9696_v48 = vld [vmem:[#allocation2 + $0xc4] sm:$0xf]  ;;  %v11142_v27 = vld [vmem:[#allocation2 + $0x94] sm:$0xf] }
 0x165   : > { %v3413_v60 = vrot.slane %v3412_v62, 4  ;;  %v3408_v52 = vsel %vm9997_vm14, %v3403_v18, %v3407_v12  ;;  %v3709_v15 = vrot.slane %v11075_v13, 5  ;;  %v3712_v21 = vrot.slane %v11079_v22, 5  ;;  %v11128_v22 = vld [vmem:[#allocation2 + $0x90] sm:$0xf] }
 0x166   : > { %v2740_v8 = vsel %vm1800_vm1, %v2705_v7, %v10906_v55  ;;  %3893 = vrot.lane.b32.xlu1 %v8748_v41, %s9833_s25  ;;  %v3720_v30 = vsel %vm9968_vm13, %v3718_v32, %v3719_v20  ;;  %v3468_v37 = vshrl.u32 %v11105_v53, 16  ;;  %v3471_v63 = vshll.u32 %v11105_v53, 16  ;;  %v9695_v7 = vld [vmem:[#allocation2 + $0xc0] sm:$0xf]  ;;  %v11145_v9 = vpop.permute.xlu1 %1729 }
 0x167   : > { %v3418_v58 = vsel %vm9997_vm14, %v3413_v60, %v3417_v38  ;;  %9267 = vmatprep.mubr.msk.bf16.mxu0 %vm2755_vm3, %v2740_v8  ;;  %v8764_v3 = vcombine.low %v3717_v47, %v3720_v30  ;;  %v3710_v59 = vsel %vm9968_vm13, %v8715_v14, %v3709_v15  ;;  %v3711_v25 = vrot.slane %v3709_v15, 4  ;;  %v11148_v60 = vld [vmem:[#allocation2 + $0x98] sm:$0x1]  ;;  %v3598_v47 = vld [vmem:[#allocation2 + $0x9c] sm:$0xe] }
 0x168   : > { %v8747_v55 = vcombine.low %v3408_v52, %v3418_v58  ;;  %9268 = vmatmul.mubr.msk.bf16.gmra.mrb[24].mxu0 %vm2755_vm3, %v2742_v46  ;;  %v3470_v12 = vrot.slane %v3468_v37, 4  ;;  %v3473_v57 = vrot.slane %v3471_v63, 5  ;;  %v3477_v24 = vshll.u32 %v11117_v10, 16 }
 0x169   : > { %v3481_v23 = vshrl.u32 %v11117_v10, 16  ;;  %v3713_v35 = vsel %vm9968_vm13, %v3711_v25, %v3712_v21  ;;  %v3487_v38 = vshll.u32 %v11124_v56, 16  ;;  %v8638_v62 = vcombine.low %v9695_v7, %v9696_v48 }
 0x16a   : > { %3891 = vrot.lane.b32.xlu0 %v8747_v55, %s9833_s25  ;;  %v3444_v20 = vshrl.u32 %v11128_v22, 16  ;;  %3973 = vrot.lane.b32.xlu1 %v8764_v3, %s9832_s24  ;;  %v8763_v18 = vcombine.low %v3710_v59, %v3713_v35  ;;  %v3474_v46 = vor.u32 %v3473_v57, %v3470_v12  ;;  %v3479_v14 = vrot.slane %v3477_v24, 5  ;;  %v9697_v3 = vld [vmem:[#allocation2 + $0xb4] sm:$0xf]  ;;  %v9698_v59 = vld [vmem:[#allocation2 + $0xb8] sm:$0xf]  ;;  %v11159_v35 = vpop.permute.xlu0 %1651 }
 0x16b   : > { %v3483_v41 = vrot.slane %v3481_v23, 4  ;;  %v3489_v32 = vrot.slane %v3487_v38, 5  ;;  %v2714_v52 = vsel %vm1751_vm15, %v8638_v62, %v10943_v19  ;;  %v3447_v21 = vshll.u32 %v11128_v22, 16 }
 0x16c   : > { %v3446_v15 = vrot.slane %v3444_v20, 4  ;;  %v3475_v8 = vrot.slane %v3474_v46, 4  ;;  %v3453_v30 = vshll.u32 %v11142_v27, 16  ;;  %v3457_v37 = vshrl.u32 %v11142_v27, 16  ;;  %v3597_v20 = vld [vmem:[#allocation2 + $0x90] sm:$0xe] }
 0x16d   : > { %v3484_v58 = vor.u32 %v3483_v41, %v3479_v14  ;;  %v3449_v63 = vrot.slane %v3447_v21, 5  ;;  %v3463_v55 = vshll.u32 %v11148_v60, 16  ;;  %v8637_v25 = vcombine.low %v9697_v3, %v9698_v59  ;;  %v11171_v21 = vld [vmem:[#allocation2 + $0xb4] sm:$0xf]  ;;  %v11186_v3 = vld [vmem:[#allocation2 + $0xbc] sm:$0x1] }
 0x16e   : > { %3971 = vrot.lane.b32.xlu0 %v8763_v18, %s9832_s24  ;;  %v8718_v12 = vrot.slane %v3598_v47, 9  ;;  %v3480_v19 = vsel %vm9997_vm14, %v3475_v8, %v3479_v14  ;;  %v3455_v24 = vrot.slane %v3453_v30, 5  ;;  %v3459_v23 = vrot.slane %v3457_v37, 4  ;;  %v11164_v18 = vpop.permute.xlu1 %1653  ;;  %12991 = vst [vmem:[#allocation6_spill] sm:$0xff] %v11171_v21 }
 0x16f   : > { %v3485_v57 = vrot.slane %v3484_v58, 4  ;;  %v3450_v38 = vor.u32 %v3449_v63, %v3446_v15  ;;  %v3465_v7 = vrot.slane %v3463_v55, 5  ;;  %v2711_v48 = vsel %vm1751_vm15, %v8637_v25, %v10939_v31  ;;  %v11177_v55 = vld [vmem:[#allocation2 + $0xb8] sm:$0xf]  ;;  %v11189_v25 = vld [vmem:[#allocation2 + $0xa8] sm:$0xf] }
 0x170   : > { %v3730_v62 = vrot.slane %v11117_v10, 5  ;;  %v3460_v41 = vor.u32 %v3459_v23, %v3455_v24  ;;  %v3733_v14 = vrot.slane %v11124_v56, 5  ;;  %v2746_v47 = vsel %vm1800_vm1, %v2714_v52, %v10963_v33  ;;  %12992 = vst [vmem:[#allocation7_spill] sm:$0xff] %v11189_v25 }
 0x171   : > { %v3490_v46 = vsel %vm9997_vm14, %v3485_v57, %v3489_v32  ;;  %v3451_v8 = vrot.slane %v3450_v38, 4  ;;  %v8717_v37 = vrot.slane %v3597_v20, 9  ;;  %v3723_v63 = vrot.slane %v11142_v27, 5 }
 0x172   : > { %v8750_v15 = vcombine.low %v3480_v19, %v3490_v46  ;;  %v3731_v31 = vsel %vm9968_vm13, %v8718_v12, %v3730_v62  ;;  %v3732_v58 = vrot.slane %v3730_v62, 4  ;;  %v3461_v30 = vrot.slane %v3460_v41, 4  ;;  %v11200_v62 = vld [vmem:[#allocation2 + $0xac] sm:$0xf] }
 0x173   : > { %v3726_v32 = vrot.slane %v11148_v60, 5  ;;  %v3456_v33 = vsel %vm9997_vm14, %v3451_v8, %v3455_v24  ;;  %v2744_v52 = vsel %vm1800_vm1, %v2711_v48, %v10960_v6  ;;  %v3516_v59 = vshrl.u32 %v11171_v21, 16  ;;  %v11196_v24 = vpop.permute.xlu0 %1731  ;;  %12993 = vst [vmem:[#allocation8_spill] sm:$0xff] %v11200_v62 }
 0x174   : > { %3897 = vrot.lane.b32.xlu1 %v8750_v15, %s9833_s25  ;;  %v3734_v56 = vsel %vm9968_vm13, %v3732_v58, %v3733_v14  ;;  %v3466_v60 = vsel %vm9997_vm14, %v3461_v30, %v3465_v7  ;;  %v3724_v19 = vsel %vm9968_vm13, %v8717_v37, %v3723_v63  ;;  %v3725_v57 = vrot.slane %v3723_v63, 4  ;;  %9271 = vmatprep.mubr.msk.bf16.mxu0 %vm2755_vm3, %v2744_v52  ;;  %v11203_v7 = vpop.permute.xlu1 %1733  ;;  %v11209_v14 = vld [vmem:[#allocation2 + $0xb0] sm:$0x1] }
 0x175   : > { %v8766_v12 = vcombine.low %v3731_v31, %v3734_v56  ;;  %v8749_v23 = vcombine.low %v3456_v33, %v3466_v60  ;;  %v3518_v6 = vrot.slane %v3516_v59, 4  ;;  %v3519_v38 = vshll.u32 %v11171_v21, 16  ;;  %9272 = vmatmul.mubr.msk.bf16.gmra.mrb[28].mxu0 %vm2755_vm3, %v2746_v47  ;;  %v3600_v60 = vld [vmem:[#allocation2 + $0xb4] sm:$0xe] }
 0x176   : > { %v3525_v48 = vshll.u32 %v11177_v55, 16  ;;  %v3727_v20 = vsel %vm9968_vm13, %v3725_v57, %v3726_v32  ;;  %v3529_v46 = vshrl.u32 %v11177_v55, 16  ;;  %v3535_v41 = vshll.u32 %v11186_v3, 16 }
 0x177   : > { %v3492_v15 = vshrl.u32 %v11189_v25, 16  ;;  %3895 = vrot.lane.b32.xlu0 %v8749_v23, %s9833_s25  ;;  %v8765_v8 = vcombine.low %v3724_v19, %v3727_v20  ;;  %v3521_v31 = vrot.slane %v3519_v38, 5  ;;  %v3495_v58 = vshll.u32 %v11189_v25, 16  ;;  %v9700_v19 = vld [vmem:[#allocation2 + $0x10] sm:$0xf] }
 0x178   : > { %3977 = vrot.lane.b32.xlu1 %v8766_v12, %s9832_s24  ;;  %v3527_v47 = vrot.slane %v3525_v48, 5  ;;  %v3531_v30 = vrot.slane %v3529_v46, 4  ;;  %v3537_v37 = vrot.slane %v3535_v41, 5  ;;  %v3501_v32 = vshll.u32 %v11200_v62, 16  ;;  %v9699_v12 = vld [vmem:[#allocation2 + $0xc] sm:$0xf]  ;;  %v11218_v46 = vpop.permute.xlu0 %1655  ;;  %v11221_v40 = vpop.permute.xlu1 %1657 }
 0x179   : > { %v3494_v63 = vrot.slane %v3492_v15, 4  ;;  %v3522_v33 = vor.u32 %v3521_v31, %v3518_v6  ;;  %v3497_v56 = vrot.slane %v3495_v58, 5  ;;  %v3505_v52 = vshrl.u32 %v11200_v62, 16  ;;  %v9701_v48 = vld [vmem:[#allocation2 + $0x4] sm:$0xf] }
 0x17a   : > { %v3511_v59 = vshll.u32 %v11209_v14, 16  ;;  %v3532_v57 = vor.u32 %v3531_v30, %v3527_v47  ;;  %v3503_v23 = vrot.slane %v3501_v32, 5  ;;  %v8560_v38 = vcombine.low %v9699_v12, %v9700_v19  ;;  %v9702_v20 = vld [vmem:[#allocation2] sm:$0xf]  ;;  %v3599_v58 = vld [vmem:[#allocation2 + $0xa8] sm:$0xe] }
 0x17b   : > { %v8559_v34 = vcombine.low %v9702_v20, %v9701_v48  ;;  %3975 = vrot.lane.b32.xlu0 %v8765_v8, %s9832_s24  ;;  %v3523_v41 = vrot.slane %v3522_v33, 4  ;;  %v3498_v6 = vor.u32 %v3497_v56, %v3494_v63  ;;  %v3507_v15 = vrot.slane %v3505_v52, 4 }
 0x17c   : > { %v3513_v31 = vrot.slane %v3511_v59, 5  ;;  %v3533_v25 = vrot.slane %v3532_v57, 4  ;;  %v1757_v30 = vsel %vm1751_vm15, %v8560_v38, %v11001_v50  ;;  %v8720_v12 = vrot.slane %v3600_v60, 9  ;;  %v289_v50 = vld [vmem:[#allocation2 + $0xcc] sm:$0x1] }
 0x17d   : > { %v1754_v32 = vsel %vm1751_vm15, %v8559_v34, %v10987_v29  ;;  %v3528_v19 = vsel %vm9997_vm14, %v3523_v41, %v3527_v47  ;;  %v3499_v48 = vrot.slane %v3498_v6, 4  ;;  %v3508_v8 = vor.u32 %v3507_v15, %v3503_v23  ;;  %v345_v60 = vld [vmem:[#allocation2 + $0xd4] sm:$0x1]  ;;  %v11243_v41 = vpop.permute.xlu0 %1735 }
 0x17e   : > { %v3744_v63 = vrot.slane %v11177_v55, 5  ;;  %v3538_v33 = vsel %vm9997_vm14, %v3533_v25, %v3537_v37  ;;  %v3747_v56 = vrot.slane %v11186_v3, 5  ;;  %v8719_v52 = vrot.slane %v3599_v58, 9  ;;  %v11241_v37 = vld [vmem:[#allocation2 + $0xd0] sm:$0xf] }
 0x17f   : > { %v3737_v59 = vrot.slane %v11200_v62, 5  ;;  %v8752_v57 = vcombine.low %v3528_v19, %v3538_v33  ;;  %v3504_v34 = vsel %vm9997_vm14, %v3499_v48, %v3503_v23  ;;  %v3509_v29 = vrot.slane %v3508_v8, 4  ;;  %v11258_v19 = vpop.permute.xlu1 %1737 }
 0x180   : > { %v3745_v47 = vsel %vm9968_vm13, %v8720_v12, %v3744_v63  ;;  %v3746_v38 = vrot.slane %v3744_v63, 4  ;;  %v3740_v3 = vrot.slane %v11209_v14, 5  ;;  %v1804_v6 = vsel %vm1800_vm1, %v1757_v30, %v11025_v61  ;;  %v11254_v12 = vld [vmem:[#allocation2 + $0xc0] sm:$0xf]  ;;  %v11256_v14 = vld [vmem:[#allocation2 + $0xc4] sm:$0xf] }
 0x181   : > { %v3738_v20 = vsel %vm9968_vm13, %v8719_v52, %v3737_v59  ;;  %v3739_v25 = vrot.slane %v3737_v59, 4  ;;  %3901 = vrot.lane.b32.xlu1 %v8752_v57, %s9833_s25  ;;  %v3514_v23 = vsel %vm9997_vm14, %v3509_v29, %v3513_v31  ;;  %v1802_v15 = vsel %vm1800_vm1, %v1754_v32, %v11021_v45  ;;  %12994 = vst [vmem:[#allocation9_spill] sm:$0xff] %v11254_v12  ;;  %v11266_v61 = vld [vmem:[#allocation2 + $0xc8] sm:$0x1]  ;;  %v9703_v29 = vld [vmem:[#allocation2 + $0x24] sm:$0xf] }
 0x182   : > { %v290_v58 = vsel %vm9875_vm2, 0, %v289_v50  ;;  %12995 = vst [vmem:[#allocation10_spill] sm:$0xff] %v11256_v14  ;;  %v8751_v48 = vcombine.low %v3504_v34, %v3514_v23  ;;  %v3748_v8 = vsel %vm9968_vm13, %v3746_v38, %v3747_v56  ;;  %v346_v45 = vsel %vm9885_vm4, 0, %v345_v60  ;;  %9277 = vmatprep.mubr.msk.bf16.mxu0 %vm2755_vm3, %v1802_v15  ;;  %v3601_v23 = vld [vmem:[#allocation2 + $0xc0] sm:$0xe] }
 0x183   : > { %v3741_v31 = vsel %vm9968_vm13, %v3739_v25, %v3740_v3  ;;  %291 = vst [vmem:[#allocation2 + $0xcc] sm:$0x1] %v290_v58  ;;  %v8768_v30 = vcombine.low %v3745_v47, %v3748_v8  ;;  %347 = vst [vmem:[#allocation2 + $0xd4] sm:$0x1] %v346_v45  ;;  %v3573_v63 = vshll.u32 %v11241_v37, 16  ;;  %v3577_v33 = vshrl.u32 %v11241_v37, 16  ;;  %9278 = vmatmul.mubr.msk.bf16.vlgmr.msra.gmra.mrb[0].mxu0 %vm2755_vm3, %v1804_v6  ;;  %v11281_v6 = vpop.permute.xlu0 %1659  ;;  %v11288_v8 = vpop.permute.xlu1 %1661 }
 0x184   : > { %v8767_v32 = vcombine.low %v3738_v20, %v3741_v31  ;;  %3899 = vrot.lane.b32.xlu0 %v8751_v48, %s9833_s25  ;;  %v3540_v56 = vshrl.u32 %v11254_v12, 16  ;;  %v3543_v4 = vshll.u32 %v11254_v12, 16  ;;  %v3549_v52 = vshll.u32 %v11256_v14, 16  ;;  %v9704_v47 = vld [vmem:[#allocation2 + $0x28] sm:$0xf] }
 0x185   : > { %v3553_v59 = vshrl.u32 %v11256_v14, 16  ;;  %3981 = vrot.lane.b32.xlu1 %v8768_v30, %s9832_s24  ;;  %v11278_v50 = vrot.slane %v3573_v63, 5  ;;  %v3579_v57 = vrot.slane %v3577_v33, 4  ;;  %v3559_v34 = vshll.u32 %v11266_v61, 16  ;;  %v9705_v58 = vld [vmem:[%s12957_s1 + $0x10] sm:$0x3f]  }
 0x186   : > { %v8562_v60 = vcombine.low %v9703_v29, %v9704_v47  ;;  %v3542_v38 = vrot.slane %v3540_v56, 4  ;;  %v3545_v20 = vrot.slane %v3543_v4, 5  ;;  %v3551_v25 = vrot.slane %v3549_v52, 5  ;;  %v9706_v63 = vld [vmem:[#allocation2 + $0x18] sm:$0xf] }
 0x187   : > { %v3555_v3 = vrot.slane %v3553_v59, 4  ;;  %v3580_v15 = vor.u32 %v3579_v57, %v11278_v50  ;;  %v4108_v48 = vsel %vm2788_vm0, %v9705_v58, 0  ;;  %v3561_v30 = vrot.slane %v3559_v34, 5  ;;  %v9707_v33 = vld [vmem:[#allocation2 + $0x1c] sm:$0xf]  ;;  %v11305_v12 = vpop.permute.xlu0 %1739 }
 0x188   : > { %3979 = vrot.lane.b32.xlu0 %v8767_v32, %s9832_s24  ;;  %v3546_v31 = vor.u32 %v3545_v20, %v3542_v38  ;;  %9310 = vmatpush3.bf16.msra.mxu0 %v4108_v48  ;;  %v8561_v56 = vcombine.low %v9706_v63, %v9707_v33  ;;  %v3602_v4 = vld [vmem:[#allocation2 + $0xcc] sm:$0xe]  ;;  %v1763_v59 = vsel %vm1751_vm15, %v8562_v60, %v11049_v2  ;;  %v3758_v57 = vrot.slane %v11241_v37, 5 }
 0x189   : > { %v3556_v45 = vor.u32 %v3555_v3, %v3551_v25  ;;  %v8721_v29 = vrot.slane %v3601_v23, 9  ;;  %v3751_v47 = vrot.slane %v11256_v14, 5  ;;  %v3581_v3 = vrot.slane %v3580_v15, 4  ;;  %v11307_v15 = vpop.permute.xlu1 %1741 }
 0x18a   : > { %v11291_v52 = vld [vmem:[#allocation2 + $0xcc] sm:$0xf]  ;;  %v3202_v58 = vld [vmem:[#allocation2 + $0xd4] sm:$0x1]  ;;  %v3547_v38 = vrot.slane %v3546_v31, 4  ;;  %v1760_v63 = vsel %vm1751_vm15, %v8561_v56, %v11043_v11  ;;  %v8722_v33 = vrot.slane %v3602_v4, 9 }
 0x18b   : > { %v3564_v32 = vshrl.u32 %v11291_v52, 16  ;;  %v3567_v34 = vshll.u32 %v11291_v52, 16  ;;  %v3557_v20 = vrot.slane %v3556_v45, 4  ;;  %v3583_v48 = vshll.u32 %v3202_v58, 16 }
 0x18c   : > { %v3552_v60 = vsel %vm9997_vm14, %v3547_v38, %v3551_v25  ;;  %v3760_v31 = vrot.slane %v3758_v57, 4  ;;  %v3761_v45 = vrot.slane %v3202_v58, 5  ;;  %v3752_v11 = vsel %vm9968_vm13, %v8721_v29, %v3751_v47  ;;  %v9708_v29 = vld [vmem:[#allocation2 + $0x30] sm:$0xf] }
 0x18d   : > { %v3566_v0 = vrot.slane %v3564_v32, 4  ;;  %v3569_v2 = vrot.slane %v3567_v34, 5  ;;  %v3562_v23 = vsel %vm9997_vm14, %v3557_v20, %v3561_v30  ;;  %v3585_v14 = vrot.slane %v3583_v48, 5  ;;  %v9712_v20 = vld [vmem:[#allocation2 + $0x48] sm:$0xf] }
 0x18e   : > { %v8753_v62 = vcombine.low %v3552_v60, %v3562_v23  ;;  %v3753_v56 = vrot.slane %v3751_v47, 4  ;;  %v3754_v4 = vrot.slane %v11266_v61, 5  ;;  %v1808_v25 = vsel %vm1800_vm1, %v1763_v59, %v11087_v51  ;;  %v9709_v47 = vld [vmem:[#allocation2 + $0x34] sm:$0xf]  ;;  %v9710_v51 = vld [vmem:[#allocation2 + $0x3c] sm:$0xf] }
 0x18f   : > { %v3570_v21 = vor.u32 %v3569_v2, %v3566_v0  ;;  %v1806_v30 = vsel %vm1800_vm1, %v1760_v63, %v11082_v54  ;;  %v3586_v58 = vsel %vm9997_vm14, %v3581_v3, %v3585_v14  ;;  %v8563_v61 = vcombine.low %v9708_v29, %v9709_v47  ;;  %v9711_v59 = vld [vmem:[#allocation2 + $0x40] sm:$0xf]  ;;  %v9713_v3 = vld [vmem:[#allocation2 + $0x4c] sm:$0xf]  ;;  %v11335_v2 = vpop.permute.xlu1 %1665 }
 0x190   : > { %3903 = vrot.lane.b32.xlu0 %v8753_v62, %s9833_s25  ;;  %v3755_v0 = vsel %vm9968_vm13, %v3753_v56, %v3754_v4  ;;  %9281 = vmatprep.mubr.msk.bf16.mxu0 %vm2755_vm3, %v1806_v30  ;;  %v3759_v62 = vsel %vm9968_vm13, %v8722_v33, %v3758_v57  ;;  %v8564_v38 = vcombine.low %v9710_v51, %v9711_v59  ;;  %v1664_v57 = vpop.permute.xlu0 %1663  ;;  %v9718_v47 = vld [vmem:[#allocation2 + $0x6c] sm:$0xf] }
 0x191   : > { %v3571_v32 = vrot.slane %v3570_v21, 4  ;;  %v8769_v34 = vcombine.low %v3752_v11, %v3755_v0  ;;  %9282 = vmatmul.mubr.msk.bf16.gmra.mrb[4].mxu0 %vm2755_vm3, %v1808_v25  ;;  %v3762_v21 = vsel %vm9968_vm13, %v3760_v31, %v3761_v45  ;;  %v1766_v14 = vsel %vm1751_vm15, %v8563_v61, %v11099_v1  ;;  %v9714_v45 = vld [vmem:[#allocation2 + $0x54] sm:$0xf]  ;;  %v9715_v11 = vld [vmem:[#allocation2 + $0x58] sm:$0xf] }
 0x192   : > { %v8565_v48 = vcombine.low %v9712_v20, %v9713_v3  ;;  %v1810_v33 = vsel %vm1800_vm1, %v1766_v14, %v11136_v43  ;;  %v1769_v1 = vsel %vm1751_vm15, %v8564_v38, %v11107_v39  ;;  %v8566_v56 = vcombine.low %v9714_v45, %v9715_v11  ;;  %v9716_v39 = vld [vmem:[#allocation2 + $0x60] sm:$0xf]  ;;  %v9717_v25 = vld [vmem:[#allocation2 + $0x64] sm:$0xf]  ;;  %v9719_v61 = vld [vmem:[#allocation2 + $0x70] sm:$0xf] }
 0x193   : > { %v3576_v54 = vsel %vm9997_vm14, %v3571_v32, %v11278_v50  ;;  %9285 = vmatprep.mubr.msk.bf16.mxu0 %vm2755_vm3, %v1810_v33  ;;  %v8770_v50 = vcombine.low %v3759_v62, %v3762_v21  ;;  %v1812_v31 = vsel %vm1800_vm1, %v1769_v1, %v11145_v9  ;;  %v1746_v4 = vpop.permute.xlu1 %1745  ;;  %v8738_v32 = vcombine.low %v11291_v52, %v11241_v37  ;;  %v9722_v21 = vld [vmem:[#allocation2 + $0x84] sm:$0xf]  ;;  %v9723_v14 = vld [vmem:[#allocation2 + $0x88] sm:$0xf]  ;;  %v9724_v3 = vld [vmem:[#allocation2 + $0x90] sm:$0xf] }
 0x194   : > { %v8754_v63 = vcombine.low %v3576_v54, %v3586_v58  ;;  %3983 = vrot.lane.b32.xlu0 %v8769_v34, %s9832_s24  ;;  %v1772_v60 = vsel %vm1751_vm15, %v8565_v48, %v11159_v35  ;;  %v1744_v43 = vpop.permute.xlu0 %1743  ;;  %v8567_v35 = vcombine.low %v9716_v39, %v9717_v25  ;;  %v8568_v62 = vcombine.low %v9718_v47, %v9719_v61  ;;  %v9725_v48 = vld [vmem:[#allocation2 + $0x94] sm:$0xf]  ;;  %v9728_v11 = vld [vmem:[#allocation2 + $0xa8] sm:$0xf]  ;;  %v9733_v47 = vld [vmem:[#allocation2 + $0x1c] sm:$0xf] }
 0x195   : > { %v1814_v23 = vsel %vm1800_vm1, %v1772_v60, %v11196_v24  ;;  %v1775_v24 = vsel %vm1751_vm15, %v8566_v56, %v11164_v18  ;;  %v9720_v18 = vld [vmem:[#allocation2 + $0x78] sm:$0xf]  ;;  %v8570_v20 = vcombine.low %v9722_v21, %v9723_v14  ;;  %v9726_v60 = vld [vmem:[#allocation2 + $0x9c] sm:$0xf]  ;;  %v9729_v56 = vld [vmem:[#allocation2 + $0xac] sm:$0xf] }
 0x196   : > { %3905 = vrot.lane.b32.xlu1 %v8754_v63, %s9833_s25  ;;  %v1778_v9 = vsel %vm1751_vm15, %v8567_v35, %v11218_v46  ;;  %v1816_v29 = vsel %vm1800_vm1, %v1775_v24, %v11203_v7  ;;  %v9721_v46 = vld [vmem:[#allocation2 + $0x7c] sm:$0xf]  ;;  %v1781_v59 = vsel %vm1751_vm15, %v8568_v62, %v11221_v40  ;;  %v8571_v40 = vcombine.low %v9724_v3, %v9725_v48  ;;  %v9730_v24 = vld [vmem:[#allocation2 + $0xb4] sm:$0xf] }
 0x197   : > { %v1818_v58 = vsel %vm1800_vm1, %v1778_v9, %v11243_v41  ;;  %v1670_v0 = vpop.permute.xlu1 %1669  ;;  %v8569_v34 = vcombine.low %v9720_v18, %v9721_v46  ;;  %v1820_v54 = vsel %vm1800_vm1, %v1781_v59, %v11258_v19  ;;  %v8573_v39 = vcombine.low %v9728_v11, %v9729_v56  ;;  %v9731_v9 = vld [vmem:[#allocation2 + $0xb8] sm:$0xf]  ;;  %v9742_v56 = vld [vmem:[#allocation2 + $0x54] sm:$0xf] }
 0x198   : > { %v1668_v30 = vpop.permute.xlu0 %1667 }
 0x199   : > { %9286 = vmatmul.mubr.msk.bf16.gmra.mrb[8].mxu0 %vm2755_vm3, %v1812_v31  ;;  %v1784_v41 = vsel %vm1751_vm15, %v8569_v34, %v11281_v6  ;;  %v1787_v6 = vsel %vm1751_vm15, %v8570_v20, %v11288_v8  ;;  %v9734_v34 = vld [vmem:[#allocation2 + $0x24] sm:$0xf] }
 0x19a   : > { %3985 = vrot.lane.b32.xlu1 %v8770_v50, %s9832_s24  ;;  %9289 = vmatprep.mubr.msk.bf16.mxu0 %vm2755_vm3, %v1814_v23  ;;  %v1822_v7 = vsel %vm1800_vm1, %v1784_v41, %v11305_v12  ;;  %v1790_v12 = vsel %vm1751_vm15, %v8571_v40, %v1664_v57  ;;  %v1824_v19 = vsel %vm1800_vm1, %v1787_v6, %v11307_v15  ;;  %v9727_v23 = vld [vmem:[#allocation2 + $0xa0] sm:$0xf]  ;;  %v9736_v41 = vld [vmem:[#allocation2 + $0x30] sm:$0xf]  ;;  %v9738_v40 = vld [vmem:[#allocation2 + $0x3c] sm:$0xf] }
 0x19b   : > { %v1750_v38 = vpop.permute.xlu1 %1749  ;;  %v1826_v50 = vsel %vm1800_vm1, %v1790_v12, %v1744_v43  ;;  %v8572_v31 = vcombine.low %v9726_v60, %v9727_v23  ;;  %v1796_v57 = vsel %vm1751_vm15, %v8573_v39, %v1668_v30  ;;  %v9743_v39 = vld [vmem:[#allocation2 + $0x58] sm:$0xf] }
 0x19c   : > { %v1748_v51 = vpop.permute.xlu0 %1747 }
 0x19d   : > { %v1793_v8 = vsel %vm1751_vm15, %v8572_v31, %v11335_v2  ;;  %v1830_v15 = vsel %vm1800_vm1, %v1796_v57, %v1748_v51  ;;  %v9735_v51 = vld [vmem:[#allocation2 + $0x28] sm:$0xf]  ;;  %v8729_v57 = vcombine.low %v10998_v49, %v11012_v16  ;;  %v8731_v49 = vcombine.low %v11065_v44, %v11075_v13 }
 0x19e   : > { %v1828_v35 = vsel %vm1800_vm1, %v1793_v8, %v1746_v4  ;;  %v8724_v59 = vcombine.low %v9734_v34, %v9735_v51  ;;  %v8728_v8 = vcombine.low %v9742_v56, %v9743_v39 }
 0x1a1   : > { %9290 = vmatmul.mubr.msk.bf16.gmra.mrb[12].mxu0 %vm2755_vm3, %v1816_v29  ;;  %v9732_v29 = vld [vmem:[#allocation2 + $0x18] sm:$0xf] }
 0x1a2   : > { %9293 = vmatprep.mubr.msk.bf16.mxu0 %vm2755_vm3, %v1818_v58  ;;  %v8574_v58 = vcombine.low %v9730_v24, %v9731_v9  ;;  %v8723_v61 = vcombine.low %v9732_v29, %v9733_v47 }
 0x1a3   : > { %v3878_v33 = vpop.permute.xlu1 %3877 }
 0x1a4   : > { %v1799_v2 = vsel %vm1751_vm15, %v8574_v58, %v1670_v0  ;;  %v3992_v0 = vsel %vm1751_vm15, %v8724_v59, %v3878_v33  ;;  %v8730_v58 = vcombine.low %v10975_v26, %v10985_v28  ;;  %v8732_v26 = vcombine.low %v11039_v5, %v11047_v42 }
 0x1a5   : > { %v1832_v4 = vsel %vm1800_vm1, %v1799_v2, %v1750_v38 }
 0x1a6   : > { %v3876_v63 = vpop.permute.xlu0 %3875 }
 0x1a7   : > { %v3958_v45 = vpop.permute.xlu1 %3957  ;;  %v3989_v18 = vsel %vm1751_vm15, %v8723_v61, %v3876_v63  ;;  %v9739_v63 = vld [vmem:[#allocation2 + $0x40] sm:$0xf] }
 0x1a8   : > { %v4038_v38 = vsel %vm1800_vm1, %v3992_v0, %v3958_v45  ;;  %v8726_v6 = vcombine.low %v9738_v40, %v9739_v63  ;;  %v12999_v63 = vld [vmem:[#allocation10_spill] sm:$0xff] }
 0x1a9   : > { %9294 = vmatmul.mubr.msk.bf16.gmra.mrb[16].mxu0 %vm2755_vm3, %v1820_v54 }
 0x1aa   : > { %9297 = vmatprep.mubr.msk.bf16.mxu0 %vm2755_vm3, %v1822_v7  ;;  %v3956_v1 = vpop.permute.xlu0 %3955  ;;  %v9737_v7 = vld [vmem:[#allocation2 + $0x34] sm:$0xf] }
 0x1ab   : > { %v4036_v46 = vsel %vm1800_vm1, %v3989_v18, %v3956_v1  ;;  %v8725_v54 = vcombine.low %v9736_v41, %v9737_v7 }
 0x1b0   : > { %v3882_v25 = vpop.permute.xlu1 %3881 }
 0x1b1   : > { %9298 = vmatmul.mubr.msk.bf16.gmra.mrb[20].mxu0 %vm2755_vm3, %v1824_v19  ;;  %v9741_v19 = vld [vmem:[#allocation2 + $0x4c] sm:$0xf]  ;;  %v3998_v33 = vsel %vm1751_vm15, %v8726_v6, %v3882_v25 }
 0x1b2   : > { %9301 = vmatprep.mubr.msk.bf16.mxu0 %vm2755_vm3, %v1826_v50  ;;  %v9740_v50 = vld [vmem:[#allocation2 + $0x48] sm:$0xf] }
 0x1b3   : > { %v3880_v43 = vpop.permute.xlu0 %3879  ;;  %v8727_v1 = vcombine.low %v9740_v50, %v9741_v19 }
 0x1b4   : > { %v3962_v30 = vpop.permute.xlu1 %3961  ;;  %v3995_v20 = vsel %vm1751_vm15, %v8725_v54, %v3880_v43 }
 0x1b5   : > { %v4042_v11 = vsel %vm1800_vm1, %v3998_v33, %v3962_v30 }
 0x1b7   : > { %v3960_v62 = vpop.permute.xlu0 %3959 }
 0x1b8   : > { %v4040_v3 = vsel %vm1800_vm1, %v3995_v20, %v3960_v62 }
 0x1b9   : > { %9302 = vmatmul.mubr.msk.bf16.gmra.mrb[24].mxu0 %vm2755_vm3, %v1828_v35 }
 0x1ba   : > { %9305 = vmatprep.mubr.msk.bf16.mxu0 %vm2755_vm3, %v1830_v15 }
 0x1bd   : > { %v3886_v14 = vpop.permute.xlu1 %3885 }
 0x1be   : > { %v4004_v15 = vsel %vm1751_vm15, %v8728_v8, %v3886_v14 }
 0x1c1   : > { %9306 = vmatmul.mubr.msk.bf16.gmra.mrb[28].mxu0 %vm2755_vm3, %v1832_v4  ;;  %v3884_v21 = vpop.permute.xlu0 %3883  ;;  %v3966_v12 = vpop.permute.xlu1 %3965  ;;  %v8733_v4 = vcombine.low %v11128_v22, %v11142_v27  ;;  %v12997_v22 = vld [vmem:[#allocation8_spill] sm:$0xff]  ;;  %v12998_v27 = vld [vmem:[#allocation7_spill] sm:$0xff] }
 0x1c2   : > { %9311 = vmatprep.mubr.msk.bf16.mxu0 %vm2755_vm3, %v4036_v46  ;;  %v4001_v60 = vsel %vm1751_vm15, %v8727_v1, %v3884_v21  ;;  %v4046_v9 = vsel %vm1800_vm1, %v4004_v15, %v3966_v12  ;;  %v8734_v46 = vcombine.low %v11105_v53, %v11117_v10  ;;  %v12996_v10 = vld [vmem:[#allocation6_spill] sm:$0xff]  ;;  %v8735_v21 = vcombine.low %v12998_v27, %v12997_v22 }
 0x1c3   : > { %v8736_v54 = vcombine.low %v12996_v10, %v11177_v55  ;;  %v13000_v55 = vld [vmem:[#allocation9_spill] sm:$0xff] }
 0x1c4   : > { %v8737_v6 = vcombine.low %v13000_v55, %v12999_v63 }
 0x1c5   : > { %v3964_v48 = vpop.permute.xlu0 %3963 }
 0x1c6   : > { %v4044_v31 = vsel %vm1800_vm1, %v4001_v60, %v3964_v48 }
 0x1c9   : > { %9312 = vmatmul.mubr.msk.bf16.vlgmr.msra.gmra.mrb[0].mxu0 %vm2755_vm3, %v4038_v38 }
 0x1ca   : > { %9315 = vmatprep.mubr.msk.bf16.mxu0 %vm2755_vm3, %v4040_v3 }
 0x1cb   : > { %v3890_v45 = vpop.permute.xlu1 %3889 }
 0x1cc   : > { %v4010_v47 = vsel %vm1751_vm15, %v8730_v58, %v3890_v45  ;;  %v11462_v45 = vld [vmem:[%s12959_s3] ss:$0 sm:$0xff] }
 0x1ce   : > { %v3888_v23 = vpop.permute.xlu0 %3887 }
 0x1cf   : > { %v3970_v25 = vpop.permute.xlu1 %3969  ;;  %v4007_v35 = vsel %vm1751_vm15, %v8729_v57, %v3888_v23 }
 0x1d0   : > { %v4050_v2 = vsel %vm1800_vm1, %v4010_v47, %v3970_v25 }
 0x1d1   : > { %9316 = vmatmul.mubr.msk.bf16.gmra.mrb[4].mxu0 %vm2755_vm3, %v4042_v11 }
 0x1d2   : > { %9319 = vmatprep.mubr.msk.bf16.mxu0 %vm2755_vm3, %v4044_v31  ;;  %v3968_v43 = vpop.permute.xlu0 %3967 }
 0x1d3   : > { %v4048_v24 = vsel %vm1800_vm1, %v4007_v35, %v3968_v43 }
 0x1d8   : > { %v3894_v29 = vpop.permute.xlu1 %3893 }
 0x1d9   : > { %9320 = vmatmul.mubr.msk.bf16.gmra.mrb[8].mxu0 %vm2755_vm3, %v4046_v9  ;;  %v4016_v44 = vsel %vm1751_vm15, %v8732_v26, %v3894_v29 }
 0x1da   : > { %9323 = vmatprep.mubr.msk.bf16.mxu0 %vm2755_vm3, %v4048_v24 }
 0x1dc   : > { %v3892_v16 = vpop.permute.xlu0 %3891  ;;  %v3974_v28 = vpop.permute.xlu1 %3973 }
 0x1dd   : > { %v4013_v61 = vsel %vm1751_vm15, %v8731_v49, %v3892_v16  ;;  %v4054_v18 = vsel %vm1800_vm1, %v4016_v44, %v3974_v28 }
 0x1e0   : > { %v3972_v62 = vpop.permute.xlu0 %3971 }
 0x1e1   : > { %v4052_v30 = vsel %vm1800_vm1, %v4013_v61, %v3972_v62  ;;  %9324 = vmatmul.mubr.msk.bf16.gmra.mrb[12].mxu0 %vm2755_vm3, %v4050_v2 }
 0x1e2   : > { %9327 = vmatprep.mubr.msk.bf16.mxu0 %vm2755_vm3, %v4052_v30 }
 0x1e6   : > { %v3898_v13 = vpop.permute.xlu1 %3897 }
 0x1e7   : > { %v4022_v5 = vsel %vm1751_vm15, %v8734_v46, %v3898_v13  ;;  %v4796_v13 = vld [vmem:[#allocation2 + $0x18] sm:$0xf] }
 0x1e9   : > { %9328 = vmatmul.mubr.msk.bf16.gmra.mrb[16].mxu0 %vm2755_vm3, %v4054_v18  ;;  %v3896_v34 = vpop.permute.xlu0 %3895 }
 0x1ea   : > { %v4019_v42 = vsel %vm1751_vm15, %v8733_v4, %v3896_v34  ;;  %v3978_v51 = vpop.permute.xlu1 %3977 }
 0x1eb   : > { %v4058_v7 = vsel %vm1800_vm1, %v4022_v5, %v3978_v51 }
 0x1ed   : > { %v3976_v59 = vpop.permute.xlu0 %3975 }
 0x1ee   : > { %v4056_v41 = vsel %vm1800_vm1, %v4019_v42, %v3976_v59 }
 0x1ef   : > { %9331 = vmatprep.mubr.msk.bf16.mxu0 %vm2755_vm3, %v4056_v41 }
 0x1f1   : > { %9332 = vmatmul.mubr.msk.bf16.gmra.mrb[20].mxu0 %vm2755_vm3, %v4058_v7 }
 0x1f3   : > { %v3902_v53 = vpop.permute.xlu1 %3901 }
 0x1f4   : > { %v4028_v0 = vsel %vm1751_vm15, %v8736_v54, %v3902_v53  ;;  %v4800_v54 = vld [vmem:[#allocation2 + $0x20] sm:$0x1] }
 0x1f6   : > { %v3900_v14 = vpop.permute.xlu0 %3899 }
 0x1f7   : > { %v3982_v20 = vpop.permute.xlu1 %3981  ;;  %v4025_v3 = vsel %vm1751_vm15, %v8735_v21, %v3900_v14 }
 0x1f8   : > { %v4062_v40 = vsel %vm1800_vm1, %v4028_v0, %v3982_v20 }
 0x1fa   : > { %v3980_v38 = vpop.permute.xlu0 %3979 }
 0x1fb   : > { %v4060_v48 = vsel %vm1800_vm1, %v4025_v3, %v3980_v38  ;;  %v4793_v3 = vld [vmem:[#allocation2 + $0x14] sm:$0x1] }
 0x1fc   : > { %9335 = vmatprep.mubr.msk.bf16.mxu0 %vm2755_vm3, %v4060_v48  ;;  %v9744_v48 = vld [vmem:[#allocation2 + $0xc] sm:$0xf] }
 0x1fd   : > { %9336 = vmatmul.mubr.msk.bf16.gmra.mrb[24].mxu0 %vm2755_vm3, %v4062_v40 }
 0x202   : > { %v3904_v12 = vpop.permute.xlu0 %3903 }
 0x203   : > { %v4031_v50 = vsel %vm1751_vm15, %v8737_v6, %v3904_v12 }
 0x206   : > { %v3984_v19 = vpop.permute.xlu0 %3983 }
 0x207   : > { %v4064_v1 = vsel %vm1800_vm1, %v4031_v50, %v3984_v19 }
 0x208   : > { %v3906_v33 = vpop.permute.xlu1 %3905  ;;  %9339 = vmatprep.mubr.msk.bf16.mxu0 %vm2755_vm3, %v4064_v1 }
 0x209   : > { %v4034_v60 = vsel %vm1751_vm15, %v8738_v32, %v3906_v33 }
 0x20c   : > { %v3986_v23 = vpop.permute.xlu1 %3985 }
 0x20d   : > { %v4066_v31 = vsel %vm1800_vm1, %v4034_v60, %v3986_v23 }
 0x20e   : > { %9340 = vmatmul.mubr.msk.bf16.gmra.mrb[28].mxu0 %vm2755_vm3, %v4066_v31 }
 0x29c   : > { %v9313_v11 = vpop.f32.mrb[0].mxu0 }
 0x29d   : > { %v4312_v56 = vadd.f32 %v9313_v11, %v11462_v45  ;;  %v4144_v39 = vpop.f32.mrb[1].mxu0 }
 0x29e   : > { %v4310_v8 = vadd.f32 %v11462_v45, %v4144_v39  ;;  %v9314_v57 = vpop.f32.mrb[2].mxu0 }
 0x29f   : > { %v4344_v37 = vmax.f32 %v4312_v56, 0.0  ;;  %v4313_v52 = vadd.f32 %v9314_v57, %v11462_v45  ;;  %v4147_v32 = vpop.f32.mrb[3].mxu0 }
 0x2a0   : > { %v4342_v43 = vmax.f32 %v4310_v8, 0.0  ;;  %v4311_v15 = vadd.f32 %v11462_v45, %v4147_v32  ;;  %v4810_v32 = vld [vmem:[#allocation2 + $0x30] sm:$0xf] }
 0x2a1   : > { %v9109_v25 = vpack.c.bf16 %v4344_v37, %v4344_v37  ;;  %v4345_v35 = vmax.f32 %v4313_v52, 0.0 }
 0x2a2   : > { %v9107_v24 = vpack.c.bf16 %v4342_v43, %v4342_v43  ;;  %v4343_v9 = vmax.f32 %v4311_v15, 0.0 }
 0x2a3   : > { %v4488_v58 = vshrl.u32 %v9109_v25, 16  ;;  %v9110_v29 = vpack.c.bf16 %v4345_v35, %v4345_v35  ;;  %v4491_v49 = vshll.u32 %v9109_v25, 16 }
 0x2a4   : > { %v4471_v16 = vshrl.u32 %v9107_v24, 16  ;;  %v4474_v47 = vshll.u32 %v9107_v24, 16  ;;  %v9108_v61 = vpack.c.bf16 %v4343_v9, %v4343_v9  ;;  %v9317_v62 = vpop.f32.mrb[4].mxu0 }
 0x2a5   : > { %v4490_v2 = vrot.slane %v4488_v58, 7  ;;  %v4496_v30 = vshrl.u32 %v9110_v29, 16  ;;  %v4499_v26 = vshll.u32 %v9110_v29, 16  ;;  %v4316_v28 = vadd.f32 %v9317_v62, %v11462_v45  ;;  %v4160_v44 = vpop.f32.mrb[5].mxu0  ;;  %v4803_v58 = vld [vmem:[#allocation2 + $0x24] sm:$0xf] }
 0x2a6   : > { %v4473_v18 = vrot.slane %v4471_v16, 7  ;;  %v4479_v46 = vshrl.u32 %v9108_v61, 16  ;;  %v4482_v4 = vshll.u32 %v9108_v61, 16  ;;  %v4314_v34 = vadd.f32 %v11462_v45, %v4160_v44  ;;  %v9318_v5 = vpop.f32.mrb[6].mxu0 }
 0x2a7   : > { %v4493_v42 = vor.u32 %v4491_v49, %v4490_v2  ;;  %v4494_v51 = vrot.slane %v4490_v2, 4  ;;  %v4498_v59 = vrot.slane %v4496_v30, 7  ;;  %v4348_v41 = vmax.f32 %v4316_v28, 0.0  ;;  %v4163_v7 = vpop.f32.mrb[7].mxu0 }
 0x2a8   : > { %v4476_v53 = vor.u32 %v4474_v47, %v4473_v18  ;;  %v4477_v10 = vrot.slane %v4473_v18, 4  ;;  %v4481_v22 = vrot.slane %v4479_v46, 7  ;;  %v4346_v27 = vmax.f32 %v4314_v34, 0.0 }
 0x2a9   : > { %v4797_v14 = vsel %vm9920_vm10, %v4493_v42, %v4796_v13  ;;  %v4501_v0 = vor.u32 %v4499_v26, %v4498_v59  ;;  %v4503_v20 = vrot.slane %v4498_v59, 4  ;;  %v9113_v38 = vpack.c.bf16 %v4348_v41, %v4348_v41  ;;  %v4814_v59 = vld [vmem:[#allocation2 + $0x38] sm:$0x1]  ;;  %v4807_v41 = vld [vmem:[#allocation2 + $0x2c] sm:$0x1] }
 0x2aa   : > { %4798 = vst [vmem:[#allocation2 + $0x18] sm:$0xf] %v4797_v14  ;;  %v4790_v40 = vsel %vm9920_vm10, %v4476_v53, %v9744_v48  ;;  %v4484_v63 = vor.u32 %v4482_v4, %v4481_v22  ;;  %v4486_v55 = vrot.slane %v4481_v22, 4  ;;  %v9111_v6 = vpack.c.bf16 %v4346_v27, %v4346_v27  ;;  %v4824_v48 = vld [vmem:[#allocation2 + $0x48] sm:$0xf] }
 0x2ab   : > { %4791 = vst [vmem:[#allocation2 + $0xc] sm:$0xf] %v4790_v40  ;;  %v4502_v50 = vsel %vm9914_vm7, %v4494_v51, %v4501_v0  ;;  %v4801_v1 = vsel %vm9875_vm2, %v4503_v20, %v4800_v54  ;;  %v4522_v33 = vshrl.u32 %v9113_v38, 16  ;;  %v4525_v31 = vshll.u32 %v9113_v38, 16 }
 0x2ac   : > { %4799 = vst.msk [vmem:[#allocation2 + $0x1c] sm:$0xf] %vm226_vm5, %v4502_v50  ;;  %4802 = vst [vmem:[#allocation2 + $0x20] sm:$0x1] %v4801_v1  ;;  %v4485_v60 = vsel %vm9914_vm7, %v4477_v10, %v4484_v63  ;;  %v4794_v23 = vsel %vm9875_vm2, %v4486_v55, %v4793_v3  ;;  %v4505_v11 = vshrl.u32 %v9111_v6, 16  ;;  %v9321_v56 = vpop.f32.mrb[8].mxu0  ;;  %v4317_v8 = vadd.f32 %v9318_v5, %v11462_v45 }
 0x2ad   : > { %4792 = vst.msk [vmem:[#allocation2 + $0x10] sm:$0xf] %vm226_vm5, %v4485_v60  ;;  %4795 = vst [vmem:[#allocation2 + $0x14] sm:$0x1] %v4794_v23  ;;  %v11484_v39 = vrot.slane %v4522_v33, 7  ;;  %v4315_v57 = vadd.f32 %v11462_v45, %v4163_v7  ;;  %v4320_v37 = vadd.f32 %v9321_v56, %v11462_v45  ;;  %v4176_v52 = vpop.f32.mrb[9].mxu0 }
 0x2ae   : > { %v4507_v43 = vrot.slane %v4505_v11, 7  ;;  %v4508_v15 = vshll.u32 %v9111_v6, 16  ;;  %v4318_v25 = vadd.f32 %v11462_v45, %v4176_v52  ;;  %v9322_v35 = vpop.f32.mrb[10].mxu0  ;;  %v4349_v29 = vmax.f32 %v4317_v8, 0.0  ;;  %v4817_v23 = vld [vmem:[#allocation2 + $0x3c] sm:$0xf] }
 0x2af   : > { %v4527_v24 = vor.u32 %v4525_v31, %v11484_v39  ;;  %v4528_v9 = vrot.slane %v11484_v39, 4  ;;  %v4347_v49 = vmax.f32 %v4315_v57, 0.0  ;;  %v4179_v16 = vpop.f32.mrb[11].mxu0  ;;  %v4352_v62 = vmax.f32 %v4320_v37, 0.0 }
 0x2b0   : > { %v4510_v47 = vor.u32 %v4508_v15, %v4507_v43  ;;  %v4511_v61 = vrot.slane %v4507_v43, 4  ;;  %v4350_v2 = vmax.f32 %v4318_v25, 0.0  ;;  %v9114_v26 = vpack.c.bf16 %v4349_v29, %v4349_v29 }
 0x2b1   : > { %v4811_v30 = vsel %vm9920_vm10, %v4527_v24, %v4810_v32  ;;  %v9112_v28 = vpack.c.bf16 %v4347_v49, %v4347_v49  ;;  %v4321_v44 = vadd.f32 %v9322_v35, %v11462_v45  ;;  %v9117_v18 = vpack.c.bf16 %v4352_v62, %v4352_v62 }
 0x2b2   : > { %4812 = vst [vmem:[#allocation2 + $0x30] sm:$0xf] %v4811_v30  ;;  %v4804_v13 = vsel %vm9920_vm10, %v4510_v47, %v4803_v58  ;;  %v9115_v46 = vpack.c.bf16 %v4350_v2, %v4350_v2  ;;  %v4319_v4 = vadd.f32 %v11462_v45, %v4179_v16  ;;  %v4530_v34 = vshrl.u32 %v9114_v26, 16  ;;  %v4828_v2 = vld [vmem:[#allocation2 + $0x50] sm:$0x1] }
 0x2b3   : > { %4805 = vst [vmem:[#allocation2 + $0x24] sm:$0xf] %v4804_v13  ;;  %v4533_v5 = vshll.u32 %v9114_v26, 16  ;;  %v4513_v42 = vshrl.u32 %v9112_v28, 16  ;;  %v4516_v51 = vshll.u32 %v9112_v28, 16  ;;  %v4556_v7 = vshrl.u32 %v9117_v18, 16 }
 0x2b4   : > { %v4559_v53 = vshll.u32 %v9117_v18, 16  ;;  %v4539_v10 = vshrl.u32 %v9115_v46, 16  ;;  %v4542_v54 = vshll.u32 %v9115_v46, 16  ;;  %v9325_v22 = vpop.f32.mrb[12].mxu0  ;;  %v4532_v27 = vrot.slane %v4530_v34, 7 }
 0x2b5   : > { %v4515_v14 = vrot.slane %v4513_v42, 7  ;;  %v4353_v0 = vmax.f32 %v4321_v44, 0.0  ;;  %v4351_v20 = vmax.f32 %v4319_v4, 0.0  ;;  %v4192_v3 = vpop.f32.mrb[13].mxu0  ;;  %v11498_v38 = vrot.slane %v4556_v7, 7 }
 0x2b6   : > { %v11500_v40 = vrot.slane %v4539_v10, 7  ;;  %v4324_v63 = vadd.f32 %v9325_v22, %v11462_v45  ;;  %v4322_v55 = vadd.f32 %v11462_v45, %v4192_v3  ;;  %v9326_v6 = vpop.f32.mrb[14].mxu0  ;;  %v4535_v50 = vor.u32 %v4533_v5, %v4532_v27  ;;  %v4821_v4 = vld [vmem:[#allocation2 + $0x44] sm:$0x1] }
 0x2b7   : > { %v4537_v1 = vrot.slane %v4532_v27, 4  ;;  %v4518_v33 = vor.u32 %v4516_v51, %v4515_v14  ;;  %v4520_v60 = vrot.slane %v4515_v14, 4  ;;  %v4195_v31 = vpop.f32.mrb[15].mxu0  ;;  %v4561_v11 = vor.u32 %v4559_v53, %v11498_v38 }
 0x2b8   : > { %v4562_v56 = vrot.slane %v11498_v38, 4  ;;  %v4544_v39 = vor.u32 %v4542_v54, %v11500_v40  ;;  %v4545_v8 = vrot.slane %v11500_v40, 4  ;;  %v4536_v57 = vsel %vm9914_vm7, %v4528_v9, %v4535_v50 }
 0x2b9   : > { %v4815_v37 = vsel %vm9875_vm2, %v4537_v1, %v4814_v59  ;;  %v4519_v52 = vsel %vm9914_vm7, %v4511_v61, %v4518_v33  ;;  %v4808_v32 = vsel %vm9875_vm2, %v4520_v60, %v4807_v41  ;;  %4813 = vst.msk [vmem:[#allocation2 + $0x34] sm:$0xf] %vm226_vm5, %v4536_v57  ;;  %v4825_v43 = vsel %vm9920_vm10, %v4561_v11, %v4824_v48 }
 0x2ba   : > { %4816 = vst [vmem:[#allocation2 + $0x38] sm:$0x1] %v4815_v37  ;;  %4806 = vst.msk [vmem:[#allocation2 + $0x28] sm:$0xf] %vm226_vm5, %v4519_v52  ;;  %v4818_v15 = vsel %vm9920_vm10, %v4544_v39, %v4817_v23  ;;  %v9118_v25 = vpack.c.bf16 %v4353_v0, %v4353_v0  ;;  %v9116_v35 = vpack.c.bf16 %v4351_v20, %v4351_v20  ;;  %v4356_v24 = vmax.f32 %v4324_v63, 0.0 }
 0x2bb   : > { %4809 = vst [vmem:[#allocation2 + $0x2c] sm:$0x1] %v4808_v32  ;;  %4826 = vst [vmem:[#allocation2 + $0x48] sm:$0xf] %v4825_v43  ;;  %v4354_v9 = vmax.f32 %v4322_v55, 0.0  ;;  %v4325_v58 = vadd.f32 %v9326_v6, %v11462_v45  ;;  %v4323_v29 = vadd.f32 %v11462_v45, %v4195_v31 }
 0x2bc   : > { %4819 = vst [vmem:[#allocation2 + $0x3c] sm:$0xf] %v4818_v15  ;;  %v4564_v49 = vshrl.u32 %v9118_v25, 16  ;;  %v4567_v16 = vshll.u32 %v9118_v25, 16  ;;  %v4547_v47 = vshrl.u32 %v9116_v35, 16  ;;  %v4550_v61 = vshll.u32 %v9116_v35, 16 }
 0x2bd   : > { %v9329_v62 = vpop.f32.mrb[16].mxu0  ;;  %v9121_v30 = vpack.c.bf16 %v4356_v24, %v4356_v24  ;;  %v9119_v26 = vpack.c.bf16 %v4354_v9, %v4354_v9  ;;  %v4357_v28 = vmax.f32 %v4325_v58, 0.0  ;;  %v4355_v44 = vmax.f32 %v4323_v29, 0.0  ;;  %v4838_v55 = vld [vmem:[#allocation2 + $0x60] sm:$0xf] }
 0x2be   : > { %v4208_v13 = vpop.f32.mrb[17].mxu0  ;;  %v4566_v18 = vrot.slane %v4564_v49, 7  ;;  %v4549_v46 = vrot.slane %v4547_v47, 7  ;;  %v4328_v34 = vadd.f32 %v9329_v62, %v11462_v45  ;;  %v4831_v6 = vld [vmem:[#allocation2 + $0x54] sm:$0xf] }
 0x2bf   : > { %v4326_v5 = vadd.f32 %v11462_v45, %v4208_v13  ;;  %v9330_v42 = vpop.f32.mrb[18].mxu0  ;;  %v4590_v51 = vshrl.u32 %v9121_v30, 16  ;;  %v4593_v59 = vshll.u32 %v9121_v30, 16  ;;  %v4573_v41 = vshrl.u32 %v9119_v26, 16  ;;  %v5817_v23 = vld [vmem:[#allocation2 + $0x18] sm:$0xf] }
 0x2c0   : > { %v4576_v7 = vshll.u32 %v9119_v26, 16  ;;  %v11526_v53 = vpop.f32.mrb[19].mxu0  ;;  %v4569_v10 = vor.u32 %v4567_v16, %v4566_v18  ;;  %v4571_v54 = vrot.slane %v4566_v18, 4  ;;  %v4552_v22 = vor.u32 %v4550_v61, %v4549_v46  ;;  %v11538_v31 = vld [vmem:[#allocation2 + $0x1c] sm:$0xf] }
 0x2c1   : > { %v4554_v27 = vrot.slane %v4549_v46, 4  ;;  %v4592_v14 = vrot.slane %v4590_v51, 7  ;;  %v4575_v0 = vrot.slane %v4573_v41, 7  ;;  %v9122_v20 = vpack.c.bf16 %v4357_v28, %v4357_v28  ;;  %v4842_v35 = vld [vmem:[#allocation2 + $0x68] sm:$0x1] }
 0x2c2   : > { %v9120_v3 = vpack.c.bf16 %v4355_v44, %v4355_v44  ;;  %v4570_v38 = vsel %vm9914_vm7, %v4562_v56, %v4569_v10  ;;  %v4829_v48 = vsel %vm9875_vm2, %v4571_v54, %v4828_v2  ;;  %v4553_v40 = vsel %vm9914_vm7, %v4545_v8, %v4552_v22  ;;  %v4835_v49 = vld [vmem:[#allocation2 + $0x5c] sm:$0x1] }
 0x2c3   : > { %v4822_v63 = vsel %vm9875_vm2, %v4554_v27, %v4821_v4  ;;  %4827 = vst.msk [vmem:[#allocation2 + $0x4c] sm:$0xf] %vm226_vm5, %v4570_v38  ;;  %4830 = vst [vmem:[#allocation2 + $0x50] sm:$0x1] %v4829_v48  ;;  %v4595_v50 = vor.u32 %v4593_v59, %v4592_v14  ;;  %v4596_v1 = vrot.slane %v4592_v14, 4  ;;  %v4578_v33 = vor.u32 %v4576_v7, %v4575_v0 }
 0x2c4   : > { %4820 = vst.msk [vmem:[#allocation2 + $0x40] sm:$0xf] %vm226_vm5, %v4553_v40  ;;  %4823 = vst [vmem:[#allocation2 + $0x44] sm:$0x1] %v4822_v63  ;;  %v4579_v60 = vrot.slane %v4575_v0, 4  ;;  %v4598_v11 = vshrl.u32 %v9122_v20, 16  ;;  %v4329_v9 = vadd.f32 %v9330_v42, %v11462_v45 }
 0x2c5   : > { %v4601_v56 = vshll.u32 %v9122_v20, 16  ;;  %v4581_v39 = vshrl.u32 %v9120_v3, 16  ;;  %v4584_v8 = vshll.u32 %v9120_v3, 16  ;;  %v11540_v57 = vpop.f32.mrb[20].mxu0  ;;  %v4839_v37 = vsel %vm9920_vm10, %v4595_v50, %v4838_v55  ;;  %v4852_v7 = vld [vmem:[#allocation2 + $0x78] sm:$0xf] }
 0x2c6   : > { %v4832_v52 = vsel %vm9920_vm10, %v4578_v33, %v4831_v6  ;;  %v4360_v32 = vmax.f32 %v4328_v34, 0.0  ;;  %v4358_v43 = vmax.f32 %v4326_v5, 0.0  ;;  %v11546_v15 = vpop.f32.mrb[21].mxu0  ;;  %4840 = vst [vmem:[#allocation2 + $0x60] sm:$0xf] %v4839_v37  ;;  %v4600_v25 = vrot.slane %v4598_v11, 7 }
 0x2c7   : > { %4833 = vst [vmem:[#allocation2 + $0x54] sm:$0xf] %v4832_v52  ;;  %v4583_v24 = vrot.slane %v4581_v39, 7  ;;  %v5888_v58 = vshrl.u32 %v5817_v23, 16  ;;  %v11549_v29 = vpop.f32.mrb[22].mxu0  ;;  %v5891_v61 = vshll.u32 %v5817_v23, 16  ;;  %v4327_v39 = vadd.f32 %v11462_v45, %v11526_v53 }
 0x2c8   : > { %v9125_v16 = vpack.c.bf16 %v4360_v32, %v4360_v32  ;;  %v9123_v47 = vpack.c.bf16 %v4358_v43, %v4358_v43  ;;  %v5897_v62 = vshll.u32 %v11538_v31, 16  ;;  %v11552_v2 = vpop.f32.mrb[23].mxu0  ;;  %v4603_v30 = vor.u32 %v4601_v56, %v4600_v25  ;;  %v11554_v34 = vld [vmem:[#allocation2 + $0x20] sm:$0x1]  ;;  %v4845_v27 = vld [vmem:[#allocation2 + $0x6c] sm:$0xf] }
 0x2c9   : > { %v4605_v26 = vrot.slane %v4600_v25, 4  ;;  %v4586_v28 = vor.u32 %v4584_v8, %v4583_v24  ;;  %v4588_v44 = vrot.slane %v4583_v24, 4  ;;  %v4361_v54 = vmax.f32 %v4329_v9, 0.0  ;;  %v5815_v33 = vld [vmem:[#allocation2 + $0xc] sm:$0xf] }
 0x2ca   : > { %v4624_v13 = vshrl.u32 %v9125_v16, 16  ;;  %v4627_v18 = vshll.u32 %v9125_v16, 16  ;;  %v4607_v46 = vshrl.u32 %v9123_v47, 16  ;;  %v4610_v4 = vshll.u32 %v9123_v47, 16  ;;  %v4856_v16 = vld [vmem:[#allocation2 + $0x80] sm:$0x1] }
 0x2cb   : > { %v4604_v5 = vsel %vm9914_vm7, %v4596_v1, %v4603_v30  ;;  %v4843_v42 = vsel %vm9875_vm2, %v4605_v26, %v4842_v35  ;;  %v4587_v51 = vsel %vm9914_vm7, %v4579_v60, %v4586_v28  ;;  %v4836_v59 = vsel %vm9875_vm2, %v4588_v44, %v4835_v49  ;;  %v11572_v60 = vld [vmem:[#allocation2 + $0x10] sm:$0xf]  ;;  %v5847_v26 = vld [vmem:[#allocation2 + $0x14] sm:$0x1]  ;;  %v9792_v36 = vld [vmem:[#allocation2 + $0x3c] sm:$0xf] }
 0x2cc   : > { %4841 = vst.msk [vmem:[#allocation2 + $0x64] sm:$0xf] %vm226_vm5, %v4604_v5  ;;  %4844 = vst [vmem:[#allocation2 + $0x68] sm:$0x1] %v4843_v42  ;;  %v4626_v41 = vrot.slane %v4624_v13, 7  ;;  %v11566_v10 = vrot.slane %v4607_v46, 7  ;;  %v9126_v55 = vpack.c.bf16 %v4361_v54, %v4361_v54 }
 0x2cd   : > { %4834 = vst.msk [vmem:[#allocation2 + $0x58] sm:$0xf] %vm226_vm5, %v4587_v51  ;;  %4837 = vst [vmem:[#allocation2 + $0x5c] sm:$0x1] %v4836_v59  ;;  %v5890_v22 = vrot.slane %v5888_v58, 4  ;;  %v5893_v14 = vrot.slane %v5891_v61, 5 }
 0x2ce   : > { %v5899_v0 = vrot.slane %v5897_v62, 5  ;;  %v5901_v20 = vshrl.u32 %v11538_v31, 16  ;;  %v5907_v3 = vshll.u32 %v11554_v34, 16  ;;  %v4629_v38 = vor.u32 %v4627_v18, %v4626_v41  ;;  %v6248_v51 = vld [vmem:[#allocation2 + $0x18] sm:$0xe] }
 0x2cf   : > { %v4630_v48 = vrot.slane %v4626_v41, 4  ;;  %v4612_v40 = vor.u32 %v4610_v4, %v11566_v10  ;;  %v4613_v63 = vrot.slane %v11566_v10, 4  ;;  %v5894_v6 = vor.u32 %v5893_v14, %v5890_v22  ;;  %v6247_v22 = vld [vmem:[#allocation2 + $0xc] sm:$0xe] }
 0x2d0   : > { %v5903_v50 = vrot.slane %v5901_v20, 4  ;;  %v5909_v1 = vrot.slane %v5907_v3, 5  ;;  %v4853_v23 = vsel %vm9920_vm10, %v4629_v38, %v4852_v7  ;;  %v6323_v56 = vrot.slane %v11554_v34, 5  ;;  %v11581_v43 = vpop.f32.mrb[24].mxu0 }
 0x2d1   : > { %v4846_v11 = vsel %vm9920_vm10, %v4612_v40, %v4845_v27  ;;  %4854 = vst [vmem:[#allocation2 + $0x78] sm:$0xf] %v4853_v23  ;;  %v4632_v8 = vshrl.u32 %v9126_v55, 16  ;;  %v4635_v37 = vshll.u32 %v9126_v55, 16  ;;  %v5895_v52 = vrot.slane %v5894_v6, 4  ;;  %v11584_v58 = vpop.f32.mrb[25].mxu0 }
 0x2d2   : > { %4847 = vst [vmem:[#allocation2 + $0x6c] sm:$0xf] %v4846_v11  ;;  %v5904_v32 = vor.u32 %v5903_v50, %v5899_v0  ;;  %v4359_v25 = vmax.f32 %v4327_v39, 0.0  ;;  %v5864_v35 = vshrl.u32 %v5815_v33, 16  ;;  %v5867_v24 = vshll.u32 %v5815_v33, 16  ;;  %v11589_v62 = vpop.f32.mrb[26].mxu0 }
 0x2d3   : > { %v5873_v9 = vshll.u32 %v11572_v60, 16  ;;  %v4634_v49 = vrot.slane %v4632_v8, 7  ;;  %v5900_v53 = vsel %vm9997_vm14, %v5895_v52, %v5899_v0  ;;  %v5877_v61 = vshrl.u32 %v11572_v60, 16  ;;  %v11591_v18 = vpop.f32.mrb[27].mxu0  ;;  %v4849_v6 = vld [vmem:[#allocation2 + $0x74] sm:$0x1] }
 0x2d4   : > { %v5905_v47 = vrot.slane %v5904_v32, 4  ;;  %v9124_v30 = vpack.c.bf16 %v4359_v25, %v4359_v25  ;;  %v5866_v28 = vrot.slane %v5864_v35, 4  ;;  %v5869_v44 = vrot.slane %v5867_v24, 5  ;;  %v5821_v35 = vld [vmem:[#allocation2 + $0x30] sm:$0xf] }
 0x2d5   : > { %v5875_v13 = vrot.slane %v5873_v9, 5  ;;  %v4637_v46 = vor.u32 %v4635_v37, %v4634_v49  ;;  %v4639_v4 = vrot.slane %v4634_v49, 4  ;;  %v5879_v42 = vrot.slane %v5877_v61, 4  ;;  %v11619_v49 = vld [vmem:[#allocation2 + $0x34] sm:$0xf] }
 0x2d6   : > { %v5910_v5 = vsel %vm9997_vm14, %v5905_v47, %v5909_v1  ;;  %v4615_v41 = vshrl.u32 %v9124_v30, 16  ;;  %v4618_v7 = vshll.u32 %v9124_v30, 16  ;;  %v5870_v54 = vor.u32 %v5869_v44, %v5866_v28  ;;  %v11633_v44 = vld [vmem:[#allocation2 + $0x38] sm:$0x1] }
 0x2d7   : > { %v8920_v59 = vcombine.low %v5900_v53, %v5910_v5  ;;  %v4638_v27 = vsel %vm9914_vm7, %v4630_v48, %v4637_v46  ;;  %v4857_v14 = vsel %vm9875_vm2, %v4639_v4, %v4856_v16  ;;  %v5880_v0 = vor.u32 %v5879_v42, %v5875_v13 }
 0x2d8   : > { %v5883_v20 = vshll.u32 %v5847_v26, 16  ;;  %4855 = vst.msk [vmem:[#allocation2 + $0x7c] sm:$0xf] %vm226_vm5, %v4638_v27  ;;  %4858 = vst [vmem:[#allocation2 + $0x80] sm:$0x1] %v4857_v14  ;;  %v4617_v3 = vrot.slane %v4615_v41, 7  ;;  %v4332_v25 = vadd.f32 %v11540_v57, %v11462_v45  ;;  %v4333_v47 = vadd.f32 %v11549_v29, %v11462_v45 }
 0x2d9   : > { %6537 = vrot.lane.b32.xlu1 %v8920_v59, %s9833_s25  ;;  %v5871_v38 = vrot.slane %v5870_v54, 4  ;;  %v6316_v40 = vrot.slane %v5847_v26, 5  ;;  %v8888_v55 = vrot.slane %v6248_v51, 9  ;;  %v5881_v50 = vrot.slane %v5880_v0, 4  ;;  %v4866_v41 = vld [vmem:[#allocation2 + $0x90] sm:$0xf] }
 0x2da   : > { %v5885_v1 = vrot.slane %v5883_v20, 5  ;;  %v6320_v33 = vrot.slane %v11538_v31, 5  ;;  %v8887_v48 = vrot.slane %v6247_v22, 9  ;;  %v4620_v23 = vor.u32 %v4618_v7, %v4617_v3 }
 0x2db   : > { %v4622_v11 = vrot.slane %v4617_v3, 4  ;;  %v5876_v39 = vsel %vm9997_vm14, %v5871_v38, %v5875_v13  ;;  %v6313_v8 = vrot.slane %v11572_v60, 5  ;;  %v4364_v16 = vmax.f32 %v4332_v25, 0.0 }
 0x2dc   : > { %v5886_v37 = vsel %vm9997_vm14, %v5881_v50, %v5885_v1  ;;  %v6321_v52 = vsel %vm9968_vm13, %v8888_v55, %v6320_v33  ;;  %v6322_v32 = vrot.slane %v6320_v33, 4  ;;  %v4621_v31 = vsel %vm9914_vm7, %v4613_v63, %v4620_v23 }
 0x2dd   : > { %v4850_v24 = vsel %vm9875_vm2, %v4622_v11, %v4849_v6  ;;  %v8919_v60 = vcombine.low %v5876_v39, %v5886_v37  ;;  %v6314_v9 = vsel %vm9968_vm13, %v8887_v48, %v6313_v8  ;;  %4848 = vst.msk [vmem:[#allocation2 + $0x70] sm:$0xf] %vm226_vm5, %v4621_v31  ;;  %v6315_v10 = vrot.slane %v6313_v8, 4  ;;  %v4859_v37 = vld [vmem:[#allocation2 + $0x84] sm:$0xf] }
 0x2de   : > { %4851 = vst [vmem:[#allocation2 + $0x74] sm:$0x1] %v4850_v24  ;;  %v6324_v57 = vsel %vm9968_vm13, %v6322_v32, %v6323_v56  ;;  %v4330_v63 = vadd.f32 %v11462_v45, %v11546_v15  ;;  %v5936_v61 = vshrl.u32 %v5821_v35, 16  ;;  %v5939_v30 = vshll.u32 %v5821_v35, 16  ;;  %v5820_v35 = vld [vmem:[#allocation2 + $0x28] sm:$0xf] }
 0x2df   : > { %6535 = vrot.lane.b32.xlu0 %v8919_v60, %s9833_s25  ;;  %v8936_v53 = vcombine.low %v6321_v52, %v6324_v57  ;;  %v6317_v26 = vsel %vm9968_vm13, %v6315_v10, %v6316_v40  ;;  %v9129_v34 = vpack.c.bf16 %v4364_v16, %v4364_v16  ;;  %v5945_v56 = vshll.u32 %v11619_v49, 16  ;;  %v5819_v40 = vld [vmem:[#allocation2 + $0x24] sm:$0xf] }
 0x2e0   : > { %v4362_v28 = vmax.f32 %v4330_v63, 0.0  ;;  %v8935_v15 = vcombine.low %v6314_v9, %v6317_v26  ;;  %v4365_v13 = vmax.f32 %v4333_v47, 0.0  ;;  %v5938_v46 = vrot.slane %v5936_v61, 4  ;;  %v4870_v9 = vld [vmem:[#allocation2 + $0x98] sm:$0x1] }
 0x2e1   : > { %6617 = vrot.lane.b32.xlu1 %v8936_v53, %s9832_s24  ;;  %v5941_v4 = vrot.slane %v5939_v30, 5  ;;  %v4658_v5 = vshrl.u32 %v9129_v34, 16  ;;  %v4661_v42 = vshll.u32 %v9129_v34, 16  ;;  %v5947_v51 = vrot.slane %v5945_v56, 5  ;;  %v11637_v59 = vpop.f32.mrb[28].mxu0 }
 0x2e2   : > { %v9127_v29 = vpack.c.bf16 %v4362_v28, %v4362_v28  ;;  %v9130_v7 = vpack.c.bf16 %v4365_v13, %v4365_v13  ;;  %v5949_v22 = vshrl.u32 %v11619_v49, 16  ;;  %v5955_v27 = vshll.u32 %v11633_v44, 16  ;;  %v11642_v14 = vpop.f32.mrb[29].mxu0  ;;  %v6250_v47 = vld [vmem:[#allocation2 + $0x30] sm:$0xe] }
 0x2e3   : > { %6615 = vrot.lane.b32.xlu0 %v8935_v15, %s9832_s24  ;;  %v5942_v54 = vor.u32 %v5941_v4, %v5938_v46  ;;  %v4660_v0 = vrot.slane %v4658_v5, 7  ;;  %v4331_v38 = vadd.f32 %v11462_v45, %v11552_v2  ;;  %v11646_v55 = vpop.f32.mrb[30].mxu0  ;;  %v5912_v57 = vshrl.u32 %v5819_v40, 16  ;;  %v5849_v30 = vld [vmem:[#allocation2 + $0x2c] sm:$0x1] }
 0x2e4   : > { %v4641_v20 = vshrl.u32 %v9127_v29, 16  ;;  %v4644_v3 = vshll.u32 %v9127_v29, 16  ;;  %v4666_v6 = vshrl.u32 %v9130_v7, 16  ;;  %v4669_v50 = vshll.u32 %v9130_v7, 16  ;;  %v11648_v48 = vpop.f32.mrb[31].mxu0 }
 0x2e5   : > { %v5943_v1 = vrot.slane %v5942_v54, 4  ;;  %v5951_v33 = vrot.slane %v5949_v22, 4  ;;  %v4663_v23 = vor.u32 %v4661_v42, %v4660_v0  ;;  %v4664_v11 = vrot.slane %v4660_v0, 4  ;;  %v6249_v4 = vld [vmem:[#allocation2 + $0x24] sm:$0xe] }
 0x2e6   : > { %v4643_v39 = vrot.slane %v4641_v20, 7  ;;  %v5957_v8 = vrot.slane %v5955_v27, 5  ;;  %v4668_v52 = vrot.slane %v4666_v6, 7  ;;  %v4363_v2 = vmax.f32 %v4331_v38, 0.0  ;;  %v4863_v27 = vld [vmem:[#allocation2 + $0x8c] sm:$0x1] }
 0x2e7   : > { %v5948_v32 = vsel %vm9997_vm14, %v5943_v1, %v5947_v51  ;;  %v5952_v25 = vor.u32 %v5951_v33, %v5947_v51  ;;  %v4867_v31 = vsel %vm9920_vm10, %v4663_v23, %v4866_v41  ;;  %v5914_v26 = vrot.slane %v5912_v57, 4 }
 0x2e8   : > { %v4646_v24 = vor.u32 %v4644_v3, %v4643_v39  ;;  %v4647_v60 = vrot.slane %v4643_v39, 4  ;;  %4868 = vst [vmem:[#allocation2 + $0x90] sm:$0xf] %v4867_v31  ;;  %v4671_v10 = vor.u32 %v4669_v50, %v4668_v52  ;;  %v4673_v16 = vrot.slane %v4668_v52, 4 }
 0x2e9   : > { %v5953_v63 = vrot.slane %v5952_v25, 4  ;;  %v9128_v53 = vpack.c.bf16 %v4363_v2, %v4363_v2  ;;  %v5915_v34 = vshll.u32 %v5819_v40, 16  ;;  %v5921_v28 = vshll.u32 %v5820_v35, 16 }
 0x2ea   : > { %v4860_v61 = vsel %vm9920_vm10, %v4646_v24, %v4859_v37  ;;  %v4672_v56 = vsel %vm9914_vm7, %v4664_v11, %v4671_v10  ;;  %v4871_v15 = vsel %vm9875_vm2, %v4673_v16, %v4870_v9  ;;  %v5925_v7 = vshrl.u32 %v5820_v35, 16  ;;  %v11687_v16 = vld [vmem:[#allocation2 + $0x4c] sm:$0xf] }
 0x2eb   : > { %4861 = vst [vmem:[#allocation2 + $0x84] sm:$0xf] %v4860_v61  ;;  %v5958_v13 = vsel %vm9997_vm14, %v5953_v63, %v5957_v8  ;;  %v4649_v46 = vshrl.u32 %v9128_v53, 16  ;;  %4869 = vst.msk [vmem:[#allocation2 + $0x94] sm:$0xf] %vm226_vm5, %v4672_v56  ;;  %v4652_v42 = vshll.u32 %v9128_v53, 16  ;;  %v4334_v9 = vadd.f32 %v11462_v45, %v11584_v58 }
 0x2ec   : > { %4872 = vst [vmem:[#allocation2 + $0x98] sm:$0x1] %v4871_v15  ;;  %v8922_v5 = vcombine.low %v5948_v32, %v5958_v13  ;;  %v5917_v29 = vrot.slane %v5915_v34, 5  ;;  %v5923_v51 = vrot.slane %v5921_v28, 5  ;;  %v5931_v54 = vshll.u32 %v5849_v30, 16 }
 0x2ed   : > { %v4651_v41 = vrot.slane %v4649_v46, 7  ;;  %v8890_v22 = vrot.slane %v6250_v47, 9  ;;  %v6334_v20 = vrot.slane %v11619_v49, 5  ;;  %v6337_v3 = vrot.slane %v11633_v44, 5  ;;  %v5825_v44 = vld [vmem:[#allocation2 + $0x48] sm:$0xf] }
 0x2ee   : > { %6541 = vrot.lane.b32.xlu1 %v8922_v5, %s9833_s25  ;;  %v5918_v0 = vor.u32 %v5917_v29, %v5914_v26  ;;  %v8889_v38 = vrot.slane %v6249_v4, 9  ;;  %v5927_v50 = vrot.slane %v5925_v7, 4  ;;  %v5933_v1 = vrot.slane %v5931_v54, 5  ;;  %v11692_v26 = vld [vmem:[#allocation2 + $0x50] sm:$0x1] }
 0x2ef   : > { %v4654_v40 = vor.u32 %v4652_v42, %v4651_v41  ;;  %v4656_v6 = vrot.slane %v4651_v41, 4  ;;  %v6335_v23 = vsel %vm9968_vm13, %v8890_v22, %v6334_v20  ;;  %v6336_v11 = vrot.slane %v6334_v20, 4  ;;  %v5823_v22 = vld [vmem:[#allocation2 + $0x3c] sm:$0xf] }
 0x2f0   : > { %v5919_v33 = vrot.slane %v5918_v0, 4  ;;  %v6327_v39 = vrot.slane %v5820_v35, 5  ;;  %v5928_v49 = vor.u32 %v5927_v50, %v5923_v51  ;;  %v6330_v52 = vrot.slane %v5849_v30, 5 }
 0x2f1   : > { %v4655_v8 = vsel %vm9914_vm7, %v4647_v60, %v4654_v40  ;;  %v4864_v37 = vsel %vm9875_vm2, %v4656_v6, %v4863_v27  ;;  %v6338_v25 = vsel %vm9968_vm13, %v6336_v11, %v6337_v3  ;;  %v4336_v60 = vadd.f32 %v11581_v43, %v11462_v45  ;;  %v4880_v40 = vld [vmem:[#allocation2 + $0xa8] sm:$0xf] }
 0x2f2   : > { %4862 = vst.msk [vmem:[#allocation2 + $0x88] sm:$0xf] %vm226_vm5, %v4655_v8  ;;  %4865 = vst [vmem:[#allocation2 + $0x8c] sm:$0x1] %v4864_v37  ;;  %v5924_v32 = vsel %vm9997_vm14, %v5919_v33, %v5923_v51  ;;  %v6328_v2 = vsel %vm9968_vm13, %v8889_v38, %v6327_v39  ;;  %v6329_v35 = vrot.slane %v6327_v39, 4  ;;  %v5929_v31 = vrot.slane %v5928_v49, 4 }
 0x2f3   : > { %v8938_v24 = vcombine.low %v6335_v23, %v6338_v25  ;;  %v4337_v10 = vadd.f32 %v11589_v62, %v11462_v45  ;;  %v5984_v63 = vshrl.u32 %v5825_v44, 16  ;;  %v5987_v53 = vshll.u32 %v5825_v44, 16  ;;  %v4873_v33 = vld [vmem:[#allocation2 + $0x9c] sm:$0xf] }
 0x2f4   : > { %v6331_v57 = vsel %vm9968_vm13, %v6329_v35, %v6330_v52  ;;  %v5934_v47 = vsel %vm9997_vm14, %v5929_v31, %v5933_v1  ;;  %v4368_v43 = vmax.f32 %v4336_v60, 0.0  ;;  %v4366_v30 = vmax.f32 %v4334_v9, 0.0  ;;  %v4884_v52 = vld [vmem:[#allocation2 + $0xb0] sm:$0x1]  ;;  %v5824_v35 = vld [vmem:[#allocation2 + $0x40] sm:$0xf] }
 0x2f5   : > { %6621 = vrot.lane.b32.xlu1 %v8938_v24, %s9832_s24  ;;  %v8937_v61 = vcombine.low %v6328_v2, %v6331_v57  ;;  %v8921_v58 = vcombine.low %v5924_v32, %v5934_v47  ;;  %v4369_v34 = vmax.f32 %v4337_v10, 0.0  ;;  %v5986_v28 = vrot.slane %v5984_v63, 4  ;;  %v11707_v60 = vld [vmem:[#allocation2 + $0x44] sm:$0x1]  ;;  %v6252_v10 = vld [vmem:[#allocation2 + $0x48] sm:$0xe] }
 0x2f6   : > { %v5989_v56 = vrot.slane %v5987_v53, 5  ;;  %v9133_v15 = vpack.c.bf16 %v4368_v43, %v4368_v43  ;;  %v9131_v62 = vpack.c.bf16 %v4366_v30, %v4366_v30  ;;  %v5993_v13 = vshll.u32 %v11687_v16, 16 }
 0x2f7   : > { %v5997_v46 = vshrl.u32 %v11687_v16, 16  ;;  %6539 = vrot.lane.b32.xlu0 %v8921_v58, %s9833_s25  ;;  %v9134_v4 = vpack.c.bf16 %v4369_v34, %v4369_v34  ;;  %v6003_v42 = vshll.u32 %v11692_v26, 16  ;;  %v4335_v29 = vadd.f32 %v11462_v45, %v11591_v18 }
 0x2f8   : > { %v5990_v5 = vor.u32 %v5989_v56, %v5986_v28  ;;  %v4692_v51 = vshrl.u32 %v9133_v15, 16  ;;  %v4695_v41 = vshll.u32 %v9133_v15, 16  ;;  %v4675_v7 = vshrl.u32 %v9131_v62, 16 }
 0x2f9   : > { %v4678_v54 = vshll.u32 %v9131_v62, 16  ;;  %v4700_v27 = vshrl.u32 %v9134_v4, 16  ;;  %v4703_v0 = vshll.u32 %v9134_v4, 16  ;;  %v5995_v3 = vrot.slane %v5993_v13, 5  ;;  %v6251_v13 = vld [vmem:[#allocation2 + $0x3c] sm:$0xe] }
 0x2fa   : > { %v5991_v20 = vrot.slane %v5990_v5, 4  ;;  %v4694_v38 = vrot.slane %v4692_v51, 7  ;;  %v4677_v6 = vrot.slane %v4675_v7, 7  ;;  %v5999_v50 = vrot.slane %v5997_v46, 4  ;;  %v4877_v4 = vld [vmem:[#allocation2 + $0xa4] sm:$0x1] }
 0x2fb   : > { %v6005_v1 = vrot.slane %v6003_v42, 5  ;;  %6619 = vrot.lane.b32.xlu0 %v8937_v61, %s9832_s24  ;;  %v4702_v23 = vrot.slane %v4700_v27, 7  ;;  %v4367_v18 = vmax.f32 %v4335_v29, 0.0  ;;  %v5960_v11 = vshrl.u32 %v5823_v22, 16 }
 0x2fc   : > { %v5996_v45 = vsel %vm9997_vm14, %v5991_v20, %v5995_v3  ;;  %v4697_v39 = vor.u32 %v4695_v41, %v4694_v38  ;;  %v4698_v8 = vrot.slane %v4694_v38, 4  ;;  %v4680_v37 = vor.u32 %v4678_v54, %v4677_v6 }
 0x2fd   : > { %v4681_v49 = vrot.slane %v4677_v6, 4  ;;  %v4705_v44 = vor.u32 %v4703_v0, %v4702_v23  ;;  %v4707_v32 = vrot.slane %v4702_v23, 4  ;;  %v6000_v25 = vor.u32 %v5999_v50, %v5995_v3  ;;  %v9745_v23 = vld [vmem:[%s12959_s3] ss:$0 sm:$0xff] }
 0x2fe   : > { %v9132_v2 = vpack.c.bf16 %v4367_v18, %v4367_v18  ;;  %v4881_v31 = vsel %vm9920_vm10, %v4697_v39, %v4880_v40  ;;  %v4874_v24 = vsel %vm9920_vm10, %v4680_v37, %v4873_v33  ;;  %v5962_v9 = vrot.slane %v5960_v11, 4  ;;  %v5829_v39 = vld [vmem:[#allocation2 + $0x60] sm:$0xf] }
 0x2ff   : > { %v5963_v57 = vshll.u32 %v5823_v22, 16  ;;  %4882 = vst [vmem:[#allocation2 + $0xa8] sm:$0xf] %v4881_v31  ;;  %4875 = vst [vmem:[#allocation2 + $0x9c] sm:$0xf] %v4874_v24  ;;  %v4706_v63 = vsel %vm9914_vm7, %v4698_v8, %v4705_v44  ;;  %v4885_v53 = vsel %vm9875_vm2, %v4707_v32, %v4884_v52  ;;  %v6001_v47 = vrot.slane %v6000_v25, 4 }
 0x300   : > { %v4683_v61 = vshrl.u32 %v9132_v2, 16  ;;  %4883 = vst.msk [vmem:[#allocation2 + $0xac] sm:$0xf] %vm226_vm5, %v4706_v63  ;;  %4886 = vst [vmem:[#allocation2 + $0xb0] sm:$0x1] %v4885_v53  ;;  %v4686_v43 = vshll.u32 %v9132_v2, 16  ;;  %v4338_v18 = vadd.f32 %v9745_v23, %v11642_v14  ;;  %v4341_v11 = vadd.f32 %v9745_v23, %v11646_v55 }
 0x301   : > { %v5965_v30 = vrot.slane %v5963_v57, 5  ;;  %v5969_v58 = vshll.u32 %v5824_v35, 16  ;;  %v5973_v34 = vshrl.u32 %v5824_v35, 16  ;;  %v6006_v28 = vsel %vm9997_vm14, %v6001_v47, %v6005_v1  ;;  %v11738_v8 = vld [vmem:[#allocation2 + $0x64] sm:$0xf] }
 0x302   : > { %v4685_v56 = vrot.slane %v4683_v61, 7  ;;  %v5979_v15 = vshll.u32 %v11707_v60, 16  ;;  %v8892_v62 = vrot.slane %v6252_v10, 9  ;;  %v8924_v46 = vcombine.low %v5996_v45, %v6006_v28  ;;  %v11749_v10 = vld [vmem:[#allocation2 + $0x68] sm:$0x1] }
 0x303   : > { %v5966_v5 = vor.u32 %v5965_v30, %v5962_v9  ;;  %v5971_v42 = vrot.slane %v5969_v58, 5  ;;  %v5975_v29 = vrot.slane %v5973_v34, 4  ;;  %v6348_v54 = vrot.slane %v11687_v16, 5  ;;  %v5827_v28 = vld [vmem:[#allocation2 + $0x54] sm:$0xf] }
 0x304   : > { %v4688_v51 = vor.u32 %v4686_v43, %v4685_v56  ;;  %v4690_v41 = vrot.slane %v4685_v56, 4  ;;  %v5981_v7 = vrot.slane %v5979_v15, 5  ;;  %6545 = vrot.lane.b32.xlu1 %v8924_v46, %s9833_s25  ;;  %v6351_v0 = vrot.slane %v11692_v26, 5 }
 0x305   : > { %v5967_v22 = vrot.slane %v5966_v5, 4  ;;  %v5976_v27 = vor.u32 %v5975_v29, %v5971_v42  ;;  %v8891_v20 = vrot.slane %v6251_v13, 9  ;;  %v6349_v40 = vsel %vm9968_vm13, %v8892_v62, %v6348_v54 }
 0x306   : > { %v4689_v3 = vsel %vm9914_vm7, %v4681_v49, %v4688_v51  ;;  %v4878_v38 = vsel %vm9875_vm2, %v4690_v41, %v4877_v4  ;;  %v6350_v6 = vrot.slane %v6348_v54, 4  ;;  %v6341_v1 = vrot.slane %v5824_v35, 5  ;;  %v4894_v4 = vld [vmem:[#allocation2 + $0xc0] sm:$0xf]  ;;  %v4887_v51 = vld [vmem:[#allocation2 + $0xb4] sm:$0xf] }
 0x307   : > { %4876 = vst.msk [vmem:[#allocation2 + $0xa0] sm:$0xf] %vm226_vm5, %v4689_v3  ;;  %4879 = vst [vmem:[#allocation2 + $0xa4] sm:$0x1] %v4878_v38  ;;  %v5972_v16 = vsel %vm9997_vm14, %v5967_v22, %v5971_v42  ;;  %v5977_v50 = vrot.slane %v5976_v27, 4  ;;  %v6344_v26 = vrot.slane %v11707_v60, 5  ;;  %v4340_v45 = vadd.f32 %v9745_v23, %v11637_v59 }
 0x308   : > { %v6352_v33 = vsel %vm9968_vm13, %v6350_v6, %v6351_v0  ;;  %v6342_v52 = vsel %vm9968_vm13, %v8891_v20, %v6341_v1  ;;  %v6343_v44 = vrot.slane %v6341_v1, 4  ;;  %v4370_v2 = vmax.f32 %v4338_v18, 0.0  ;;  %v4898_v38 = vld [vmem:[#allocation2 + $0xc8] sm:$0x1]  ;;  %v5828_v1 = vld [vmem:[#allocation2 + $0x58] sm:$0xf] }
 0x309   : > { %v5982_v37 = vsel %vm9997_vm14, %v5977_v50, %v5981_v7  ;;  %v8940_v49 = vcombine.low %v6349_v40, %v6352_v33  ;;  %v4372_v25 = vmax.f32 %v4340_v45, 0.0  ;;  %v4373_v35 = vmax.f32 %v4341_v11, 0.0  ;;  %v5853_v45 = vld [vmem:[#allocation2 + $0x5c] sm:$0x1]  ;;  %v6254_v18 = vld [vmem:[#allocation2 + $0x60] sm:$0xe] }
 0x30a   : > { %v8923_v32 = vcombine.low %v5972_v16, %v5982_v37  ;;  %v6345_v59 = vsel %vm9968_vm13, %v6343_v44, %v6344_v26  ;;  %v6032_v14 = vshrl.u32 %v5829_v39, 16  ;;  %v6035_v55 = vshll.u32 %v5829_v39, 16 }
 0x30b   : > { %6625 = vrot.lane.b32.xlu1 %v8940_v49, %s9832_s24  ;;  %v6041_v31 = vshll.u32 %v11738_v8, 16  ;;  %v8939_v24 = vcombine.low %v6342_v52, %v6345_v59  ;;  %v9137_v60 = vpack.c.bf16 %v4372_v25, %v4372_v25  ;;  %v9135_v9 = vpack.c.bf16 %v4370_v2, %v4370_v2 }
 0x30c   : > { %6543 = vrot.lane.b32.xlu0 %v8923_v32, %s9833_s25  ;;  %v9138_v57 = vpack.c.bf16 %v4373_v35, %v4373_v35  ;;  %v6034_v63 = vrot.slane %v6032_v14, 4  ;;  %v6037_v53 = vrot.slane %v6035_v55, 5  ;;  %v6045_v61 = vshrl.u32 %v11738_v8, 16  ;;  %v6253_v14 = vld [vmem:[#allocation2 + $0x54] sm:$0xe] }
 0x30d   : > { %v6043_v47 = vrot.slane %v6041_v31, 5  ;;  %v4726_v43 = vshrl.u32 %v9137_v60, 16  ;;  %v4729_v30 = vshll.u32 %v9137_v60, 16  ;;  %v4709_v58 = vshrl.u32 %v9135_v9, 16 }
 0x30e   : > { %v4712_v34 = vshll.u32 %v9135_v9, 16  ;;  %v4734_v56 = vshrl.u32 %v9138_v57, 16  ;;  %v4737_v15 = vshll.u32 %v9138_v57, 16  ;;  %v6038_v62 = vor.u32 %v6037_v53, %v6034_v63 }
 0x30f   : > { %v6047_v13 = vrot.slane %v6045_v61, 4  ;;  %v4728_v46 = vrot.slane %v4726_v43, 7  ;;  %v11753_v5 = vrot.slane %v4709_v58, 7  ;;  %v6051_v42 = vshll.u32 %v11749_v10, 16  ;;  %v5833_v58 = vld [vmem:[#allocation2 + $0x78] sm:$0xf] }
 0x310   : > { %6623 = vrot.lane.b32.xlu0 %v8939_v24, %s9832_s24  ;;  %v4339_v29 = vadd.f32 %v9745_v23, %v11648_v48  ;;  %v4736_v41 = vrot.slane %v4734_v56, 7  ;;  %v6039_v7 = vrot.slane %v6038_v62, 4  ;;  %v6008_v22 = vshrl.u32 %v5827_v28, 16 }
 0x311   : > { %v6048_v54 = vor.u32 %v6047_v13, %v6043_v47  ;;  %v4731_v27 = vor.u32 %v4729_v30, %v4728_v46  ;;  %v4732_v0 = vrot.slane %v4728_v46, 4  ;;  %v4714_v20 = vor.u32 %v4712_v34, %v11753_v5  ;;  %v4891_v34 = vld [vmem:[#allocation2 + $0xbc] sm:$0x1] }
 0x312   : > { %v4715_v3 = vrot.slane %v11753_v5, 4  ;;  %v4739_v40 = vor.u32 %v4737_v15, %v4736_v41  ;;  %v4741_v6 = vrot.slane %v4736_v41, 4  ;;  %v6044_v16 = vsel %vm9997_vm14, %v6039_v7, %v6043_v47 }
 0x313   : > { %v6049_v50 = vrot.slane %v6048_v54, 4  ;;  %v4895_v48 = vsel %vm9920_vm10, %v4731_v27, %v4894_v4  ;;  %v4888_v26 = vsel %vm9920_vm10, %v4714_v20, %v4887_v51  ;;  %v6053_v33 = vrot.slane %v6051_v42, 5  ;;  %v11783_v51 = vld [vmem:[#allocation2 + $0x80] sm:$0x1]  ;;  %v5832_v20 = vld [vmem:[#allocation2 + $0x70] sm:$0xf] }
 0x314   : > { %v4371_v23 = vmax.f32 %v4339_v29, 0.0  ;;  %4896 = vst [vmem:[#allocation2 + $0xc0] sm:$0xf] %v4895_v48  ;;  %4889 = vst [vmem:[#allocation2 + $0xb4] sm:$0xf] %v4888_v26  ;;  %v4740_v11 = vsel %vm9914_vm7, %v4732_v0, %v4739_v40  ;;  %v4899_v39 = vsel %vm9875_vm2, %v4741_v6, %v4898_v38  ;;  %v6010_v37 = vrot.slane %v6008_v22, 4 }
 0x315   : > { %v6011_v49 = vshll.u32 %v5827_v28, 16  ;;  %4897 = vst.msk [vmem:[#allocation2 + $0xc4] sm:$0xf] %vm226_vm5, %v4740_v11  ;;  %4900 = vst [vmem:[#allocation2 + $0xc8] sm:$0x1] %v4899_v39  ;;  %v6054_v21 = vsel %vm9997_vm14, %v6049_v50, %v6053_v33  ;;  %v6017_v44 = vshll.u32 %v5828_v1, 16 }
 0x316   : > { %v9136_v52 = vpack.c.bf16 %v4371_v23, %v4371_v23  ;;  %v6021_v32 = vshrl.u32 %v5828_v1, 16  ;;  %v8926_v25 = vcombine.low %v6044_v16, %v6054_v21  ;;  %v6027_v35 = vshll.u32 %v5853_v45, 16  ;;  %v5834_v29 = vld [vmem:[#allocation2 + $0x7c] sm:$0xf]  ;;  %v5831_v0 = vld [vmem:[#allocation2 + $0x6c] sm:$0xf] }
 0x317   : > { %v6013_v2 = vrot.slane %v6011_v49, 5  ;;  %v8894_v59 = vrot.slane %v6254_v18, 9  ;;  %v6019_v24 = vrot.slane %v6017_v44, 5  ;;  %v6362_v63 = vrot.slane %v11738_v8, 5  ;;  %v5855_v26 = vld [vmem:[#allocation2 + $0x74] sm:$0x1] }
 0x318   : > { %v4717_v55 = vshrl.u32 %v9136_v52, 16  ;;  %v4720_v31 = vshll.u32 %v9136_v52, 16  ;;  %v6023_v60 = vrot.slane %v6021_v32, 4  ;;  %6549 = vrot.lane.b32.xlu1 %v8926_v25, %s9833_s25  ;;  %v6029_v57 = vrot.slane %v6027_v35, 5  ;;  %v6255_v32 = vld [vmem:[#allocation2 + $0x6c] sm:$0xe] }
 0x319   : > { %v6014_v9 = vor.u32 %v6013_v2, %v6010_v37  ;;  %v6365_v53 = vrot.slane %v11749_v10, 5  ;;  %v8893_v43 = vrot.slane %v6253_v14, 9  ;;  %v6355_v30 = vrot.slane %v5828_v1, 5  ;;  %v6256_v1 = vld [vmem:[#allocation2 + $0x78] sm:$0xe] }
 0x31a   : > { %v4719_v47 = vrot.slane %v4717_v55, 7  ;;  %v6024_v61 = vor.u32 %v6023_v60, %v6019_v24  ;;  %v6363_v56 = vsel %vm9968_vm13, %v8894_v59, %v6362_v63  ;;  %v6364_v15 = vrot.slane %v6362_v63, 4 }
 0x31b   : > { %v6015_v28 = vrot.slane %v6014_v9, 4  ;;  %v6358_v62 = vrot.slane %v5853_v45, 5  ;;  %v6356_v8 = vsel %vm9968_vm13, %v8893_v43, %v6355_v30  ;;  %v6357_v42 = vrot.slane %v6355_v30, 4 }
 0x31c   : > { %v4722_v13 = vor.u32 %v4720_v31, %v4719_v47  ;;  %v4724_v46 = vrot.slane %v4719_v47, 4  ;;  %v6025_v4 = vrot.slane %v6024_v61, 4  ;;  %v6366_v5 = vsel %vm9968_vm13, %v6364_v15, %v6365_v53  ;;  %v5837_v53 = vld [vmem:[#allocation2 + $0x90] sm:$0xf] }
 0x31d   : > { %v6020_v10 = vsel %vm9997_vm14, %v6015_v28, %v6019_v24  ;;  %v6080_v41 = vshrl.u32 %v5833_v58, 16  ;;  %v8942_v27 = vcombine.low %v6363_v56, %v6366_v5  ;;  %v6359_v40 = vsel %vm9968_vm13, %v6357_v42, %v6358_v62  ;;  %v9623_v62 = vld [vmem:[%s12958_s2 + $0x8] sm:$0x3f]   ;;  %v5835_v5 = vld [vmem:[#allocation2 + $0x84] sm:$0xf] }
 0x31e   : > { %v4723_v7 = vsel %vm9914_vm7, %v4715_v3, %v4722_v13  ;;  %v4892_v54 = vsel %vm9875_vm2, %v4724_v46, %v4891_v34  ;;  %v6030_v22 = vsel %vm9997_vm14, %v6025_v4, %v6029_v57  ;;  %v6083_v16 = vshll.u32 %v5833_v58, 16  ;;  %v5838_v58 = vld [vmem:[#allocation2 + $0x94] sm:$0xf]  ;;  %9576 = vmatprep.subr.msk.bf16.mxu1 %vm2788_vm0, %v9623_v62 }
 0x31f   : > { %4890 = vst.msk [vmem:[#allocation2 + $0xb8] sm:$0xf] %vm226_vm5, %v4723_v7  ;;  %4893 = vst [vmem:[#allocation2 + $0xbc] sm:$0x1] %v4892_v54  ;;  %v8925_v38 = vcombine.low %v6020_v10, %v6030_v22  ;;  %v6082_v6 = vrot.slane %v6080_v41, 4  ;;  %6629 = vrot.lane.b32.xlu1 %v8942_v27, %s9832_s24  ;;  %v8941_v12 = vcombine.low %v6356_v8, %v6359_v40  ;;  %v6089_v19 = vshll.u32 %v5834_v29, 16 }
 0x320   : > { %v6093_v3 = vshrl.u32 %v5834_v29, 16  ;;  %v6099_v50 = vshll.u32 %v11783_v51, 16  ;;  %v6085_v48 = vrot.slane %v6083_v16, 5  ;;  %v6056_v33 = vshrl.u32 %v5831_v0, 16  ;;  %v5858_v8 = vld [vmem:[#allocation2 + $0x98] sm:$0x1] }
 0x321   : > { %6547 = vrot.lane.b32.xlu0 %v8925_v38, %s9833_s25  ;;  %v6059_v23 = vshll.u32 %v5831_v0, 16  ;;  %v6065_v45 = vshll.u32 %v5832_v20, 16  ;;  %v6091_v18 = vrot.slane %v6089_v19, 5  ;;  %v6069_v37 = vshrl.u32 %v5832_v20, 16  ;;  %v5836_v0 = vld [vmem:[#allocation2 + $0x88] sm:$0xf] }
 0x322   : > { %v6095_v11 = vrot.slane %v6093_v3, 4  ;;  %v6101_v39 = vrot.slane %v6099_v50, 5  ;;  %v6086_v49 = vor.u32 %v6085_v48, %v6082_v6  ;;  %v6058_v21 = vrot.slane %v6056_v33, 4  ;;  %v5857_v6 = vld [vmem:[#allocation2 + $0x8c] sm:$0x1] }
 0x323   : > { %v6061_v52 = vrot.slane %v6059_v23, 5  ;;  %v6067_v44 = vrot.slane %v6065_v45, 5  ;;  %v6071_v2 = vrot.slane %v6069_v37, 4  ;;  %v6075_v35 = vshll.u32 %v5855_v26, 16 }
 0x324   : > { %v6096_v25 = vor.u32 %v6095_v11, %v6091_v18  ;;  %v8896_v59 = vrot.slane %v6256_v1, 9  ;;  %v6087_v14 = vrot.slane %v6086_v49, 4  ;;  %v6376_v31 = vrot.slane %v5834_v29, 5  ;;  %v6258_v1 = vld [vmem:[#allocation2 + $0x90] sm:$0xe] }
 0x325   : > { %6627 = vrot.lane.b32.xlu0 %v8941_v12, %s9832_s24  ;;  %v6062_v55 = vor.u32 %v6061_v52, %v6058_v21  ;;  %v6379_v24 = vrot.slane %v11783_v51, 5  ;;  %v6072_v9 = vor.u32 %v6071_v2, %v6067_v44  ;;  %v6077_v57 = vrot.slane %v6075_v35, 5 }
 0x326   : > { %v6097_v60 = vrot.slane %v6096_v25, 4  ;;  %v8895_v63 = vrot.slane %v6255_v32, 9  ;;  %v6092_v47 = vsel %vm9997_vm14, %v6087_v14, %v6091_v18  ;;  %v6377_v43 = vsel %vm9968_vm13, %v8896_v59, %v6376_v31 }
 0x327   : > { %v6063_v61 = vrot.slane %v6062_v55, 4  ;;  %v6378_v30 = vrot.slane %v6376_v31, 4  ;;  %v6073_v28 = vrot.slane %v6072_v9, 4  ;;  %v6369_v56 = vrot.slane %v5832_v20, 5 }
 0x328   : > { %v6102_v34 = vsel %vm9997_vm14, %v6097_v60, %v6101_v39  ;;  %v6372_v15 = vrot.slane %v5855_v26, 5  ;;  %v6128_v10 = vshrl.u32 %v5837_v53, 16  ;;  %v6131_v22 = vshll.u32 %v5837_v53, 16 }
 0x329   : > { %v8928_v13 = vcombine.low %v6092_v47, %v6102_v34  ;;  %v6068_v46 = vsel %vm9997_vm14, %v6063_v61, %v6067_v44  ;;  %v6380_v4 = vsel %vm9968_vm13, %v6378_v30, %v6379_v24  ;;  %v6078_v42 = vsel %vm9997_vm14, %v6073_v28, %v6077_v57  ;;  %v6257_v44 = vld [vmem:[#allocation2 + $0x84] sm:$0xe]  ;;  %v5842_v30 = vld [vmem:[#allocation2 + $0xac] sm:$0xf] }
 0x32a   : > { %v8944_v29 = vcombine.low %v6377_v43, %v6380_v4  ;;  %v6370_v51 = vsel %vm9968_vm13, %v8895_v63, %v6369_v56  ;;  %v6371_v41 = vrot.slane %v6369_v56, 4  ;;  %v8927_v7 = vcombine.low %v6068_v46, %v6078_v42  ;;  %v5841_v63 = vld [vmem:[#allocation2 + $0xa8] sm:$0xf] }
 0x32b   : > { %6553 = vrot.lane.b32.xlu1 %v8928_v13, %s9833_s25  ;;  %v6130_v54 = vrot.slane %v6128_v10, 4  ;;  %v6137_v27 = vshll.u32 %v5838_v58, 16  ;;  %v6141_v38 = vshrl.u32 %v5838_v58, 16  ;;  %v6147_v40 = vshll.u32 %v5858_v8, 16 }
 0x32c   : > { %v6373_v20 = vsel %vm9968_vm13, %v6371_v41, %v6372_v15  ;;  %v6104_v16 = vshrl.u32 %v5835_v5, 16  ;;  %6551 = vrot.lane.b32.xlu0 %v8927_v7, %s9833_s25  ;;  %v6133_v19 = vrot.slane %v6131_v22, 5  ;;  %v6107_v50 = vshll.u32 %v5835_v5, 16 }
 0x32d   : > { %v8943_v12 = vcombine.low %v6370_v51, %v6373_v20  ;;  %v6139_v3 = vrot.slane %v6137_v27, 5  ;;  %v6143_v48 = vrot.slane %v6141_v38, 4  ;;  %v6149_v26 = vrot.slane %v6147_v40, 5  ;;  %v5840_v51 = vld [vmem:[#allocation2 + $0xa0] sm:$0xf] }
 0x32e   : > { %v6106_v33 = vrot.slane %v6104_v16, 4  ;;  %v6113_v23 = vshll.u32 %v5836_v0, 16  ;;  %v6134_v45 = vor.u32 %v6133_v19, %v6130_v54  ;;  %v6109_v18 = vrot.slane %v6107_v50, 5  ;;  %v5859_v27 = vld [vmem:[#allocation2 + $0xa4] sm:$0x1] }
 0x32f   : > { %6633 = vrot.lane.b32.xlu1 %v8944_v29, %s9832_s24  ;;  %v6117_v11 = vshrl.u32 %v5836_v0, 16  ;;  %v6123_v39 = vshll.u32 %v5857_v6, 16  ;;  %v6144_v37 = vor.u32 %v6143_v48, %v6139_v3  ;;  %v8898_v21 = vrot.slane %v6258_v1, 9 }
 0x330   : > { %v6115_v49 = vrot.slane %v6113_v23, 5  ;;  %v6390_v52 = vrot.slane %v5838_v58, 5  ;;  %6631 = vrot.lane.b32.xlu0 %v8943_v12, %s9832_s24  ;;  %v6135_v32 = vrot.slane %v6134_v45, 4  ;;  %v6110_v25 = vor.u32 %v6109_v18, %v6106_v33  ;;  %v11831_v58 = vld [vmem:[#allocation2 + $0xb0] sm:$0x1] }
 0x331   : > { %v6119_v2 = vrot.slane %v6117_v11, 4  ;;  %v6125_v35 = vrot.slane %v6123_v39, 5  ;;  %v6145_v59 = vrot.slane %v6144_v37, 4  ;;  %v6393_v31 = vrot.slane %v5858_v8, 5  ;;  %v5839_v8 = vld [vmem:[#allocation2 + $0x9c] sm:$0xf] }
 0x332   : > { %v6391_v14 = vsel %vm9968_vm13, %v8898_v21, %v6390_v52  ;;  %v6392_v55 = vrot.slane %v6390_v52, 4  ;;  %v6140_v24 = vsel %vm9997_vm14, %v6135_v32, %v6139_v3  ;;  %v6111_v60 = vrot.slane %v6110_v25, 4  ;;  %v6259_v33 = vld [vmem:[#allocation2 + $0x9c] sm:$0xe] }
 0x333   : > { %v6120_v9 = vor.u32 %v6119_v2, %v6115_v49  ;;  %v8897_v57 = vrot.slane %v6257_v44, 9  ;;  %v6150_v53 = vsel %vm9997_vm14, %v6145_v59, %v6149_v26  ;;  %v6383_v61 = vrot.slane %v5836_v0, 5  ;;  %v6260_v0 = vld [vmem:[#allocation2 + $0xa8] sm:$0xe]  ;;  %v5845_v2 = vld [vmem:[#allocation2 + $0xc0] sm:$0xf] }
 0x334   : > { %v6394_v47 = vsel %vm9968_vm13, %v6392_v55, %v6393_v31  ;;  %v6386_v43 = vrot.slane %v5857_v6, 5  ;;  %v8930_v34 = vcombine.low %v6140_v24, %v6150_v53  ;;  %v6116_v28 = vsel %vm9997_vm14, %v6111_v60, %v6115_v49 }
 0x335   : > { %v6121_v56 = vrot.slane %v6120_v9, 4  ;;  %v8946_v15 = vcombine.low %v6391_v14, %v6394_v47  ;;  %v6384_v62 = vsel %vm9968_vm13, %v8897_v57, %v6383_v61  ;;  %v6385_v13 = vrot.slane %v6383_v61, 4  ;;  %v5846_v57 = vld [vmem:[#allocation2 + $0xc4] sm:$0xf]  ;;  %v5862_v47 = vld [vmem:[#allocation2 + $0xc8] sm:$0x1] }
 0x336   : > { %v6176_v46 = vshrl.u32 %v5841_v63, 16  ;;  %v6179_v4 = vshll.u32 %v5841_v63, 16  ;;  %6557 = vrot.lane.b32.xlu1 %v8930_v34, %s9833_s25  ;;  %v6185_v5 = vshll.u32 %v5842_v30, 16  ;;  %v6189_v42 = vshrl.u32 %v5842_v30, 16 }
 0x337   : > { %v6126_v10 = vsel %vm9997_vm14, %v6121_v56, %v6125_v35  ;;  %v6195_v29 = vshll.u32 %v11831_v58, 16  ;;  %v6387_v7 = vsel %vm9968_vm13, %v6385_v13, %v6386_v43  ;;  %v6152_v12 = vshrl.u32 %v5839_v8, 16  ;;  %v5843_v56 = vld [vmem:[#allocation2 + $0xb4] sm:$0xf] }
 0x338   : > { %v8929_v41 = vcombine.low %v6116_v28, %v6126_v10  ;;  %v6178_v54 = vrot.slane %v6176_v46, 4  ;;  %v6181_v22 = vrot.slane %v6179_v4, 5  ;;  %v8945_v20 = vcombine.low %v6384_v62, %v6387_v7  ;;  %v5844_v4 = vld [vmem:[#allocation2 + $0xb8] sm:$0xf] }
 0x339   : > { %v6187_v38 = vrot.slane %v6185_v5, 5  ;;  %v6191_v40 = vrot.slane %v6189_v42, 4  ;;  %v6197_v6 = vrot.slane %v6195_v29, 5  ;;  %v6155_v19 = vshll.u32 %v5839_v8, 16  ;;  %v5861_v29 = vld [vmem:[#allocation2 + $0xbc] sm:$0x1] }
 0x33a   : > { %6555 = vrot.lane.b32.xlu0 %v8929_v41, %s9833_s25  ;;  %v6182_v16 = vor.u32 %v6181_v22, %v6178_v54  ;;  %v6161_v3 = vshll.u32 %v5840_v51, 16  ;;  %6637 = vrot.lane.b32.xlu1 %v8946_v15, %s9832_s24  ;;  %v6165_v1 = vshrl.u32 %v5840_v51, 16  ;;  %v6171_v48 = vshll.u32 %v5859_v27, 16  ;;  %v6262_v22 = vld [vmem:[#allocation2 + $0xc0] sm:$0xe] }
 0x33b   : > { %v6192_v50 = vor.u32 %v6191_v40, %v6187_v38  ;;  %v8900_v26 = vrot.slane %v6260_v0, 9  ;;  %v6154_v45 = vrot.slane %v6152_v12, 4  ;;  %v6157_v18 = vrot.slane %v6155_v19, 5  ;;  %v6261_v19 = vld [vmem:[#allocation2 + $0xb4] sm:$0xe] }
 0x33c   : > { %v6183_v23 = vrot.slane %v6182_v16, 4  ;;  %v6163_v11 = vrot.slane %v6161_v3, 5  ;;  %v6167_v37 = vrot.slane %v6165_v1, 4  ;;  %v6173_v49 = vrot.slane %v6171_v48, 5 }
 0x33d   : > { %v6193_v39 = vrot.slane %v6192_v50, 4  ;;  %v6404_v21 = vrot.slane %v5842_v30, 5  ;;  %v6158_v44 = vor.u32 %v6157_v18, %v6154_v45  ;;  %v6407_v32 = vrot.slane %v11831_v58, 5  ;;  %v4903_v18 = vld [vmem:[#allocation2 + $0xc] sm:$0xf] }
 0x33e   : > { %6635 = vrot.lane.b32.xlu0 %v8945_v20, %s9832_s24  ;;  %v6188_v52 = vsel %vm9997_vm14, %v6183_v23, %v6187_v38  ;;  %v8899_v25 = vrot.slane %v6259_v33, 9  ;;  %v6168_v59 = vor.u32 %v6167_v37, %v6163_v11  ;;  %v6397_v60 = vrot.slane %v5840_v51, 5 }
 0x33f   : > { %v6198_v35 = vsel %vm9997_vm14, %v6193_v39, %v6197_v6  ;;  %v6405_v14 = vsel %vm9968_vm13, %v8900_v26, %v6404_v21  ;;  %v6406_v55 = vrot.slane %v6404_v21, 4  ;;  %v6159_v24 = vrot.slane %v6158_v44, 4 }
 0x340   : > { %v8932_v31 = vcombine.low %v6188_v52, %v6198_v35  ;;  %v6400_v9 = vrot.slane %v5859_v27, 5  ;;  %v6169_v63 = vrot.slane %v6168_v59, 4  ;;  %v6224_v61 = vshrl.u32 %v5845_v2, 16  ;;  %v4904_v59 = vld [vmem:[#allocation2 + $0x10] sm:$0xf] }
 0x341   : > { %v6408_v53 = vsel %vm9968_vm13, %v6406_v55, %v6407_v32  ;;  %v6227_v43 = vshll.u32 %v5845_v2, 16  ;;  %v6164_v30 = vsel %vm9997_vm14, %v6159_v24, %v6163_v11  ;;  %v6398_v34 = vsel %vm9968_vm13, %v8899_v25, %v6397_v60 }
 0x342   : > { %6561 = vrot.lane.b32.xlu1 %v8932_v31, %s9833_s25  ;;  %v8948_v58 = vcombine.low %v6405_v14, %v6408_v53  ;;  %v6399_v28 = vrot.slane %v6397_v60, 4  ;;  %v6174_v15 = vsel %vm9997_vm14, %v6169_v63, %v6173_v49  ;;  %v6226_v62 = vrot.slane %v6224_v61, 4 }
 0x343   : > { %v6229_v13 = vrot.slane %v6227_v43, 5  ;;  %v6233_v46 = vshll.u32 %v5846_v57, 16  ;;  %v8931_v8 = vcombine.low %v6164_v30, %v6174_v15  ;;  %v6237_v5 = vshrl.u32 %v5846_v57, 16 }
 0x344   : > { %v6401_v10 = vsel %vm9968_vm13, %v6399_v28, %v6400_v9  ;;  %v6243_v42 = vshll.u32 %v5862_v47, 16  ;;  %v6200_v54 = vshrl.u32 %v5843_v56, 16  ;;  %v6203_v20 = vshll.u32 %v5843_v56, 16  ;;  %v4934_v9 = vld [vmem:[#allocation2 + $0x14] sm:$0x1] }
 0x345   : > { %v8947_v51 = vcombine.low %v6398_v34, %v6401_v10  ;;  %v6230_v41 = vor.u32 %v6229_v13, %v6226_v62  ;;  %v6235_v7 = vrot.slane %v6233_v46, 5  ;;  %6559 = vrot.lane.b32.xlu0 %v8931_v8, %s9833_s25  ;;  %v6239_v27 = vrot.slane %v6237_v5, 4  ;;  %v4902_v28 = vld [vmem:[#allocation2 + $0x4] sm:$0xf]  ;;  %v4933_v13 = vld [vmem:[#allocation2 + $0x8] sm:$0x1] }
 0x346   : > { %6641 = vrot.lane.b32.xlu1 %v8948_v58, %s9832_s24  ;;  %v6245_v0 = vrot.slane %v6243_v42, 5  ;;  %v6209_v38 = vshll.u32 %v5844_v4, 16  ;;  %v6202_v6 = vrot.slane %v6200_v54, 4  ;;  %v6213_v16 = vshrl.u32 %v5844_v4, 16  ;;  %v5334_v42 = vld [vmem:[#allocation2 + $0xc] sm:$0xe] }
 0x347   : > { %v6231_v40 = vrot.slane %v6230_v41, 4  ;;  %v6219_v12 = vshll.u32 %v5861_v29, 16  ;;  %v6240_v3 = vor.u32 %v6239_v27, %v6235_v7  ;;  %v6205_v50 = vrot.slane %v6203_v20, 5 }
 0x348   : > { %v6211_v1 = vrot.slane %v6209_v38, 5  ;;  %v8902_v48 = vrot.slane %v6262_v22, 9  ;;  %v6215_v33 = vrot.slane %v6213_v16, 4  ;;  %v6418_v45 = vrot.slane %v5846_v57, 5  ;;  %v4901_v57 = vld [vmem:[#allocation2] sm:$0xf] }
 0x349   : > { %v6236_v26 = vsel %vm9997_vm14, %v6231_v40, %v6235_v7  ;;  %v6221_v23 = vrot.slane %v6219_v12, 5  ;;  %6639 = vrot.lane.b32.xlu0 %v8947_v51, %s9832_s24  ;;  %v6241_v11 = vrot.slane %v6240_v3, 4  ;;  %v6206_v39 = vor.u32 %v6205_v50, %v6202_v6  ;;  %v5333_v16 = vld [vmem:[#allocation2] sm:$0xe] }
 0x34a   : > { %v6421_v37 = vrot.slane %v5862_v47, 5  ;;  %v8901_v49 = vrot.slane %v6261_v19, 9  ;;  %v6216_v21 = vor.u32 %v6215_v33, %v6211_v1  ;;  %v6419_v52 = vsel %vm9968_vm13, %v8902_v48, %v6418_v45 }
 0x34b   : > { %v6420_v44 = vrot.slane %v6418_v45, 4  ;;  %v6411_v32 = vrot.slane %v5844_v4, 5  ;;  %v6246_v25 = vsel %vm9997_vm14, %v6241_v11, %v6245_v0  ;;  %v6207_v2 = vrot.slane %v6206_v39, 4 }
 0x34c   : > { %v6414_v35 = vrot.slane %v5861_v29, 5  ;;  %v4974_v14 = vshrl.u32 %v4903_v18, 16  ;;  %v8934_v55 = vcombine.low %v6236_v26, %v6246_v25  ;;  %v6217_v31 = vrot.slane %v6216_v21, 4 }
 0x34d   : > { %v6422_v24 = vsel %vm9968_vm13, %v6420_v44, %v6421_v37  ;;  %v6412_v60 = vsel %vm9968_vm13, %v8901_v49, %v6411_v32  ;;  %v6212_v63 = vsel %vm9997_vm14, %v6207_v2, %v6211_v1  ;;  %v6413_v47 = vrot.slane %v6411_v32, 4  ;;  %v4908_v44 = vld [vmem:[#allocation2 + $0x28] sm:$0xf] }
 0x34e   : > { %v8950_v53 = vcombine.low %v6419_v52, %v6422_v24  ;;  %v4976_v61 = vrot.slane %v4974_v14, 4  ;;  %6565 = vrot.lane.b32.xlu1 %v8934_v55, %s9833_s25  ;;  %v6222_v43 = vsel %vm9997_vm14, %v6217_v31, %v6221_v23  ;;  %v4977_v30 = vshll.u32 %v4903_v18, 16  ;;  %v4907_v23 = vld [vmem:[#allocation2 + $0x24] sm:$0xf] }
 0x34f   : > { %v4983_v58 = vshll.u32 %v4904_v59, 16  ;;  %v4987_v34 = vshrl.u32 %v4904_v59, 16  ;;  %v8933_v56 = vcombine.low %v6212_v63, %v6222_v43  ;;  %v6415_v15 = vsel %vm9968_vm13, %v6413_v47, %v6414_v35  ;;  %v4936_v35 = vld [vmem:[#allocation2 + $0x2c] sm:$0x1]  ;;  %v4906_v47 = vld [vmem:[#allocation2 + $0x1c] sm:$0xf] }
 0x350   : > { %v4993_v62 = vshll.u32 %v4934_v9, 16  ;;  %v4950_v46 = vshrl.u32 %v4901_v57, 16  ;;  %v8949_v4 = vcombine.low %v6412_v60, %v6415_v15  ;;  %v4979_v8 = vrot.slane %v4977_v30, 5  ;;  %v4905_v60 = vld [vmem:[#allocation2 + $0x18] sm:$0xf] }
 0x351   : > { %v4985_v10 = vrot.slane %v4983_v58, 5  ;;  %v4989_v5 = vrot.slane %v4987_v34, 4  ;;  %6563 = vrot.lane.b32.xlu0 %v8933_v56, %s9833_s25  ;;  %v4953_v41 = vshll.u32 %v4901_v57, 16  ;;  %v4959_v7 = vshll.u32 %v4902_v28, 16  ;;  %v4935_v34 = vld [vmem:[#allocation2 + $0x20] sm:$0x1] }
 0x352   : > { %v4995_v29 = vrot.slane %v4993_v62, 5  ;;  %v4952_v51 = vrot.slane %v4950_v46, 4  ;;  %6645 = vrot.lane.b32.xlu1 %v8950_v53, %s9832_s24  ;;  %v4980_v54 = vor.u32 %v4979_v8, %v4976_v61  ;;  %v4963_v27 = vshrl.u32 %v4902_v28, 16 }
 0x353   : > { %v4990_v22 = vor.u32 %v4989_v5, %v4985_v10  ;;  %v4969_v0 = vshll.u32 %v4933_v13, 16  ;;  %v4955_v20 = vrot.slane %v4953_v41, 5  ;;  %v4961_v38 = vrot.slane %v4959_v7, 5  ;;  %v5335_v41 = vld [vmem:[#allocation2 + $0x18] sm:$0xe] }
 0x354   : > { %v8824_v40 = vrot.slane %v5334_v42, 9  ;;  %v5406_v6 = vrot.slane %v4904_v59, 5  ;;  %v4981_v12 = vrot.slane %v4980_v54, 4  ;;  %v4965_v3 = vrot.slane %v4963_v27, 4 }
 0x355   : > { %v4991_v19 = vrot.slane %v4990_v22, 4  ;;  %v4971_v50 = vrot.slane %v4969_v0, 5  ;;  %6643 = vrot.lane.b32.xlu0 %v8949_v4, %s9832_s24  ;;  %v4956_v1 = vor.u32 %v4955_v20, %v4952_v51  ;;  %v5409_v33 = vrot.slane %v4934_v9, 5 }
 0x356   : > { %v5407_v48 = vsel %vm9968_vm13, %v8824_v40, %v5406_v6  ;;  %v5408_v26 = vrot.slane %v5406_v6, 4  ;;  %v4986_v45 = vsel %vm9997_vm14, %v4981_v12, %v4985_v10  ;;  %v4966_v11 = vor.u32 %v4965_v3, %v4961_v38  ;;  %v4911_v3 = vld [vmem:[#allocation2 + $0x3c] sm:$0xf] }
 0x357   : > { %v4996_v18 = vsel %vm9997_vm14, %v4991_v19, %v4995_v29  ;;  %v8823_v39 = vrot.slane %v5333_v16, 9  ;;  %v4957_v49 = vrot.slane %v4956_v1, 4  ;;  %v5399_v52 = vrot.slane %v4902_v28, 5 }
 0x358   : > { %v8856_v37 = vcombine.low %v4986_v45, %v4996_v18  ;;  %v5410_v21 = vsel %vm9968_vm13, %v5408_v26, %v5409_v33  ;;  %v4967_v32 = vrot.slane %v4966_v11, 4  ;;  %v5402_v2 = vrot.slane %v4933_v13, 5  ;;  %v5336_v13 = vld [vmem:[#allocation2 + $0x24] sm:$0xe]  ;;  %v4912_v11 = vld [vmem:[#allocation2 + $0x40] sm:$0xf] }
 0x359   : > { %v8872_v25 = vcombine.low %v5407_v48, %v5410_v21  ;;  %v5022_v59 = vshrl.u32 %v4907_v23, 16  ;;  %v4962_v14 = vsel %vm9997_vm14, %v4957_v49, %v4961_v38  ;;  %v5400_v55 = vsel %vm9968_vm13, %v8823_v39, %v5399_v52  ;;  %v4938_v49 = vld [vmem:[#allocation2 + $0x44] sm:$0x1] }
 0x35a   : > { %5623 = vrot.lane.b32.xlu1 %v8856_v37, %s9833_s25  ;;  %v5401_v31 = vrot.slane %v5399_v52, 4  ;;  %v5025_v24 = vshll.u32 %v4907_v23, 16  ;;  %v4972_v9 = vsel %vm9997_vm14, %v4967_v32, %v4971_v50  ;;  %v5031_v63 = vshll.u32 %v4908_v44, 16 }
 0x35b   : > { %v5024_v57 = vrot.slane %v5022_v59, 4  ;;  %v5035_v53 = vshrl.u32 %v4908_v44, 16  ;;  %v8855_v61 = vcombine.low %v4962_v14, %v4972_v9  ;;  %v5041_v58 = vshll.u32 %v4936_v35, 16 }
 0x35c   : > { %v5403_v43 = vsel %vm9968_vm13, %v5401_v31, %v5402_v2  ;;  %v5027_v30 = vrot.slane %v5025_v24, 5  ;;  %v5033_v56 = vrot.slane %v5031_v63, 5  ;;  %v4998_v62 = vshrl.u32 %v4905_v60, 16  ;;  %v4910_v24 = vld [vmem:[#allocation2 + $0x34] sm:$0xf] }
 0x35d   : > { %v8871_v28 = vcombine.low %v5400_v55, %v5403_v43  ;;  %v5037_v15 = vrot.slane %v5035_v53, 4  ;;  %5621 = vrot.lane.b32.xlu0 %v8855_v61, %s9833_s25  ;;  %v5043_v4 = vrot.slane %v5041_v58, 5  ;;  %v5001_v8 = vshll.u32 %v4905_v60, 16  ;;  %v4937_v53 = vld [vmem:[#allocation2 + $0x38] sm:$0x1] }
 0x35e   : > { %5703 = vrot.lane.b32.xlu1 %v8872_v25, %s9832_s24  ;;  %v5028_v46 = vor.u32 %v5027_v30, %v5024_v57  ;;  %v5007_v10 = vshll.u32 %v4906_v47, 16  ;;  %v5000_v42 = vrot.slane %v4998_v62, 4  ;;  %v5011_v29 = vshrl.u32 %v4906_v47, 16  ;;  %v5338_v58 = vld [vmem:[#allocation2 + $0x3c] sm:$0xe] }
 0x35f   : > { %v5038_v5 = vor.u32 %v5037_v15, %v5033_v56  ;;  %v5017_v51 = vshll.u32 %v4935_v34, 16  ;;  %v5003_v54 = vrot.slane %v5001_v8, 5  ;;  %v8826_v27 = vrot.slane %v5336_v13, 9  ;;  %v5337_v8 = vld [vmem:[#allocation2 + $0x30] sm:$0xe] }
 0x360   : > { %v5029_v7 = vrot.slane %v5028_v46, 4  ;;  %v5009_v22 = vrot.slane %v5007_v10, 5  ;;  %v5013_v20 = vrot.slane %v5011_v29, 4  ;;  %v5420_v40 = vrot.slane %v4908_v44, 5 }
 0x361   : > { %v5039_v0 = vrot.slane %v5038_v5, 4  ;;  %v5019_v38 = vrot.slane %v5017_v51, 5  ;;  %5701 = vrot.lane.b32.xlu0 %v8871_v28, %s9832_s24  ;;  %v5004_v16 = vor.u32 %v5003_v54, %v5000_v42  ;;  %v5423_v12 = vrot.slane %v4936_v35, 5  ;;  %v4909_v35 = vld [vmem:[#allocation2 + $0x30] sm:$0xf] }
 0x362   : > { %v5034_v6 = vsel %vm9997_vm14, %v5029_v7, %v5033_v56  ;;  %v8825_v19 = vrot.slane %v5335_v41, 9  ;;  %v5014_v1 = vor.u32 %v5013_v20, %v5009_v22  ;;  %v5421_v48 = vsel %vm9968_vm13, %v8826_v27, %v5420_v40 }
 0x363   : > { %v5044_v50 = vsel %vm9997_vm14, %v5039_v0, %v5043_v4  ;;  %v5422_v26 = vrot.slane %v5420_v40, 4  ;;  %v5005_v23 = vrot.slane %v5004_v16, 4  ;;  %v5413_v45 = vrot.slane %v4906_v47, 5 }
 0x364   : > { %v8858_v33 = vcombine.low %v5034_v6, %v5044_v50  ;;  %v5416_v18 = vrot.slane %v4935_v34, 5  ;;  %v5015_v39 = vrot.slane %v5014_v1, 4  ;;  %v5070_v21 = vshrl.u32 %v4911_v3, 16  ;;  %v4916_v1 = vld [vmem:[#allocation2 + $0x58] sm:$0xf] }
 0x365   : > { %v5424_v37 = vsel %vm9968_vm13, %v5422_v26, %v5423_v12  ;;  %v5073_v52 = vshll.u32 %v4911_v3, 16  ;;  %v5010_v44 = vsel %vm9997_vm14, %v5005_v23, %v5009_v22  ;;  %v5414_v25 = vsel %vm9968_vm13, %v8825_v19, %v5413_v45  ;;  %v4915_v22 = vld [vmem:[#allocation2 + $0x54] sm:$0xf] }
 0x366   : > { %5627 = vrot.lane.b32.xlu1 %v8858_v33, %s9833_s25  ;;  %v8874_v32 = vcombine.low %v5421_v48, %v5424_v37  ;;  %v5415_v2 = vrot.slane %v5413_v45, 4  ;;  %v5020_v59 = vsel %vm9997_vm14, %v5015_v39, %v5019_v38  ;;  %v5072_v14 = vrot.slane %v5070_v21, 4 }
 0x367   : > { %v5075_v55 = vrot.slane %v5073_v52, 5  ;;  %v5079_v31 = vshll.u32 %v4912_v11, 16  ;;  %v8857_v60 = vcombine.low %v5010_v44, %v5020_v59  ;;  %v5083_v57 = vshrl.u32 %v4912_v11, 16 }
 0x368   : > { %v5417_v9 = vsel %vm9968_vm13, %v5415_v2, %v5416_v18  ;;  %v5089_v63 = vshll.u32 %v4938_v49, 16  ;;  %v5046_v30 = vshrl.u32 %v4909_v35, 16  ;;  %v5049_v56 = vshll.u32 %v4909_v35, 16  ;;  %v4940_v18 = vld [vmem:[#allocation2 + $0x5c] sm:$0x1] }
 0x369   : > { %v8873_v47 = vcombine.low %v5414_v25, %v5417_v9  ;;  %v5076_v61 = vor.u32 %v5075_v55, %v5072_v14  ;;  %v5081_v43 = vrot.slane %v5079_v31, 5  ;;  %5625 = vrot.lane.b32.xlu0 %v8857_v60, %s9833_s25  ;;  %v5085_v34 = vrot.slane %v5083_v57, 4  ;;  %v4914_v2 = vld [vmem:[#allocation2 + $0x4c] sm:$0xf]  ;;  %v11944_v55 = vld [vmem:[#allocation2 + $0x50] sm:$0x1] }
 0x36a   : > { %5707 = vrot.lane.b32.xlu1 %v8874_v32, %s9832_s24  ;;  %v5091_v28 = vrot.slane %v5089_v63, 5  ;;  %v5055_v15 = vshll.u32 %v4910_v24, 16  ;;  %v5048_v13 = vrot.slane %v5046_v30, 4  ;;  %v5059_v46 = vshrl.u32 %v4910_v24, 16  ;;  %v5340_v63 = vld [vmem:[#allocation2 + $0x54] sm:$0xe] }
 0x36b   : > { %v5077_v62 = vrot.slane %v5076_v61, 4  ;;  %v5065_v4 = vshll.u32 %v4937_v53, 16  ;;  %v5086_v10 = vor.u32 %v5085_v34, %v5081_v43  ;;  %v5051_v5 = vrot.slane %v5049_v56, 5 }
 0x36c   : > { %v5057_v42 = vrot.slane %v5055_v15, 5  ;;  %v8828_v29 = vrot.slane %v5338_v58, 9  ;;  %v5061_v41 = vrot.slane %v5059_v46, 4  ;;  %v5434_v54 = vrot.slane %v4912_v11, 5  ;;  %v4913_v11 = vld [vmem:[#allocation2 + $0x48] sm:$0xf] }
 0x36d   : > { %v5082_v51 = vsel %vm9997_vm14, %v5077_v62, %v5081_v43  ;;  %v5067_v7 = vrot.slane %v5065_v4, 5  ;;  %5705 = vrot.lane.b32.xlu0 %v8873_v47, %s9832_s24  ;;  %v5087_v27 = vrot.slane %v5086_v10, 4  ;;  %v5052_v0 = vor.u32 %v5051_v5, %v5048_v13  ;;  %v5339_v46 = vld [vmem:[#allocation2 + $0x48] sm:$0xe]  ;;  %v11949_v4 = vpop.permute.xlu0 %6535 }
 0x36e   : > { %v5437_v20 = vrot.slane %v4938_v49, 5  ;;  %v8827_v38 = vrot.slane %v5337_v8, 9  ;;  %v5062_v40 = vor.u32 %v5061_v41, %v5057_v42  ;;  %v5435_v6 = vsel %vm9968_vm13, %v8828_v29, %v5434_v54  ;;  %v11951_v29 = vpop.permute.xlu1 %6537 }
 0x36f   : > { %v5436_v16 = vrot.slane %v5434_v54, 4  ;;  %v5427_v12 = vrot.slane %v4910_v24, 5  ;;  %v5092_v19 = vsel %vm9997_vm14, %v5087_v27, %v5091_v28  ;;  %v5053_v3 = vrot.slane %v5052_v0, 4 }
 0x370   : > { %v5430_v50 = vrot.slane %v4937_v53, 5  ;;  %v5118_v48 = vshrl.u32 %v4915_v22, 16  ;;  %v8860_v26 = vcombine.low %v5082_v51, %v5092_v19  ;;  %v5063_v33 = vrot.slane %v5062_v40, 4  ;;  %v4920_v19 = vld [vmem:[#allocation2 + $0x70] sm:$0xf] }
 0x371   : > { %v5438_v23 = vsel %vm9968_vm13, %v5436_v16, %v5437_v20  ;;  %v5428_v45 = vsel %vm9968_vm13, %v8827_v38, %v5427_v12  ;;  %v5058_v39 = vsel %vm9997_vm14, %v5053_v3, %v5057_v42  ;;  %v5429_v49 = vrot.slane %v5427_v12, 4 }
 0x372   : > { %v8876_v37 = vcombine.low %v5435_v6, %v5438_v23  ;;  %v5120_v21 = vrot.slane %v5118_v48, 4  ;;  %5631 = vrot.lane.b32.xlu1 %v8860_v26, %s9833_s25  ;;  %v5068_v52 = vsel %vm9997_vm14, %v5063_v33, %v5067_v7  ;;  %v5121_v44 = vshll.u32 %v4915_v22, 16  ;;  %v4919_v22 = vld [vmem:[#allocation2 + $0x6c] sm:$0xf]  ;;  %v11963_v48 = vld [vmem:[#allocation2 + $0x74] sm:$0x1] }
 0x373   : > { %v5127_v32 = vshll.u32 %v4916_v1, 16  ;;  %v5131_v25 = vshrl.u32 %v4916_v1, 16  ;;  %v8859_v35 = vcombine.low %v5058_v39, %v5068_v52  ;;  %v5431_v59 = vsel %vm9968_vm13, %v5429_v49, %v5430_v50  ;;  %v11970_v39 = vpop.permute.xlu0 %6615 }
 0x374   : > { %v5137_v14 = vshll.u32 %v4940_v18, 16  ;;  %v5094_v31 = vshrl.u32 %v4913_v11, 16  ;;  %v8875_v24 = vcombine.low %v5428_v45, %v5431_v59  ;;  %v5123_v60 = vrot.slane %v5121_v44, 5  ;;  %v4918_v44 = vld [vmem:[#allocation2 + $0x64] sm:$0xf] }
 0x375   : > { %v5129_v9 = vrot.slane %v5127_v32, 5  ;;  %v5133_v57 = vrot.slane %v5131_v25, 4  ;;  %5629 = vrot.lane.b32.xlu0 %v8859_v35, %s9833_s25  ;;  %v5097_v61 = vshll.u32 %v4913_v11, 16  ;;  %v5103_v43 = vshll.u32 %v4914_v2, 16  ;;  %v4917_v11 = vld [vmem:[#allocation2 + $0x60] sm:$0xf]  ;;  %v11974_v32 = vpop.permute.xlu1 %6617 }
 0x376   : > { %v5139_v53 = vrot.slane %v5137_v14, 5  ;;  %v5096_v47 = vrot.slane %v5094_v31, 4  ;;  %5711 = vrot.lane.b32.xlu1 %v8876_v37, %s9832_s24  ;;  %v5124_v30 = vor.u32 %v5123_v60, %v5120_v21  ;;  %v5107_v34 = vshrl.u32 %v4914_v2, 16  ;;  %v11979_v14 = vld [vmem:[#allocation2 + $0x68] sm:$0x1] }
 0x377   : > { %v5134_v58 = vor.u32 %v5133_v57, %v5129_v9  ;;  %v5113_v28 = vshll.u32 %v11944_v55, 16  ;;  %v5099_v56 = vrot.slane %v5097_v61, 5  ;;  %v5105_v15 = vrot.slane %v5103_v43, 5 }
 0x378   : > { %v8830_v62 = vrot.slane %v5340_v63, 9  ;;  %v5448_v13 = vrot.slane %v4916_v1, 5  ;;  %v5125_v8 = vrot.slane %v5124_v30, 4  ;;  %v5109_v5 = vrot.slane %v5107_v34, 4  ;;  %v5341_v34 = vld [vmem:[#allocation2 + $0x60] sm:$0xe] }
 0x379   : > { %v5135_v10 = vrot.slane %v5134_v58, 4  ;;  %v5115_v42 = vrot.slane %v5113_v28, 5  ;;  %5709 = vrot.lane.b32.xlu0 %v8875_v24, %s9832_s24  ;;  %v5100_v51 = vor.u32 %v5099_v56, %v5096_v47  ;;  %v5451_v54 = vrot.slane %v4940_v18, 5 }
 0x37a   : > { %v5449_v41 = vsel %vm9968_vm13, %v8830_v62, %v5448_v13  ;;  %v5450_v7 = vrot.slane %v5448_v13, 4  ;;  %v5130_v27 = vsel %vm9997_vm14, %v5125_v8, %v5129_v9  ;;  %v5110_v20 = vor.u32 %v5109_v5, %v5105_v15  ;;  %v5342_v9 = vld [vmem:[#allocation2 + $0x6c] sm:$0xe]  ;;  %v11984_v13 = vpop.permute.xlu0 %6539 }
 0x37b   : > { %v5140_v0 = vsel %vm9997_vm14, %v5135_v10, %v5139_v53  ;;  %v8829_v38 = vrot.slane %v5339_v46, 9  ;;  %v5101_v6 = vrot.slane %v5100_v51, 4  ;;  %v5441_v12 = vrot.slane %v4914_v2, 5 }
 0x37c   : > { %v8862_v40 = vcombine.low %v5130_v27, %v5140_v0  ;;  %v5452_v16 = vsel %vm9968_vm13, %v5450_v7, %v5451_v54  ;;  %v5111_v3 = vrot.slane %v5110_v20, 4  ;;  %v5444_v1 = vrot.slane %v11944_v55, 5 }
 0x37d   : > { %v8878_v50 = vcombine.low %v5449_v41, %v5452_v16  ;;  %v5166_v26 = vshrl.u32 %v4919_v22, 16  ;;  %v5106_v33 = vsel %vm9997_vm14, %v5101_v6, %v5105_v15  ;;  %v5442_v23 = vsel %vm9968_vm13, %v8829_v38, %v5441_v12 }
 0x37e   : > { %5635 = vrot.lane.b32.xlu1 %v8862_v40, %s9833_s25  ;;  %v5443_v45 = vrot.slane %v5441_v12, 4  ;;  %v5169_v18 = vshll.u32 %v4919_v22, 16  ;;  %v5116_v37 = vsel %vm9997_vm14, %v5111_v3, %v5115_v42  ;;  %v5175_v21 = vshll.u32 %v4920_v19, 16  ;;  %v11986_v42 = vpop.permute.xlu1 %6541  ;;  %v4923_v22 = vld [vmem:[#allocation2 + $0x84] sm:$0xf] }
 0x37f   : > { %v5168_v49 = vrot.slane %v5166_v26, 4  ;;  %v5179_v52 = vshrl.u32 %v4920_v19, 16  ;;  %v8861_v25 = vcombine.low %v5106_v33, %v5116_v37  ;;  %v5185_v59 = vshll.u32 %v11963_v48, 16  ;;  %v12006_v37 = vpop.permute.xlu0 %6619 }
 0x380   : > { %v5445_v2 = vsel %vm9968_vm13, %v5443_v45, %v5444_v1  ;;  %v5171_v35 = vrot.slane %v5169_v18, 5  ;;  %v5177_v31 = vrot.slane %v5175_v21, 5  ;;  %v5142_v60 = vshrl.u32 %v4917_v11, 16  ;;  %v11999_v1 = vld [vmem:[#allocation2 + $0x8c] sm:$0x1] }
 0x381   : > { %v8877_v55 = vcombine.low %v5442_v23, %v5445_v2  ;;  %v5181_v24 = vrot.slane %v5179_v52, 4  ;;  %5633 = vrot.lane.b32.xlu0 %v8861_v25, %s9833_s25  ;;  %v5187_v63 = vrot.slane %v5185_v59, 5  ;;  %v5145_v53 = vshll.u32 %v4917_v11, 16  ;;  %v4921_v11 = vld [vmem:[#allocation2 + $0x78] sm:$0xf] }
 0x382   : > { %5715 = vrot.lane.b32.xlu1 %v8878_v50, %s9832_s24  ;;  %v5172_v57 = vor.u32 %v5171_v35, %v5168_v49  ;;  %v5151_v47 = vshll.u32 %v4918_v44, 16  ;;  %v5144_v43 = vrot.slane %v5142_v60, 4  ;;  %v5155_v30 = vshrl.u32 %v4918_v44, 16  ;;  %v4922_v25 = vld [vmem:[#allocation2 + $0x7c] sm:$0xf]  ;;  %v12010_v2 = vpop.permute.xlu1 %6621 }
 0x383   : > { %v5182_v61 = vor.u32 %v5181_v24, %v5177_v31  ;;  %v5161_v58 = vshll.u32 %v11979_v14, 16  ;;  %v5147_v56 = vrot.slane %v5145_v53, 5  ;;  %v8832_v62 = vrot.slane %v5342_v9, 9 }
 0x384   : > { %v5173_v28 = vrot.slane %v5172_v57, 4  ;;  %v5153_v15 = vrot.slane %v5151_v47, 5  ;;  %v5157_v8 = vrot.slane %v5155_v30, 4  ;;  %v5462_v5 = vrot.slane %v4920_v19, 5  ;;  %v4924_v19 = vld [vmem:[#allocation2 + $0x88] sm:$0xf] }
 0x385   : > { %v5183_v46 = vrot.slane %v5182_v61, 4  ;;  %v5163_v10 = vrot.slane %v5161_v58, 5  ;;  %5713 = vrot.lane.b32.xlu0 %v8877_v55, %s9832_s24  ;;  %v5148_v41 = vor.u32 %v5147_v56, %v5144_v43  ;;  %v5465_v7 = vrot.slane %v11963_v48, 5  ;;  %v5343_v56 = vld [vmem:[#allocation2 + $0x78] sm:$0xe] }
 0x386   : > { %v5178_v51 = vsel %vm9997_vm14, %v5173_v28, %v5177_v31  ;;  %v8831_v54 = vrot.slane %v5341_v34, 9  ;;  %v5158_v0 = vor.u32 %v5157_v8, %v5153_v15  ;;  %v5463_v20 = vsel %vm9968_vm13, %v8832_v62, %v5462_v5  ;;  %v12015_v31 = vld [vmem:[#allocation2 + $0x80] sm:$0x1] }
 0x387   : > { %v5188_v27 = vsel %vm9997_vm14, %v5183_v46, %v5187_v63  ;;  %v5464_v38 = vrot.slane %v5462_v5, 4  ;;  %v5149_v6 = vrot.slane %v5148_v41, 4  ;;  %v5455_v16 = vrot.slane %v4918_v44, 5  ;;  %v5344_v63 = vld [vmem:[#allocation2 + $0x84] sm:$0xe] }
 0x388   : > { %v8864_v40 = vcombine.low %v5178_v51, %v5188_v27  ;;  %v5458_v12 = vrot.slane %v11979_v14, 5  ;;  %v5159_v3 = vrot.slane %v5158_v0, 4  ;;  %v5214_v48 = vshrl.u32 %v4923_v22, 16 }
 0x389   : > { %v5466_v50 = vsel %vm9968_vm13, %v5464_v38, %v5465_v7  ;;  %v5217_v26 = vshll.u32 %v4923_v22, 16  ;;  %v5154_v33 = vsel %vm9997_vm14, %v5149_v6, %v5153_v15  ;;  %v5456_v45 = vsel %vm9968_vm13, %v8831_v54, %v5455_v16  ;;  %v4927_v54 = vld [vmem:[#allocation2 + $0x9c] sm:$0xf]  ;;  %v12024_v22 = vpop.permute.xlu1 %6545 }
 0x38a   : > { %5639 = vrot.lane.b32.xlu1 %v8864_v40, %s9833_s25  ;;  %v8880_v23 = vcombine.low %v5463_v20, %v5466_v50  ;;  %v5457_v18 = vrot.slane %v5455_v16, 4  ;;  %v5164_v49 = vsel %vm9997_vm14, %v5159_v3, %v5163_v10  ;;  %v5216_v21 = vrot.slane %v5214_v48, 4  ;;  %v12020_v10 = vpop.permute.xlu0 %6543  ;;  %v12033_v48 = vld [vmem:[#allocation2 + $0xa0] sm:$0xf] }
 0x38b   : > { %v5219_v52 = vrot.slane %v5217_v26, 5  ;;  %v5223_v44 = vshll.u32 %v4924_v19, 16  ;;  %v8863_v35 = vcombine.low %v5154_v33, %v5164_v49  ;;  %v5227_v14 = vshrl.u32 %v4924_v19, 16 }
 0x38c   : > { %v5459_v59 = vsel %vm9968_vm13, %v5457_v18, %v5458_v12  ;;  %v5233_v55 = vshll.u32 %v11999_v1, 16  ;;  %v5190_v57 = vshrl.u32 %v4921_v11, 16  ;;  %v5193_v61 = vshll.u32 %v4921_v11, 16  ;;  %v12039_v18 = vld [vmem:[#allocation2 + $0xa4] sm:$0x1] }
 0x38d   : > { %v8879_v24 = vcombine.low %v5456_v45, %v5459_v59  ;;  %v5220_v60 = vor.u32 %v5219_v52, %v5216_v21  ;;  %v5225_v9 = vrot.slane %v5223_v44, 5  ;;  %5637 = vrot.lane.b32.xlu0 %v8863_v35, %s9833_s25  ;;  %v5229_v53 = vrot.slane %v5227_v14, 4  ;;  %v4925_v11 = vld [vmem:[#allocation2 + $0x90] sm:$0xf] }
 0x38e   : > { %5719 = vrot.lane.b32.xlu1 %v8880_v23, %s9832_s24  ;;  %v5235_v47 = vrot.slane %v5233_v55, 5  ;;  %v5199_v43 = vshll.u32 %v4922_v25, 16  ;;  %v5192_v58 = vrot.slane %v5190_v57, 4  ;;  %v5203_v34 = vshrl.u32 %v4922_v25, 16 }
 0x38f   : > { %v5221_v30 = vrot.slane %v5220_v60, 4  ;;  %v5209_v28 = vshll.u32 %v12015_v31, 16  ;;  %v5230_v15 = vor.u32 %v5229_v53, %v5225_v9  ;;  %v5195_v62 = vrot.slane %v5193_v61, 5 }
 0x390   : > { %v5201_v46 = vrot.slane %v5199_v43, 5  ;;  %v8834_v8 = vrot.slane %v5344_v63, 9  ;;  %v5205_v51 = vrot.slane %v5203_v34, 4  ;;  %v5476_v7 = vrot.slane %v4924_v19, 5  ;;  %v12057_v63 = vld [vmem:[#allocation2 + $0x98] sm:$0x1] }
 0x391   : > { %v5226_v5 = vsel %vm9997_vm14, %v5221_v30, %v5225_v9  ;;  %v5211_v41 = vrot.slane %v5209_v28, 5  ;;  %5717 = vrot.lane.b32.xlu0 %v8879_v24, %s9832_s24  ;;  %v5231_v27 = vrot.slane %v5230_v15, 4  ;;  %v5196_v0 = vor.u32 %v5195_v62, %v5192_v58  ;;  %v12052_v24 = vpop.permute.xlu1 %6625 }
 0x392   : > { %v5479_v20 = vrot.slane %v11999_v1, 5  ;;  %v8833_v38 = vrot.slane %v5343_v56, 9  ;;  %v5206_v40 = vor.u32 %v5205_v51, %v5201_v46  ;;  %v5477_v6 = vsel %vm9968_vm13, %v8834_v8, %v5476_v7 }
 0x393   : > { %v5478_v16 = vrot.slane %v5476_v7, 4  ;;  %v5469_v12 = vrot.slane %v4922_v25, 5  ;;  %v5236_v3 = vsel %vm9997_vm14, %v5231_v27, %v5235_v47  ;;  %v5197_v19 = vrot.slane %v5196_v0, 4  ;;  %v12043_v25 = vpop.permute.xlu0 %6623  ;;  %v9746_v7 = vld [vmem:[#allocation2 + $0x18] sm:$0xf] }
 0x394   : > { %v5472_v50 = vrot.slane %v12015_v31, 5  ;;  %v5262_v26 = vshrl.u32 %v4927_v54, 16  ;;  %v8866_v33 = vcombine.low %v5226_v5, %v5236_v3  ;;  %v5207_v23 = vrot.slane %v5206_v40, 4  ;;  %v12050_v31 = vld [vmem:[#allocation2 + $0x94] sm:$0xf] }
 0x395   : > { %v5480_v1 = vsel %vm9968_vm13, %v5478_v16, %v5479_v20  ;;  %v5470_v45 = vsel %vm9968_vm13, %v8833_v38, %v5469_v12  ;;  %v5202_v49 = vsel %vm9997_vm14, %v5197_v19, %v5201_v46  ;;  %v5471_v52 = vrot.slane %v5469_v12, 4  ;;  %v5346_v5 = vld [vmem:[#allocation2 + $0x9c] sm:$0xe]  ;;  %v9748_v0 = vld [vmem:[#allocation2 + $0xc] sm:$0xf] }
 0x396   : > { %v8882_v21 = vcombine.low %v5477_v6, %v5480_v1  ;;  %v5264_v44 = vrot.slane %v5262_v26, 4  ;;  %5643 = vrot.lane.b32.xlu1 %v8866_v33, %s9833_s25  ;;  %v5212_v35 = vsel %vm9997_vm14, %v5207_v23, %v5211_v41  ;;  %v5265_v59 = vshll.u32 %v4927_v54, 16  ;;  %v9747_v54 = vld [vmem:[#allocation2 + $0x1c] sm:$0xf]  ;;  %v9749_v20 = vld [vmem:[#allocation2 + $0x10] sm:$0xf] }
 0x397   : > { %v5271_v14 = vshll.u32 %v12033_v48, 16  ;;  %v5275_v55 = vshrl.u32 %v12033_v48, 16  ;;  %v8865_v60 = vcombine.low %v5202_v49, %v5212_v35  ;;  %v5473_v9 = vsel %vm9968_vm13, %v5471_v52, %v5472_v50  ;;  %v12064_v40 = vpop.permute.xlu0 %6547  ;;  %v5345_v19 = vld [vmem:[#allocation2 + $0x90] sm:$0xe]  ;;  %v12066_v50 = vpop.permute.xlu1 %6549 }
 0x398   : > { %v5281_v57 = vshll.u32 %v12039_v18, 16  ;;  %v5238_v53 = vshrl.u32 %v4925_v11, 16  ;;  %v8881_v47 = vcombine.low %v5470_v45, %v5473_v9  ;;  %v5267_v61 = vrot.slane %v5265_v59, 5  ;;  %v4931_v9 = vld [vmem:[#allocation2 + $0xb4] sm:$0xf] }
 0x399   : > { %v5273_v43 = vrot.slane %v5271_v14, 5  ;;  %v5277_v30 = vrot.slane %v5275_v55, 4  ;;  %5641 = vrot.lane.b32.xlu0 %v8865_v60, %s9833_s25  ;;  %v5241_v28 = vshll.u32 %v4925_v11, 16  ;;  %v5247_v56 = vshll.u32 %v12050_v31, 16 }
 0x39a   : > { %v5283_v58 = vrot.slane %v5281_v57, 5  ;;  %v5240_v34 = vrot.slane %v5238_v53, 4  ;;  %5723 = vrot.lane.b32.xlu1 %v8882_v21, %s9832_s24  ;;  %v5268_v15 = vor.u32 %v5267_v61, %v5264_v44  ;;  %v5251_v46 = vshrl.u32 %v12050_v31, 16  ;;  %v9750_v57 = vld [vmem:[%s12958_s2 + $0x8] sm:$0x3f]  }
 0x39b   : > { %v5278_v62 = vor.u32 %v5277_v30, %v5273_v43  ;;  %v5257_v8 = vshll.u32 %v12057_v63, 16  ;;  %v5243_v51 = vrot.slane %v5241_v28, 5  ;;  %v5249_v41 = vrot.slane %v5247_v56, 5  ;;  %v12095_v61 = vld [vmem:[#allocation2 + $0xb8] sm:$0xf]  ;;  %v12107_v28 = vpop.permute.xlu1 %6629 }
 0x39c   : > { %v8904_v27 = vcombine.low %v9746_v7, %v9747_v54  ;;  %v8903_v38 = vcombine.low %v9748_v0, %v9749_v20  ;;  %v5269_v6 = vrot.slane %v5268_v15, 4  ;;  %v5253_v12 = vrot.slane %v5251_v46, 4  ;;  %v4929_v46 = vld [vmem:[#allocation2 + $0xa8] sm:$0xf]  ;;  %v12115_v7 = vld [vmem:[#allocation2 + $0xac] sm:$0xf] }
 0x39d   : > { %v5279_v16 = vrot.slane %v5278_v62, 4  ;;  %v5259_v3 = vrot.slane %v5257_v8, 5  ;;  %5721 = vrot.lane.b32.xlu0 %v8881_v47, %s9832_s24  ;;  %v5244_v26 = vor.u32 %v5243_v51, %v5240_v34  ;;  %v8836_v1 = vrot.slane %v5346_v5, 9 }
 0x39e   : > { %v6652_v33 = vsel %vm1751_vm15, %v8904_v27, %v11951_v29  ;;  %v6649_v23 = vsel %vm1751_vm15, %v8903_v38, %v11949_v4  ;;  %v5274_v45 = vsel %vm9997_vm14, %v5269_v6, %v5273_v43  ;;  %v5254_v49 = vor.u32 %v5253_v12, %v5249_v41  ;;  %v9624_v29 = vld [vmem:[%s12958_s2] sm:$0x3f]   ;;  %v12099_v43 = vpop.permute.xlu0 %6627  ;;  %v12121_v38 = vld [vmem:[#allocation2 + $0xb0] sm:$0x1] }
 0x39f   : > { %v5284_v11 = vsel %vm9997_vm14, %v5279_v16, %v5283_v58  ;;  %v5490_v21 = vrot.slane %v12033_v48, 5  ;;  %v5245_v44 = vrot.slane %v5244_v26, 4  ;;  %v5493_v35 = vrot.slane %v12039_v18, 5 }
 0x3a0   : > { %v8868_v52 = vcombine.low %v5274_v45, %v5284_v11  ;;  %v8835_v59 = vrot.slane %v5345_v19, 9  ;;  %v5255_v4 = vrot.slane %v5254_v49, 4  ;;  %v5483_v60 = vrot.slane %v12050_v31, 5  ;;  %v12097_v31 = vld [vmem:[#allocation2 + $0xbc] sm:$0x1] }
 0x3a1   : > { %v5491_v14 = vsel %vm9968_vm13, %v8836_v1, %v5490_v21  ;;  %v5492_v55 = vrot.slane %v5490_v21, 4  ;;  %v5250_v48 = vsel %vm9997_vm14, %v5245_v44, %v5249_v41  ;;  %v5486_v18 = vrot.slane %v12057_v63, 5  ;;  %v9636_v19 = vld [vmem:[%s12958_s2 + $0x10] sm:$0x3f]   ;;  %v12134_v44 = vpop.permute.xlu1 %6553 }
 0x3a2   : > { %5647 = vrot.lane.b32.xlu1 %v8868_v52, %s9833_s25  ;;  %v6768_v53 = vsel %vm2788_vm0, %v9750_v57, 0  ;;  %v6698_v47 = vsel %vm1800_vm1, %v6652_v33, %v11974_v32  ;;  %v5260_v30 = vsel %vm9997_vm14, %v5255_v4, %v5259_v3  ;;  %v5484_v58 = vsel %vm9968_vm13, %v8835_v59, %v5483_v60  ;;  %v5348_v52 = vld [vmem:[#allocation2 + $0xb4] sm:$0xe]  ;;  %v9753_v57 = vld [vmem:[#allocation2 + $0x24] sm:$0xf] }
 0x3a3   : > { %v5494_v63 = vsel %vm9968_vm13, %v5492_v55, %v5493_v35  ;;  %v5485_v34 = vrot.slane %v5483_v60, 4  ;;  %9344 = vmatpush3.bf16.msra.mxu1 %v6768_v53  ;;  %v8867_v32 = vcombine.low %v5250_v48, %v5260_v30  ;;  %v5310_v15 = vshrl.u32 %v4931_v9, 16  ;;  %v9752_v48 = vld [vmem:[#allocation2 + $0x34] sm:$0xf]  ;;  %v9754_v53 = vld [vmem:[#allocation2 + $0x28] sm:$0xf] }
 0x3a4   : > { %v8884_v56 = vcombine.low %v5491_v14, %v5494_v63  ;;  %v5313_v62 = vshll.u32 %v4931_v9, 16  ;;  %9577 = vmatprep.subr.msk.bf16.mxu1 %vm2788_vm0, %v9624_v29  ;;  %v5319_v5 = vshll.u32 %v12095_v61, 16  ;;  %v5323_v51 = vshrl.u32 %v12095_v61, 16  ;;  %v9751_v9 = vld [vmem:[#allocation2 + $0x30] sm:$0xf] }
 0x3a5   : > { %v5487_v8 = vsel %vm9968_vm13, %v5485_v34, %v5486_v18  ;;  %v5329_v41 = vshll.u32 %v12097_v31, 16  ;;  %5645 = vrot.lane.b32.xlu0 %v8867_v32, %s9833_s25  ;;  %v5312_v27 = vrot.slane %v5310_v15, 4  ;;  %v6696_v20 = vsel %vm1800_vm1, %v6649_v23, %v11970_v39  ;;  %v12130_v39 = vpop.permute.xlu0 %6551  ;;  %v5347_v34 = vld [vmem:[#allocation2 + $0xa8] sm:$0xe] }
 0x3a6   : > { %5727 = vrot.lane.b32.xlu1 %v8884_v56, %s9832_s24  ;;  %v8883_v54 = vcombine.low %v5484_v58, %v5487_v8  ;;  %v5315_v0 = vrot.slane %v5313_v62, 5  ;;  %v5321_v6 = vrot.slane %v5319_v5, 5  ;;  %v5325_v16 = vrot.slane %v5323_v51, 4  ;;  %9345 = vmatprep.mubr.msk.bf16.mxu1 %vm2755_vm3, %v6696_v20 }
 0x3a7   : > { %v5331_v12 = vrot.slane %v5329_v41, 5  ;;  %v5286_v3 = vshrl.u32 %v4929_v46, 16  ;;  %v5289_v33 = vshll.u32 %v4929_v46, 16  ;;  %v5295_v1 = vshll.u32 %v12115_v7, 16  ;;  %9346 = vmatmul.mubr.msk.bf16.vlgmr.msra.gmra.mrb[0].mxu1 %vm2755_vm3, %v6698_v47 }
 0x3a8   : > { %v5316_v26 = vor.u32 %v5315_v0, %v5312_v27  ;;  %v5299_v45 = vshrl.u32 %v12115_v7, 16  ;;  %v5326_v23 = vor.u32 %v5325_v16, %v5321_v6  ;;  %v5305_v49 = vshll.u32 %v12121_v38, 16 }
 0x3a9   : > { %v5288_v11 = vrot.slane %v5286_v3, 4  ;;  %v6969_v21 = vsel %vm2788_vm0, %v9624_v29, 0  ;;  %5725 = vrot.lane.b32.xlu0 %v8883_v54, %s9832_s24  ;;  %v5291_v59 = vrot.slane %v5289_v33, 5  ;;  %v5297_v4 = vrot.slane %v5295_v1, 5  ;;  %v12148_v41 = vpop.permute.xlu0 %6631  ;;  %v12165_v3 = vld [vmem:[#allocation2 + $0x2c] sm:$0x1] }
 0x3aa   : > { %v5317_v35 = vrot.slane %v5316_v26, 4  ;;  %v5301_v14 = vrot.slane %v5299_v45, 4  ;;  %9378 = vmatpush3.bf16.msra.mxu1 %v6969_v21  ;;  %v5327_v55 = vrot.slane %v5326_v23, 4  ;;  %v5307_v60 = vrot.slane %v5305_v49, 5  ;;  %v7132_v1 = vld [vmem:[#allocation2 + $0x18] sm:$0xf] }
 0x3ab   : > { %v8906_v18 = vcombine.low %v9751_v9, %v9752_v48  ;;  %v8905_v47 = vcombine.low %v9753_v57, %v9754_v53  ;;  %9578 = vmatprep.subr.msk.bf16.mxu1 %vm2788_vm0, %v9636_v19  ;;  %v5292_v30 = vor.u32 %v5291_v59, %v5288_v11  ;;  %v8838_v58 = vrot.slane %v5348_v52, 9 }
 0x3ac   : > { %v5322_v29 = vsel %vm9997_vm14, %v5317_v35, %v5321_v6  ;;  %v5302_v63 = vor.u32 %v5301_v14, %v5297_v4  ;;  %v5332_v32 = vsel %vm9997_vm14, %v5327_v55, %v5331_v12  ;;  %v5504_v62 = vrot.slane %v12095_v61, 5  ;;  %v12153_v6 = vpop.permute.xlu1 %6633  ;;  %v12163_v12 = vld [vmem:[#allocation2 + $0x28] sm:$0xf]  ;;  %v7133_v35 = vld [vmem:[#allocation2 + $0x1c] sm:$0xf] }
 0x3ad   : > { %v6658_v56 = vsel %vm1751_vm15, %v8906_v18, %v11986_v42  ;;  %v6655_v15 = vsel %vm1751_vm15, %v8905_v47, %v11984_v13  ;;  %v8870_v46 = vcombine.low %v5322_v29, %v5332_v32  ;;  %v5293_v8 = vrot.slane %v5292_v30, 4  ;;  %v7134_v42 = vld [vmem:[#allocation2 + $0x24] sm:$0xf]  ;;  %v12181_v14 = vld [vmem:[#allocation2 + $0x20] sm:$0x1] }
 0x3ae   : > { %v5303_v5 = vrot.slane %v5302_v63, 4  ;;  %v5507_v51 = vrot.slane %v12097_v31, 5  ;;  %v5505_v54 = vsel %vm9968_vm13, %v8838_v58, %v5504_v62  ;;  %v5506_v27 = vrot.slane %v5504_v62, 4 }
 0x3af   : > { %v8837_v0 = vrot.slane %v5347_v34, 9  ;;  %v5497_v20 = vrot.slane %v12115_v7, 5  ;;  %5651 = vrot.lane.b32.xlu1 %v8870_v46, %s9833_s25  ;;  %v5298_v13 = vsel %vm9997_vm14, %v5293_v8, %v5297_v4  ;;  %v5500_v31 = vrot.slane %v12121_v38, 5  ;;  %v7565_v46 = vld [vmem:[#allocation2 + $0x24] sm:$0xe] }
 0x3b0   : > { %v5308_v61 = vsel %vm9997_vm14, %v5303_v5, %v5307_v60  ;;  %v6702_v16 = vsel %vm1800_vm1, %v6658_v56, %v12010_v2  ;;  %v5508_v19 = vsel %vm9968_vm13, %v5506_v27, %v5507_v51  ;;  %v6700_v38 = vsel %vm1800_vm1, %v6655_v15, %v12006_v37  ;;  %v12184_v60 = vpop.permute.xlu0 %6555  ;;  %v12186_v53 = vpop.permute.xlu1 %6557  ;;  %v9755_v56 = vld [vmem:[#allocation2 + $0x48] sm:$0xf]  ;;  %v9756_v15 = vld [vmem:[#allocation2 + $0x4c] sm:$0xf]  ;;  %v9758_v27 = vld [vmem:[#allocation2 + $0x40] sm:$0xf] }
 0x3b1   : > { %v8869_v7 = vcombine.low %v5298_v13, %v5308_v61  ;;  %v5498_v26 = vsel %vm9968_vm13, %v8837_v0, %v5497_v20  ;;  %v5499_v33 = vrot.slane %v5497_v20, 4  ;;  %v8886_v45 = vcombine.low %v5505_v54, %v5508_v19  ;;  %9349 = vmatprep.mubr.msk.bf16.mxu1 %vm2755_vm3, %v6700_v38  ;;  %v9757_v54 = vld [vmem:[#allocation2 + $0x3c] sm:$0xf] }
 0x3b2   : > { %v7205_v23 = vshrl.u32 %v7134_v42, 16  ;;  %v7208_v11 = vshll.u32 %v7134_v42, 16  ;;  %v7214_v49 = vshll.u32 %v12163_v12, 16  ;;  %v7218_v21 = vshrl.u32 %v12163_v12, 16  ;;  %9350 = vmatmul.mubr.msk.bf16.gmra.mrb[4].mxu1 %vm2755_vm3, %v6702_v16 }
 0x3b3   : > { %5649 = vrot.lane.b32.xlu0 %v8869_v7, %s9833_s25  ;;  %v5501_v2 = vsel %vm9968_vm13, %v5499_v33, %v5500_v31  ;;  %v7224_v52 = vshll.u32 %v12165_v3, 16  ;;  %5731 = vrot.lane.b32.xlu1 %v8886_v45, %s9832_s24  ;;  %v7181_v55 = vshrl.u32 %v7132_v1, 16  ;;  %v7184_v57 = vshll.u32 %v7132_v1, 16  ;;  %v7564_v31 = vld [vmem:[#allocation2 + $0x18] sm:$0xe] }
 0x3b4   : > { %v8885_v59 = vcombine.low %v5498_v26, %v5501_v2  ;;  %v7207_v37 = vrot.slane %v7205_v23, 4  ;;  %v7210_v4 = vrot.slane %v7208_v11, 5  ;;  %v7216_v9 = vrot.slane %v7214_v49, 5  ;;  %v12196_v33 = vpop.permute.xlu0 %6635 }
 0x3b5   : > { %v7220_v48 = vrot.slane %v7218_v21, 4  ;;  %v7226_v18 = vrot.slane %v7224_v52, 5  ;;  %v7183_v29 = vrot.slane %v7181_v55, 4  ;;  %v7190_v30 = vshll.u32 %v7133_v35, 16  ;;  %v7138_v52 = vld [vmem:[#allocation2 + $0x3c] sm:$0xf] }
 0x3b6   : > { %v7211_v47 = vor.u32 %v7210_v4, %v7207_v37  ;;  %v7194_v63 = vshrl.u32 %v7133_v35, 16  ;;  %v7186_v34 = vrot.slane %v7184_v57, 5  ;;  %v7200_v32 = vshll.u32 %v12181_v14, 16  ;;  %v12209_v55 = vld [vmem:[#allocation2 + $0x40] sm:$0xf] }
 0x3b7   : > { %5729 = vrot.lane.b32.xlu0 %v8885_v59, %s9832_s24  ;;  %v7221_v58 = vor.u32 %v7220_v48, %v7216_v9  ;;  %v8908_v62 = vcombine.low %v9755_v56, %v9756_v15  ;;  %v7192_v5 = vrot.slane %v7190_v30, 5  ;;  %v8907_v0 = vcombine.low %v9757_v54, %v9758_v27  ;;  %v12218_v48 = vld [vmem:[#allocation2 + $0x44] sm:$0x1] }
 0x3b8   : > { %v7212_v8 = vrot.slane %v7211_v47, 4  ;;  %v7196_v51 = vrot.slane %v7194_v63, 4  ;;  %v7187_v42 = vor.u32 %v7186_v34, %v7183_v29  ;;  %v7202_v13 = vrot.slane %v7200_v32, 5  ;;  %v7136_v29 = vld [vmem:[#allocation2 + $0x30] sm:$0xf] }
 0x3b9   : > { %v7222_v20 = vrot.slane %v7221_v58, 4  ;;  %v6664_v61 = vsel %vm1751_vm15, %v8908_v62, %v12024_v22  ;;  %v6661_v19 = vsel %vm1751_vm15, %v8907_v0, %v12020_v10  ;;  %v8988_v26 = vrot.slane %v7565_v46, 9  ;;  %v12202_v22 = vpop.permute.xlu1 %6637  ;;  %v12227_v32 = vld [vmem:[#allocation2 + $0x34] sm:$0xf]  ;;  %v12235_v46 = vld [vmem:[#allocation2 + $0x38] sm:$0x1] }
 0x3ba   : > { %v7217_v16 = vsel %vm9997_vm14, %v7212_v8, %v7216_v9  ;;  %v7197_v7 = vor.u32 %v7196_v51, %v7192_v5  ;;  %v7188_v45 = vrot.slane %v7187_v42, 4  ;;  %v7637_v38 = vrot.slane %v12163_v12, 5 }
 0x3bb   : > { %v7227_v1 = vsel %vm9997_vm14, %v7222_v20, %v7226_v18  ;;  %v7640_v23 = vrot.slane %v12165_v3, 5  ;;  %v8987_v49 = vrot.slane %v7564_v31, 9  ;;  %v7630_v21 = vrot.slane %v7133_v35, 5 }
 0x3bc   : > { %v9020_v11 = vcombine.low %v7217_v16, %v7227_v1  ;;  %v7198_v2 = vrot.slane %v7197_v7, 4  ;;  %v7193_v10 = vsel %vm9997_vm14, %v7188_v45, %v7192_v5  ;;  %v7638_v59 = vsel %vm9968_vm13, %v8988_v26, %v7637_v38 }
 0x3bd   : > { %v7639_v37 = vrot.slane %v7637_v38, 4  ;;  %v7633_v4 = vrot.slane %v12181_v14, 5  ;;  %v7631_v3 = vsel %vm9968_vm13, %v8987_v49, %v7630_v21  ;;  %v7632_v35 = vrot.slane %v7630_v21, 4  ;;  %v12238_v8 = vpop.permute.xlu1 %6561  ;;  %v9759_v38 = vld [vmem:[#allocation2 + $0x60] sm:$0xf] }
 0x3be   : > { %7854 = vrot.lane.b32.xlu1 %v9020_v11, %s9833_s25  ;;  %v7203_v12 = vsel %vm9997_vm14, %v7198_v2, %v7202_v13  ;;  %v6706_v9 = vsel %vm1800_vm1, %v6664_v61, %v12052_v24  ;;  %v6704_v57 = vsel %vm1800_vm1, %v6661_v19, %v12043_v25  ;;  %v7253_v47 = vshrl.u32 %v7138_v52, 16  ;;  %v12230_v24 = vpop.permute.xlu0 %6559  ;;  %v7567_v19 = vld [vmem:[#allocation2 + $0x3c] sm:$0xe] }
 0x3bf   : > { %v9019_v18 = vcombine.low %v7193_v10, %v7203_v12  ;;  %v7641_v14 = vsel %vm9968_vm13, %v7639_v37, %v7640_v23  ;;  %v7634_v63 = vsel %vm9968_vm13, %v7632_v35, %v7633_v4  ;;  %v7256_v58 = vshll.u32 %v7138_v52, 16  ;;  %9353 = vmatprep.mubr.msk.bf16.mxu1 %vm2755_vm3, %v6704_v57  ;;  %v9760_v23 = vld [vmem:[#allocation2 + $0x64] sm:$0xf]  ;;  %v9761_v52 = vld [vmem:[#allocation2 + $0x54] sm:$0xf] }
 0x3c0   : > { %v9036_v30 = vcombine.low %v7638_v59, %v7641_v14  ;;  %v7262_v34 = vshll.u32 %v12209_v55, 16  ;;  %v9035_v56 = vcombine.low %v7631_v3, %v7634_v63  ;;  %v7255_v15 = vrot.slane %v7253_v47, 4  ;;  %9354 = vmatmul.mubr.msk.bf16.gmra.mrb[8].mxu1 %vm2755_vm3, %v6706_v9  ;;  %v9762_v10 = vld [vmem:[#allocation2 + $0x58] sm:$0xf]  ;;  %v7566_v37 = vld [vmem:[#allocation2 + $0x30] sm:$0xe] }
 0x3c1   : > { %7852 = vrot.lane.b32.xlu0 %v9019_v18, %s9833_s25  ;;  %v7266_v25 = vshrl.u32 %v12209_v55, 16  ;;  %v7272_v62 = vshll.u32 %v12218_v48, 16  ;;  %v7258_v5 = vrot.slane %v7256_v58, 5  ;;  %v7229_v54 = vshrl.u32 %v7136_v29, 16  ;;  %v12249_v18 = vpop.permute.xlu1 %6641 }
 0x3c2   : > { %7934 = vrot.lane.b32.xlu1 %v9036_v30, %s9832_s24  ;;  %v7264_v51 = vrot.slane %v7262_v34, 5  ;;  %v7232_v27 = vshll.u32 %v7136_v29, 16  ;;  %v7238_v42 = vshll.u32 %v12227_v32, 16  ;;  %v7242_v13 = vshrl.u32 %v12227_v32, 16  ;;  %v12245_v4 = vpop.permute.xlu0 %6639 }
 0x3c3   : > { %v7268_v0 = vrot.slane %v7266_v25, 4  ;;  %v7274_v20 = vrot.slane %v7272_v62, 5  ;;  %v7259_v61 = vor.u32 %v7258_v5, %v7255_v15  ;;  %v7231_v31 = vrot.slane %v7229_v54, 4  ;;  %v12271_v54 = vld [vmem:[#allocation2 + $0x5c] sm:$0x1] }
 0x3c4   : > { %v7234_v16 = vrot.slane %v7232_v27, 5  ;;  %v7248_v7 = vshll.u32 %v12235_v46, 16  ;;  %v7240_v1 = vrot.slane %v7238_v42, 5  ;;  %v7244_v45 = vrot.slane %v7242_v13, 4 }
 0x3c5   : > { %7932 = vrot.lane.b32.xlu0 %v9035_v56, %s9832_s24  ;;  %v7269_v26 = vor.u32 %v7268_v0, %v7264_v51  ;;  %v8910_v11 = vcombine.low %v9759_v38, %v9760_v23  ;;  %v7260_v2 = vrot.slane %v7259_v61, 4  ;;  %v8909_v59 = vcombine.low %v9761_v52, %v9762_v10  ;;  %v12292_v23 = vld [vmem:[#allocation2 + $0x50] sm:$0x1] }
 0x3c6   : > { %v7235_v49 = vor.u32 %v7234_v16, %v7231_v31  ;;  %v7250_v21 = vrot.slane %v7248_v7, 5  ;;  %v7245_v3 = vor.u32 %v7244_v45, %v7240_v1  ;;  %v8990_v9 = vrot.slane %v7567_v19, 9  ;;  %v12278_v13 = vpop.permute.xlu0 %6563  ;;  %v12283_v16 = vpop.permute.xlu1 %6565 }
 0x3c7   : > { %v7270_v12 = vrot.slane %v7269_v26, 4  ;;  %v6670_v35 = vsel %vm1751_vm15, %v8910_v11, %v12066_v50  ;;  %v7265_v14 = vsel %vm9997_vm14, %v7260_v2, %v7264_v51  ;;  %v6667_v47 = vsel %vm1751_vm15, %v8909_v59, %v12064_v40  ;;  %v7142_v50 = vld [vmem:[#allocation2 + $0x54] sm:$0xf]  ;;  %v12269_v51 = vld [vmem:[#allocation2 + $0x58] sm:$0xf] }
 0x3c8   : > { %v7236_v57 = vrot.slane %v7235_v49, 4  ;;  %v7651_v29 = vrot.slane %v12209_v55, 5  ;;  %v7246_v63 = vrot.slane %v7245_v3, 4  ;;  %v7654_v58 = vrot.slane %v12218_v48, 5 }
 0x3c9   : > { %v7275_v30 = vsel %vm9997_vm14, %v7270_v12, %v7274_v20  ;;  %v8989_v34 = vrot.slane %v7566_v37, 9  ;;  %v7644_v55 = vrot.slane %v12227_v32, 5  ;;  %v7647_v5 = vrot.slane %v12235_v46, 5  ;;  %v7140_v32 = vld [vmem:[#allocation2 + $0x48] sm:$0xf] }
 0x3ca   : > { %v9022_v56 = vcombine.low %v7265_v14, %v7275_v30  ;;  %v7241_v15 = vsel %vm9997_vm14, %v7236_v57, %v7240_v1  ;;  %v7652_v25 = vsel %vm9968_vm13, %v8990_v9, %v7651_v29  ;;  %v7653_v62 = vrot.slane %v7651_v29, 4  ;;  %v7141_v1 = vld [vmem:[#allocation2 + $0x4c] sm:$0xf]  ;;  %v9763_v57 = vld [vmem:[#allocation2 + $0x78] sm:$0xf] }
 0x3cb   : > { %v7251_v40 = vsel %vm9997_vm14, %v7246_v63, %v7250_v21  ;;  %v6710_v48 = vsel %vm1800_vm1, %v6670_v35, %v12107_v28  ;;  %v6708_v20 = vsel %vm1800_vm1, %v6667_v47, %v12099_v43  ;;  %v7301_v42 = vshrl.u32 %v7142_v50, 16  ;;  %v9764_v47 = vld [vmem:[#allocation2 + $0x7c] sm:$0xf]  ;;  %v7569_v30 = vld [vmem:[#allocation2 + $0x54] sm:$0xe]  ;;  %v12297_v63 = vpop.permute.xlu0 %6643 }
 0x3cc   : > { %7858 = vrot.lane.b32.xlu1 %v9022_v56, %s9833_s25  ;;  %v9021_v27 = vcombine.low %v7241_v15, %v7251_v40  ;;  %v7655_v0 = vsel %vm9968_vm13, %v7653_v62, %v7654_v58  ;;  %v7645_v28 = vsel %vm9968_vm13, %v8989_v34, %v7644_v55  ;;  %v7646_v61 = vrot.slane %v7644_v55, 4  ;;  %9357 = vmatprep.mubr.msk.bf16.mxu1 %vm2755_vm3, %v6708_v20  ;;  %v9765_v56 = vld [vmem:[#allocation2 + $0x6c] sm:$0xf]  ;;  %v9766_v15 = vld [vmem:[#allocation2 + $0x70] sm:$0xf]  ;;  %v12299_v62 = vpop.permute.xlu1 %6645 }
 0x3cd   : > { %v9038_v46 = vcombine.low %v7652_v25, %v7655_v0  ;;  %v7304_v31 = vshll.u32 %v7142_v50, 16  ;;  %v7303_v7 = vrot.slane %v7301_v42, 4  ;;  %v7310_v19 = vshll.u32 %v12269_v51, 16  ;;  %9358 = vmatmul.mubr.msk.bf16.gmra.mrb[12].mxu1 %vm2755_vm3, %v6710_v48 }
 0x3ce   : > { %7856 = vrot.lane.b32.xlu0 %v9021_v27, %s9833_s25  ;;  %v7314_v43 = vshrl.u32 %v12269_v51, 16  ;;  %v7320_v26 = vshll.u32 %v12271_v54, 16  ;;  %v7648_v45 = vsel %vm9968_vm13, %v7646_v61, %v7647_v5  ;;  %v7277_v11 = vshrl.u32 %v7140_v32, 16  ;;  %v7568_v27 = vld [vmem:[#allocation2 + $0x48] sm:$0xe] }
 0x3cf   : > { %v7306_v38 = vrot.slane %v7304_v31, 5  ;;  %v7280_v2 = vshll.u32 %v7140_v32, 16  ;;  %v9037_v49 = vcombine.low %v7645_v28, %v7648_v45  ;;  %v7312_v21 = vrot.slane %v7310_v19, 5 }
 0x3d0   : > { %7938 = vrot.lane.b32.xlu1 %v9038_v46, %s9832_s24  ;;  %v7316_v52 = vrot.slane %v7314_v43, 4  ;;  %v7322_v10 = vrot.slane %v7320_v26, 5  ;;  %v7279_v37 = vrot.slane %v7277_v11, 4  ;;  %v7286_v3 = vshll.u32 %v7141_v1, 16  ;;  %v12313_v26 = vld [vmem:[#allocation2 + $0x6c] sm:$0xf] }
 0x3d1   : > { %v7307_v59 = vor.u32 %v7306_v38, %v7303_v7  ;;  %v7282_v12 = vrot.slane %v7280_v2, 5  ;;  %v7290_v9 = vshrl.u32 %v7141_v1, 16  ;;  %v7296_v14 = vshll.u32 %v12292_v23, 16  ;;  %v12318_v2 = vld [vmem:[#allocation2 + $0x70] sm:$0xf] }
 0x3d2   : > { %7936 = vrot.lane.b32.xlu0 %v9037_v49, %s9832_s24  ;;  %v7317_v35 = vor.u32 %v7316_v52, %v7312_v21  ;;  %v8912_v29 = vcombine.low %v9763_v57, %v9764_v47  ;;  %v7288_v50 = vrot.slane %v7286_v3, 5  ;;  %v8911_v25 = vcombine.low %v9765_v56, %v9766_v15  ;;  %v12329_v52 = vpop.permute.xlu1 %5623  ;;  %v12339_v3 = vld [vmem:[#allocation2 + $0x60] sm:$0xf] }
 0x3d3   : > { %v7308_v58 = vrot.slane %v7307_v59, 4  ;;  %v7283_v34 = vor.u32 %v7282_v12, %v7279_v37  ;;  %v7292_v55 = vrot.slane %v7290_v9, 4  ;;  %v7298_v5 = vrot.slane %v7296_v14, 5  ;;  %v12335_v59 = vld [vmem:[#allocation2 + $0x74] sm:$0x1] }
 0x3d4   : > { %v7318_v40 = vrot.slane %v7317_v35, 4  ;;  %v6676_v48 = vsel %vm1751_vm15, %v8912_v29, %v12134_v44  ;;  %v6673_v42 = vsel %vm1751_vm15, %v8911_v25, %v12130_v39  ;;  %v8992_v32 = vrot.slane %v7569_v30, 9  ;;  %v12345_v14 = vld [vmem:[#allocation2 + $0x64] sm:$0xf] }
 0x3d5   : > { %v7313_v0 = vsel %vm9997_vm14, %v7308_v58, %v7312_v21  ;;  %v7284_v20 = vrot.slane %v7283_v34, 4  ;;  %v7293_v28 = vor.u32 %v7292_v55, %v7288_v50  ;;  %v7665_v61 = vrot.slane %v12269_v51, 5  ;;  %v12320_v51 = vpop.permute.xlu0 %5621  ;;  %v12349_v58 = vld [vmem:[#allocation2 + $0x68] sm:$0x1] }
 0x3d6   : > { %v7323_v46 = vsel %vm9997_vm14, %v7318_v40, %v7322_v10  ;;  %v7668_v31 = vrot.slane %v12271_v54, 5  ;;  %v8991_v19 = vrot.slane %v7568_v27, 9  ;;  %v7658_v43 = vrot.slane %v7141_v1, 5 }
 0x3d7   : > { %v9024_v7 = vcombine.low %v7313_v0, %v7323_v46  ;;  %v7289_v44 = vsel %vm9997_vm14, %v7284_v20, %v7288_v50  ;;  %v7294_v45 = vrot.slane %v7293_v28, 4  ;;  %v7666_v39 = vsel %vm9968_vm13, %v8992_v32, %v7665_v61  ;;  %v7571_v32 = vld [vmem:[#allocation2 + $0x6c] sm:$0xe]  ;;  %v12361_v46 = vpop.permute.xlu1 %5703 }
 0x3d8   : > { %v7667_v38 = vrot.slane %v7665_v61, 4  ;;  %v7661_v11 = vrot.slane %v12292_v23, 5  ;;  %v7659_v54 = vsel %vm9968_vm13, %v8991_v19, %v7658_v43  ;;  %v7660_v49 = vrot.slane %v7658_v43, 4  ;;  %v9767_v43 = vld [vmem:[#allocation2 + $0x90] sm:$0xf] }
 0x3d9   : > { %7862 = vrot.lane.b32.xlu1 %v9024_v7, %s9833_s25  ;;  %v6714_v1 = vsel %vm1800_vm1, %v6676_v48, %v12153_v6  ;;  %v6712_v21 = vsel %vm1800_vm1, %v6673_v42, %v12148_v41  ;;  %v7299_v23 = vsel %vm9997_vm14, %v7294_v45, %v7298_v5  ;;  %v7349_v37 = vshrl.u32 %v12313_v26, 16  ;;  %v12358_v48 = vpop.permute.xlu0 %5701  ;;  %v9768_v45 = vld [vmem:[#allocation2 + $0x94] sm:$0xf] }
 0x3da   : > { %v7669_v10 = vsel %vm9968_vm13, %v7667_v38, %v7668_v31  ;;  %v7352_v12 = vshll.u32 %v12313_v26, 16  ;;  %9361 = vmatprep.mubr.msk.bf16.mxu1 %vm2755_vm3, %v6712_v21  ;;  %v9023_v6 = vcombine.low %v7289_v44, %v7299_v23  ;;  %v7662_v35 = vsel %vm9968_vm13, %v7660_v49, %v7661_v11  ;;  %v9769_v38 = vld [vmem:[#allocation2 + $0x84] sm:$0xf]  ;;  %v9770_v11 = vld [vmem:[#allocation2 + $0x88] sm:$0xf] }
 0x3db   : > { %v9040_v41 = vcombine.low %v7666_v39, %v7669_v10  ;;  %v7358_v9 = vshll.u32 %v12318_v2, 16  ;;  %9362 = vmatmul.mubr.msk.bf16.gmra.mrb[16].mxu1 %vm2755_vm3, %v6714_v1  ;;  %v9039_v57 = vcombine.low %v7659_v54, %v7662_v35  ;;  %v7351_v47 = vrot.slane %v7349_v37, 4  ;;  %v7570_v49 = vld [vmem:[#allocation2 + $0x60] sm:$0xe] }
 0x3dc   : > { %v7354_v29 = vrot.slane %v7352_v12, 5  ;;  %v7362_v30 = vshrl.u32 %v12318_v2, 16  ;;  %7860 = vrot.lane.b32.xlu0 %v9023_v6, %s9833_s25  ;;  %v7368_v50 = vshll.u32 %v12335_v59, 16  ;;  %v7325_v56 = vshrl.u32 %v12339_v3, 16 }
 0x3dd   : > { %7942 = vrot.lane.b32.xlu1 %v9040_v41, %s9832_s24  ;;  %v7360_v34 = vrot.slane %v7358_v9, 5  ;;  %v7328_v15 = vshll.u32 %v12339_v3, 16  ;;  %v7334_v55 = vshll.u32 %v12345_v14, 16  ;;  %v7338_v5 = vshrl.u32 %v12345_v14, 16 }
 0x3de   : > { %v7355_v25 = vor.u32 %v7354_v29, %v7351_v47  ;;  %v7364_v40 = vrot.slane %v7362_v30, 4  ;;  %v7370_v27 = vrot.slane %v7368_v50, 5  ;;  %v7327_v0 = vrot.slane %v7325_v56, 4  ;;  %v12374_v29 = vld [vmem:[#allocation2 + $0x84] sm:$0xf]  ;;  %v12376_v30 = vpop.permute.xlu0 %5625  ;;  %v12382_v56 = vpop.permute.xlu1 %5627 }
 0x3df   : > { %v7330_v20 = vrot.slane %v7328_v15, 5  ;;  %v7344_v42 = vshll.u32 %v12349_v58, 16  ;;  %v7336_v31 = vrot.slane %v7334_v55, 5  ;;  %v7340_v7 = vrot.slane %v7338_v5, 4  ;;  %13004 = vst [vmem:[#allocation6_spill] sm:$0xff] %v12374_v29 }
 0x3e0   : > { %v7356_v28 = vrot.slane %v7355_v25, 4  ;;  %v7365_v61 = vor.u32 %v7364_v40, %v7360_v34  ;;  %7940 = vrot.lane.b32.xlu0 %v9039_v57, %s9832_s24  ;;  %v8914_v39 = vcombine.low %v9767_v43, %v9768_v45  ;;  %v8913_v54 = vcombine.low %v9769_v38, %v9770_v11  ;;  %v12390_v55 = vld [vmem:[#allocation2 + $0x88] sm:$0xf]  ;;  %v12392_v5 = vld [vmem:[#allocation2 + $0x8c] sm:$0x1] }
 0x3e1   : > { %v7331_v44 = vor.u32 %v7330_v20, %v7327_v0  ;;  %v7346_v19 = vrot.slane %v7344_v42, 5  ;;  %v7341_v23 = vor.u32 %v7340_v7, %v7336_v31  ;;  %v8994_v10 = vrot.slane %v7571_v32, 9  ;;  %13005 = vst [vmem:[#allocation8_spill] sm:$0xff] %v12390_v55  ;;  %v12400_v32 = vld [vmem:[#allocation2 + $0x78] sm:$0xf] }
 0x3e2   : > { %v7361_v1 = vsel %vm9997_vm14, %v7356_v28, %v7360_v34  ;;  %v7366_v21 = vrot.slane %v7365_v61, 4  ;;  %v6682_v12 = vsel %vm1751_vm15, %v8914_v39, %v12186_v53  ;;  %v6679_v6 = vsel %vm1751_vm15, %v8913_v54, %v12184_v60  ;;  %13006 = vst [vmem:[#allocation7_spill] sm:$0xff] %v12400_v32  ;;  %v12415_v39 = vld [vmem:[#allocation2 + $0x80] sm:$0x1]  ;;  %v12419_v54 = vpop.permute.xlu0 %5705 }
 0x3e3   : > { %v7332_v37 = vrot.slane %v7331_v44, 4  ;;  %v7679_v41 = vrot.slane %v12318_v2, 5  ;;  %v7342_v9 = vrot.slane %v7341_v23, 4  ;;  %v7682_v57 = vrot.slane %v12335_v59, 5 }
 0x3e4   : > { %v7371_v35 = vsel %vm9997_vm14, %v7366_v21, %v7370_v27  ;;  %v8993_v47 = vrot.slane %v7570_v49, 9  ;;  %v7672_v59 = vrot.slane %v12345_v14, 5  ;;  %v7675_v25 = vrot.slane %v12349_v58, 5 }
 0x3e5   : > { %v9026_v34 = vcombine.low %v7361_v1, %v7371_v35  ;;  %v7337_v53 = vsel %vm9997_vm14, %v7332_v37, %v7336_v31  ;;  %v7680_v60 = vsel %vm9968_vm13, %v8994_v10, %v7679_v41  ;;  %v7681_v50 = vrot.slane %v7679_v41, 4  ;;  %v12422_v10 = vpop.permute.xlu1 %5707 }
 0x3e6   : > { %v7347_v15 = vsel %vm9997_vm14, %v7342_v9, %v7346_v19  ;;  %v6718_v40 = vsel %vm1800_vm1, %v6682_v12, %v12202_v22  ;;  %v6716_v20 = vsel %vm1800_vm1, %v6679_v6, %v12196_v33  ;;  %v7397_v42 = vshrl.u32 %v12374_v29, 16  ;;  %v12410_v19 = vld [vmem:[#allocation2 + $0x7c] sm:$0xf] }
 0x3e7   : > { %7866 = vrot.lane.b32.xlu1 %v9026_v34, %s9833_s25  ;;  %v9025_v27 = vcombine.low %v7337_v53, %v7347_v15  ;;  %v7683_v0 = vsel %vm9968_vm13, %v7681_v50, %v7682_v57  ;;  %v7673_v22 = vsel %vm9968_vm13, %v8993_v47, %v7672_v59  ;;  %v7674_v28 = vrot.slane %v7672_v59, 4  ;;  %9365 = vmatprep.mubr.msk.bf16.mxu1 %vm2755_vm3, %v6716_v20  ;;  %v9771_v47 = vld [vmem:[#allocation2 + $0xa8] sm:$0xf]  ;;  %v9772_v34 = vld [vmem:[#allocation2 + $0xac] sm:$0xf] }
 0x3e8   : > { %v9042_v58 = vcombine.low %v7680_v60, %v7683_v0  ;;  %v7400_v61 = vshll.u32 %v12374_v29, 16  ;;  %v7399_v31 = vrot.slane %v7397_v42, 4  ;;  %v7406_v7 = vshll.u32 %v12390_v55, 16  ;;  %9366 = vmatmul.mubr.msk.bf16.gmra.mrb[20].mxu1 %vm2755_vm3, %v6718_v40  ;;  %v7573_v60 = vld [vmem:[#allocation2 + $0x84] sm:$0xe] }
 0x3e9   : > { %7864 = vrot.lane.b32.xlu0 %v9025_v27, %s9833_s25  ;;  %v7410_v33 = vshrl.u32 %v12390_v55, 16  ;;  %v7416_v44 = vshll.u32 %v12392_v5, 16  ;;  %v7676_v43 = vsel %vm9968_vm13, %v7674_v28, %v7675_v25  ;;  %v7373_v38 = vshrl.u32 %v12400_v32, 16  ;;  %v9773_v25 = vld [vmem:[#allocation2 + $0x9c] sm:$0xf] }
 0x3ea   : > { %v7402_v45 = vrot.slane %v7400_v61, 5  ;;  %v7376_v11 = vshll.u32 %v12400_v32, 16  ;;  %v9041_v49 = vcombine.low %v7673_v22, %v7676_v43  ;;  %v7408_v1 = vrot.slane %v7406_v7, 5  ;;  %v9774_v40 = vld [vmem:[#allocation2 + $0xa0] sm:$0xf] }
 0x3eb   : > { %7946 = vrot.lane.b32.xlu1 %v9042_v58, %s9832_s24  ;;  %v7412_v21 = vrot.slane %v7410_v33, 4  ;;  %v7418_v23 = vrot.slane %v7416_v44, 5  ;;  %v7375_v12 = vrot.slane %v7373_v38, 4  ;;  %v7382_v41 = vshll.u32 %v12410_v19, 16  ;;  %v7572_v22 = vld [vmem:[#allocation2 + $0x78] sm:$0xe]  ;;  %v12434_v33 = vpop.permute.xlu0 %5629 }
 0x3ec   : > { %v7403_v37 = vor.u32 %v7402_v45, %v7399_v31  ;;  %v7378_v6 = vrot.slane %v7376_v11, 5  ;;  %v7386_v9 = vshrl.u32 %v12410_v19, 16  ;;  %v7392_v57 = vshll.u32 %v12415_v39, 16 }
 0x3ed   : > { %7944 = vrot.lane.b32.xlu0 %v9041_v49, %s9832_s24  ;;  %v7413_v35 = vor.u32 %v7412_v21, %v7408_v1  ;;  %v8916_v53 = vcombine.low %v9771_v47, %v9772_v34  ;;  %v7384_v59 = vrot.slane %v7382_v41, 5  ;;  %v8915_v27 = vcombine.low %v9773_v25, %v9774_v40  ;;  %v12445_v21 = vld [vmem:[#allocation2 + $0x9c] sm:$0xf]  ;;  %v12450_v41 = vld [vmem:[#allocation2 + $0xa0] sm:$0xf] }
 0x3ee   : > { %v7404_v50 = vrot.slane %v7403_v37, 4  ;;  %v7379_v15 = vor.u32 %v7378_v6, %v7375_v12  ;;  %v7388_v20 = vrot.slane %v7386_v9, 4  ;;  %v7394_v42 = vrot.slane %v7392_v57, 5  ;;  %v12463_v34 = vld [vmem:[#allocation2 + $0xa4] sm:$0x1] }
 0x3ef   : > { %v7414_v0 = vrot.slane %v7413_v35, 4  ;;  %v6688_v58 = vsel %vm1751_vm15, %v8916_v53, %v12238_v8  ;;  %v6685_v31 = vsel %vm1751_vm15, %v8915_v27, %v12230_v24  ;;  %v8996_v7 = vrot.slane %v7573_v60, 9  ;;  %v12440_v8 = vpop.permute.xlu1 %5631  ;;  %v12473_v25 = vld [vmem:[#allocation2 + $0x94] sm:$0xf]  ;;  %v12476_v40 = vpop.permute.xlu0 %5709 }
 0x3f0   : > { %v7409_v28 = vsel %vm9997_vm14, %v7404_v50, %v7408_v1  ;;  %v7380_v61 = vrot.slane %v7379_v15, 4  ;;  %v7389_v43 = vor.u32 %v7388_v20, %v7384_v59  ;;  %v7693_v45 = vrot.slane %v12390_v55, 5  ;;  %v12467_v50 = vld [vmem:[#allocation2 + $0x90] sm:$0xf]  ;;  %v9786_v55 = vld [vmem:[#allocation2 + $0x18] sm:$0xf] }
 0x3f1   : > { %v7419_v44 = vsel %vm9997_vm14, %v7414_v0, %v7418_v23  ;;  %v7696_v38 = vrot.slane %v12392_v5, 5  ;;  %v8995_v1 = vrot.slane %v7572_v22, 9  ;;  %v7686_v24 = vrot.slane %v12410_v19, 5 }
 0x3f2   : > { %v9028_v11 = vcombine.low %v7409_v28, %v7419_v44  ;;  %v7385_v49 = vsel %vm9997_vm14, %v7380_v61, %v7384_v59  ;;  %v7390_v37 = vrot.slane %v7389_v43, 4  ;;  %v7694_v23 = vsel %vm9968_vm13, %v8996_v7, %v7693_v45 }
 0x3f3   : > { %v7695_v12 = vrot.slane %v7693_v45, 4  ;;  %v7689_v6 = vrot.slane %v12415_v39, 5  ;;  %v7687_v5 = vsel %vm9968_vm13, %v8995_v1, %v7686_v24  ;;  %v7688_v35 = vrot.slane %v7686_v24, 4  ;;  %v12481_v22 = vpop.permute.xlu1 %5711 }
 0x3f4   : > { %7870 = vrot.lane.b32.xlu1 %v9028_v11, %s9833_s25  ;;  %v6722_v9 = vsel %vm1800_vm1, %v6688_v58, %v12249_v18  ;;  %v6720_v57 = vsel %vm1800_vm1, %v6685_v31, %v12245_v4  ;;  %v7395_v47 = vsel %vm9997_vm14, %v7390_v37, %v7394_v42  ;;  %v7445_v53 = vshrl.u32 %v12445_v21, 16  ;;  %v12479_v58 = vld [vmem:[#allocation2 + $0x98] sm:$0x1]  ;;  %v7575_v37 = vld [vmem:[#allocation2 + $0x9c] sm:$0xe] }
 0x3f5   : > { %v7697_v39 = vsel %vm9968_vm13, %v7695_v12, %v7696_v38  ;;  %v7448_v60 = vshll.u32 %v12445_v21, 16  ;;  %9369 = vmatprep.mubr.msk.bf16.mxu1 %vm2755_vm3, %v6720_v57  ;;  %v9027_v18 = vcombine.low %v7385_v49, %v7395_v47  ;;  %v7690_v4 = vsel %vm9968_vm13, %v7688_v35, %v7689_v6  ;;  %v9775_v57 = vld [vmem:[#allocation2 + $0xc0] sm:$0xf]  ;;  %v9776_v47 = vld [vmem:[#allocation2 + $0xc4] sm:$0xf] }
 0x3f6   : > { %v9044_v15 = vcombine.low %v7694_v23, %v7697_v39  ;;  %v7454_v59 = vshll.u32 %v12450_v41, 16  ;;  %9370 = vmatmul.mubr.msk.bf16.gmra.mrb[24].mxu1 %vm2755_vm3, %v6722_v9  ;;  %v9043_v27 = vcombine.low %v7687_v5, %v7690_v4  ;;  %v7447_v0 = vrot.slane %v7445_v53, 4  ;;  %v9777_v53 = vld [vmem:[#allocation2 + $0xb4] sm:$0xf]  ;;  %v12492_v4 = vpop.permute.xlu0 %5633 }
 0x3f7   : > { %v7450_v20 = vrot.slane %v7448_v60, 5  ;;  %v7458_v42 = vshrl.u32 %v12450_v41, 16  ;;  %7868 = vrot.lane.b32.xlu0 %v9027_v18, %s9833_s25  ;;  %v7464_v61 = vshll.u32 %v12463_v34, 16  ;;  %v7421_v31 = vshrl.u32 %v12467_v50, 16  ;;  %v9778_v60 = vld [vmem:[#allocation2 + $0xb8] sm:$0xf] }
 0x3f8   : > { %7950 = vrot.lane.b32.xlu1 %v9044_v15, %s9832_s24  ;;  %v7456_v28 = vrot.slane %v7454_v59, 5  ;;  %v7424_v7 = vshll.u32 %v12467_v50, 16  ;;  %v7430_v45 = vshll.u32 %v12473_v25, 16  ;;  %v7434_v38 = vshrl.u32 %v12473_v25, 16  ;;  %v7574_v15 = vld [vmem:[#allocation2 + $0x90] sm:$0xe] }
 0x3f9   : > { %v7451_v44 = vor.u32 %v7450_v20, %v7447_v0  ;;  %v7460_v43 = vrot.slane %v7458_v42, 4  ;;  %v7466_v11 = vrot.slane %v7464_v61, 5  ;;  %v7423_v49 = vrot.slane %v7421_v31, 4  ;;  %v12496_v61 = vpop.permute.xlu1 %5635 }
 0x3fa   : > { %v7426_v1 = vrot.slane %v7424_v7, 5  ;;  %v7440_v24 = vshll.u32 %v12479_v58, 16  ;;  %v7432_v6 = vrot.slane %v7430_v45, 5  ;;  %v7436_v5 = vrot.slane %v7434_v38, 4 }
 0x3fb   : > { %v7452_v23 = vrot.slane %v7451_v44, 4  ;;  %v7461_v12 = vor.u32 %v7460_v43, %v7456_v28  ;;  %7948 = vrot.lane.b32.xlu0 %v9043_v27, %s9832_s24  ;;  %v8918_v39 = vcombine.low %v9775_v57, %v9776_v47  ;;  %v8917_v18 = vcombine.low %v9777_v53, %v9778_v60  ;;  %v12528_v47 = vld [vmem:[#allocation2 + $0xa8] sm:$0xf] }
 0x3fc   : > { %v7427_v35 = vor.u32 %v7426_v1, %v7423_v49  ;;  %v7442_v9 = vrot.slane %v7440_v24, 5  ;;  %v7437_v20 = vor.u32 %v7436_v5, %v7432_v6  ;;  %v8998_v42 = vrot.slane %v7575_v37, 9  ;;  %v12506_v49 = vld [vmem:[#allocation2 + $0xb4] sm:$0xf]  ;;  %v12520_v5 = vld [vmem:[#allocation2 + $0xbc] sm:$0x1] }
 0x3fd   : > { %v7457_v59 = vsel %vm9997_vm14, %v7452_v23, %v7456_v28  ;;  %v7462_v0 = vrot.slane %v7461_v12, 4  ;;  %v6694_v31 = vsel %vm1751_vm15, %v8918_v39, %v12283_v16  ;;  %v6691_v7 = vsel %vm1751_vm15, %v8917_v18, %v12278_v13  ;;  %v12518_v12 = vld [vmem:[#allocation2 + $0xb8] sm:$0xf]  ;;  %v12536_v18 = vpop.permute.xlu1 %5715 }
 0x3fe   : > { %v7428_v27 = vrot.slane %v7427_v35, 4  ;;  %v7707_v44 = vrot.slane %v12450_v41, 5  ;;  %v7438_v45 = vrot.slane %v7437_v20, 4  ;;  %v7710_v28 = vrot.slane %v12463_v34, 5  ;;  %v12542_v20 = vld [vmem:[#allocation2 + $0xac] sm:$0xf] }
 0x3ff   : > { %v7467_v43 = vsel %vm9997_vm14, %v7462_v0, %v7466_v11  ;;  %v8997_v38 = vrot.slane %v7574_v15, 9  ;;  %v7700_v23 = vrot.slane %v12473_v25, 5  ;;  %v7703_v11 = vrot.slane %v12479_v58, 5  ;;  %v12530_v58 = vpop.permute.xlu0 %5713 }
 0x400   : > { %v9030_v1 = vcombine.low %v7457_v59, %v7467_v43  ;;  %v7433_v24 = vsel %vm9997_vm14, %v7428_v27, %v7432_v6  ;;  %v7708_v16 = vsel %vm9968_vm13, %v8998_v42, %v7707_v44  ;;  %v7709_v37 = vrot.slane %v7707_v44, 4 }
 0x401   : > { %v7443_v13 = vsel %vm9997_vm14, %v7438_v45, %v7442_v9  ;;  %v6726_v34 = vsel %vm1800_vm1, %v6694_v31, %v12299_v62  ;;  %v6724_v9 = vsel %vm1800_vm1, %v6691_v7, %v12297_v63  ;;  %v7493_v57 = vshrl.u32 %v12506_v49, 16  ;;  %v12547_v31 = vld [vmem:[#allocation2 + $0xb0] sm:$0x1] }
 0x402   : > { %7874 = vrot.lane.b32.xlu1 %v9030_v1, %s9833_s25  ;;  %v9029_v6 = vcombine.low %v7433_v24, %v7443_v13  ;;  %v7711_v35 = vsel %vm9968_vm13, %v7709_v37, %v7710_v28  ;;  %v7701_v39 = vsel %vm9968_vm13, %v8997_v38, %v7700_v23  ;;  %v7702_v53 = vrot.slane %v7700_v23, 4  ;;  %9373 = vmatprep.mubr.msk.bf16.mxu1 %vm2755_vm3, %v6724_v9  ;;  %v7577_v9 = vld [vmem:[#allocation2 + $0xb4] sm:$0xe] }
 0x403   : > { %v9046_v62 = vcombine.low %v7708_v16, %v7711_v35  ;;  %v7496_v60 = vshll.u32 %v12506_v49, 16  ;;  %v7495_v63 = vrot.slane %v7493_v57, 4  ;;  %v7502_v15 = vshll.u32 %v12518_v12, 16  ;;  %9374 = vmatmul.mubr.msk.bf16.gmra.mrb[28].mxu1 %vm2755_vm3, %v6726_v34  ;;  %v9779_v34 = vld [vmem:[#allocation2 + $0xc] sm:$0xf]  ;;  %v12556_v57 = vpop.permute.xlu0 %5637 }
 0x404   : > { %7872 = vrot.lane.b32.xlu0 %v9029_v6, %s9833_s25  ;;  %v7506_v59 = vshrl.u32 %v12518_v12, 16  ;;  %v7512_v0 = vshll.u32 %v12520_v5, 16  ;;  %v7704_v42 = vsel %vm9968_vm13, %v7702_v53, %v7703_v11  ;;  %v7469_v7 = vshrl.u32 %v12528_v47, 16  ;;  %v9780_v6 = vld [vmem:[#allocation2 + $0x10] sm:$0xf] }
 0x405   : > { %v7498_v27 = vrot.slane %v7496_v60, 5  ;;  %v7472_v44 = vshll.u32 %v12528_v47, 16  ;;  %v9045_v43 = vcombine.low %v7701_v39, %v7704_v42  ;;  %v7504_v45 = vrot.slane %v7502_v15, 5  ;;  %v9781_v60 = vld [vmem:[#allocation2] sm:$0xf] }
 0x406   : > { %7954 = vrot.lane.b32.xlu1 %v9046_v62, %s9832_s24  ;;  %v7508_v28 = vrot.slane %v7506_v59, 4  ;;  %v7514_v38 = vrot.slane %v7512_v0, 5  ;;  %v7471_v24 = vrot.slane %v7469_v7, 4  ;;  %v7478_v37 = vshll.u32 %v12542_v20, 16  ;;  %v12558_v59 = vpop.permute.xlu1 %5639 }
 0x407   : > { %v7499_v1 = vor.u32 %v7498_v27, %v7495_v63  ;;  %v7474_v16 = vrot.slane %v7472_v44, 5  ;;  %v7482_v23 = vshrl.u32 %v12542_v20, 16  ;;  %v7488_v11 = vshll.u32 %v12547_v31, 16  ;;  %v9782_v63 = vld [vmem:[#allocation2 + $0x4] sm:$0xf] }
 0x408   : > { %7952 = vrot.lane.b32.xlu0 %v9045_v43, %s9832_s24  ;;  %v7509_v13 = vor.u32 %v7508_v28, %v7504_v45  ;;  %v8840_v35 = vcombine.low %v9779_v34, %v9780_v6  ;;  %v7480_v53 = vrot.slane %v7478_v37, 5  ;;  %v8839_v15 = vcombine.low %v9781_v60, %v9782_v63  ;;  %v7576_v44 = vld [vmem:[#allocation2 + $0xa8] sm:$0xe]  ;;  %v12573_v6 = vld [vmem:[#allocation2 + $0xcc] sm:$0xf] }
 0x409   : > { %v7500_v62 = vrot.slane %v7499_v1, 4  ;;  %v7475_v39 = vor.u32 %v7474_v16, %v7471_v24  ;;  %v7484_v42 = vrot.slane %v7482_v23, 4  ;;  %v7490_v27 = vrot.slane %v7488_v11, 5 }
 0x40a   : > { %v7510_v0 = vrot.slane %v7509_v13, 4  ;;  %v5738_v7 = vsel %vm1751_vm15, %v8840_v35, %v12329_v52  ;;  %v5735_v1 = vsel %vm1751_vm15, %v8839_v15, %v12320_v51  ;;  %v9000_v24 = vrot.slane %v7577_v9, 9  ;;  %v12589_v15 = vpop.permute.xlu1 %5719 }
 0x40b   : > { %v7505_v43 = vsel %vm9997_vm14, %v7500_v62, %v7504_v45  ;;  %v7476_v28 = vrot.slane %v7475_v39, 4  ;;  %v7485_v37 = vor.u32 %v7484_v42, %v7480_v53  ;;  %v7721_v13 = vrot.slane %v12518_v12, 5  ;;  %v12578_v62 = vld [vmem:[#allocation2 + $0xd0] sm:$0xf]  ;;  %v12580_v39 = vpop.permute.xlu0 %5717  ;;  %v12595_v42 = vld [vmem:[#allocation2 + $0xd4] sm:$0x1] }
 0x40c   : > { %v7515_v16 = vsel %vm9997_vm14, %v7510_v0, %v7514_v38  ;;  %v7724_v23 = vrot.slane %v12520_v5, 5  ;;  %v8999_v34 = vrot.slane %v7576_v44, 9  ;;  %v7714_v45 = vrot.slane %v12542_v20, 5 }
 0x40d   : > { %v9032_v11 = vcombine.low %v7505_v43, %v7515_v16  ;;  %v7481_v52 = vsel %vm9997_vm14, %v7476_v28, %v7480_v53  ;;  %v7486_v35 = vrot.slane %v7485_v37, 4  ;;  %v7722_v51 = vsel %vm9968_vm13, %v9000_v24, %v7721_v13  ;;  %v12599_v28 = vld [vmem:[#allocation2 + $0xc0] sm:$0xf] }
 0x40e   : > { %v7723_v9 = vrot.slane %v7721_v13, 4  ;;  %v7717_v38 = vrot.slane %v12547_v31, 5  ;;  %v7715_v5 = vsel %vm9968_vm13, %v8999_v34, %v7714_v45  ;;  %v7716_v53 = vrot.slane %v7714_v45, 4 }
 0x40f   : > { %7878 = vrot.lane.b32.xlu1 %v9032_v11, %s9833_s25  ;;  %v5784_v60 = vsel %vm1800_vm1, %v5738_v7, %v12361_v46  ;;  %v5782_v63 = vsel %vm1800_vm1, %v5735_v1, %v12358_v48  ;;  %v7491_v31 = vsel %vm9997_vm14, %v7486_v35, %v7490_v27  ;;  %v7541_v44 = vshrl.u32 %v12573_v6, 16  ;;  %v12605_v1 = vld [vmem:[#allocation2 + $0xc4] sm:$0xf] }
 0x410   : > { %v7725_v0 = vsel %vm9968_vm13, %v7723_v9, %v7724_v23  ;;  %v7544_v43 = vshll.u32 %v12573_v6, 16  ;;  %9379 = vmatprep.mubr.msk.bf16.mxu1 %vm2755_vm3, %v5782_v63  ;;  %v9031_v46 = vcombine.low %v7481_v52, %v7491_v31  ;;  %v7718_v7 = vsel %vm9968_vm13, %v7716_v53, %v7717_v38  ;;  %v12609_v23 = vld [vmem:[#allocation2 + $0xc8] sm:$0x1] }
 0x411   : > { %v9048_v48 = vcombine.low %v7722_v51, %v7725_v0  ;;  %v7550_v27 = vshll.u32 %v12578_v62, 16  ;;  %9380 = vmatmul.mubr.msk.bf16.vlgmr.msra.gmra.mrb[0].mxu1 %vm2755_vm3, %v5784_v60  ;;  %v9047_v24 = vcombine.low %v7715_v5, %v7718_v7  ;;  %v7543_v16 = vrot.slane %v7541_v44, 4  ;;  %v12618_v5 = vpop.permute.xlu0 %5641  ;;  %v12621_v0 = vpop.permute.xlu1 %5643  ;;  %v7579_v7 = vld [vmem:[#allocation2 + $0xcc] sm:$0xe] }
 0x412   : > { %v7546_v37 = vrot.slane %v7544_v43, 5  ;;  %v7554_v13 = vshrl.u32 %v12578_v62, 16  ;;  %7876 = vrot.lane.b32.xlu0 %v9031_v46, %s9833_s25  ;;  %v7560_v52 = vshll.u32 %v12595_v42, 16  ;;  %v7517_v34 = vshrl.u32 %v12599_v28, 16 }
 0x413   : > { %7958 = vrot.lane.b32.xlu1 %v9048_v48, %s9832_s24  ;;  %v7552_v11 = vrot.slane %v7550_v27, 5  ;;  %v7520_v45 = vshll.u32 %v12599_v28, 16  ;;  %v7526_v9 = vshll.u32 %v12605_v1, 16  ;;  %v7530_v38 = vshrl.u32 %v12605_v1, 16 }
 0x414   : > { %v7547_v35 = vor.u32 %v7546_v37, %v7543_v16  ;;  %v7556_v51 = vrot.slane %v7554_v13, 4  ;;  %v7562_v53 = vrot.slane %v7560_v52, 5  ;;  %v7519_v60 = vrot.slane %v7517_v34, 4  ;;  %v9783_v16 = vld [vmem:[%s12958_s2 + $0x10] sm:$0x3f]  }
 0x415   : > { %v7522_v63 = vrot.slane %v7520_v45, 5  ;;  %v7536_v31 = vshll.u32 %v12609_v23, 16  ;;  %v7528_v46 = vrot.slane %v7526_v9, 5  ;;  %v7532_v48 = vrot.slane %v7530_v38, 4  ;;  %v9785_v9 = vld [vmem:[#allocation2 + $0x28] sm:$0xf] }
 0x416   : > { %v7548_v44 = vrot.slane %v7547_v35, 4  ;;  %v7557_v43 = vor.u32 %v7556_v51, %v7552_v11  ;;  %7956 = vrot.lane.b32.xlu0 %v9047_v24, %s9832_s24  ;;  %v8085_v37 = vsel %vm2788_vm0, %v9783_v16, 0  ;;  %v9784_v51 = vld [vmem:[#allocation2 + $0x24] sm:$0xf]  ;;  %v9002_v29 = vrot.slane %v7579_v7, 9 }
 0x417   : > { %v7523_v27 = vor.u32 %v7522_v63, %v7519_v60  ;;  %v7533_v34 = vor.u32 %v7532_v48, %v7528_v46  ;;  %v7538_v45 = vrot.slane %v7536_v31, 5  ;;  %9412 = vmatpush3.bf16.msra.mxu1 %v8085_v37  ;;  %v8842_v38 = vcombine.low %v9784_v51, %v9785_v9  ;;  %v9787_v16 = vld [vmem:[#allocation2 + $0x1c] sm:$0xf]  ;;  %v12640_v37 = vpop.permute.xlu1 %5723 }
 0x418   : > { %v7553_v13 = vsel %vm9997_vm14, %v7548_v44, %v7552_v11  ;;  %v7558_v52 = vrot.slane %v7557_v43, 4  ;;  %v7735_v24 = vrot.slane %v12578_v62, 5  ;;  %v8841_v32 = vcombine.low %v9786_v55, %v9787_v16  ;;  %v7578_v44 = vld [vmem:[#allocation2 + $0xc0] sm:$0xe]  ;;  %v12634_v43 = vpop.permute.xlu0 %5721  ;;  %v9791_v16 = vld [vmem:[#allocation2 + $0x4c] sm:$0xf] }
 0x419   : > { %v7524_v35 = vrot.slane %v7523_v27, 4  ;;  %v7534_v63 = vrot.slane %v7533_v34, 4  ;;  %v7738_v11 = vrot.slane %v12595_v42, 5  ;;  %v5744_v48 = vsel %vm1751_vm15, %v8842_v38, %v12382_v56 }
 0x41a   : > { %v7563_v60 = vsel %vm9997_vm14, %v7558_v52, %v7562_v53  ;;  %v7736_v7 = vsel %vm9968_vm13, %v9002_v29, %v7735_v24  ;;  %v7737_v27 = vrot.slane %v7735_v24, 4  ;;  %v5741_v42 = vsel %vm1751_vm15, %v8841_v32, %v12376_v30  ;;  %v9788_v30 = vld [vmem:[#allocation2 + $0x30] sm:$0xf]  ;;  %v9789_v32 = vld [vmem:[#allocation2 + $0x34] sm:$0xf] }
 0x41b   : > { %v9034_v31 = vcombine.low %v7553_v13, %v7563_v60  ;;  %v7529_v53 = vsel %vm9997_vm14, %v7524_v35, %v7528_v46  ;;  %v7539_v55 = vsel %vm9997_vm14, %v7534_v63, %v7538_v45  ;;  %v7728_v13 = vrot.slane %v12605_v1, 5  ;;  %v12669_v24 = vpop.permute.xlu1 %5647  ;;  %v9790_v63 = vld [vmem:[#allocation2 + $0x48] sm:$0xf] }
 0x41c   : > { %v9033_v56 = vcombine.low %v7529_v53, %v7539_v55  ;;  %v7739_v29 = vsel %vm9968_vm13, %v7737_v27, %v7738_v11  ;;  %v9001_v52 = vrot.slane %v7578_v44, 9  ;;  %v5786_v34 = vsel %vm1800_vm1, %v5741_v42, %v12419_v54  ;;  %v12664_v38 = vpop.permute.xlu0 %5645  ;;  %v9793_v44 = vld [vmem:[#allocation2 + $0x40] sm:$0xf]  ;;  %v9795_v42 = vld [vmem:[#allocation2 + $0x64] sm:$0xf] }
 0x41d   : > { %7882 = vrot.lane.b32.xlu1 %v9034_v31, %s9833_s25  ;;  %v9050_v51 = vcombine.low %v7736_v7, %v7739_v29  ;;  %v7730_v46 = vrot.slane %v7728_v13, 4  ;;  %v7731_v17 = vrot.slane %v12609_v23, 5  ;;  %v5788_v45 = vsel %vm1800_vm1, %v5744_v48, %v12422_v10  ;;  %9383 = vmatprep.mubr.msk.bf16.mxu1 %vm2755_vm3, %v5786_v34  ;;  %v9794_v55 = vld [vmem:[#allocation2 + $0x60] sm:$0xf] }
 0x41e   : > { %7880 = vrot.lane.b32.xlu0 %v9033_v56, %s9833_s25  ;;  %9384 = vmatmul.mubr.msk.bf16.gmra.mrb[4].mxu1 %vm2755_vm3, %v5788_v45  ;;  %v8843_v35 = vcombine.low %v9788_v30, %v9789_v32  ;;  %v7729_v9 = vsel %vm9968_vm13, %v9001_v52, %v7728_v13  ;;  %v8845_v11 = vcombine.low %v9790_v63, %v9791_v16  ;;  %v9797_v56 = vld [vmem:[#allocation2 + $0x58] sm:$0xf] }
 0x41f   : > { %v7732_v54 = vsel %vm9968_vm13, %v7730_v46, %v7731_v17  ;;  %v8844_v31 = vcombine.low %v9792_v36, %v9793_v44  ;;  %v12684_v53 = vpop.permute.xlu1 %5727  ;;  %v8847_v13 = vcombine.low %v9794_v55, %v9795_v42  ;;  %v9018_v46 = vcombine.low %v12573_v6, %v12578_v62  ;;  %v12816_v6 = vld [vmem:[%s12960_s4] ss:$0 sm:$0xff] }
 0x420   : > { %v9049_v10 = vcombine.low %v7729_v9, %v7732_v54  ;;  %v5747_v23 = vsel %vm1751_vm15, %v8843_v35, %v12434_v33  ;;  %v5753_v48 = vsel %vm1751_vm15, %v8845_v11, %v12492_v4  ;;  %v5726_v27 = vpop.permute.xlu0 %5725  ;;  %v9796_v4 = vld [vmem:[#allocation2 + $0x54] sm:$0xf]  ;;  %v9017_v17 = vcombine.low %v12599_v28, %v12605_v1  ;;  %v9798_v35 = vld [vmem:[#allocation2 + $0x78] sm:$0xf]  ;;  %v9799_v9 = vld [vmem:[#allocation2 + $0x7c] sm:$0xf] }
 0x421   : > { %7962 = vrot.lane.b32.xlu1 %v9050_v51, %s9832_s24  ;;  %v5790_v60 = vsel %vm1800_vm1, %v5747_v23, %v12476_v40  ;;  %v5750_v33 = vsel %vm1751_vm15, %v8844_v31, %v12440_v8  ;;  %v5794_v7 = vsel %vm1800_vm1, %v5753_v48, %v12530_v58  ;;  %v8846_v29 = vcombine.low %v9796_v4, %v9797_v56  ;;  %v9800_v23 = vld [vmem:[#allocation2 + $0x6c] sm:$0xf]  ;;  %v9802_v31 = vld [vmem:[#allocation2 + $0x90] sm:$0xf]  ;;  %v9803_v48 = vld [vmem:[#allocation2 + $0x94] sm:$0xf] }
 0x422   : > { %7960 = vrot.lane.b32.xlu0 %v9049_v10, %s9832_s24  ;;  %9387 = vmatprep.mubr.msk.bf16.mxu1 %vm2755_vm3, %v5790_v60  ;;  %v5792_v40 = vsel %vm1800_vm1, %v5750_v33, %v12481_v22  ;;  %v9014_v8 = vcombine.low %v12445_v21, %v12450_v41  ;;  %v9013_v58 = vcombine.low %v12467_v50, %v12473_v25  ;;  %v9801_v60 = vld [vmem:[#allocation2 + $0x70] sm:$0xf]  ;;  %v9806_v4 = vld [vmem:[#allocation2 + $0xa8] sm:$0xf]  ;;  %v9807_v56 = vld [vmem:[#allocation2 + $0xac] sm:$0xf] }
 0x423   : > { %v9016_v22 = vcombine.low %v12506_v49, %v12518_v12  ;;  %v5759_v52 = vsel %vm1751_vm15, %v8847_v13, %v12556_v57  ;;  %v9015_v51 = vcombine.low %v12528_v47, %v12542_v20  ;;  %v5756_v45 = vsel %vm1751_vm15, %v8846_v29, %v12496_v61  ;;  %v5652_v32 = vpop.permute.xlu1 %5651  ;;  %v8282_v28 = vld [vmem:[%s9897_s23 + $0x10] sm:$0xff] }
 0x424   : > { %v5798_v30 = vsel %vm1800_vm1, %v5759_v52, %v12580_v39  ;;  %v5796_v57 = vsel %vm1800_vm1, %v5756_v45, %v12536_v18  ;;  %v8849_v54 = vcombine.low %v9798_v35, %v9799_v9  ;;  %v8848_v63 = vcombine.low %v9800_v23, %v9801_v60  ;;  %v9808_v52 = vld [vmem:[#allocation2 + $0x9c] sm:$0xf]  ;;  %v9809_v45 = vld [vmem:[#allocation2 + $0xa0] sm:$0xf]  ;;  %v9810_v9 = vld [vmem:[#allocation2 + $0x18] sm:$0xf] }
 0x425   : > { %v5650_v34 = vpop.permute.xlu0 %5649  ;;  %v8851_v33 = vcombine.low %v9802_v31, %v9803_v48  ;;  %v8853_v29 = vcombine.low %v9806_v4, %v9807_v56  ;;  %v9814_v48 = vld [vmem:[#allocation2 + $0x30] sm:$0xf]  ;;  %v9819_v4 = vld [vmem:[#allocation2 + $0x4c] sm:$0xf] }
 0x426   : > { %9388 = vmatmul.mubr.msk.bf16.gmra.mrb[8].mxu1 %vm2755_vm3, %v5792_v40  ;;  %v5765_v61 = vsel %vm1751_vm15, %v8849_v54, %v12618_v5  ;;  %v5762_v39 = vsel %vm1751_vm15, %v8848_v63, %v12558_v59  ;;  %v9805_v5 = vld [vmem:[#allocation2 + $0x88] sm:$0xf]  ;;  %v9811_v54 = vld [vmem:[#allocation2 + $0x1c] sm:$0xf]  ;;  %v9812_v63 = vld [vmem:[#allocation2 + $0xb4] sm:$0xf] }
 0x427   : > { %9391 = vmatprep.mubr.msk.bf16.mxu1 %vm2755_vm3, %v5794_v7  ;;  %v5732_v16 = vpop.permute.xlu1 %5731  ;;  %v5802_v18 = vsel %vm1800_vm1, %v5765_v61, %v12634_v43  ;;  %v5800_v11 = vsel %vm1800_vm1, %v5762_v39, %v12589_v15  ;;  %v9804_v7 = vld [vmem:[#allocation2 + $0x84] sm:$0xf]  ;;  %v5771_v59 = vsel %vm1751_vm15, %v8851_v33, %v12664_v38  ;;  %v8852_v38 = vcombine.low %v9808_v52, %v9809_v45  ;;  %v9815_v33 = vld [vmem:[#allocation2 + $0x34] sm:$0xf]  ;;  %v9821_v52 = vld [vmem:[#allocation2 + $0x40] sm:$0xf] }
 0x428   : > { %v8850_v40 = vcombine.low %v9804_v7, %v9805_v5  ;;  %v5806_v15 = vsel %vm1800_vm1, %v5771_v59, %v5726_v27  ;;  %v9003_v23 = vcombine.low %v9810_v9, %v9811_v54  ;;  %v9005_v7 = vcombine.low %v9814_v48, %v9815_v33  ;;  %v9816_v5 = vld [vmem:[#allocation2 + $0x24] sm:$0xf]  ;;  %v9822_v9 = vld [vmem:[#allocation2 + $0x54] sm:$0xf]  ;;  %v9823_v54 = vld [vmem:[#allocation2 + $0x58] sm:$0xf] }
 0x429   : > { %v5730_v10 = vpop.permute.xlu0 %5729  ;;  %v5774_v27 = vsel %vm1751_vm15, %v8852_v38, %v12669_v24 }
 0x42a   : > { %v5768_v43 = vsel %vm1751_vm15, %v8850_v40, %v12621_v0  ;;  %v5808_v35 = vsel %vm1800_vm1, %v5774_v27, %v12684_v53  ;;  %v9817_v40 = vld [vmem:[#allocation2 + $0x28] sm:$0xf] }
 0x42b   : > { %v5804_v55 = vsel %vm1800_vm1, %v5768_v43, %v12640_v37  ;;  %v9004_v59 = vcombine.low %v9816_v5, %v9817_v40  ;;  %v13009_v5 = vld [vmem:[#allocation6_spill] sm:$0xff] }
 0x42e   : > { %9392 = vmatmul.mubr.msk.bf16.gmra.mrb[12].mxu1 %vm2755_vm3, %v5796_v57 }
 0x42f   : > { %9395 = vmatprep.mubr.msk.bf16.mxu1 %vm2755_vm3, %v5798_v30  ;;  %v5777_v30 = vsel %vm1751_vm15, %v8853_v29, %v5650_v34  ;;  %v9813_v34 = vld [vmem:[#allocation2 + $0xb8] sm:$0xf]  ;;  %v9820_v29 = vld [vmem:[#allocation2 + $0x3c] sm:$0xf] }
 0x430   : > { %v7855_v44 = vpop.permute.xlu1 %7854  ;;  %v5810_v37 = vsel %vm1800_vm1, %v5777_v30, %v5730_v10  ;;  %v8854_v61 = vcombine.low %v9812_v63, %v9813_v34  ;;  %v9006_v45 = vcombine.low %v9820_v29, %v9821_v52 }
 0x432   : > { %v5780_v10 = vsel %vm1751_vm15, %v8854_v61, %v5652_v32  ;;  %v7969_v32 = vsel %vm1751_vm15, %v9004_v59, %v7855_v44 }
 0x433   : > { %v7853_v36 = vpop.permute.xlu0 %7852  ;;  %v5812_v53 = vsel %vm1800_vm1, %v5780_v10, %v5732_v16 }
 0x434   : > { %v7935_v13 = vpop.permute.xlu1 %7934  ;;  %v7966_v24 = vsel %vm1751_vm15, %v9003_v23, %v7853_v36  ;;  %v9008_v23 = vcombine.low %v9822_v9, %v9823_v54 }
 0x435   : > { %v8015_v16 = vsel %vm1800_vm1, %v7969_v32, %v7935_v13 }
 0x436   : > { %9396 = vmatmul.mubr.msk.bf16.gmra.mrb[16].mxu1 %vm2755_vm3, %v5800_v11 }
 0x437   : > { %9399 = vmatprep.mubr.msk.bf16.mxu1 %vm2755_vm3, %v5802_v18  ;;  %v7933_v42 = vpop.permute.xlu0 %7932 }
 0x438   : > { %v8013_v18 = vsel %vm1800_vm1, %v7966_v24, %v7933_v42  ;;  %v9818_v42 = vld [vmem:[#allocation2 + $0x48] sm:$0xf] }
 0x439   : > { %v9007_v56 = vcombine.low %v9818_v42, %v9819_v4 }
 0x43e   : > { %9400 = vmatmul.mubr.msk.bf16.gmra.mrb[20].mxu1 %vm2755_vm3, %v5804_v55  ;;  %v7859_v57 = vpop.permute.xlu1 %7858 }
 0x43f   : > { %9403 = vmatprep.mubr.msk.bf16.mxu1 %vm2755_vm3, %v5806_v15  ;;  %v7975_v44 = vsel %vm1751_vm15, %v9006_v45, %v7859_v57 }
 0x440   : > { %v7857_v0 = vpop.permute.xlu0 %7856 }
 0x441   : > { %v7972_v36 = vsel %vm1751_vm15, %v9005_v7, %v7857_v0  ;;  %v13008_v7 = vld [vmem:[#allocation8_spill] sm:$0xff] }
 0x442   : > { %v7939_v39 = vpop.permute.xlu1 %7938 }
 0x443   : > { %v8019_v27 = vsel %vm1800_vm1, %v7975_v44, %v7939_v39 }
 0x444   : > { %v7937_v60 = vpop.permute.xlu0 %7936 }
 0x445   : > { %v8017_v43 = vsel %vm1800_vm1, %v7972_v36, %v7937_v60 }
 0x446   : > { %9404 = vmatmul.mubr.msk.bf16.gmra.mrb[24].mxu1 %vm2755_vm3, %v5808_v35 }
 0x447   : > { %9407 = vmatprep.mubr.msk.bf16.mxu1 %vm2755_vm3, %v5810_v37  ;;  %v9009_v37 = vcombine.low %v12339_v3, %v12345_v14  ;;  %v9010_v3 = vcombine.low %v12313_v26, %v12318_v2  ;;  %v13007_v14 = vld [vmem:[#allocation7_spill] sm:$0xff]  ;;  %v9012_v26 = vcombine.low %v13009_v5, %v13008_v7 }
 0x448   : > { %v9011_v10 = vcombine.low %v13007_v14, %v12410_v19 }
 0x44b   : > { %v7863_v31 = vpop.permute.xlu1 %7862 }
 0x44c   : > { %v7981_v57 = vsel %vm1751_vm15, %v9008_v23, %v7863_v31 }
 0x44e   : > { %9408 = vmatmul.mubr.msk.bf16.gmra.mrb[28].mxu1 %vm2755_vm3, %v5812_v53  ;;  %v7861_v11 = vpop.permute.xlu0 %7860 }
 0x44f   : > { %9413 = vmatprep.mubr.msk.bf16.mxu1 %vm2755_vm3, %v8013_v18  ;;  %v7943_v55 = vpop.permute.xlu1 %7942  ;;  %v7978_v38 = vsel %vm1751_vm15, %v9007_v56, %v7861_v11 }
 0x450   : > { %v8023_v61 = vsel %vm1800_vm1, %v7981_v57, %v7943_v55 }
 0x452   : > { %v7941_v15 = vpop.permute.xlu0 %7940 }
 0x453   : > { %v8021_v0 = vsel %vm1800_vm1, %v7978_v38, %v7941_v15  ;;  %v8283_v38 = vld [vmem:[%s9897_s23 + $0x18] sm:$0xff] }
 0x456   : > { %9414 = vmatmul.mubr.msk.bf16.vlgmr.msra.gmra.mrb[0].mxu1 %vm2755_vm3, %v8015_v16 }
 0x457   : > { %9417 = vmatprep.mubr.msk.bf16.mxu1 %vm2755_vm3, %v8017_v43 }
 0x459   : > { %v7867_v13 = vpop.permute.xlu1 %7866 }
 0x45a   : > { %v7987_v18 = vsel %vm1751_vm15, %v9010_v3, %v7867_v13  ;;  %v8281_v13 = vld [vmem:[%s9897_s23 + $0x8] sm:$0xff] }
 0x45b   : > { %v7865_v30 = vpop.permute.xlu0 %7864 }
 0x45c   : > { %v7984_v63 = vsel %vm1751_vm15, %v9009_v37, %v7865_v30 }
 0x45d   : > { %v7947_v60 = vpop.permute.xlu1 %7946 }
 0x45e   : > { %9418 = vmatmul.mubr.msk.bf16.gmra.mrb[4].mxu1 %vm2755_vm3, %v8019_v27  ;;  %v8027_v53 = vsel %vm1800_vm1, %v7987_v18, %v7947_v60 }
 0x45f   : > { %9421 = vmatprep.mubr.msk.bf16.mxu1 %vm2755_vm3, %v8021_v0  ;;  %v7945_v35 = vpop.permute.xlu0 %7944 }
 0x460   : > { %v8025_v34 = vsel %vm1800_vm1, %v7984_v63, %v7945_v35 }
 0x466   : > { %9422 = vmatmul.mubr.msk.bf16.gmra.mrb[8].mxu1 %vm2755_vm3, %v8023_v61  ;;  %v7871_v39 = vpop.permute.xlu1 %7870 }
 0x467   : > { %9425 = vmatprep.mubr.msk.bf16.mxu1 %vm2755_vm3, %v8025_v34  ;;  %v7993_v2 = vsel %vm1751_vm15, %v9012_v26, %v7871_v39  ;;  %v8286_v34 = vld [vmem:[%s9897_s23 + $0x30] sm:$0xff] }
 0x469   : > { %v7869_v24 = vpop.permute.xlu0 %7868 }
 0x46a   : > { %v7990_v11 = vsel %vm1751_vm15, %v9011_v10, %v7869_v24  ;;  %v7951_v48 = vpop.permute.xlu1 %7950  ;;  %v8284_v24 = vld [vmem:[%s9897_s23 + $0x20] sm:$0xff]  ;;  %v8287_v10 = vld [vmem:[%s9897_s23 + $0x38] sm:$0xff] }
 0x46b   : > { %v8031_v40 = vsel %vm1800_vm1, %v7993_v2, %v7951_v48 }
 0x46d   : > { %v7949_v31 = vpop.permute.xlu0 %7948 }
 0x46e   : > { %9426 = vmatmul.mubr.msk.bf16.gmra.mrb[12].mxu1 %vm2755_vm3, %v8027_v53  ;;  %v8029_v33 = vsel %vm1800_vm1, %v7990_v11, %v7949_v31  ;;  %v8285_v31 = vld [vmem:[%s9897_s23 + $0x28] sm:$0xff] }
 0x46f   : > { %9429 = vmatprep.mubr.msk.bf16.mxu1 %vm2755_vm3, %v8029_v33 }
 0x474   : > { %v7875_v19 = vpop.permute.xlu1 %7874 }
 0x475   : > { %v7999_v15 = vsel %vm1751_vm15, %v9014_v8, %v7875_v19 }
 0x476   : > { %v7873_v59 = vpop.permute.xlu0 %7872  ;;  %9430 = vmatmul.mubr.msk.bf16.gmra.mrb[16].mxu1 %vm2755_vm3, %v8031_v40 }
 0x477   : > { %v7996_v36 = vsel %vm1751_vm15, %v9013_v58, %v7873_v59 }
 0x478   : > { %v7955_v43 = vpop.permute.xlu1 %7954 }
 0x479   : > { %v8035_v55 = vsel %vm1800_vm1, %v7999_v15, %v7955_v43 }
 0x47a   : > { %v7953_v32 = vpop.permute.xlu0 %7952 }
 0x47b   : > { %v8033_v16 = vsel %vm1800_vm1, %v7996_v36, %v7953_v32  ;;  %v8290_v36 = vld [vmem:[%s9897_s23 + $0x50] sm:$0xff] }
 0x47c   : > { %9433 = vmatprep.mubr.msk.bf16.mxu1 %vm2755_vm3, %v8033_v16  ;;  %v8288_v16 = vld [vmem:[%s9897_s23 + $0x40] sm:$0xff] }
 0x47e   : > { %9434 = vmatmul.mubr.msk.bf16.gmra.mrb[20].mxu1 %vm2755_vm3, %v8035_v55 }
 0x481   : > { %v7879_v42 = vpop.permute.xlu1 %7878 }
 0x482   : > { %v8005_v21 = vsel %vm1751_vm15, %v9016_v22, %v7879_v42  ;;  %v8291_v42 = vld [vmem:[%s9897_s23 + $0x58] sm:$0xff] }
 0x484   : > { %v7877_v4 = vpop.permute.xlu0 %7876 }
 0x485   : > { %v7959_v50 = vpop.permute.xlu1 %7958  ;;  %v8002_v25 = vsel %vm1751_vm15, %v9015_v51, %v7877_v4 }
 0x486   : > { %v8039_v8 = vsel %vm1800_vm1, %v8005_v21, %v7959_v50 }
 0x488   : > { %v7957_v58 = vpop.permute.xlu0 %7956 }
 0x489   : > { %v8037_v41 = vsel %vm1800_vm1, %v8002_v25, %v7957_v58  ;;  %v8289_v58 = vld [vmem:[%s9897_s23 + $0x48] sm:$0xff] }
 0x48a   : > { %9437 = vmatprep.mubr.msk.bf16.mxu1 %vm2755_vm3, %v8037_v41 }
 0x48b   : > { %9438 = vmatmul.mubr.msk.bf16.gmra.mrb[24].mxu1 %vm2755_vm3, %v8039_v8 }
 0x48f   : > { %v7883_v56 = vpop.permute.xlu1 %7882 }
 0x490   : > { %v7881_v47 = vpop.permute.xlu0 %7880  ;;  %v8011_v20 = vsel %vm1751_vm15, %v9018_v46, %v7883_v56 }
 0x491   : > { %v8008_v12 = vsel %vm1751_vm15, %v9017_v17, %v7881_v47  ;;  %v8280_v17 = vld [vmem:[%s9897_s23] sm:$0xff] }
 0x493   : > { %v7963_v49 = vpop.permute.xlu1 %7962 }
 0x494   : > { %v7961_v22 = vpop.permute.xlu0 %7960  ;;  %v8043_v29 = vsel %vm1800_vm1, %v8011_v20, %v7963_v49 }
 0x495   : > { %v8041_v51 = vsel %vm1800_vm1, %v8008_v12, %v7961_v22 }
 0x496   : > { %9441 = vmatprep.mubr.msk.bf16.mxu1 %vm2755_vm3, %v8041_v51  ;;  %v8294_v51 = vld [vmem:[%s9897_s23 + $0x70] sm:$0xff] }
 0x497   : > { %9442 = vmatmul.mubr.msk.bf16.gmra.mrb[28].mxu1 %vm2755_vm3, %v8043_v29 }
 0x529   : > { %v9415_v62 = vpop.f32.mrb[0].mxu1 }
 0x52a   : > { %v8321_v1 = vadd.f32 %v9415_v62, %v12816_v6  ;;  %v8121_v46 = vpop.f32.mrb[1].mxu1 }
 0x52b   : > { %v8319_v52 = vadd.f32 %v12816_v6, %v8121_v46  ;;  %v9416_v45 = vpop.f32.mrb[2].mxu1 }
 0x52c   : > { %v8353_v30 = vadd.f32 %v8321_v1, %v8282_v28  ;;  %v8322_v44 = vadd.f32 %v9416_v45, %v12816_v6  ;;  %v8124_v0 = vpop.f32.mrb[3].mxu1  ;;  %v8292_v28 = vld [vmem:[%s9897_s23 + $0x60] sm:$0xff] }
 0x52d   : > { %v8351_v27 = vadd.f32 %v8319_v52, %v8280_v17  ;;  %v8320_v37 = vadd.f32 %v12816_v6, %v8124_v0  ;;  %v8295_v17 = vld [vmem:[%s9897_s23 + $0x78] sm:$0xff] }
 0x52e   : > { %v8385_v35 = vmax.f32 %v8353_v30, 0.0  ;;  %v8354_v9 = vadd.f32 %v8322_v44, %v8283_v38  ;;  %v8293_v30 = vld [vmem:[%s9897_s23 + $0x68] sm:$0xff] }
 0x52f   : > { %v8383_v54 = vmax.f32 %v8351_v27, 0.0  ;;  %v8352_v23 = vadd.f32 %v8320_v37, %v8281_v13 }
 0x530   : > { %8417 = vst.msk [vmem:[%s12830_s6 + $0x10] sm:$0xff] %vm1751_vm15, %v8385_v35  ;;  %v8386_v60 = vmax.f32 %v8354_v9, 0.0 }
 0x531   : > { %8415 = vst.msk [vmem:[%s12830_s6] sm:$0xff] %vm1751_vm15, %v8383_v54  ;;  %v8384_v63 = vmax.f32 %v8352_v23, 0.0  ;;  %v9419_v57 = vpop.f32.mrb[4].mxu1 }
 0x532   : > { %8418 = vst.msk [vmem:[%s12830_s6 + $0x18] sm:$0xff] %vm1751_vm15, %v8386_v60  ;;  %v8325_v61 = vadd.f32 %v9419_v57, %v12816_v6  ;;  %v8137_v39 = vpop.f32.mrb[5].mxu1  ;;  %v8298_v60 = vld [vmem:[%s9897_s23 + $0x90] sm:$0xff] }
 0x533   : > { %8416 = vst.msk [vmem:[%s12830_s6 + $0x8] sm:$0xff] %vm1751_vm15, %v8384_v63  ;;  %v8323_v3 = vadd.f32 %v12816_v6, %v8137_v39  ;;  %v9420_v14 = vpop.f32.mrb[6].mxu1 }
 0x534   : > { %v8357_v18 = vadd.f32 %v8325_v61, %v8286_v34  ;;  %v8326_v53 = vadd.f32 %v9420_v14, %v12816_v6  ;;  %v8140_v11 = vpop.f32.mrb[7].mxu1  ;;  %v8296_v34 = vld [vmem:[%s9897_s23 + $0x80] sm:$0xff] }
 0x535   : > { %v8355_v48 = vadd.f32 %v8323_v3, %v8284_v24  ;;  %v8324_v33 = vadd.f32 %v12816_v6, %v8140_v11  ;;  %v8299_v24 = vld [vmem:[%s9897_s23 + $0x98] sm:$0xff] }
 0x536   : > { %v8389_v7 = vmax.f32 %v8357_v18, 0.0  ;;  %v8358_v5 = vadd.f32 %v8326_v53, %v8287_v10  ;;  %v8297_v18 = vld [vmem:[%s9897_s23 + $0x88] sm:$0xff] }
 0x537   : > { %v8387_v26 = vmax.f32 %v8355_v48, 0.0  ;;  %v8356_v2 = vadd.f32 %v8324_v33, %v8285_v31 }
 0x538   : > { %8421 = vst.msk [vmem:[%s12830_s6 + $0x30] sm:$0xff] %vm1751_vm15, %v8389_v7  ;;  %v8390_v19 = vmax.f32 %v8358_v5, 0.0 }
 0x539   : > { %8419 = vst.msk [vmem:[%s12830_s6 + $0x20] sm:$0xff] %vm1751_vm15, %v8387_v26  ;;  %v8388_v40 = vmax.f32 %v8356_v2, 0.0  ;;  %v9423_v59 = vpop.f32.mrb[8].mxu1 }
 0x53a   : > { %8422 = vst.msk [vmem:[%s12830_s6 + $0x38] sm:$0xff] %vm1751_vm15, %v8390_v19  ;;  %v8329_v32 = vadd.f32 %v9423_v59, %v12816_v6  ;;  %v8153_v43 = vpop.f32.mrb[9].mxu1  ;;  %v8302_v19 = vld [vmem:[%s9897_s23 + $0xb0] sm:$0xff] }
 0x53b   : > { %8420 = vst.msk [vmem:[%s12830_s6 + $0x28] sm:$0xff] %vm1751_vm15, %v8388_v40  ;;  %v8327_v15 = vadd.f32 %v12816_v6, %v8153_v43  ;;  %v9424_v55 = vpop.f32.mrb[10].mxu1 }
 0x53c   : > { %v8361_v4 = vadd.f32 %v8329_v32, %v8290_v36  ;;  %v8330_v50 = vadd.f32 %v9424_v55, %v12816_v6  ;;  %v8156_v25 = vpop.f32.mrb[11].mxu1  ;;  %v8300_v36 = vld [vmem:[%s9897_s23 + $0xa0] sm:$0xff] }
 0x53d   : > { %v8359_v21 = vadd.f32 %v8327_v15, %v8288_v16  ;;  %v8328_v41 = vadd.f32 %v12816_v6, %v8156_v25  ;;  %v8303_v16 = vld [vmem:[%s9897_s23 + $0xb8] sm:$0xff] }
 0x53e   : > { %v8393_v8 = vmax.f32 %v8361_v4, 0.0  ;;  %v8362_v56 = vadd.f32 %v8330_v50, %v8291_v42  ;;  %v8301_v4 = vld [vmem:[%s9897_s23 + $0xa8] sm:$0xff] }
 0x53f   : > { %v8391_v47 = vmax.f32 %v8359_v21, 0.0  ;;  %v8360_v20 = vadd.f32 %v8328_v41, %v8289_v58 }
 0x540   : > { %8425 = vst.msk [vmem:[%s12830_s6 + $0x50] sm:$0xff] %vm1751_vm15, %v8393_v8  ;;  %v8394_v49 = vmax.f32 %v8362_v56, 0.0 }
 0x541   : > { %8423 = vst.msk [vmem:[%s12830_s6 + $0x40] sm:$0xff] %vm1751_vm15, %v8391_v47  ;;  %v8392_v12 = vmax.f32 %v8360_v20, 0.0  ;;  %v9427_v22 = vpop.f32.mrb[12].mxu1 }
 0x542   : > { %8426 = vst.msk [vmem:[%s12830_s6 + $0x58] sm:$0xff] %vm1751_vm15, %v8394_v49  ;;  %v8333_v29 = vadd.f32 %v9427_v22, %v12816_v6  ;;  %v8169_v62 = vpop.f32.mrb[13].mxu1  ;;  %v8306_v49 = vld [vmem:[%s9897_s23 + $0xd0] sm:$0xff] }
 0x543   : > { %8424 = vst.msk [vmem:[%s12830_s6 + $0x48] sm:$0xff] %vm1751_vm15, %v8392_v12  ;;  %v8331_v1 = vadd.f32 %v12816_v6, %v8169_v62  ;;  %v9428_v46 = vpop.f32.mrb[14].mxu1 }
 0x544   : > { %v8365_v52 = vadd.f32 %v8333_v29, %v8294_v51  ;;  %v8334_v45 = vadd.f32 %v9428_v46, %v12816_v6  ;;  %v8172_v38 = vpop.f32.mrb[15].mxu1  ;;  %v8304_v51 = vld [vmem:[%s9897_s23 + $0xc0] sm:$0xff] }
 0x545   : > { %v8363_v44 = vadd.f32 %v8331_v1, %v8292_v28  ;;  %v8332_v0 = vadd.f32 %v12816_v6, %v8172_v38  ;;  %v8307_v28 = vld [vmem:[%s9897_s23 + $0xd8] sm:$0xff] }
 0x546   : > { %v8397_v13 = vmax.f32 %v8365_v52, 0.0  ;;  %v8366_v27 = vadd.f32 %v8334_v45, %v8295_v17  ;;  %v8305_v52 = vld [vmem:[%s9897_s23 + $0xc8] sm:$0xff] }
 0x547   : > { %v8395_v37 = vmax.f32 %v8363_v44, 0.0  ;;  %v8364_v35 = vadd.f32 %v8332_v0, %v8293_v30 }
 0x548   : > { %8429 = vst.msk [vmem:[%s12830_s6 + $0x70] sm:$0xff] %vm1751_vm15, %v8397_v13  ;;  %v8398_v9 = vmax.f32 %v8366_v27, 0.0 }
 0x549   : > { %8427 = vst.msk [vmem:[%s12830_s6 + $0x60] sm:$0xff] %vm1751_vm15, %v8395_v37  ;;  %v8396_v54 = vmax.f32 %v8364_v35, 0.0  ;;  %v9431_v23 = vpop.f32.mrb[16].mxu1 }
 0x54a   : > { %8430 = vst.msk [vmem:[%s12830_s6 + $0x78] sm:$0xff] %vm1751_vm15, %v8398_v9  ;;  %v8337_v63 = vadd.f32 %v9431_v23, %v12816_v6  ;;  %v8185_v57 = vpop.f32.mrb[17].mxu1  ;;  %v8310_v9 = vld [vmem:[%s9897_s23 + $0xf0] sm:$0xff] }
 0x54b   : > { %8428 = vst.msk [vmem:[%s12830_s6 + $0x68] sm:$0xff] %vm1751_vm15, %v8396_v54  ;;  %v8335_v61 = vadd.f32 %v12816_v6, %v8185_v57  ;;  %v9432_v39 = vpop.f32.mrb[18].mxu1 }
 0x54c   : > { %v8369_v3 = vadd.f32 %v8337_v63, %v8298_v60  ;;  %v8338_v14 = vadd.f32 %v9432_v39, %v12816_v6  ;;  %v8188_v10 = vpop.f32.mrb[19].mxu1  ;;  %v8308_v60 = vld [vmem:[%s9897_s23 + $0xe0] sm:$0xff] }
 0x54d   : > { %v8367_v53 = vadd.f32 %v8335_v61, %v8296_v34  ;;  %v8336_v11 = vadd.f32 %v12816_v6, %v8188_v10  ;;  %v8311_v34 = vld [vmem:[%s9897_s23 + $0xf8] sm:$0xff] }
 0x54e   : > { %v8401_v31 = vmax.f32 %v8369_v3, 0.0  ;;  %v8370_v48 = vadd.f32 %v8338_v14, %v8299_v24  ;;  %v8309_v3 = vld [vmem:[%s9897_s23 + $0xe8] sm:$0xff] }
 0x54f   : > { %v8399_v33 = vmax.f32 %v8367_v53, 0.0  ;;  %v8368_v7 = vadd.f32 %v8336_v11, %v8297_v18 }
 0x550   : > { %8433 = vst.msk [vmem:[%s12830_s6 + $0x90] sm:$0xff] %vm1751_vm15, %v8401_v31  ;;  %v8402_v5 = vmax.f32 %v8370_v48, 0.0 }
 0x551   : > { %8431 = vst.msk [vmem:[%s12830_s6 + $0x80] sm:$0xff] %vm1751_vm15, %v8399_v33  ;;  %v8400_v26 = vmax.f32 %v8368_v7, 0.0  ;;  %v9435_v2 = vpop.f32.mrb[20].mxu1 }
 0x552   : > { %8434 = vst.msk [vmem:[%s12830_s6 + $0x98] sm:$0xff] %vm1751_vm15, %v8402_v5  ;;  %v8341_v40 = vadd.f32 %v9435_v2, %v12816_v6  ;;  %v8201_v59 = vpop.f32.mrb[21].mxu1 }
 0x553   : > { %8432 = vst.msk [vmem:[%s12830_s6 + $0x88] sm:$0xff] %vm1751_vm15, %v8400_v26  ;;  %v8339_v32 = vadd.f32 %v12816_v6, %v8201_v59  ;;  %v9436_v43 = vpop.f32.mrb[22].mxu1 }
 0x554   : > { %v8373_v15 = vadd.f32 %v8341_v40, %v8302_v19  ;;  %v8342_v55 = vadd.f32 %v9436_v43, %v12816_v6  ;;  %v8204_v42 = vpop.f32.mrb[23].mxu1 }
 0x555   : > { %v8371_v50 = vadd.f32 %v8339_v32, %v8300_v36  ;;  %v8340_v25 = vadd.f32 %v12816_v6, %v8204_v42 }
 0x556   : > { %v8405_v58 = vmax.f32 %v8373_v15, 0.0  ;;  %v8374_v21 = vadd.f32 %v8342_v55, %v8303_v16 }
 0x557   : > { %v8403_v41 = vmax.f32 %v8371_v50, 0.0  ;;  %v8372_v8 = vadd.f32 %v8340_v25, %v8301_v4 }
 0x558   : > { %8437 = vst.msk [vmem:[%s12830_s6 + $0xb0] sm:$0xff] %vm1751_vm15, %v8405_v58  ;;  %v8406_v56 = vmax.f32 %v8374_v21, 0.0 }
 0x559   : > { %8435 = vst.msk [vmem:[%s12830_s6 + $0xa0] sm:$0xff] %vm1751_vm15, %v8403_v41  ;;  %v8404_v47 = vmax.f32 %v8372_v8, 0.0 }
 0x55a   : > { %8438 = vst.msk [vmem:[%s12830_s6 + $0xb8] sm:$0xff] %vm1751_vm15, %v8406_v56 }
 0x55b   : > { %8436 = vst.msk [vmem:[%s12830_s6 + $0xa8] sm:$0xff] %vm1751_vm15, %v8404_v47 }
 0x55e   : > { %v9439_v20 = vpop.f32.mrb[24].mxu1 }
 0x55f   : > { %v8345_v12 = vadd.f32 %v9439_v20, %v12816_v6  ;;  %v8217_v22 = vpop.f32.mrb[25].mxu1 }
 0x560   : > { %v8343_v29 = vadd.f32 %v12816_v6, %v8217_v22  ;;  %v9440_v62 = vpop.f32.mrb[26].mxu1 }
 0x561   : > { %v8377_v1 = vadd.f32 %v8345_v12, %v8306_v49  ;;  %v8346_v46 = vadd.f32 %v9440_v62, %v12816_v6  ;;  %v8220_v17 = vpop.f32.mrb[27].mxu1 }
 0x562   : > { %v8375_v45 = vadd.f32 %v8343_v29, %v8304_v51  ;;  %v8344_v38 = vadd.f32 %v12816_v6, %v8220_v17 }
 0x563   : > { %v8409_v30 = vmax.f32 %v8377_v1, 0.0  ;;  %v8378_v44 = vadd.f32 %v8346_v46, %v8307_v28 }
 0x564   : > { %v8407_v0 = vmax.f32 %v8375_v45, 0.0  ;;  %v8376_v13 = vadd.f32 %v8344_v38, %v8305_v52 }
 0x565   : > { %8441 = vst.msk [vmem:[%s12830_s6 + $0xd0] sm:$0xff] %vm1751_vm15, %v8409_v30  ;;  %v8410_v27 = vmax.f32 %v8378_v44, 0.0 }
 0x566   : > { %8439 = vst.msk [vmem:[%s12830_s6 + $0xc0] sm:$0xff] %vm1751_vm15, %v8407_v0  ;;  %v8408_v37 = vmax.f32 %v8376_v13, 0.0 }
 0x567   : > { %8442 = vst.msk [vmem:[%s12830_s6 + $0xd8] sm:$0xff] %vm1751_vm15, %v8410_v27 }
 0x568   : > { %8440 = vst.msk [vmem:[%s12830_s6 + $0xc8] sm:$0xff] %vm1751_vm15, %v8408_v37 }
 0x56a   : > { %v9443_v35 = vpop.f32.mrb[28].mxu1 }
 0x56b   : > { %v8349_v54 = vadd.f32 %v9443_v35, %v12816_v6  ;;  %v8233_v23 = vpop.f32.mrb[29].mxu1 }
 0x56c   : > { %v8347_v63 = vadd.f32 %v12816_v6, %v8233_v23  ;;  %v9444_v57 = vpop.f32.mrb[30].mxu1 }
 0x56d   : > { %v8381_v61 = vadd.f32 %v8349_v54, %v8310_v9  ;;  %v8350_v39 = vadd.f32 %v9444_v57, %v12816_v6  ;;  %v8236_v24 = vpop.f32.mrb[31].mxu1 }
 0x56e   : > { %v8379_v14 = vadd.f32 %v8347_v63, %v8308_v60  ;;  %v8348_v10 = vadd.f32 %v12816_v6, %v8236_v24 }
 0x56f   : > { %v8413_v18 = vmax.f32 %v8381_v61, 0.0  ;;  %v8382_v53 = vadd.f32 %v8350_v39, %v8311_v34 }
 0x570   : > { %v8411_v11 = vmax.f32 %v8379_v14, 0.0  ;;  %v8380_v31 = vadd.f32 %v8348_v10, %v8309_v3 }
 0x571   : > { %8445 = vst.msk [vmem:[%s12830_s6 + $0xf0] sm:$0xff] %vm1751_vm15, %v8413_v18  ;;  %v8414_v48 = vmax.f32 %v8382_v53, 0.0 }
 0x572   : > { %8443 = vst.msk [vmem:[%s12830_s6 + $0xe0] sm:$0xff] %vm1751_vm15, %v8411_v11  ;;  %v8412_v33 = vmax.f32 %v8380_v31, 0.0 }
 0x573   : > { %8446 = vst.msk [vmem:[%s12830_s6 + $0xf8] sm:$0xff] %vm1751_vm15, %v8414_v48 }
 0x574   : > { %8444 = vst.msk [vmem:[%s12830_s6 + $0xe8] sm:$0xff] %vm1751_vm15, %v8412_v33 }
 0x575 PF: > { %s15_s18 = sadd.s32 1, %s9830_s18  }
 0x576   : > { %p12_p4 = scmp.ge.s32.totalorder %s15_s18, 4  }
 0x578   :  { %14 = sbr.rel (!%p12_p4) target bundleno = 1 (0x1), region = 77 }

</bundles_post_ra>
